<compile_context>
chip_gen: v5e
topology: v5e:2x2
jax: 0.10.0
libtpu: 0.0.40
codegen_flags: <defaults>
</compile_context>

<pallas_src>
import numpy as np
import jax
import jax.numpy as jnp
from jax.experimental import pallas as pl
from jax.experimental.pallas import tpu as pltpu


# ------------------------- network geometry (16x16 in) ----------------------
_H0 = 16                    # input spatial size
_K = 3                      # conv kernel size
_H1 = _H0 - _K + 1          # 14 : conv1 output
_H2 = _H1 - _K + 1          # 12 : conv2 output
_HP = _H2 // 2              # 6  : after 2x2 max pool
_C = 32                     # conv channels
_S = _HP * _HP              # 36 pooled spatial positions
_FLAT = _C * _S             # 1152
_FC1 = 256
_PAD = 32                   # zero rows appended to h1 so shifted reads stay in bounds


# ------------------------------ Pallas kernel -------------------------------

def _emgnet_kernel(p1_ref, w1_ref, b1_ref, w2_ref, b2_ref, scale_ref, shift_ref,
                   sel_ref, wfc1_ref, bfc1_ref, wfc2_ref, bfc2_ref,
                   out_ref, h1_ref):
    n = out_ref.shape[0]            # batch size
    m1 = p1_ref.shape[0]            # n * 14 * 14

    # ---- conv1 + ReLU -> h1 scratch (rows in (n, i, j) scan order) ----------
    h1 = jnp.dot(p1_ref[...], w1_ref[...], preferred_element_type=jnp.float32)
    h1 = jnp.maximum(h1 + b1_ref[...], 0.0)
    h1_ref[0:m1, :] = h1
    # zero tail so the shifted reads below never touch garbage
    h1_ref[m1:m1 + _PAD, :] = jnp.zeros((_PAD, _C), jnp.float32)

    # ---- conv2 (pre-bias) at every 14x14 position: 9 constant-shift dots ----
    # (fused im2col: h1 never leaves VMEM; invalid edge rows are dropped below)
    h2full = jnp.zeros((m1, _C), jnp.float32)
    for kh in range(_K):
        for kw in range(_K):
            d = kh * _H1 + kw
            h2full = h2full + jnp.dot(h1_ref[d:d + m1, :],
                                      w2_ref[kh * _K + kw],
                                      preferred_element_type=jnp.float32)

    # ---- crop to valid 12x12 + regroup rows as (pool quadrant, spatial, n) ---
    # sel is a constant one-hot matrix; the MXU does the gather.
    h2 = jnp.dot(sel_ref[...], h2full, preferred_element_type=jnp.float32)

    # ---- conv2 bias + ReLU, then BatchNorm (running-stats affine) -----------
    h2 = jnp.maximum(h2 + b2_ref[...], 0.0) * scale_ref[...] + shift_ref[...]

    # ---- MaxPool2d(2, 2): max over the 4 quadrant chunks --------------------
    c = _S * n
    pooled = jnp.maximum(jnp.maximum(h2[0:c], h2[c:2 * c]),
                         jnp.maximum(h2[2 * c:3 * c], h2[3 * c:4 * c]))
    # pooled rows are ordered (spatial s = ip*6+jp, batch n); channels on lanes.

    # TODO(synk): Dropout(0.5) is the identity here (inference semantics).

    # ---- fc1: NCHW flatten folded into the pre-permuted weight layout -------
    acc = jnp.zeros((n, _FC1), jnp.float32)
    for s in range(_S):
        acc = acc + jnp.dot(pooled[s * n:(s + 1) * n, :],
                            wfc1_ref[s * _C:(s + 1) * _C, :],
                            preferred_element_type=jnp.float32)
    hfc = acc + bfc1_ref[...]

    # ---- fc2 -----------------------------------------------------------------
    out = jnp.dot(hfc, wfc2_ref[...], preferred_element_type=jnp.float32)
    out_ref[...] = (out + bfc2_ref[...]).astype(out_ref.dtype)


# ------------------------------- JAX wrapper --------------------------------

def _conv1_patches(x_nchw):
    """im2col for conv1 (Cin=1): rows = (n, i, j) scan order, cols = (kh, kw)."""
    n = x_nchw.shape[0]
    x = x_nchw[:, 0]                                        # (n, 16, 16)
    cols = [x[:, di:di + _H1, dj:dj + _H1]
            for di in range(_K) for dj in range(_K)]
    p1 = jnp.stack(cols, axis=-1)                           # (n, 14, 14, 9)
    return p1.reshape(n * _H1 * _H1, _K * _K)


def _build_sel(n):
    """One-hot matrix: crop the 14x14 conv2 map to the valid 12x12 grid and
    reorder rows as (pool quadrant q=di*2+dj, spatial s=ip*6+jp, batch)."""
    sel = np.zeros((4 * _S * n, _H1 * _H1 * n), np.float32)
    for di in range(2):
        for dj in range(2):
            q = di * 2 + dj
            for ip in range(_HP):
                for jp in range(_HP):
                    s = ip * _HP + jp
                    for b in range(n):
                        row = (q * _S + s) * n + b
                        col = b * _H1 * _H1 + (2 * ip + di) * _H1 + (2 * jp + dj)
                        sel[row, col] = 1.0
    return jnp.asarray(sel)


def _full_spec(shape):
    zeros = (0,) * len(shape)
    return pl.BlockSpec(shape, lambda i: zeros)


def emgnet_forward(x_nchw, params):
    n = x_nchw.shape[0]
    assert x_nchw.shape[1:] == (1, _H0, _H0), x_nchw.shape
    g = params["wfc2"].shape[1]

    p1 = _conv1_patches(x_nchw)                 # (n*196, 9)  -- only XLA prep
    sel = _build_sel(n)                         # compile-time constant
    m1 = n * _H1 * _H1

    operands = (p1, params["w1m"], params["b1"], params["w2s"], params["b2"],
                params["bn_scale"], params["bn_shift"], sel,
                params["wfc1p"], params["bfc1"], params["wfc2"], params["bfc2"])

    return pl.pallas_call(
        _emgnet_kernel,
        out_shape=jax.ShapeDtypeStruct((n, g), jnp.float32),
        grid=(1,),
        in_specs=[_full_spec(op.shape) for op in operands],
        out_specs=_full_spec((n, g)),
        scratch_shapes=[pltpu.VMEM((m1 + _PAD, _C), jnp.float32)],
        compiler_params=pltpu.CompilerParams(
            dimension_semantics=("arbitrary",)),
    )(*operands)


# ------------------------- parameters (synthetic) ---------------------------

def init_params(key, out_gesture):
    ks = jax.random.split(key, 12)

    def u(k, shape, fan_in):
        bound = 1.0 / jnp.sqrt(jnp.float32(fan_in))
        return jax.random.uniform(k, shape, jnp.float32, -bound, bound)

    w1 = u(ks[0], (32, 1, 3, 3), 9)            # conv1.weight
    b1 = u(ks[1], (32,), 9)                    # conv1.bias
    w2 = u(ks[2], (32, 32, 3, 3), 288)         # conv2.weight
    b2 = u(ks[3], (32,), 288)                  # conv2.bias

    gamma = 1.0 + 0.1 * jax.random.normal(ks[4], (32,), jnp.float32)
    beta = 0.1 * jax.random.normal(ks[5], (32,), jnp.float32)
    run_mean = 0.1 * jax.random.normal(ks[6], (32,), jnp.float32)
    run_var = 1.0 + 0.1 * jnp.abs(jax.random.normal(ks[7], (32,), jnp.float32))
    eps = 1e-5
    bn_scale = gamma / jnp.sqrt(run_var + eps)
    bn_shift = beta - run_mean * bn_scale

    wfc1 = u(ks[8], (_FC1, _FLAT), _FLAT)      # fc1.weight (256, 1152)
    bfc1 = u(ks[9], (_FC1,), _FLAT)
    wfc2 = u(ks[10], (out_gesture, _FC1), _FC1)
    bfc2 = u(ks[11], (out_gesture,), _FC1)

    # conv weights in im2col matmul layout: rows = (kh, kw, cin), cols = cout
    w1m = jnp.transpose(w1, (2, 3, 1, 0)).reshape(_K * _K, 32)
    w2m = jnp.transpose(w2, (2, 3, 1, 0)).reshape(_K * _K * 32, 32)
    # fc1 weight: (1152, 256) with rows in PyTorch flatten order c*36 + s ...
    wfc1_t = wfc1.T
    # ... permuted once so rows are (s, c) — this folds the NCHW flatten.
    wfc1p = wfc1_t.reshape(_C, _S, _FC1).transpose(1, 0, 2).reshape(_FLAT, _FC1)

    return {
        # kernel-layout parameters
        "w1m": w1m, "b1": b1.reshape(1, 32),
        "w2s": w2m.reshape(_K * _K, 32, 32), "b2": b2.reshape(1, 32),
        "bn_scale": bn_scale.reshape(1, 32), "bn_shift": bn_shift.reshape(1, 32),
        "wfc1p": wfc1p, "bfc1": bfc1.reshape(1, _FC1),
        "wfc2": wfc2.T, "bfc2": bfc2.reshape(1, out_gesture),
        # reference-layout parameters
        "w2m": w2m, "wfc1": wfc1_t,
    }


# -------------------------------- reference ----------------------------------

def _im2col(x_nhwc, k=3):
    n, h, w, c = x_nhwc.shape
    ho, wo = h - k + 1, w - k + 1
    cols = []
    for di in range(k):
        for dj in range(k):
            cols.append(x_nhwc[:, di:di + ho, dj:dj + wo, :])
    p = jnp.stack(cols, axis=3)                      # (n, ho, wo, k*k, c)
    return p.reshape(n * ho * wo, k * k * c), (ho, wo)


def reference_forward(x_nchw, params):
    n = x_nchw.shape[0]
    x = jnp.transpose(x_nchw, (0, 2, 3, 1))
    hp = jax.lax.Precision.HIGHEST

    p1, (h1h, h1w) = _im2col(x)
    h1 = jnp.maximum(jnp.dot(p1, params["w1m"], precision=hp) + params["b1"], 0.0)
    h1 = h1.reshape(n, h1h, h1w, 32)

    p2, (h2h, h2w) = _im2col(h1)
    h2 = jnp.maximum(jnp.dot(p2, params["w2m"], precision=hp) + params["b2"], 0.0)
    h2 = (h2 * params["bn_scale"] + params["bn_shift"]).reshape(n, h2h, h2w, 32)

    hp2, wp2 = h2h // 2, h2w // 2
    pooled = h2.reshape(n, hp2, 2, wp2, 2, 32).max(axis=(2, 4))

    flat = jnp.transpose(pooled, (0, 3, 1, 2)).reshape(n, 32 * hp2 * wp2)
    h = jnp.dot(flat, params["wfc1"], precision=hp) + params["bfc1"]
    return jnp.dot(h, params["wfc2"], precision=hp) + params["bfc2"]


# ----------------------------------- main ------------------------------------

if __name__ == "__main__":
    out_gesture = 8
    key = jax.random.PRNGKey(0)
    kx, kp = jax.random.split(key)

    x = jax.random.normal(kx, (2, 1, 16, 16), jnp.float32)   # NCHW
    params = init_params(kp, out_gesture)

    out = jax.jit(emgnet_forward)(x, params)
    out = jax.block_until_ready(out)

    assert out.shape == (2, out_gesture), out.shape
    ref = reference_forward(x, params)
    assert jnp.allclose(out, ref, rtol=2e-2, atol=2e-2), (out, ref)

    print("KERNEL_OK")
</pallas_src>

<mosaic_0001>
module attributes {stable_mosaic.version = 11 : i64} {
  func.func @_emgnet_kernel(%arg0: i32, %arg1: memref<392x9xf32, #tpu.memory_space<vmem>>, %arg2: memref<9x32xf32, #tpu.memory_space<vmem>>, %arg3: memref<1x32xf32, #tpu.memory_space<vmem>>, %arg4: memref<9x32x32xf32, #tpu.memory_space<vmem>>, %arg5: memref<1x32xf32, #tpu.memory_space<vmem>>, %arg6: memref<1x32xf32, #tpu.memory_space<vmem>>, %arg7: memref<1x32xf32, #tpu.memory_space<vmem>>, %arg8: memref<288x392xf32, #tpu.memory_space<vmem>>, %arg9: memref<1152x256xf32, #tpu.memory_space<vmem>>, %arg10: memref<1x256xf32, #tpu.memory_space<vmem>>, %arg11: memref<256x8xf32, #tpu.memory_space<vmem>>, %arg12: memref<1x8xf32, #tpu.memory_space<vmem>>, %arg13: memref<2x8xf32, #tpu.memory_space<vmem>>, %arg14: memref<424x32xf32, #tpu.memory_space<vmem>>) attributes {dimension_semantics = [#tpu.dimension_semantics<arbitrary>], iteration_bounds = array<i64: 1>, scalar_prefetch = 0 : i64, scratch_operands = 1 : i64, tpu.core_type = #tpu.core_type<tc>, window_params = [{pipeline_mode = #tpu.pipeline_mode<synchronous>, transform_indices = @transform_0, window_bounds = array<i64: 392, 9>}, {pipeline_mode = #tpu.pipeline_mode<synchronous>, transform_indices = @transform_1, window_bounds = array<i64: 9, 32>}, {pipeline_mode = #tpu.pipeline_mode<synchronous>, transform_indices = @transform_2, window_bounds = array<i64: 1, 32>}, {pipeline_mode = #tpu.pipeline_mode<synchronous>, transform_indices = @transform_3, window_bounds = array<i64: 9, 32, 32>}, {pipeline_mode = #tpu.pipeline_mode<synchronous>, transform_indices = @transform_4, window_bounds = array<i64: 1, 32>}, {pipeline_mode = #tpu.pipeline_mode<synchronous>, transform_indices = @transform_5, window_bounds = array<i64: 1, 32>}, {pipeline_mode = #tpu.pipeline_mode<synchronous>, transform_indices = @transform_6, window_bounds = array<i64: 1, 32>}, {pipeline_mode = #tpu.pipeline_mode<synchronous>, transform_indices = @transform_7, window_bounds = array<i64: 288, 392>}, {pipeline_mode = #tpu.pipeline_mode<synchronous>, transform_indices = @transform_8, window_bounds = array<i64: 1152, 256>}, {pipeline_mode = #tpu.pipeline_mode<synchronous>, transform_indices = @transform_9, window_bounds = array<i64: 1, 256>}, {pipeline_mode = #tpu.pipeline_mode<synchronous>, transform_indices = @transform_10, window_bounds = array<i64: 256, 8>}, {pipeline_mode = #tpu.pipeline_mode<synchronous>, transform_indices = @transform_11, window_bounds = array<i64: 1, 8>}, {pipeline_mode = #tpu.pipeline_mode<synchronous>, transform_indices = @transform_12, window_bounds = array<i64: 2, 8>}]} {
    %c0 = arith.constant 0 : index
    %c0_0 = arith.constant 0 : index
    %0 = vector.load %arg1[%c0, %c0_0] : memref<392x9xf32, #tpu.memory_space<vmem>>, vector<392x9xf32>
    %c0_1 = arith.constant 0 : index
    %c0_2 = arith.constant 0 : index
    %1 = vector.load %arg2[%c0_1, %c0_2] : memref<9x32xf32, #tpu.memory_space<vmem>>, vector<9x32xf32>
    %cst = arith.constant dense<0.000000e+00> : vector<392x32xf32>
    %2 = tpu.matmul %0, %1, %cst {dimension_numbers = #tpu.dot_dimension_numbers<[1], [0], [0], [1], [0, 0, 1, 1], [], []>} : vector<392x9xf32>, vector<9x32xf32>, vector<392x32xf32> -> vector<392x32xf32>
    %c0_3 = arith.constant 0 : index
    %c0_4 = arith.constant 0 : index
    %3 = vector.load %arg3[%c0_3, %c0_4] : memref<1x32xf32, #tpu.memory_space<vmem>>, vector<1x32xf32>
    %4 = vector.broadcast %3 : vector<1x32xf32> to vector<392x32xf32>
    %5 = arith.addf %2, %4 : vector<392x32xf32>
    %cst_5 = arith.constant 0.000000e+00 : f32
    %6 = vector.broadcast %cst_5 : f32 to vector<392x32xf32>
    %7 = arith.maximumf %5, %6 : vector<392x32xf32>
    %c0_6 = arith.constant 0 : index
    %c0_7 = arith.constant 0 : index
    %8 = vector.load %arg14[%c0_6, %c0_7] : memref<424x32xf32, #tpu.memory_space<vmem>>, vector<392x32xf32>
    tpu.vector_store %arg14[%c0_6, %c0_7], %7 {strides = array<i32>} : memref<424x32xf32, #tpu.memory_space<vmem>>, vector<392x32xf32>,
    %cst_8 = arith.constant 0.000000e+00 : f32
    %9 = vector.broadcast %cst_8 : f32 to vector<32x32xf32>
    %c392 = arith.constant 392 : index
    %c0_9 = arith.constant 0 : index
    %10 = vector.load %arg14[%c392, %c0_9] : memref<424x32xf32, #tpu.memory_space<vmem>>, vector<32x32xf32>
    tpu.vector_store %arg14[%c392, %c0_9], %9 {strides = array<i32>} : memref<424x32xf32, #tpu.memory_space<vmem>>, vector<32x32xf32>,
    %cst_10 = arith.constant 0.000000e+00 : f32
    %11 = vector.broadcast %cst_10 : f32 to vector<392x32xf32>
    %c0_11 = arith.constant 0 : index
    %c0_12 = arith.constant 0 : index
    %12 = vector.load %arg14[%c0_11, %c0_12] : memref<424x32xf32, #tpu.memory_space<vmem>>, vector<392x32xf32>
    %c0_13 = arith.constant 0 : index
    %c0_14 = arith.constant 0 : index
    %c0_15 = arith.constant 0 : index
    %13 = vector.load %arg4[%c0_13, %c0_14, %c0_15] : memref<9x32x32xf32, #tpu.memory_space<vmem>>, vector<1x32x32xf32>
    %14 = vector.shape_cast %13 : vector<1x32x32xf32> to vector<32x32xf32>
    %cst_16 = arith.constant dense<0.000000e+00> : vector<392x32xf32>
    %15 = tpu.matmul %12, %14, %cst_16 {dimension_numbers = #tpu.dot_dimension_numbers<[1], [0], [0], [1], [0, 0, 1, 1], [], []>} : vector<392x32xf32>, vector<32x32xf32>, vector<392x32xf32> -> vector<392x32xf32>
    %16 = arith.addf %11, %15 : vector<392x32xf32>
    %c1 = arith.constant 1 : index
    %c0_17 = arith.constant 0 : index
    %17 = vector.load %arg14[%c1, %c0_17] : memref<424x32xf32, #tpu.memory_space<vmem>>, vector<392x32xf32>
    %c1_18 = arith.constant 1 : index
    %c0_19 = arith.constant 0 : index
    %c0_20 = arith.constant 0 : index
    %18 = vector.load %arg4[%c1_18, %c0_19, %c0_20] : memref<9x32x32xf32, #tpu.memory_space<vmem>>, vector<1x32x32xf32>
    %19 = vector.shape_cast %18 : vector<1x32x32xf32> to vector<32x32xf32>
    %cst_21 = arith.constant dense<0.000000e+00> : vector<392x32xf32>
    %20 = tpu.matmul %17, %19, %cst_21 {dimension_numbers = #tpu.dot_dimension_numbers<[1], [0], [0], [1], [0, 0, 1, 1], [], []>} : vector<392x32xf32>, vector<32x32xf32>, vector<392x32xf32> -> vector<392x32xf32>
    %21 = arith.addf %16, %20 : vector<392x32xf32>
    %c2 = arith.constant 2 : index
    %c0_22 = arith.constant 0 : index
    %22 = vector.load %arg14[%c2, %c0_22] : memref<424x32xf32, #tpu.memory_space<vmem>>, vector<392x32xf32>
    %c2_23 = arith.constant 2 : index
    %c0_24 = arith.constant 0 : index
    %c0_25 = arith.constant 0 : index
    %23 = vector.load %arg4[%c2_23, %c0_24, %c0_25] : memref<9x32x32xf32, #tpu.memory_space<vmem>>, vector<1x32x32xf32>
    %24 = vector.shape_cast %23 : vector<1x32x32xf32> to vector<32x32xf32>
    %cst_26 = arith.constant dense<0.000000e+00> : vector<392x32xf32>
    %25 = tpu.matmul %22, %24, %cst_26 {dimension_numbers = #tpu.dot_dimension_numbers<[1], [0], [0], [1], [0, 0, 1, 1], [], []>} : vector<392x32xf32>, vector<32x32xf32>, vector<392x32xf32> -> vector<392x32xf32>
    %26 = arith.addf %21, %25 : vector<392x32xf32>
    %c14 = arith.constant 14 : index
    %c0_27 = arith.constant 0 : index
    %27 = vector.load %arg14[%c14, %c0_27] : memref<424x32xf32, #tpu.memory_space<vmem>>, vector<392x32xf32>
    %c3 = arith.constant 3 : index
    %c0_28 = arith.constant 0 : index
    %c0_29 = arith.constant 0 : index
    %28 = vector.load %arg4[%c3, %c0_28, %c0_29] : memref<9x32x32xf32, #tpu.memory_space<vmem>>, vector<1x32x32xf32>
    %29 = vector.shape_cast %28 : vector<1x32x32xf32> to vector<32x32xf32>
    %cst_30 = arith.constant dense<0.000000e+00> : vector<392x32xf32>
    %30 = tpu.matmul %27, %29, %cst_30 {dimension_numbers = #tpu.dot_dimension_numbers<[1], [0], [0], [1], [0, 0, 1, 1], [], []>} : vector<392x32xf32>, vector<32x32xf32>, vector<392x32xf32> -> vector<392x32xf32>
    %31 = arith.addf %26, %30 : vector<392x32xf32>
    %c15 = arith.constant 15 : index
    %c0_31 = arith.constant 0 : index
    %32 = vector.load %arg14[%c15, %c0_31] : memref<424x32xf32, #tpu.memory_space<vmem>>, vector<392x32xf32>
    %c4 = arith.constant 4 : index
    %c0_32 = arith.constant 0 : index
    %c0_33 = arith.constant 0 : index
    %33 = vector.load %arg4[%c4, %c0_32, %c0_33] : memref<9x32x32xf32, #tpu.memory_space<vmem>>, vector<1x32x32xf32>
    %34 = vector.shape_cast %33 : vector<1x32x32xf32> to vector<32x32xf32>
    %cst_34 = arith.constant dense<0.000000e+00> : vector<392x32xf32>
    %35 = tpu.matmul %32, %34, %cst_34 {dimension_numbers = #tpu.dot_dimension_numbers<[1], [0], [0], [1], [0, 0, 1, 1], [], []>} : vector<392x32xf32>, vector<32x32xf32>, vector<392x32xf32> -> vector<392x32xf32>
    %36 = arith.addf %31, %35 : vector<392x32xf32>
    %c16 = arith.constant 16 : index
    %c0_35 = arith.constant 0 : index
    %37 = vector.load %arg14[%c16, %c0_35] : memref<424x32xf32, #tpu.memory_space<vmem>>, vector<392x32xf32>
    %c5 = arith.constant 5 : index
    %c0_36 = arith.constant 0 : index
    %c0_37 = arith.constant 0 : index
    %38 = vector.load %arg4[%c5, %c0_36, %c0_37] : memref<9x32x32xf32, #tpu.memory_space<vmem>>, vector<1x32x32xf32>
    %39 = vector.shape_cast %38 : vector<1x32x32xf32> to vector<32x32xf32>
    %cst_38 = arith.constant dense<0.000000e+00> : vector<392x32xf32>
    %40 = tpu.matmul %37, %39, %cst_38 {dimension_numbers = #tpu.dot_dimension_numbers<[1], [0], [0], [1], [0, 0, 1, 1], [], []>} : vector<392x32xf32>, vector<32x32xf32>, vector<392x32xf32> -> vector<392x32xf32>
    %41 = arith.addf %36, %40 : vector<392x32xf32>
    %c28 = arith.constant 28 : index
    %c0_39 = arith.constant 0 : index
    %42 = vector.load %arg14[%c28, %c0_39] : memref<424x32xf32, #tpu.memory_space<vmem>>, vector<392x32xf32>
    %c6 = arith.constant 6 : index
    %c0_40 = arith.constant 0 : index
    %c0_41 = arith.constant 0 : index
    %43 = vector.load %arg4[%c6, %c0_40, %c0_41] : memref<9x32x32xf32, #tpu.memory_space<vmem>>, vector<1x32x32xf32>
    %44 = vector.shape_cast %43 : vector<1x32x32xf32> to vector<32x32xf32>
    %cst_42 = arith.constant dense<0.000000e+00> : vector<392x32xf32>
    %45 = tpu.matmul %42, %44, %cst_42 {dimension_numbers = #tpu.dot_dimension_numbers<[1], [0], [0], [1], [0, 0, 1, 1], [], []>} : vector<392x32xf32>, vector<32x32xf32>, vector<392x32xf32> -> vector<392x32xf32>
    %46 = arith.addf %41, %45 : vector<392x32xf32>
    %c29 = arith.constant 29 : index
    %c0_43 = arith.constant 0 : index
    %47 = vector.load %arg14[%c29, %c0_43] : memref<424x32xf32, #tpu.memory_space<vmem>>, vector<392x32xf32>
    %c7 = arith.constant 7 : index
    %c0_44 = arith.constant 0 : index
    %c0_45 = arith.constant 0 : index
    %48 = vector.load %arg4[%c7, %c0_44, %c0_45] : memref<9x32x32xf32, #tpu.memory_space<vmem>>, vector<1x32x32xf32>
    %49 = vector.shape_cast %48 : vector<1x32x32xf32> to vector<32x32xf32>
    %cst_46 = arith.constant dense<0.000000e+00> : vector<392x32xf32>
    %50 = tpu.matmul %47, %49, %cst_46 {dimension_numbers = #tpu.dot_dimension_numbers<[1], [0], [0], [1], [0, 0, 1, 1], [], []>} : vector<392x32xf32>, vector<32x32xf32>, vector<392x32xf32> -> vector<392x32xf32>
    %51 = arith.addf %46, %50 : vector<392x32xf32>
    %c30 = arith.constant 30 : index
    %c0_47 = arith.constant 0 : index
    %52 = vector.load %arg14[%c30, %c0_47] : memref<424x32xf32, #tpu.memory_space<vmem>>, vector<392x32xf32>
    %c8 = arith.constant 8 : index
    %c0_48 = arith.constant 0 : index
    %c0_49 = arith.constant 0 : index
    %53 = vector.load %arg4[%c8, %c0_48, %c0_49] : memref<9x32x32xf32, #tpu.memory_space<vmem>>, vector<1x32x32xf32>
    %54 = vector.shape_cast %53 : vector<1x32x32xf32> to vector<32x32xf32>
    %cst_50 = arith.constant dense<0.000000e+00> : vector<392x32xf32>
    %55 = tpu.matmul %52, %54, %cst_50 {dimension_numbers = #tpu.dot_dimension_numbers<[1], [0], [0], [1], [0, 0, 1, 1], [], []>} : vector<392x32xf32>, vector<32x32xf32>, vector<392x32xf32> -> vector<392x32xf32>
    %56 = arith.addf %51, %55 : vector<392x32xf32>
    %c0_51 = arith.constant 0 : index
    %c0_52 = arith.constant 0 : index
    %57 = vector.load %arg8[%c0_51, %c0_52] : memref<288x392xf32, #tpu.memory_space<vmem>>, vector<288x392xf32>
    %cst_53 = arith.constant dense<0.000000e+00> : vector<288x32xf32>
    %58 = tpu.matmul %57, %56, %cst_53 {dimension_numbers = #tpu.dot_dimension_numbers<[1], [0], [0], [1], [0, 0, 1, 1], [], []>} : vector<288x392xf32>, vector<392x32xf32>, vector<288x32xf32> -> vector<288x32xf32>
    %c0_54 = arith.constant 0 : index
    %c0_55 = arith.constant 0 : index
    %59 = vector.load %arg5[%c0_54, %c0_55] : memref<1x32xf32, #tpu.memory_space<vmem>>, vector<1x32xf32>
    %60 = vector.broadcast %59 : vector<1x32xf32> to vector<288x32xf32>
    %61 = arith.addf %58, %60 : vector<288x32xf32>
    %cst_56 = arith.constant 0.000000e+00 : f32
    %62 = vector.broadcast %cst_56 : f32 to vector<288x32xf32>
    %63 = arith.maximumf %61, %62 : vector<288x32xf32>
    %c0_57 = arith.constant 0 : index
    %c0_58 = arith.constant 0 : index
    %64 = vector.load %arg6[%c0_57, %c0_58] : memref<1x32xf32, #tpu.memory_space<vmem>>, vector<1x32xf32>
    %65 = vector.broadcast %64 : vector<1x32xf32> to vector<288x32xf32>
    %66 = arith.mulf %63, %65 : vector<288x32xf32>
    %c0_59 = arith.constant 0 : index
    %c0_60 = arith.constant 0 : index
    %67 = vector.load %arg7[%c0_59, %c0_60] : memref<1x32xf32, #tpu.memory_space<vmem>>, vector<1x32xf32>
    %68 = vector.broadcast %67 : vector<1x32xf32> to vector<288x32xf32>
    %69 = arith.addf %66, %68 : vector<288x32xf32>
    %70 = vector.extract_strided_slice %69 {offsets = [0, 0], sizes = [72, 32], strides = [1, 1]} : vector<288x32xf32> to vector<72x32xf32>
    %71 = vector.extract_strided_slice %69 {offsets = [72, 0], sizes = [72, 32], strides = [1, 1]} : vector<288x32xf32> to vector<72x32xf32>
    %72 = arith.maximumf %70, %71 : vector<72x32xf32>
    %73 = vector.extract_strided_slice %69 {offsets = [144, 0], sizes = [72, 32], strides = [1, 1]} : vector<288x32xf32> to vector<72x32xf32>
    %74 = vector.extract_strided_slice %69 {offsets = [216, 0], sizes = [72, 32], strides = [1, 1]} : vector<288x32xf32> to vector<72x32xf32>
    %75 = arith.maximumf %73, %74 : vector<72x32xf32>
    %76 = arith.maximumf %72, %75 : vector<72x32xf32>
    %cst_61 = arith.constant 0.000000e+00 : f32
    %77 = vector.broadcast %cst_61 : f32 to vector<2x256xf32>
    %78 = vector.extract_strided_slice %76 {offsets = [0, 0], sizes = [2, 32], strides = [1, 1]} : vector<72x32xf32> to vector<2x32xf32>
    %c0_62 = arith.constant 0 : index
    %c0_63 = arith.constant 0 : index
    %79 = vector.load %arg9[%c0_62, %c0_63] : memref<1152x256xf32, #tpu.memory_space<vmem>>, vector<32x256xf32>
    %cst_64 = arith.constant dense<0.000000e+00> : vector<2x256xf32>
    %80 = tpu.matmul %78, %79, %cst_64 {dimension_numbers = #tpu.dot_dimension_numbers<[1], [0], [0], [1], [0, 0, 1, 1], [], []>} : vector<2x32xf32>, vector<32x256xf32>, vector<2x256xf32> -> vector<2x256xf32>
    %81 = arith.addf %77, %80 : vector<2x256xf32>
    %82 = vector.extract_strided_slice %76 {offsets = [2, 0], sizes = [2, 32], strides = [1, 1]} : vector<72x32xf32> to vector<2x32xf32>
    %c32 = arith.constant 32 : index
    %c0_65 = arith.constant 0 : index
    %83 = vector.load %arg9[%c32, %c0_65] : memref<1152x256xf32, #tpu.memory_space<vmem>>, vector<32x256xf32>
    %cst_66 = arith.constant dense<0.000000e+00> : vector<2x256xf32>
    %84 = tpu.matmul %82, %83, %cst_66 {dimension_numbers = #tpu.dot_dimension_numbers<[1], [0], [0], [1], [0, 0, 1, 1], [], []>} : vector<2x32xf32>, vector<32x256xf32>, vector<2x256xf32> -> vector<2x256xf32>
    %85 = arith.addf %81, %84 : vector<2x256xf32>
    %86 = vector.extract_strided_slice %76 {offsets = [4, 0], sizes = [2, 32], strides = [1, 1]} : vector<72x32xf32> to vector<2x32xf32>
    %c64 = arith.constant 64 : index
    %c0_67 = arith.constant 0 : index
    %87 = vector.load %arg9[%c64, %c0_67] : memref<1152x256xf32, #tpu.memory_space<vmem>>, vector<32x256xf32>
    %cst_68 = arith.constant dense<0.000000e+00> : vector<2x256xf32>
    %88 = tpu.matmul %86, %87, %cst_68 {dimension_numbers = #tpu.dot_dimension_numbers<[1], [0], [0], [1], [0, 0, 1, 1], [], []>} : vector<2x32xf32>, vector<32x256xf32>, vector<2x256xf32> -> vector<2x256xf32>
    %89 = arith.addf %85, %88 : vector<2x256xf32>
    %90 = vector.extract_strided_slice %76 {offsets = [6, 0], sizes = [2, 32], strides = [1, 1]} : vector<72x32xf32> to vector<2x32xf32>
    %c96 = arith.constant 96 : index
    %c0_69 = arith.constant 0 : index
    %91 = vector.load %arg9[%c96, %c0_69] : memref<1152x256xf32, #tpu.memory_space<vmem>>, vector<32x256xf32>
    %cst_70 = arith.constant dense<0.000000e+00> : vector<2x256xf32>
    %92 = tpu.matmul %90, %91, %cst_70 {dimension_numbers = #tpu.dot_dimension_numbers<[1], [0], [0], [1], [0, 0, 1, 1], [], []>} : vector<2x32xf32>, vector<32x256xf32>, vector<2x256xf32> -> vector<2x256xf32>
    %93 = arith.addf %89, %92 : vector<2x256xf32>
    %94 = vector.extract_strided_slice %76 {offsets = [8, 0], sizes = [2, 32], strides = [1, 1]} : vector<72x32xf32> to vector<2x32xf32>
    %c128 = arith.constant 128 : index
    %c0_71 = arith.constant 0 : index
    %95 = vector.load %arg9[%c128, %c0_71] : memref<1152x256xf32, #tpu.memory_space<vmem>>, vector<32x256xf32>
    %cst_72 = arith.constant dense<0.000000e+00> : vector<2x256xf32>
    %96 = tpu.matmul %94, %95, %cst_72 {dimension_numbers = #tpu.dot_dimension_numbers<[1], [0], [0], [1], [0, 0, 1, 1], [], []>} : vector<2x32xf32>, vector<32x256xf32>, vector<2x256xf32> -> vector<2x256xf32>
    %97 = arith.addf %93, %96 : vector<2x256xf32>
    %98 = vector.extract_strided_slice %76 {offsets = [10, 0], sizes = [2, 32], strides = [1, 1]} : vector<72x32xf32> to vector<2x32xf32>
    %c160 = arith.constant 160 : index
    %c0_73 = arith.constant 0 : index
    %99 = vector.load %arg9[%c160, %c0_73] : memref<1152x256xf32, #tpu.memory_space<vmem>>, vector<32x256xf32>
    %cst_74 = arith.constant dense<0.000000e+00> : vector<2x256xf32>
    %100 = tpu.matmul %98, %99, %cst_74 {dimension_numbers = #tpu.dot_dimension_numbers<[1], [0], [0], [1], [0, 0, 1, 1], [], []>} : vector<2x32xf32>, vector<32x256xf32>, vector<2x256xf32> -> vector<2x256xf32>
    %101 = arith.addf %97, %100 : vector<2x256xf32>
    %102 = vector.extract_strided_slice %76 {offsets = [12, 0], sizes = [2, 32], strides = [1, 1]} : vector<72x32xf32> to vector<2x32xf32>
    %c192 = arith.constant 192 : index
    %c0_75 = arith.constant 0 : index
    %103 = vector.load %arg9[%c192, %c0_75] : memref<1152x256xf32, #tpu.memory_space<vmem>>, vector<32x256xf32>
    %cst_76 = arith.constant dense<0.000000e+00> : vector<2x256xf32>
    %104 = tpu.matmul %102, %103, %cst_76 {dimension_numbers = #tpu.dot_dimension_numbers<[1], [0], [0], [1], [0, 0, 1, 1], [], []>} : vector<2x32xf32>, vector<32x256xf32>, vector<2x256xf32> -> vector<2x256xf32>
    %105 = arith.addf %101, %104 : vector<2x256xf32>
    %106 = vector.extract_strided_slice %76 {offsets = [14, 0], sizes = [2, 32], strides = [1, 1]} : vector<72x32xf32> to vector<2x32xf32>
    %c224 = arith.constant 224 : index
    %c0_77 = arith.constant 0 : index
    %107 = vector.load %arg9[%c224, %c0_77] : memref<1152x256xf32, #tpu.memory_space<vmem>>, vector<32x256xf32>
    %cst_78 = arith.constant dense<0.000000e+00> : vector<2x256xf32>
    %108 = tpu.matmul %106, %107, %cst_78 {dimension_numbers = #tpu.dot_dimension_numbers<[1], [0], [0], [1], [0, 0, 1, 1], [], []>} : vector<2x32xf32>, vector<32x256xf32>, vector<2x256xf32> -> vector<2x256xf32>
    %109 = arith.addf %105, %108 : vector<2x256xf32>
    %110 = vector.extract_strided_slice %76 {offsets = [16, 0], sizes = [2, 32], strides = [1, 1]} : vector<72x32xf32> to vector<2x32xf32>
    %c256 = arith.constant 256 : index
    %c0_79 = arith.constant 0 : index
    %111 = vector.load %arg9[%c256, %c0_79] : memref<1152x256xf32, #tpu.memory_space<vmem>>, vector<32x256xf32>
    %cst_80 = arith.constant dense<0.000000e+00> : vector<2x256xf32>
    %112 = tpu.matmul %110, %111, %cst_80 {dimension_numbers = #tpu.dot_dimension_numbers<[1], [0], [0], [1], [0, 0, 1, 1], [], []>} : vector<2x32xf32>, vector<32x256xf32>, vector<2x256xf32> -> vector<2x256xf32>
    %113 = arith.addf %109, %112 : vector<2x256xf32>
    %114 = vector.extract_strided_slice %76 {offsets = [18, 0], sizes = [2, 32], strides = [1, 1]} : vector<72x32xf32> to vector<2x32xf32>
    %c288 = arith.constant 288 : index
    %c0_81 = arith.constant 0 : index
    %115 = vector.load %arg9[%c288, %c0_81] : memref<1152x256xf32, #tpu.memory_space<vmem>>, vector<32x256xf32>
    %cst_82 = arith.constant dense<0.000000e+00> : vector<2x256xf32>
    %116 = tpu.matmul %114, %115, %cst_82 {dimension_numbers = #tpu.dot_dimension_numbers<[1], [0], [0], [1], [0, 0, 1, 1], [], []>} : vector<2x32xf32>, vector<32x256xf32>, vector<2x256xf32> -> vector<2x256xf32>
    %117 = arith.addf %113, %116 : vector<2x256xf32>
    %118 = vector.extract_strided_slice %76 {offsets = [20, 0], sizes = [2, 32], strides = [1, 1]} : vector<72x32xf32> to vector<2x32xf32>
    %c320 = arith.constant 320 : index
    %c0_83 = arith.constant 0 : index
    %119 = vector.load %arg9[%c320, %c0_83] : memref<1152x256xf32, #tpu.memory_space<vmem>>, vector<32x256xf32>
    %cst_84 = arith.constant dense<0.000000e+00> : vector<2x256xf32>
    %120 = tpu.matmul %118, %119, %cst_84 {dimension_numbers = #tpu.dot_dimension_numbers<[1], [0], [0], [1], [0, 0, 1, 1], [], []>} : vector<2x32xf32>, vector<32x256xf32>, vector<2x256xf32> -> vector<2x256xf32>
    %121 = arith.addf %117, %120 : vector<2x256xf32>
    %122 = vector.extract_strided_slice %76 {offsets = [22, 0], sizes = [2, 32], strides = [1, 1]} : vector<72x32xf32> to vector<2x32xf32>
    %c352 = arith.constant 352 : index
    %c0_85 = arith.constant 0 : index
    %123 = vector.load %arg9[%c352, %c0_85] : memref<1152x256xf32, #tpu.memory_space<vmem>>, vector<32x256xf32>
    %cst_86 = arith.constant dense<0.000000e+00> : vector<2x256xf32>
    %124 = tpu.matmul %122, %123, %cst_86 {dimension_numbers = #tpu.dot_dimension_numbers<[1], [0], [0], [1], [0, 0, 1, 1], [], []>} : vector<2x32xf32>, vector<32x256xf32>, vector<2x256xf32> -> vector<2x256xf32>
    %125 = arith.addf %121, %124 : vector<2x256xf32>
    %126 = vector.extract_strided_slice %76 {offsets = [24, 0], sizes = [2, 32], strides = [1, 1]} : vector<72x32xf32> to vector<2x32xf32>
    %c384 = arith.constant 384 : index
    %c0_87 = arith.constant 0 : index
    %127 = vector.load %arg9[%c384, %c0_87] : memref<1152x256xf32, #tpu.memory_space<vmem>>, vector<32x256xf32>
    %cst_88 = arith.constant dense<0.000000e+00> : vector<2x256xf32>
    %128 = tpu.matmul %126, %127, %cst_88 {dimension_numbers = #tpu.dot_dimension_numbers<[1], [0], [0], [1], [0, 0, 1, 1], [], []>} : vector<2x32xf32>, vector<32x256xf32>, vector<2x256xf32> -> vector<2x256xf32>
    %129 = arith.addf %125, %128 : vector<2x256xf32>
    %130 = vector.extract_strided_slice %76 {offsets = [26, 0], sizes = [2, 32], strides = [1, 1]} : vector<72x32xf32> to vector<2x32xf32>
    %c416 = arith.constant 416 : index
    %c0_89 = arith.constant 0 : index
    %131 = vector.load %arg9[%c416, %c0_89] : memref<1152x256xf32, #tpu.memory_space<vmem>>, vector<32x256xf32>
    %cst_90 = arith.constant dense<0.000000e+00> : vector<2x256xf32>
    %132 = tpu.matmul %130, %131, %cst_90 {dimension_numbers = #tpu.dot_dimension_numbers<[1], [0], [0], [1], [0, 0, 1, 1], [], []>} : vector<2x32xf32>, vector<32x256xf32>, vector<2x256xf32> -> vector<2x256xf32>
    %133 = arith.addf %129, %132 : vector<2x256xf32>
    %134 = vector.extract_strided_slice %76 {offsets = [28, 0], sizes = [2, 32], strides = [1, 1]} : vector<72x32xf32> to vector<2x32xf32>
    %c448 = arith.constant 448 : index
    %c0_91 = arith.constant 0 : index
    %135 = vector.load %arg9[%c448, %c0_91] : memref<1152x256xf32, #tpu.memory_space<vmem>>, vector<32x256xf32>
    %cst_92 = arith.constant dense<0.000000e+00> : vector<2x256xf32>
    %136 = tpu.matmul %134, %135, %cst_92 {dimension_numbers = #tpu.dot_dimension_numbers<[1], [0], [0], [1], [0, 0, 1, 1], [], []>} : vector<2x32xf32>, vector<32x256xf32>, vector<2x256xf32> -> vector<2x256xf32>
    %137 = arith.addf %133, %136 : vector<2x256xf32>
    %138 = vector.extract_strided_slice %76 {offsets = [30, 0], sizes = [2, 32], strides = [1, 1]} : vector<72x32xf32> to vector<2x32xf32>
    %c480 = arith.constant 480 : index
    %c0_93 = arith.constant 0 : index
    %139 = vector.load %arg9[%c480, %c0_93] : memref<1152x256xf32, #tpu.memory_space<vmem>>, vector<32x256xf32>
    %cst_94 = arith.constant dense<0.000000e+00> : vector<2x256xf32>
    %140 = tpu.matmul %138, %139, %cst_94 {dimension_numbers = #tpu.dot_dimension_numbers<[1], [0], [0], [1], [0, 0, 1, 1], [], []>} : vector<2x32xf32>, vector<32x256xf32>, vector<2x256xf32> -> vector<2x256xf32>
    %141 = arith.addf %137, %140 : vector<2x256xf32>
    %142 = vector.extract_strided_slice %76 {offsets = [32, 0], sizes = [2, 32], strides = [1, 1]} : vector<72x32xf32> to vector<2x32xf32>
    %c512 = arith.constant 512 : index
    %c0_95 = arith.constant 0 : index
    %143 = vector.load %arg9[%c512, %c0_95] : memref<1152x256xf32, #tpu.memory_space<vmem>>, vector<32x256xf32>
    %cst_96 = arith.constant dense<0.000000e+00> : vector<2x256xf32>
    %144 = tpu.matmul %142, %143, %cst_96 {dimension_numbers = #tpu.dot_dimension_numbers<[1], [0], [0], [1], [0, 0, 1, 1], [], []>} : vector<2x32xf32>, vector<32x256xf32>, vector<2x256xf32> -> vector<2x256xf32>
    %145 = arith.addf %141, %144 : vector<2x256xf32>
    %146 = vector.extract_strided_slice %76 {offsets = [34, 0], sizes = [2, 32], strides = [1, 1]} : vector<72x32xf32> to vector<2x32xf32>
    %c544 = arith.constant 544 : index
    %c0_97 = arith.constant 0 : index
    %147 = vector.load %arg9[%c544, %c0_97] : memref<1152x256xf32, #tpu.memory_space<vmem>>, vector<32x256xf32>
    %cst_98 = arith.constant dense<0.000000e+00> : vector<2x256xf32>
    %148 = tpu.matmul %146, %147, %cst_98 {dimension_numbers = #tpu.dot_dimension_numbers<[1], [0], [0], [1], [0, 0, 1, 1], [], []>} : vector<2x32xf32>, vector<32x256xf32>, vector<2x256xf32> -> vector<2x256xf32>
    %149 = arith.addf %145, %148 : vector<2x256xf32>
    %150 = vector.extract_strided_slice %76 {offsets = [36, 0], sizes = [2, 32], strides = [1, 1]} : vector<72x32xf32> to vector<2x32xf32>
    %c576 = arith.constant 576 : index
    %c0_99 = arith.constant 0 : index
    %151 = vector.load %arg9[%c576, %c0_99] : memref<1152x256xf32, #tpu.memory_space<vmem>>, vector<32x256xf32>
    %cst_100 = arith.constant dense<0.000000e+00> : vector<2x256xf32>
    %152 = tpu.matmul %150, %151, %cst_100 {dimension_numbers = #tpu.dot_dimension_numbers<[1], [0], [0], [1], [0, 0, 1, 1], [], []>} : vector<2x32xf32>, vector<32x256xf32>, vector<2x256xf32> -> vector<2x256xf32>
    %153 = arith.addf %149, %152 : vector<2x256xf32>
    %154 = vector.extract_strided_slice %76 {offsets = [38, 0], sizes = [2, 32], strides = [1, 1]} : vector<72x32xf32> to vector<2x32xf32>
    %c608 = arith.constant 608 : index
    %c0_101 = arith.constant 0 : index
    %155 = vector.load %arg9[%c608, %c0_101] : memref<1152x256xf32, #tpu.memory_space<vmem>>, vector<32x256xf32>
    %cst_102 = arith.constant dense<0.000000e+00> : vector<2x256xf32>
    %156 = tpu.matmul %154, %155, %cst_102 {dimension_numbers = #tpu.dot_dimension_numbers<[1], [0], [0], [1], [0, 0, 1, 1], [], []>} : vector<2x32xf32>, vector<32x256xf32>, vector<2x256xf32> -> vector<2x256xf32>
    %157 = arith.addf %153, %156 : vector<2x256xf32>
    %158 = vector.extract_strided_slice %76 {offsets = [40, 0], sizes = [2, 32], strides = [1, 1]} : vector<72x32xf32> to vector<2x32xf32>
    %c640 = arith.constant 640 : index
    %c0_103 = arith.constant 0 : index
    %159 = vector.load %arg9[%c640, %c0_103] : memref<1152x256xf32, #tpu.memory_space<vmem>>, vector<32x256xf32>
    %cst_104 = arith.constant dense<0.000000e+00> : vector<2x256xf32>
    %160 = tpu.matmul %158, %159, %cst_104 {dimension_numbers = #tpu.dot_dimension_numbers<[1], [0], [0], [1], [0, 0, 1, 1], [], []>} : vector<2x32xf32>, vector<32x256xf32>, vector<2x256xf32> -> vector<2x256xf32>
    %161 = arith.addf %157, %160 : vector<2x256xf32>
    %162 = vector.extract_strided_slice %76 {offsets = [42, 0], sizes = [2, 32], strides = [1, 1]} : vector<72x32xf32> to vector<2x32xf32>
    %c672 = arith.constant 672 : index
    %c0_105 = arith.constant 0 : index
    %163 = vector.load %arg9[%c672, %c0_105] : memref<1152x256xf32, #tpu.memory_space<vmem>>, vector<32x256xf32>
    %cst_106 = arith.constant dense<0.000000e+00> : vector<2x256xf32>
    %164 = tpu.matmul %162, %163, %cst_106 {dimension_numbers = #tpu.dot_dimension_numbers<[1], [0], [0], [1], [0, 0, 1, 1], [], []>} : vector<2x32xf32>, vector<32x256xf32>, vector<2x256xf32> -> vector<2x256xf32>
    %165 = arith.addf %161, %164 : vector<2x256xf32>
    %166 = vector.extract_strided_slice %76 {offsets = [44, 0], sizes = [2, 32], strides = [1, 1]} : vector<72x32xf32> to vector<2x32xf32>
    %c704 = arith.constant 704 : index
    %c0_107 = arith.constant 0 : index
    %167 = vector.load %arg9[%c704, %c0_107] : memref<1152x256xf32, #tpu.memory_space<vmem>>, vector<32x256xf32>
    %cst_108 = arith.constant dense<0.000000e+00> : vector<2x256xf32>
    %168 = tpu.matmul %166, %167, %cst_108 {dimension_numbers = #tpu.dot_dimension_numbers<[1], [0], [0], [1], [0, 0, 1, 1], [], []>} : vector<2x32xf32>, vector<32x256xf32>, vector<2x256xf32> -> vector<2x256xf32>
    %169 = arith.addf %165, %168 : vector<2x256xf32>
    %170 = vector.extract_strided_slice %76 {offsets = [46, 0], sizes = [2, 32], strides = [1, 1]} : vector<72x32xf32> to vector<2x32xf32>
    %c736 = arith.constant 736 : index
    %c0_109 = arith.constant 0 : index
    %171 = vector.load %arg9[%c736, %c0_109] : memref<1152x256xf32, #tpu.memory_space<vmem>>, vector<32x256xf32>
    %cst_110 = arith.constant dense<0.000000e+00> : vector<2x256xf32>
    %172 = tpu.matmul %170, %171, %cst_110 {dimension_numbers = #tpu.dot_dimension_numbers<[1], [0], [0], [1], [0, 0, 1, 1], [], []>} : vector<2x32xf32>, vector<32x256xf32>, vector<2x256xf32> -> vector<2x256xf32>
    %173 = arith.addf %169, %172 : vector<2x256xf32>
    %174 = vector.extract_strided_slice %76 {offsets = [48, 0], sizes = [2, 32], strides = [1, 1]} : vector<72x32xf32> to vector<2x32xf32>
    %c768 = arith.constant 768 : index
    %c0_111 = arith.constant 0 : index
    %175 = vector.load %arg9[%c768, %c0_111] : memref<1152x256xf32, #tpu.memory_space<vmem>>, vector<32x256xf32>
    %cst_112 = arith.constant dense<0.000000e+00> : vector<2x256xf32>
    %176 = tpu.matmul %174, %175, %cst_112 {dimension_numbers = #tpu.dot_dimension_numbers<[1], [0], [0], [1], [0, 0, 1, 1], [], []>} : vector<2x32xf32>, vector<32x256xf32>, vector<2x256xf32> -> vector<2x256xf32>
    %177 = arith.addf %173, %176 : vector<2x256xf32>
    %178 = vector.extract_strided_slice %76 {offsets = [50, 0], sizes = [2, 32], strides = [1, 1]} : vector<72x32xf32> to vector<2x32xf32>
    %c800 = arith.constant 800 : index
    %c0_113 = arith.constant 0 : index
    %179 = vector.load %arg9[%c800, %c0_113] : memref<1152x256xf32, #tpu.memory_space<vmem>>, vector<32x256xf32>
    %cst_114 = arith.constant dense<0.000000e+00> : vector<2x256xf32>
    %180 = tpu.matmul %178, %179, %cst_114 {dimension_numbers = #tpu.dot_dimension_numbers<[1], [0], [0], [1], [0, 0, 1, 1], [], []>} : vector<2x32xf32>, vector<32x256xf32>, vector<2x256xf32> -> vector<2x256xf32>
    %181 = arith.addf %177, %180 : vector<2x256xf32>
    %182 = vector.extract_strided_slice %76 {offsets = [52, 0], sizes = [2, 32], strides = [1, 1]} : vector<72x32xf32> to vector<2x32xf32>
    %c832 = arith.constant 832 : index
    %c0_115 = arith.constant 0 : index
    %183 = vector.load %arg9[%c832, %c0_115] : memref<1152x256xf32, #tpu.memory_space<vmem>>, vector<32x256xf32>
    %cst_116 = arith.constant dense<0.000000e+00> : vector<2x256xf32>
    %184 = tpu.matmul %182, %183, %cst_116 {dimension_numbers = #tpu.dot_dimension_numbers<[1], [0], [0], [1], [0, 0, 1, 1], [], []>} : vector<2x32xf32>, vector<32x256xf32>, vector<2x256xf32> -> vector<2x256xf32>
    %185 = arith.addf %181, %184 : vector<2x256xf32>
    %186 = vector.extract_strided_slice %76 {offsets = [54, 0], sizes = [2, 32], strides = [1, 1]} : vector<72x32xf32> to vector<2x32xf32>
    %c864 = arith.constant 864 : index
    %c0_117 = arith.constant 0 : index
    %187 = vector.load %arg9[%c864, %c0_117] : memref<1152x256xf32, #tpu.memory_space<vmem>>, vector<32x256xf32>
    %cst_118 = arith.constant dense<0.000000e+00> : vector<2x256xf32>
    %188 = tpu.matmul %186, %187, %cst_118 {dimension_numbers = #tpu.dot_dimension_numbers<[1], [0], [0], [1], [0, 0, 1, 1], [], []>} : vector<2x32xf32>, vector<32x256xf32>, vector<2x256xf32> -> vector<2x256xf32>
    %189 = arith.addf %185, %188 : vector<2x256xf32>
    %190 = vector.extract_strided_slice %76 {offsets = [56, 0], sizes = [2, 32], strides = [1, 1]} : vector<72x32xf32> to vector<2x32xf32>
    %c896 = arith.constant 896 : index
    %c0_119 = arith.constant 0 : index
    %191 = vector.load %arg9[%c896, %c0_119] : memref<1152x256xf32, #tpu.memory_space<vmem>>, vector<32x256xf32>
    %cst_120 = arith.constant dense<0.000000e+00> : vector<2x256xf32>
    %192 = tpu.matmul %190, %191, %cst_120 {dimension_numbers = #tpu.dot_dimension_numbers<[1], [0], [0], [1], [0, 0, 1, 1], [], []>} : vector<2x32xf32>, vector<32x256xf32>, vector<2x256xf32> -> vector<2x256xf32>
    %193 = arith.addf %189, %192 : vector<2x256xf32>
    %194 = vector.extract_strided_slice %76 {offsets = [58, 0], sizes = [2, 32], strides = [1, 1]} : vector<72x32xf32> to vector<2x32xf32>
    %c928 = arith.constant 928 : index
    %c0_121 = arith.constant 0 : index
    %195 = vector.load %arg9[%c928, %c0_121] : memref<1152x256xf32, #tpu.memory_space<vmem>>, vector<32x256xf32>
    %cst_122 = arith.constant dense<0.000000e+00> : vector<2x256xf32>
    %196 = tpu.matmul %194, %195, %cst_122 {dimension_numbers = #tpu.dot_dimension_numbers<[1], [0], [0], [1], [0, 0, 1, 1], [], []>} : vector<2x32xf32>, vector<32x256xf32>, vector<2x256xf32> -> vector<2x256xf32>
    %197 = arith.addf %193, %196 : vector<2x256xf32>
    %198 = vector.extract_strided_slice %76 {offsets = [60, 0], sizes = [2, 32], strides = [1, 1]} : vector<72x32xf32> to vector<2x32xf32>
    %c960 = arith.constant 960 : index
    %c0_123 = arith.constant 0 : index
    %199 = vector.load %arg9[%c960, %c0_123] : memref<1152x256xf32, #tpu.memory_space<vmem>>, vector<32x256xf32>
    %cst_124 = arith.constant dense<0.000000e+00> : vector<2x256xf32>
    %200 = tpu.matmul %198, %199, %cst_124 {dimension_numbers = #tpu.dot_dimension_numbers<[1], [0], [0], [1], [0, 0, 1, 1], [], []>} : vector<2x32xf32>, vector<32x256xf32>, vector<2x256xf32> -> vector<2x256xf32>
    %201 = arith.addf %197, %200 : vector<2x256xf32>
    %202 = vector.extract_strided_slice %76 {offsets = [62, 0], sizes = [2, 32], strides = [1, 1]} : vector<72x32xf32> to vector<2x32xf32>
    %c992 = arith.constant 992 : index
    %c0_125 = arith.constant 0 : index
    %203 = vector.load %arg9[%c992, %c0_125] : memref<1152x256xf32, #tpu.memory_space<vmem>>, vector<32x256xf32>
    %cst_126 = arith.constant dense<0.000000e+00> : vector<2x256xf32>
    %204 = tpu.matmul %202, %203, %cst_126 {dimension_numbers = #tpu.dot_dimension_numbers<[1], [0], [0], [1], [0, 0, 1, 1], [], []>} : vector<2x32xf32>, vector<32x256xf32>, vector<2x256xf32> -> vector<2x256xf32>
    %205 = arith.addf %201, %204 : vector<2x256xf32>
    %206 = vector.extract_strided_slice %76 {offsets = [64, 0], sizes = [2, 32], strides = [1, 1]} : vector<72x32xf32> to vector<2x32xf32>
    %c1024 = arith.constant 1024 : index
    %c0_127 = arith.constant 0 : index
    %207 = vector.load %arg9[%c1024, %c0_127] : memref<1152x256xf32, #tpu.memory_space<vmem>>, vector<32x256xf32>
    %cst_128 = arith.constant dense<0.000000e+00> : vector<2x256xf32>
    %208 = tpu.matmul %206, %207, %cst_128 {dimension_numbers = #tpu.dot_dimension_numbers<[1], [0], [0], [1], [0, 0, 1, 1], [], []>} : vector<2x32xf32>, vector<32x256xf32>, vector<2x256xf32> -> vector<2x256xf32>
    %209 = arith.addf %205, %208 : vector<2x256xf32>
    %210 = vector.extract_strided_slice %76 {offsets = [66, 0], sizes = [2, 32], strides = [1, 1]} : vector<72x32xf32> to vector<2x32xf32>
    %c1056 = arith.constant 1056 : index
    %c0_129 = arith.constant 0 : index
    %211 = vector.load %arg9[%c1056, %c0_129] : memref<1152x256xf32, #tpu.memory_space<vmem>>, vector<32x256xf32>
    %cst_130 = arith.constant dense<0.000000e+00> : vector<2x256xf32>
    %212 = tpu.matmul %210, %211, %cst_130 {dimension_numbers = #tpu.dot_dimension_numbers<[1], [0], [0], [1], [0, 0, 1, 1], [], []>} : vector<2x32xf32>, vector<32x256xf32>, vector<2x256xf32> -> vector<2x256xf32>
    %213 = arith.addf %209, %212 : vector<2x256xf32>
    %214 = vector.extract_strided_slice %76 {offsets = [68, 0], sizes = [2, 32], strides = [1, 1]} : vector<72x32xf32> to vector<2x32xf32>
    %c1088 = arith.constant 1088 : index
    %c0_131 = arith.constant 0 : index
    %215 = vector.load %arg9[%c1088, %c0_131] : memref<1152x256xf32, #tpu.memory_space<vmem>>, vector<32x256xf32>
    %cst_132 = arith.constant dense<0.000000e+00> : vector<2x256xf32>
    %216 = tpu.matmul %214, %215, %cst_132 {dimension_numbers = #tpu.dot_dimension_numbers<[1], [0], [0], [1], [0, 0, 1, 1], [], []>} : vector<2x32xf32>, vector<32x256xf32>, vector<2x256xf32> -> vector<2x256xf32>
    %217 = arith.addf %213, %216 : vector<2x256xf32>
    %218 = vector.extract_strided_slice %76 {offsets = [70, 0], sizes = [2, 32], strides = [1, 1]} : vector<72x32xf32> to vector<2x32xf32>
    %c1120 = arith.constant 1120 : index
    %c0_133 = arith.constant 0 : index
    %219 = vector.load %arg9[%c1120, %c0_133] : memref<1152x256xf32, #tpu.memory_space<vmem>>, vector<32x256xf32>
    %cst_134 = arith.constant dense<0.000000e+00> : vector<2x256xf32>
    %220 = tpu.matmul %218, %219, %cst_134 {dimension_numbers = #tpu.dot_dimension_numbers<[1], [0], [0], [1], [0, 0, 1, 1], [], []>} : vector<2x32xf32>, vector<32x256xf32>, vector<2x256xf32> -> vector<2x256xf32>
    %221 = arith.addf %217, %220 : vector<2x256xf32>
    %c0_135 = arith.constant 0 : index
    %c0_136 = arith.constant 0 : index
    %222 = vector.load %arg10[%c0_135, %c0_136] : memref<1x256xf32, #tpu.memory_space<vmem>>, vector<1x256xf32>
    %223 = vector.broadcast %222 : vector<1x256xf32> to vector<2x256xf32>
    %224 = arith.addf %221, %223 : vector<2x256xf32>
    %c0_137 = arith.constant 0 : index
    %c0_138 = arith.constant 0 : index
    %225 = vector.load %arg11[%c0_137, %c0_138] : memref<256x8xf32, #tpu.memory_space<vmem>>, vector<256x8xf32>
    %cst_139 = arith.constant dense<0.000000e+00> : vector<2x8xf32>
    %226 = tpu.matmul %224, %225, %cst_139 {dimension_numbers = #tpu.dot_dimension_numbers<[1], [0], [0], [1], [0, 0, 1, 1], [], []>} : vector<2x256xf32>, vector<256x8xf32>, vector<2x8xf32> -> vector<2x8xf32>
    %c0_140 = arith.constant 0 : index
    %c0_141 = arith.constant 0 : index
    %227 = vector.load %arg12[%c0_140, %c0_141] : memref<1x8xf32, #tpu.memory_space<vmem>>, vector<1x8xf32>
    %228 = vector.broadcast %227 : vector<1x8xf32> to vector<2x8xf32>
    %229 = arith.addf %226, %228 : vector<2x8xf32>
    %c0_142 = arith.constant 0 : index
    %c0_143 = arith.constant 0 : index
    %230 = vector.load %arg13[%c0_142, %c0_143] : memref<2x8xf32, #tpu.memory_space<vmem>>, vector<2x8xf32>
    tpu.vector_store %arg13[%c0_142, %c0_143], %229 {strides = array<i32>} : memref<2x8xf32, #tpu.memory_space<vmem>>, vector<2x8xf32>,
    return
  }
  func.func @transform_0(%arg0: i32) -> (i32, i32) {
    %c0_i32 = arith.constant 0 : i32
    %c0_i32_0 = arith.constant 0 : i32
    %c0_i32_1 = arith.constant 0 : i32
    return %c0_i32, %c0_i32_0 : i32, i32
  }
  func.func @transform_1(%arg0: i32) -> (i32, i32) {
    %c0_i32 = arith.constant 0 : i32
    %c0_i32_0 = arith.constant 0 : i32
    %c0_i32_1 = arith.constant 0 : i32
    return %c0_i32, %c0_i32_0 : i32, i32
  }
  func.func @transform_2(%arg0: i32) -> (i32, i32) {
    %c0_i32 = arith.constant 0 : i32
    %c0_i32_0 = arith.constant 0 : i32
    %c0_i32_1 = arith.constant 0 : i32
    return %c0_i32, %c0_i32_0 : i32, i32
  }
  func.func @transform_3(%arg0: i32) -> (i32, i32, i32) {
    %c0_i32 = arith.constant 0 : i32
    %c0_i32_0 = arith.constant 0 : i32
    %c0_i32_1 = arith.constant 0 : i32
    %c0_i32_2 = arith.constant 0 : i32
    return %c0_i32, %c0_i32_0, %c0_i32_1 : i32, i32, i32
  }
  func.func @transform_4(%arg0: i32) -> (i32, i32) {
    %c0_i32 = arith.constant 0 : i32
    %c0_i32_0 = arith.constant 0 : i32
    %c0_i32_1 = arith.constant 0 : i32
    return %c0_i32, %c0_i32_0 : i32, i32
  }
  func.func @transform_5(%arg0: i32) -> (i32, i32) {
    %c0_i32 = arith.constant 0 : i32
    %c0_i32_0 = arith.constant 0 : i32
    %c0_i32_1 = arith.constant 0 : i32
    return %c0_i32, %c0_i32_0 : i32, i32
  }
  func.func @transform_6(%arg0: i32) -> (i32, i32) {
    %c0_i32 = arith.constant 0 : i32
    %c0_i32_0 = arith.constant 0 : i32
    %c0_i32_1 = arith.constant 0 : i32
    return %c0_i32, %c0_i32_0 : i32, i32
  }
  func.func @transform_7(%arg0: i32) -> (i32, i32) {
    %c0_i32 = arith.constant 0 : i32
    %c0_i32_0 = arith.constant 0 : i32
    %c0_i32_1 = arith.constant 0 : i32
    return %c0_i32, %c0_i32_0 : i32, i32
  }
  func.func @transform_8(%arg0: i32) -> (i32, i32) {
    %c0_i32 = arith.constant 0 : i32
    %c0_i32_0 = arith.constant 0 : i32
    %c0_i32_1 = arith.constant 0 : i32
    return %c0_i32, %c0_i32_0 : i32, i32
  }
  func.func @transform_9(%arg0: i32) -> (i32, i32) {
    %c0_i32 = arith.constant 0 : i32
    %c0_i32_0 = arith.constant 0 : i32
    %c0_i32_1 = arith.constant 0 : i32
    return %c0_i32, %c0_i32_0 : i32, i32
  }
  func.func @transform_10(%arg0: i32) -> (i32, i32) {
    %c0_i32 = arith.constant 0 : i32
    %c0_i32_0 = arith.constant 0 : i32
    %c0_i32_1 = arith.constant 0 : i32
    return %c0_i32, %c0_i32_0 : i32, i32
  }
  func.func @transform_11(%arg0: i32) -> (i32, i32) {
    %c0_i32 = arith.constant 0 : i32
    %c0_i32_0 = arith.constant 0 : i32
    %c0_i32_1 = arith.constant 0 : i32
    return %c0_i32, %c0_i32_0 : i32, i32
  }
  func.func @transform_12(%arg0: i32) -> (i32, i32) {
    %c0_i32 = arith.constant 0 : i32
    %c0_i32_0 = arith.constant 0 : i32
    %c0_i32_1 = arith.constant 0 : i32
    return %c0_i32, %c0_i32_0 : i32, i32
  }
}

</mosaic_0001>

<bundles_post_ra>
// kernel: emgnet_forward.1
= control target key start
LH: loop header
LB: loop body
LE: loop exit
PB: predicated region body
PF: predicated region fallthrough
CT: control target
= control target key end

     0   :  { %17 = vsyncpa [#allocation4], 0  ;;  %s10647_s0 = inlined_call_operand.vmem [shape: f32[392,9], index: 0, kind: input, shape index: {}]   ;;  %s10648_s1 = inlined_call_operand.hbm [shape: f32[9,32], index: 1, kind: input, shape index: {}]   ;;  %s10649_s2 = inlined_call_operand.hbm [shape: f32[1,32], index: 2, kind: input, shape index: {}]   ;;  %s10650_s3 = inlined_call_operand.hbm [shape: f32[9,32,32], index: 3, kind: input, shape index: {}]   ;;  %s10651_s4 = inlined_call_operand.hbm [shape: f32[1,32], index: 4, kind: input, shape index: {}]   ;;  %s10652_s5 = inlined_call_operand.hbm [shape: f32[1,32], index: 5, kind: input, shape index: {}]   ;;  %s10653_s6 = inlined_call_operand.hbm [shape: f32[1,32], index: 6, kind: input, shape index: {}]   ;;  %s10654_s7 = inlined_call_operand.hbm [shape: f32[288,392], index: 7, kind: input, shape index: {}]   ;;  %s10655_s8 = inlined_call_operand.hbm [shape: f32[1152,256], index: 8, kind: input, shape index: {}]   ;;  %s10656_s9 = inlined_call_operand.hbm [shape: f32[1,256], index: 9, kind: input, shape index: {}]   ;;  %s10657_s10 = inlined_call_operand.vmem [shape: f32[256,8], index: 10, kind: input, shape index: {}]   ;;  %s10658_s11 = inlined_call_operand.hbm [shape: f32[1,8], index: 11, kind: input, shape index: {}]   ;;  %s10659_s12 = inlined_call_operand.hbm [shape: f32[2,8], index: 12, kind: output, shape index: {}]  }
   0x1   :  { %18 = vsyncpa [#allocation7], 0 }
   0x2   :  { %19 = vsyncpa [#allocation10], 0 }
   0x3   :  { %20 = vsyncpa [#allocation13], 0 }
   0x4   :  { %21 = vsyncpa [#allocation16], 0 }
   0x5   :  { %22 = vsyncpa [#allocation19], 0  ;;  %s44_s23 = sshll.u32 %s10649_s2, 4  ;;  %s45_s23 = int_to_ptr.hbm [resolvable:$true] %s44_s23 }
   0x6   :  { %23 = vsyncpa [#allocation5], 0  ;;  %s8109_s24 = smov [#allocation6]   ;;  %s68_s28 = sshll.u32 %s10651_s4, 4  ;;  %s69_s28 = int_to_ptr.hbm [resolvable:$true] %s68_s28 }
   0x7   :  { %s46_s25 = sshll.u32 %s8109_s24, 4  ;;  %s8110_s29 = smov [#allocation9]   ;;  %s47_s25 = int_to_ptr.vmem [resolvable:$true] %s46_s25 }
   0x8   :  { %49 = dma.hbm_to_vmem [thread:$0]  %s45_s23, 16, %s47_s25, [#allocation7]  }
   0x9   :  { %s70_s30 = sshll.u32 %s8110_s29, 4  ;;  %s90_s15 = sshll.u32 %s10653_s6, 4  ;;  %s71_s30 = int_to_ptr.vmem [resolvable:$true] %s70_s30  ;;  %s91_s15 = int_to_ptr.hbm [resolvable:$true] %s90_s15 }
   0xa   :  { %73 = dma.hbm_to_vmem [thread:$0]  %s69_s28, 16, %s71_s30, [#allocation10]  }
   0xb   :  { %s113_s17 = sshll.u32 %s10655_s8, 4  ;;  %s8111_s18 = smov [#allocation12]   ;;  %s114_s17 = int_to_ptr.hbm [resolvable:$true] %s113_s17 }
   0xc   :  { %s92_s19 = sshll.u32 %s8111_s18, 4  ;;  %s8112_s4 = smov [#allocation15]   ;;  %s93_s19 = int_to_ptr.vmem [resolvable:$true] %s92_s19 }
   0xd   :  { %95 = dma.hbm_to_vmem [thread:$0]  %s91_s15, 16, %s93_s19, [#allocation13]  }
   0xe   :  { %s115_s20 = sshll.u32 %s8112_s4, 4  ;;  %s8113_s21 = smov 256   ;;  %s116_s20 = int_to_ptr.vmem [resolvable:$true] %s115_s20 }
   0xf   :  { %s8114_s22 = smov 16   ;;  %s30_s24 = sshll.u32 %s10648_s1, 4  ;;  %s31_s24 = int_to_ptr.hbm [resolvable:$true] %s30_s24 }
  0x10   :  { %121 = dma.hbm_to_vmem [thread:$0]  %s114_s17, 36864, %s116_s20, [#allocation16], %s8113_s21, %s8113_s21, %s8114_s22  }
  0x11   :  { %s8115_s25 = smov [#allocation3]   ;;  %s54_s28 = sshll.u32 %s10650_s3, 4  ;;  %s55_s28 = int_to_ptr.hbm [resolvable:$true] %s54_s28 }
  0x12   :  { %s32_s26 = sshll.u32 %s8115_s25, 4  ;;  %s8116_s29 = smov 128   ;;  %s33_s26 = int_to_ptr.vmem [resolvable:$true] %s32_s26 }
  0x13   :  { %s8117_s30 = smov 8   ;;  %s8118_s13 = smov [#allocation8]  }
  0x14   :  { %38 = dma.hbm_to_vmem [thread:$0]  %s31_s24, 256, %s33_s26, [#allocation4], %s8116_s29, %s8116_s29, %s8117_s30  }
  0x15   :  { %s56_s14 = sshll.u32 %s8118_s13, 4  ;;  %s79_s16 = sshll.u32 %s10652_s5, 4  ;;  %s57_s14 = int_to_ptr.vmem [resolvable:$true] %s56_s14  ;;  %s80_s16 = int_to_ptr.hbm [resolvable:$true] %s79_s16 }
  0x16   :  { %62 = dma.hbm_to_vmem [thread:$0]  %s55_s28, 4608, %s57_s14, [#allocation7], %s8116_s29, %s8116_s29, %s8117_s30  }
  0x17   :  { %s100_s18 = sshll.u32 %s10654_s7, 4  ;;  %s8119_s19 = smov [#allocation11]   ;;  %s101_s18 = int_to_ptr.hbm [resolvable:$true] %s100_s18 }
  0x18   :  { %s81_s4 = sshll.u32 %s8119_s19, 4  ;;  %s8120_s3 = smov [#allocation14]   ;;  %s82_s4 = int_to_ptr.vmem [resolvable:$true] %s81_s4 }
  0x19   :  { %84 = dma.hbm_to_vmem [thread:$0]  %s80_s16, 16, %s82_s4, [#allocation10]  }
  0x1a   :  { %s102_s20 = sshll.u32 %s8120_s3, 4  ;;  %s8121_s21 = smov 512   ;;  %s103_s20 = int_to_ptr.vmem [resolvable:$true] %s102_s20 }
  0x1b   :  { %s8122_s22 = smov 32   ;;  %s127_s6 = sshll.u32 %s10656_s9, 4  ;;  %s128_s6 = int_to_ptr.hbm [resolvable:$true] %s127_s6 }
  0x1c   :  { %108 = dma.hbm_to_vmem [thread:$0]  %s101_s18, 18432, %s103_s20, [#allocation13], %s8121_s21, %s8121_s21, %s8122_s22  }
  0x1d   :  { %s8123_s24 = smov [#allocation17]   ;;  %s140_s8 = sshll.u32 %s10658_s11, 4  ;;  %s141_s8 = int_to_ptr.hbm [resolvable:$true] %s140_s8 }
  0x1e   :  { %s129_s25 = sshll.u32 %s8123_s24, 4  ;;  %s8124_s27 = smov [#allocation18]   ;;  %s130_s25 = int_to_ptr.vmem [resolvable:$true] %s129_s25 }
  0x1f   :  { %132 = dma.hbm_to_vmem [thread:$0]  %s128_s6, 32, %s130_s25, [#allocation16]  }
  0x20   :  { %s142_s28 = sshll.u32 %s8124_s27, 4  ;;  %s143_s28 = int_to_ptr.vmem [resolvable:$true] %s142_s28 }
  0x21   :  { %145 = dma.hbm_to_vmem [thread:$0]  %s141_s8, 16, %s143_s28, [#allocation19]  }
  0x22   :  { %8095 = dma.done.wait [#allocation4], 256  }
  0x23   :  { %8096 = vsyncadd [#allocation4], 4294967040 }
  0x24   :  { %8097 = dma.done.wait [#allocation7], 4624  }
  0x25   :  { %8098 = vsyncadd [#allocation7], 4294962672 }
  0x26   :  { %8099 = dma.done.wait [#allocation10], 32  }
  0x27   :  { %8100 = vsyncadd [#allocation10], 4294967264 }
  0x28   :  { %8101 = dma.done.wait [#allocation13], 18448  }
  0x29   :  { %8102 = vsyncadd [#allocation13], 4294948848 }
  0x2a   :  { %8103 = dma.done.wait [#allocation16], 36896  }
  0x2b   :  { %8104 = vsyncadd [#allocation16], 4294930400 }
  0x2c   :  { %8105 = dma.done.wait [#allocation19], 16  }
  0x2d   :  { %8106 = vsyncadd [#allocation19], 4294967280  ;;  %vm389_vm0 = vcmask 1040384   ;;  %v236_v0 = vld [vmem:[#allocation3 + $0x8] sm:$0x1]  ;;  %v235_v1 = vld [vmem:[#allocation3] sm:$0xff] }
  0x2e   :  { %7199 = vmatpush.msk.msra.mxu0 %vm389_vm0, %v236_v0  ;;  %v186_v2 = vld [vmem:[%s10647_s0] sm:$0xff]  ;;  %vm241_vm1 = vcmask 72704   ;;  %v187_v3 = vld [vmem:[%s10647_s0 + $0x8] sm:$0xff]  ;;  %v188_v4 = vld [vmem:[%s10647_s0 + $0x10] sm:$0xff]  ;;  %vm606_vm2 = vcmask 261120   ;;  %vm4435_vm3 = vcmask 64512  }
  0x2f   :  { %v189_v5 = vld [vmem:[%s10647_s0 + $0x18] sm:$0xff]  ;;  %v190_v6 = vld [vmem:[%s10647_s0 + $0x20] sm:$0xff]  ;;  %v191_v7 = vld [vmem:[%s10647_s0 + $0x28] sm:$0xff]  ;;  %s7184_s25 = sshll.u32 %s10659_s12, 4  ;;  %vm7175_vm4 = vcmask 58368   ;;  %s7185_s25 = int_to_ptr.hbm [resolvable:$true] %s7184_s25 }
  0x30   :  { %408 = vmatpush.msra.mxu0 %v235_v1  ;;  %v192_v8 = vld [vmem:[%s10647_s0 + $0x30] sm:$0xff]  ;;  %v193_v9 = vld [vmem:[%s10647_s0 + $0x38] sm:$0xff]  ;;  %v194_v10 = vld [vmem:[%s10647_s0 + $0x40] sm:$0xff] }
  0x31   :  { %7200 = vmatmul.msk.f32.vlgmr.msra.gmra.mxu0 %vm241_vm1, %v186_v2  ;;  %v195_v11 = vld [vmem:[%s10647_s0 + $0x48] sm:$0xff]  ;;  %v196_v12 = vld [vmem:[%s10647_s0 + $0x50] sm:$0xff]  ;;  %v197_v13 = vld [vmem:[%s10647_s0 + $0x58] sm:$0xff] }
  0x32   :  { %v198_v14 = vld [vmem:[%s10647_s0 + $0x60] sm:$0xff]  ;;  %v199_v15 = vld [vmem:[%s10647_s0 + $0x68] sm:$0xff]  ;;  %v766_v16 = vld [vmem:[#allocation8 + $0x38] sm:$0xff] }
  0x33   :  { %v712_v17 = vld [vmem:[#allocation8 + $0x18] sm:$0xff]  ;;  %926 = vmatpush.msra.mxu1 %v766_v16  ;;  %v765_v18 = vld [vmem:[#allocation8 + $0x30] sm:$0xff]  ;;  %v764_v21 = vld [vmem:[#allocation8 + $0x28] sm:$0xff] }
  0x34   :  { %7798 = vmatpush.msra.mxu2 %v712_v17  ;;  %v711_v19 = vld [vmem:[#allocation8 + $0x10] sm:$0xff]  ;;  %1237 = vmatpush.msrb.mxu0 %v712_v17  ;;  %v710_v22 = vld [vmem:[#allocation8 + $0x8] sm:$0xff]  ;;  %v763_v23 = vld [vmem:[#allocation8 + $0x20] sm:$0xff] }
  0x35   :  { %v200_v20 = vld [vmem:[%s10647_s0 + $0x70] sm:$0xff]  ;;  %927 = vmatpush.msra.mxu1 %v765_v18  ;;  %v709_v24 = vld [vmem:[#allocation8] sm:$0xff]  ;;  %v1440_v28 = vld [vmem:[#allocation8 + $0x48] sm:$0xff] }
  0x36   :  { %7799 = vmatpush.msra.mxu2 %v711_v19  ;;  %1238 = vmatpush.msrb.mxu0 %v711_v19  ;;  %v1442_v25 = vld [vmem:[#allocation8 + $0x58] sm:$0xff]  ;;  %v1441_v26 = vld [vmem:[#allocation8 + $0x50] sm:$0xff]  ;;  %v1439_v29 = vld [vmem:[#allocation8 + $0x40] sm:$0xff] }
  0x37   :  { %928 = vmatpush.msra.mxu1 %v764_v21  ;;  %7802 = vmatpush.msra.mxu3 %v1442_v25  ;;  %v201_v27 = vld [vmem:[%s10647_s0 + $0x78] sm:$0xff]  ;;  %v202_v32 = vld [vmem:[%s10647_s0 + $0x80] sm:$0xff]  ;;  %v203_v36 = vld [vmem:[%s10647_s0 + $0x88] sm:$0xff] }
  0x38   :  { %7800 = vmatpush.msra.mxu2 %v710_v22  ;;  %1239 = vmatpush.msrb.mxu0 %v710_v22  ;;  %v8286_v30 = vld [vmem:[#allocation6] ss:$0 sm:$0xff]  ;;  %v204_v40 = vld [vmem:[%s10647_s0 + $0x90] sm:$0xff]  ;;  %v206_v53 = vld [vmem:[%s10647_s0 + $0xa0] sm:$0xff] }
  0x39   :  { %7201 = vmatmul.msk.f32.gmra.mxu0 %vm241_vm1, %v187_v3  ;;  %929 = vmatpush.msra.mxu1 %v763_v23  ;;  %v205_v46 = vld [vmem:[%s10647_s0 + $0x98] sm:$0xff]  ;;  %v207_v60 = vld [vmem:[%s10647_s0 + $0xa8] sm:$0xff]  ;;  %v208_v3 = vld [vmem:[%s10647_s0 + $0xb0] sm:$0xff] }
  0x3a   :  { %7801 = vmatpush.msra.mxu2 %v709_v24  ;;  %1240 = vmatpush.msrb.mxu0 %v709_v24  ;;  %v210_v17 = vld [vmem:[%s10647_s0 + $0xc0] sm:$0xff]  ;;  %v211_v24 = vld [vmem:[%s10647_s0 + $0xc8] sm:$0xff] }
  0x3b   :  { %1602 = vmatpush.msrb.mxu1 %v1442_v25  ;;  %7803 = vmatpush.msra.mxu3 %v1441_v26 }
  0x3d   :  { %1603 = vmatpush.msrb.mxu1 %v1441_v26  ;;  %7804 = vmatpush.msra.mxu3 %v1440_v28 }
  0x3f   :  { %1604 = vmatpush.msrb.mxu1 %v1440_v28  ;;  %7805 = vmatpush.msra.mxu3 %v1439_v29 }
  0x41   :  { %7202 = vmatmul.msk.f32.gmra.mxu0 %vm241_vm1, %v188_v4  ;;  %1605 = vmatpush.msrb.mxu1 %v1439_v29 }
  0x49   :  { %7203 = vmatmul.msk.f32.gmra.mxu0 %vm241_vm1, %v189_v5 }
  0x51   :  { %7204 = vmatmul.msk.f32.gmra.mxu0 %vm241_vm1, %v190_v6 }
  0x59   :  { %7205 = vmatmul.msk.f32.gmra.mxu0 %vm241_vm1, %v191_v7 }
  0x61   :  { %7206 = vmatmul.msk.f32.gmra.mxu0 %vm241_vm1, %v192_v8 }
  0x69   :  { %7207 = vmatmul.msk.f32.gmra.mxu0 %vm241_vm1, %v193_v9 }
  0x71   :  { %7208 = vmatmul.msk.f32.gmra.mxu0 %vm241_vm1, %v194_v10  ;;  %v209_v10 = vld [vmem:[%s10647_s0 + $0xb8] sm:$0xff] }
  0x79   :  { %7209 = vmatmul.msk.f32.gmra.mxu0 %vm241_vm1, %v195_v11 }
  0x81   :  { %7210 = vmatmul.msk.f32.gmra.mxu0 %vm241_vm1, %v196_v12 }
  0x89   :  { %7211 = vmatmul.msk.f32.gmra.mxu0 %vm241_vm1, %v197_v13 }
  0x91   :  { %7212 = vmatmul.msk.f32.gmra.mxu0 %vm241_vm1, %v198_v14 }
  0x99   :  { %7213 = vmatmul.msk.f32.gmra.mxu0 %vm241_vm1, %v199_v15 }
  0xa1   :  { %7214 = vmatmul.msk.f32.gmra.mxu0 %vm241_vm1, %v200_v20 }
  0xa9   :  { %7215 = vmatmul.msk.f32.gmra.mxu0 %vm241_vm1, %v201_v27 }
  0xae   :  { %v410_v31 = vpop.f32.mrf.mxu0 }
  0xaf   :  { %v411_v33 = vadd.f32 %v8286_v30, %v410_v31 }
  0xb1   :  { %v557_v34 = vmax.f32 %v411_v33, 0.0  ;;  %7216 = vmatmul.msk.f32.gmra.mxu0 %vm241_vm1, %v202_v32  ;;  %v212_v32 = vld [vmem:[%s10647_s0 + $0xd0] sm:$0xff] }
  0xb3   :  { %607 = vst.msk [vmem:[#allocation2] sm:$0xff] %vm606_vm2, %v557_v34 }
  0xb6   :  { %v413_v35 = vpop.f32.mrf.mxu0 }
  0xb7   :  { %v414_v37 = vadd.f32 %v8286_v30, %v413_v35 }
  0xb9   :  { %v558_v38 = vmax.f32 %v414_v37, 0.0  ;;  %7217 = vmatmul.msk.f32.gmra.mxu0 %vm241_vm1, %v203_v36 }
  0xbb   :  { %608 = vst.msk [vmem:[#allocation2 + $0x8] sm:$0xff] %vm606_vm2, %v558_v38 }
  0xbe   :  { %v416_v39 = vpop.f32.mrf.mxu0 }
  0xbf   :  { %v417_v41 = vadd.f32 %v8286_v30, %v416_v39  ;;  %v213_v39 = vld [vmem:[%s10647_s0 + $0xd8] sm:$0xff] }
  0xc1   :  { %v559_v42 = vmax.f32 %v417_v41, 0.0  ;;  %7218 = vmatmul.msk.f32.gmra.mxu0 %vm241_vm1, %v204_v40 }
  0xc2   :  { %v713_v43 = vld [vmem:[#allocation2 + $0x1] sm:$0xff] }
  0xc3   :  { %v661_v44 = vld [vmem:[#allocation2 + $0x8] sm:$0xff]  ;;  %609 = vst.msk [vmem:[#allocation2 + $0x10] sm:$0xff] %vm606_vm2, %v559_v42  ;;  %7249 = vmatmul.msk.f32.vlgmr.msra.gmra.mxu1 %vm606_vm2, %v713_v43 }
  0xc4   :  { %7299 = vmatmul.msk.f32.vlgmr.msra.gmra.mxu2 %vm606_vm2, %v661_v44 }
  0xc6   :  { %v419_v45 = vpop.f32.mrf.mxu0 }
  0xc7   :  { %v420_v47 = vadd.f32 %v8286_v30, %v419_v45 }
  0xc9   :  { %v560_v48 = vmax.f32 %v420_v47, 0.0  ;;  %7219 = vmatmul.msk.f32.gmra.mxu0 %vm241_vm1, %v205_v46  ;;  %v214_v46 = vld [vmem:[%s10647_s0 + $0xe0] sm:$0xff] }
  0xca   :  { %v714_v49 = vld [vmem:[#allocation2 + $0x9] sm:$0xff] }
  0xcb   :  { %v662_v50 = vld [vmem:[#allocation2 + $0x10] sm:$0xff]  ;;  %610 = vst.msk [vmem:[#allocation2 + $0x18] sm:$0xff] %vm606_vm2, %v560_v48  ;;  %7250 = vmatmul.msk.f32.gmra.mxu1 %vm606_vm2, %v714_v49 }
  0xcc   :  { %v1390_v51 = vld [vmem:[#allocation2 + $0xa] sm:$0xff]  ;;  %7300 = vmatmul.msk.f32.gmra.mxu2 %vm606_vm2, %v662_v50 }
  0xcd   :  { %7348 = vmatmul.msk.f32.vlgmr.msra.gmra.mxu3 %vm606_vm2, %v1390_v51 }
  0xce   :  { %v422_v52 = vpop.f32.mrf.mxu0 }
  0xcf   :  { %v423_v54 = vadd.f32 %v8286_v30, %v422_v52 }
  0xd1   :  { %v561_v55 = vmax.f32 %v423_v54, 0.0  ;;  %7220 = vmatmul.msk.f32.gmra.mxu0 %vm241_vm1, %v206_v53  ;;  %v215_v53 = vld [vmem:[%s10647_s0 + $0xe8] sm:$0xff] }
  0xd2   :  { %v715_v56 = vld [vmem:[#allocation2 + $0x11] sm:$0xff] }
  0xd3   :  { %v663_v57 = vld [vmem:[#allocation2 + $0x18] sm:$0xff]  ;;  %611 = vst.msk [vmem:[#allocation2 + $0x20] sm:$0xff] %vm606_vm2, %v561_v55  ;;  %7251 = vmatmul.msk.f32.gmra.mxu1 %vm606_vm2, %v715_v56 }
  0xd4   :  { %v1391_v58 = vld [vmem:[#allocation2 + $0x12] sm:$0xff]  ;;  %7301 = vmatmul.msk.f32.gmra.mxu2 %vm606_vm2, %v663_v57 }
  0xd5   :  { %7349 = vmatmul.msk.f32.gmra.mxu3 %vm606_vm2, %v1391_v58 }
  0xd6   :  { %v425_v59 = vpop.f32.mrf.mxu0 }
  0xd7   :  { %v426_v61 = vadd.f32 %v8286_v30, %v425_v59 }
  0xd9   :  { %v562_v62 = vmax.f32 %v426_v61, 0.0  ;;  %7221 = vmatmul.msk.f32.gmra.mxu0 %vm241_vm1, %v207_v60  ;;  %v216_v60 = vld [vmem:[%s10647_s0 + $0xf0] sm:$0xff] }
  0xda   :  { %v716_v63 = vld [vmem:[#allocation2 + $0x19] sm:$0xff] }
  0xdb   :  { %v664_v0 = vld [vmem:[#allocation2 + $0x20] sm:$0xff]  ;;  %612 = vst.msk [vmem:[#allocation2 + $0x28] sm:$0xff] %vm606_vm2, %v562_v62  ;;  %7252 = vmatmul.msk.f32.gmra.mxu1 %vm606_vm2, %v716_v63 }
  0xdc   :  { %v1392_v1 = vld [vmem:[#allocation2 + $0x1a] sm:$0xff]  ;;  %7302 = vmatmul.msk.f32.gmra.mxu2 %vm606_vm2, %v664_v0 }
  0xdd   :  { %7350 = vmatmul.msk.f32.gmra.mxu3 %vm606_vm2, %v1392_v1 }
  0xde   :  { %v428_v2 = vpop.f32.mrf.mxu0 }
  0xdf   :  { %v429_v4 = vadd.f32 %v8286_v30, %v428_v2 }
  0xe1   :  { %v563_v5 = vmax.f32 %v429_v4, 0.0  ;;  %7222 = vmatmul.msk.f32.gmra.mxu0 %vm241_vm1, %v208_v3  ;;  %v217_v3 = vld [vmem:[%s10647_s0 + $0xf8] sm:$0xff] }
  0xe2   :  { %v717_v6 = vld [vmem:[#allocation2 + $0x21] sm:$0xff] }
  0xe3   :  { %v665_v7 = vld [vmem:[#allocation2 + $0x28] sm:$0xff]  ;;  %613 = vst.msk [vmem:[#allocation2 + $0x30] sm:$0xff] %vm606_vm2, %v563_v5  ;;  %7253 = vmatmul.msk.f32.gmra.mxu1 %vm606_vm2, %v717_v6 }
  0xe4   :  { %v1393_v8 = vld [vmem:[#allocation2 + $0x22] sm:$0xff]  ;;  %7303 = vmatmul.msk.f32.gmra.mxu2 %vm606_vm2, %v665_v7 }
  0xe5   :  { %7351 = vmatmul.msk.f32.gmra.mxu3 %vm606_vm2, %v1393_v8 }
  0xe6   :  { %v431_v9 = vpop.f32.mrf.mxu0 }
  0xe7   :  { %v432_v11 = vadd.f32 %v8286_v30, %v431_v9 }
  0xe9   :  { %v564_v12 = vmax.f32 %v432_v11, 0.0  ;;  %7223 = vmatmul.msk.f32.gmra.mxu0 %vm241_vm1, %v209_v10  ;;  %v218_v10 = vld [vmem:[%s10647_s0 + $0x100] sm:$0xff] }
  0xea   :  { %v718_v13 = vld [vmem:[#allocation2 + $0x29] sm:$0xff] }
  0xeb   :  { %v666_v14 = vld [vmem:[#allocation2 + $0x30] sm:$0xff]  ;;  %614 = vst.msk [vmem:[#allocation2 + $0x38] sm:$0xff] %vm606_vm2, %v564_v12  ;;  %7254 = vmatmul.msk.f32.gmra.mxu1 %vm606_vm2, %v718_v13 }
  0xec   :  { %v1394_v15 = vld [vmem:[#allocation2 + $0x2a] sm:$0xff]  ;;  %7304 = vmatmul.msk.f32.gmra.mxu2 %vm606_vm2, %v666_v14 }
  0xed   :  { %7352 = vmatmul.msk.f32.gmra.mxu3 %vm606_vm2, %v1394_v15 }
  0xee   :  { %v434_v16 = vpop.f32.mrf.mxu0 }
  0xef   :  { %v435_v18 = vadd.f32 %v8286_v30, %v434_v16 }
  0xf1   :  { %v565_v19 = vmax.f32 %v435_v18, 0.0  ;;  %7224 = vmatmul.msk.f32.gmra.mxu0 %vm241_vm1, %v210_v17  ;;  %v219_v17 = vld [vmem:[%s10647_s0 + $0x108] sm:$0xff] }
  0xf2   :  { %v719_v20 = vld [vmem:[#allocation2 + $0x31] sm:$0xff] }
  0xf3   :  { %v667_v21 = vld [vmem:[#allocation2 + $0x38] sm:$0xff]  ;;  %615 = vst.msk [vmem:[#allocation2 + $0x40] sm:$0xff] %vm606_vm2, %v565_v19  ;;  %7255 = vmatmul.msk.f32.gmra.mxu1 %vm606_vm2, %v719_v20 }
  0xf4   :  { %v1395_v22 = vld [vmem:[#allocation2 + $0x32] sm:$0xff]  ;;  %7305 = vmatmul.msk.f32.gmra.mxu2 %vm606_vm2, %v667_v21 }
  0xf5   :  { %7353 = vmatmul.msk.f32.gmra.mxu3 %vm606_vm2, %v1395_v22 }
  0xf6   :  { %v437_v23 = vpop.f32.mrf.mxu0 }
  0xf7   :  { %v438_v25 = vadd.f32 %v8286_v30, %v437_v23 }
  0xf9   :  { %v566_v26 = vmax.f32 %v438_v25, 0.0  ;;  %7225 = vmatmul.msk.f32.gmra.mxu0 %vm241_vm1, %v211_v24  ;;  %v220_v24 = vld [vmem:[%s10647_s0 + $0x110] sm:$0xff] }
  0xfa   :  { %v720_v27 = vld [vmem:[#allocation2 + $0x39] sm:$0xff] }
  0xfb   :  { %v668_v28 = vld [vmem:[#allocation2 + $0x40] sm:$0xff]  ;;  %616 = vst.msk [vmem:[#allocation2 + $0x48] sm:$0xff] %vm606_vm2, %v566_v26  ;;  %7256 = vmatmul.msk.f32.gmra.mxu1 %vm606_vm2, %v720_v27 }
  0xfc   :  { %v1396_v29 = vld [vmem:[#allocation2 + $0x3a] sm:$0xff]  ;;  %7306 = vmatmul.msk.f32.gmra.mxu2 %vm606_vm2, %v668_v28 }
  0xfd   :  { %7354 = vmatmul.msk.f32.gmra.mxu3 %vm606_vm2, %v1396_v29 }
  0xfe   :  { %v440_v31 = vpop.f32.mrf.mxu0 }
  0xff   :  { %v441_v33 = vadd.f32 %v8286_v30, %v440_v31 }
 0x101   :  { %v567_v34 = vmax.f32 %v441_v33, 0.0  ;;  %7226 = vmatmul.msk.f32.gmra.mxu0 %vm241_vm1, %v212_v32 }
 0x102   :  { %v721_v35 = vld [vmem:[#allocation2 + $0x41] sm:$0xff] }
 0x103   :  { %v669_v36 = vld [vmem:[#allocation2 + $0x48] sm:$0xff]  ;;  %617 = vst.msk [vmem:[#allocation2 + $0x50] sm:$0xff] %vm606_vm2, %v567_v34  ;;  %7257 = vmatmul.msk.f32.gmra.mxu1 %vm606_vm2, %v721_v35  ;;  %v221_v34 = vld [vmem:[%s10647_s0 + $0x118] sm:$0xff] }
 0x104   :  { %v1397_v37 = vld [vmem:[#allocation2 + $0x42] sm:$0xff]  ;;  %7307 = vmatmul.msk.f32.gmra.mxu2 %vm606_vm2, %v669_v36 }
 0x105   :  { %7355 = vmatmul.msk.f32.gmra.mxu3 %vm606_vm2, %v1397_v37 }
 0x106   :  { %v443_v38 = vpop.f32.mrf.mxu0 }
 0x107   :  { %v444_v40 = vadd.f32 %v8286_v30, %v443_v38 }
 0x109   :  { %v568_v41 = vmax.f32 %v444_v40, 0.0  ;;  %7227 = vmatmul.msk.f32.gmra.mxu0 %vm241_vm1, %v213_v39 }
 0x10a   :  { %v722_v42 = vld [vmem:[#allocation2 + $0x49] sm:$0xff] }
 0x10b   :  { %v670_v43 = vld [vmem:[#allocation2 + $0x50] sm:$0xff]  ;;  %618 = vst.msk [vmem:[#allocation2 + $0x58] sm:$0xff] %vm606_vm2, %v568_v41  ;;  %7258 = vmatmul.msk.f32.gmra.mxu1 %vm606_vm2, %v722_v42 }
 0x10c   :  { %v1398_v44 = vld [vmem:[#allocation2 + $0x4a] sm:$0xff]  ;;  %7308 = vmatmul.msk.f32.gmra.mxu2 %vm606_vm2, %v670_v43 }
 0x10d   :  { %7356 = vmatmul.msk.f32.gmra.mxu3 %vm606_vm2, %v1398_v44  ;;  %v222_v44 = vld [vmem:[%s10647_s0 + $0x120] sm:$0xff] }
 0x10e   :  { %v446_v45 = vpop.f32.mrf.mxu0 }
 0x10f   :  { %v447_v47 = vadd.f32 %v8286_v30, %v446_v45 }
 0x111   :  { %v569_v48 = vmax.f32 %v447_v47, 0.0  ;;  %7228 = vmatmul.msk.f32.gmra.mxu0 %vm241_vm1, %v214_v46 }
 0x112   :  { %v723_v49 = vld [vmem:[#allocation2 + $0x51] sm:$0xff] }
 0x113   :  { %v671_v50 = vld [vmem:[#allocation2 + $0x58] sm:$0xff]  ;;  %619 = vst.msk [vmem:[#allocation2 + $0x60] sm:$0xff] %vm606_vm2, %v569_v48  ;;  %7259 = vmatmul.msk.f32.gmra.mxu1 %vm606_vm2, %v723_v49 }
 0x114   :  { %v1399_v51 = vld [vmem:[#allocation2 + $0x52] sm:$0xff]  ;;  %7309 = vmatmul.msk.f32.gmra.mxu2 %vm606_vm2, %v671_v50 }
 0x115   :  { %7357 = vmatmul.msk.f32.gmra.mxu3 %vm606_vm2, %v1399_v51 }
 0x116   :  { %v449_v52 = vpop.f32.mrf.mxu0 }
 0x117   :  { %v450_v54 = vadd.f32 %v8286_v30, %v449_v52 }
 0x119   :  { %v570_v55 = vmax.f32 %v450_v54, 0.0  ;;  %7229 = vmatmul.msk.f32.gmra.mxu0 %vm241_vm1, %v215_v53 }
 0x11a   :  { %v724_v56 = vld [vmem:[#allocation2 + $0x59] sm:$0xff] }
 0x11b   :  { %v672_v57 = vld [vmem:[#allocation2 + $0x60] sm:$0xff]  ;;  %620 = vst.msk [vmem:[#allocation2 + $0x68] sm:$0xff] %vm606_vm2, %v570_v55  ;;  %7260 = vmatmul.msk.f32.gmra.mxu1 %vm606_vm2, %v724_v56  ;;  %v223_v56 = vld [vmem:[%s10647_s0 + $0x128] sm:$0xff] }
 0x11c   :  { %v1400_v58 = vld [vmem:[#allocation2 + $0x5a] sm:$0xff]  ;;  %7310 = vmatmul.msk.f32.gmra.mxu2 %vm606_vm2, %v672_v57 }
 0x11d   :  { %7358 = vmatmul.msk.f32.gmra.mxu3 %vm606_vm2, %v1400_v58 }
 0x11e   :  { %v452_v59 = vpop.f32.mrf.mxu0 }
 0x11f   :  { %v453_v61 = vadd.f32 %v8286_v30, %v452_v59 }
 0x121   :  { %v571_v62 = vmax.f32 %v453_v61, 0.0  ;;  %7230 = vmatmul.msk.f32.gmra.mxu0 %vm241_vm1, %v216_v60 }
 0x122   :  { %v725_v63 = vld [vmem:[#allocation2 + $0x61] sm:$0xff] }
 0x123   :  { %v673_v0 = vld [vmem:[#allocation2 + $0x68] sm:$0xff]  ;;  %621 = vst.msk [vmem:[#allocation2 + $0x70] sm:$0xff] %vm606_vm2, %v571_v62  ;;  %7261 = vmatmul.msk.f32.gmra.mxu1 %vm606_vm2, %v725_v63 }
 0x124   :  { %v1401_v1 = vld [vmem:[#allocation2 + $0x62] sm:$0xff]  ;;  %7311 = vmatmul.msk.f32.gmra.mxu2 %vm606_vm2, %v673_v0 }
 0x125   :  { %7359 = vmatmul.msk.f32.gmra.mxu3 %vm606_vm2, %v1401_v1 }
 0x126   :  { %v455_v2 = vpop.f32.mrf.mxu0 }
 0x127   :  { %v456_v4 = vadd.f32 %v8286_v30, %v455_v2 }
 0x129   :  { %v572_v5 = vmax.f32 %v456_v4, 0.0  ;;  %7231 = vmatmul.msk.f32.gmra.mxu0 %vm241_vm1, %v217_v3  ;;  %v224_v4 = vld [vmem:[%s10647_s0 + $0x130] sm:$0xff] }
 0x12a   :  { %v726_v6 = vld [vmem:[#allocation2 + $0x69] sm:$0xff] }
 0x12b   :  { %v674_v7 = vld [vmem:[#allocation2 + $0x70] sm:$0xff]  ;;  %622 = vst.msk [vmem:[#allocation2 + $0x78] sm:$0xff] %vm606_vm2, %v572_v5  ;;  %7262 = vmatmul.msk.f32.gmra.mxu1 %vm606_vm2, %v726_v6 }
 0x12c   :  { %v1402_v8 = vld [vmem:[#allocation2 + $0x6a] sm:$0xff]  ;;  %7312 = vmatmul.msk.f32.gmra.mxu2 %vm606_vm2, %v674_v7 }
 0x12d   :  { %7360 = vmatmul.msk.f32.gmra.mxu3 %vm606_vm2, %v1402_v8 }
 0x12e   :  { %v458_v9 = vpop.f32.mrf.mxu0 }
 0x12f   :  { %v459_v11 = vadd.f32 %v8286_v30, %v458_v9 }
 0x131   :  { %v573_v12 = vmax.f32 %v459_v11, 0.0  ;;  %7232 = vmatmul.msk.f32.gmra.mxu0 %vm241_vm1, %v218_v10 }
 0x132   :  { %v727_v13 = vld [vmem:[#allocation2 + $0x71] sm:$0xff] }
 0x133   :  { %v675_v14 = vld [vmem:[#allocation2 + $0x78] sm:$0xff]  ;;  %623 = vst.msk [vmem:[#allocation2 + $0x80] sm:$0xff] %vm606_vm2, %v573_v12  ;;  %7263 = vmatmul.msk.f32.gmra.mxu1 %vm606_vm2, %v727_v13 }
 0x134   :  { %v1403_v15 = vld [vmem:[#allocation2 + $0x72] sm:$0xff]  ;;  %7313 = vmatmul.msk.f32.gmra.mxu2 %vm606_vm2, %v675_v14 }
 0x135   :  { %7361 = vmatmul.msk.f32.gmra.mxu3 %vm606_vm2, %v1403_v15 }
 0x136   :  { %v461_v16 = vpop.f32.mrf.mxu0 }
 0x137   :  { %v462_v18 = vadd.f32 %v8286_v30, %v461_v16  ;;  %v225_v16 = vld [vmem:[%s10647_s0 + $0x138] sm:$0xff] }
 0x139   :  { %v574_v19 = vmax.f32 %v462_v18, 0.0  ;;  %7233 = vmatmul.msk.f32.gmra.mxu0 %vm241_vm1, %v219_v17 }
 0x13a   :  { %v728_v20 = vld [vmem:[#allocation2 + $0x79] sm:$0xff] }
 0x13b   :  { %v676_v21 = vld [vmem:[#allocation2 + $0x80] sm:$0xff]  ;;  %624 = vst.msk [vmem:[#allocation2 + $0x88] sm:$0xff] %vm606_vm2, %v574_v19  ;;  %7264 = vmatmul.msk.f32.gmra.mxu1 %vm606_vm2, %v728_v20 }
 0x13c   :  { %v1404_v22 = vld [vmem:[#allocation2 + $0x7a] sm:$0xff]  ;;  %7314 = vmatmul.msk.f32.gmra.mxu2 %vm606_vm2, %v676_v21 }
 0x13d   :  { %7362 = vmatmul.msk.f32.gmra.mxu3 %vm606_vm2, %v1404_v22 }
 0x13e   :  { %v464_v23 = vpop.f32.mrf.mxu0 }
 0x13f   :  { %v465_v25 = vadd.f32 %v8286_v30, %v464_v23 }
 0x140   :  { %v8447_v26 = vpop.f32.mrf.mxu1 }
 0x141   :  { %v575_v27 = vmax.f32 %v465_v25, 0.0  ;;  %7234 = vmatmul.msk.f32.gmra.mxu0 %vm241_vm1, %v220_v24 }
 0x142   :  { %v729_v28 = vld [vmem:[#allocation2 + $0x81] sm:$0xff] }
 0x143   :  { %v677_v29 = vld [vmem:[#allocation2 + $0x88] sm:$0xff]  ;;  %625 = vst.msk [vmem:[#allocation2 + $0x90] sm:$0xff] %vm606_vm2, %v575_v27  ;;  %7265 = vmatmul.msk.f32.gmra.mxu1 %vm606_vm2, %v729_v28 }
 0x144   :  { %v1405_v31 = vld [vmem:[#allocation2 + $0x82] sm:$0xff]  ;;  %7315 = vmatmul.msk.f32.gmra.mxu2 %vm606_vm2, %v677_v29 }
 0x145   :  { %7363 = vmatmul.msk.f32.gmra.mxu3 %vm606_vm2, %v1405_v31  ;;  %v226_v29 = vld [vmem:[%s10647_s0 + $0x140] sm:$0xff] }
 0x146   :  { %v467_v32 = vpop.f32.mrf.mxu0 }
 0x147   :  { %v1245_v33 = vpop.f32.mrf.mxu2  ;;  %v468_v35 = vadd.f32 %v8286_v30, %v467_v32 }
 0x148   :  { %v934_v36 = vpop.f32.mrf.mxu1 }
 0x149   :  { %v576_v37 = vmax.f32 %v468_v35, 0.0  ;;  %7235 = vmatmul.msk.f32.gmra.mxu0 %vm241_vm1, %v221_v34  ;;  %v1246_v41 = vadd.f32 %v1245_v33, %v934_v36 }
 0x14a   :  { %v730_v38 = vld [vmem:[#allocation2 + $0x89] sm:$0xff] }
 0x14b   :  { %v678_v39 = vld [vmem:[#allocation2 + $0x90] sm:$0xff]  ;;  %626 = vst.msk [vmem:[#allocation2 + $0x98] sm:$0xff] %vm606_vm2, %v576_v37  ;;  %7266 = vmatmul.msk.f32.gmra.mxu1 %vm606_vm2, %v730_v38 }
 0x14c   :  { %v1406_v40 = vld [vmem:[#allocation2 + $0x8a] sm:$0xff]  ;;  %7316 = vmatmul.msk.f32.gmra.mxu2 %vm606_vm2, %v678_v39 }
 0x14d   :  { %7364 = vmatmul.msk.f32.gmra.mxu3 %vm606_vm2, %v1406_v40 }
 0x14e   :  { %v470_v42 = vpop.f32.mrf.mxu0 }
 0x14f   :  { %v1248_v43 = vpop.f32.mrf.mxu2  ;;  %v471_v45 = vadd.f32 %v8286_v30, %v470_v42  ;;  %v227_v42 = vld [vmem:[%s10647_s0 + $0x148] sm:$0xff] }
 0x150   :  { %v1610_v46 = vpop.f32.mrf.mxu3  ;;  %v937_v48 = vpop.f32.mrf.mxu1 }
 0x151   :  { %v8467_v47 = vadd.f32 %v1610_v46, %v1246_v41  ;;  %v577_v49 = vmax.f32 %v471_v45, 0.0  ;;  %7236 = vmatmul.msk.f32.gmra.mxu0 %vm241_vm1, %v222_v44  ;;  %v1249_v53 = vadd.f32 %v1248_v43, %v937_v48 }
 0x152   :  { %v731_v50 = vld [vmem:[#allocation2 + $0x91] sm:$0xff] }
 0x153   :  { %v679_v51 = vld [vmem:[#allocation2 + $0x98] sm:$0xff]  ;;  %627 = vst.msk [vmem:[#allocation2 + $0xa0] sm:$0xff] %vm606_vm2, %v577_v49  ;;  %7267 = vmatmul.msk.f32.gmra.mxu1 %vm606_vm2, %v731_v50 }
 0x154   :  { %v1407_v52 = vld [vmem:[#allocation2 + $0x92] sm:$0xff]  ;;  %7317 = vmatmul.msk.f32.gmra.mxu2 %vm606_vm2, %v679_v51 }
 0x155   :  { %7365 = vmatmul.msk.f32.gmra.mxu3 %vm606_vm2, %v1407_v52 }
 0x156   :  { %v473_v54 = vpop.f32.mrf.mxu0 }
 0x157   :  { %v1251_v55 = vpop.f32.mrf.mxu2  ;;  %v474_v57 = vadd.f32 %v8286_v30, %v473_v54 }
 0x158   :  { %v1613_v58 = vpop.f32.mrf.mxu3  ;;  %v940_v60 = vpop.f32.mrf.mxu1 }
 0x159   :  { %v8478_v59 = vadd.f32 %v1613_v58, %v1249_v53  ;;  %v578_v61 = vmax.f32 %v474_v57, 0.0  ;;  %7237 = vmatmul.msk.f32.gmra.mxu0 %vm241_vm1, %v223_v56  ;;  %v1252_v1 = vadd.f32 %v1251_v55, %v940_v60  ;;  %v228_v55 = vld [vmem:[%s10647_s0 + $0x150] sm:$0xff] }
 0x15a   :  { %v732_v62 = vld [vmem:[#allocation2 + $0x99] sm:$0xff] }
 0x15b   :  { %v680_v63 = vld [vmem:[#allocation2 + $0xa0] sm:$0xff]  ;;  %628 = vst.msk [vmem:[#allocation2 + $0xa8] sm:$0xff] %vm606_vm2, %v578_v61  ;;  %7268 = vmatmul.msk.f32.gmra.mxu1 %vm606_vm2, %v732_v62 }
 0x15c   :  { %v1408_v0 = vld [vmem:[#allocation2 + $0x9a] sm:$0xff]  ;;  %7318 = vmatmul.msk.f32.gmra.mxu2 %vm606_vm2, %v680_v63 }
 0x15d   :  { %7366 = vmatmul.msk.f32.gmra.mxu3 %vm606_vm2, %v1408_v0 }
 0x15e   :  { %v476_v2 = vpop.f32.mrf.mxu0 }
 0x15f   :  { %v1254_v3 = vpop.f32.mrf.mxu2  ;;  %v477_v5 = vadd.f32 %v8286_v30, %v476_v2 }
 0x160   :  { %v1616_v6 = vpop.f32.mrf.mxu3  ;;  %v943_v8 = vpop.f32.mrf.mxu1 }
 0x161   :  { %v8489_v7 = vadd.f32 %v1616_v6, %v1252_v1  ;;  %v579_v9 = vmax.f32 %v477_v5, 0.0  ;;  %7238 = vmatmul.msk.f32.gmra.mxu0 %vm241_vm1, %v224_v4  ;;  %v1255_v13 = vadd.f32 %v1254_v3, %v943_v8  ;;  %v229_v4 = vld [vmem:[%s10647_s0 + $0x158] sm:$0xff] }
 0x162   :  { %v733_v10 = vld [vmem:[#allocation2 + $0xa1] sm:$0xff] }
 0x163   :  { %v681_v11 = vld [vmem:[#allocation2 + $0xa8] sm:$0xff]  ;;  %629 = vst.msk [vmem:[#allocation2 + $0xb0] sm:$0xff] %vm606_vm2, %v579_v9  ;;  %7269 = vmatmul.msk.f32.gmra.mxu1 %vm606_vm2, %v733_v10 }
 0x164   :  { %v1409_v12 = vld [vmem:[#allocation2 + $0xa2] sm:$0xff]  ;;  %7319 = vmatmul.msk.f32.gmra.mxu2 %vm606_vm2, %v681_v11 }
 0x165   :  { %7367 = vmatmul.msk.f32.gmra.mxu3 %vm606_vm2, %v1409_v12 }
 0x166   :  { %v479_v14 = vpop.f32.mrf.mxu0 }
 0x167   :  { %v1257_v15 = vpop.f32.mrf.mxu2  ;;  %v480_v17 = vadd.f32 %v8286_v30, %v479_v14 }
 0x168   :  { %v1619_v18 = vpop.f32.mrf.mxu3  ;;  %v946_v20 = vpop.f32.mrf.mxu1 }
 0x169   :  { %v8500_v19 = vadd.f32 %v1619_v18, %v1255_v13  ;;  %v580_v21 = vmax.f32 %v480_v17, 0.0  ;;  %7239 = vmatmul.msk.f32.gmra.mxu0 %vm241_vm1, %v225_v16  ;;  %v1258_v25 = vadd.f32 %v1257_v15, %v946_v20  ;;  %v230_v17 = vld [vmem:[%s10647_s0 + $0x160] sm:$0xff] }
 0x16a   :  { %v734_v22 = vld [vmem:[#allocation2 + $0xa9] sm:$0xff] }
 0x16b   :  { %v682_v23 = vld [vmem:[#allocation2 + $0xb0] sm:$0xff]  ;;  %630 = vst.msk [vmem:[#allocation2 + $0xb8] sm:$0xff] %vm606_vm2, %v580_v21  ;;  %7270 = vmatmul.msk.f32.gmra.mxu1 %vm606_vm2, %v734_v22 }
 0x16c   :  { %v1410_v24 = vld [vmem:[#allocation2 + $0xaa] sm:$0xff]  ;;  %7320 = vmatmul.msk.f32.gmra.mxu2 %vm606_vm2, %v682_v23 }
 0x16d   :  { %7368 = vmatmul.msk.f32.gmra.mxu3 %vm606_vm2, %v1410_v24 }
 0x16e   :  { %v482_v27 = vpop.f32.mrf.mxu0 }
 0x16f   :  { %v1260_v28 = vpop.f32.mrf.mxu2  ;;  %v483_v31 = vadd.f32 %v8286_v30, %v482_v27 }
 0x170   :  { %v1622_v32 = vpop.f32.mrf.mxu3  ;;  %v949_v34 = vpop.f32.mrf.mxu1 }
 0x171   :  { %v8511_v33 = vadd.f32 %v1622_v32, %v1258_v25  ;;  %v581_v35 = vmax.f32 %v483_v31, 0.0  ;;  %7240 = vmatmul.msk.f32.gmra.mxu0 %vm241_vm1, %v226_v29  ;;  %v1261_v39 = vadd.f32 %v1260_v28, %v949_v34  ;;  %v231_v32 = vld [vmem:[%s10647_s0 + $0x168] sm:$0xff] }
 0x172   :  { %v735_v36 = vld [vmem:[#allocation2 + $0xb1] sm:$0xff] }
 0x173   :  { %v683_v37 = vld [vmem:[#allocation2 + $0xb8] sm:$0xff]  ;;  %631 = vst.msk [vmem:[#allocation2 + $0xc0] sm:$0xff] %vm606_vm2, %v581_v35  ;;  %7271 = vmatmul.msk.f32.gmra.mxu1 %vm606_vm2, %v735_v36 }
 0x174   :  { %v1411_v38 = vld [vmem:[#allocation2 + $0xb2] sm:$0xff]  ;;  %7321 = vmatmul.msk.f32.gmra.mxu2 %vm606_vm2, %v683_v37 }
 0x175   :  { %7369 = vmatmul.msk.f32.gmra.mxu3 %vm606_vm2, %v1411_v38 }
 0x176   :  { %v485_v40 = vpop.f32.mrf.mxu0 }
 0x177   :  { %v1263_v41 = vpop.f32.mrf.mxu2  ;;  %v486_v43 = vadd.f32 %v8286_v30, %v485_v40 }
 0x178   :  { %v1625_v44 = vpop.f32.mrf.mxu3  ;;  %v952_v46 = vpop.f32.mrf.mxu1 }
 0x179   :  { %v8522_v45 = vadd.f32 %v1625_v44, %v1261_v39  ;;  %v582_v48 = vmax.f32 %v486_v43, 0.0  ;;  %7241 = vmatmul.msk.f32.gmra.mxu0 %vm241_vm1, %v227_v42  ;;  %v1264_v52 = vadd.f32 %v1263_v41, %v952_v46  ;;  %v1856_v42 = vld [vmem:[#allocation8 + $0x78] sm:$0xff]  ;;  %v1855_v43 = vld [vmem:[#allocation8 + $0x70] sm:$0xff] }
 0x17a   :  { %v736_v49 = vld [vmem:[#allocation2 + $0xb9] sm:$0xff]  ;;  %2016 = vmatpush.msra.mxu0 %v1856_v42 }
 0x17b   :  { %v684_v50 = vld [vmem:[#allocation2 + $0xc0] sm:$0xff]  ;;  %632 = vst.msk [vmem:[#allocation2 + $0xc8] sm:$0xff] %vm606_vm2, %v582_v48  ;;  %7272 = vmatmul.msk.f32.gmra.mxu1 %vm606_vm2, %v736_v49  ;;  %v232_v49 = vld [vmem:[%s10647_s0 + $0x170] sm:$0xff] }
 0x17c   :  { %v1412_v51 = vld [vmem:[#allocation2 + $0xba] sm:$0xff]  ;;  %7322 = vmatmul.msk.f32.gmra.mxu2 %vm606_vm2, %v684_v50  ;;  %2017 = vmatpush.msra.mxu0 %v1855_v43  ;;  %v1854_v50 = vld [vmem:[#allocation8 + $0x68] sm:$0xff] }
 0x17d   :  { %7370 = vmatmul.msk.f32.gmra.mxu3 %vm606_vm2, %v1412_v51 }
 0x17e   :  { %v488_v53 = vpop.f32.mrf.mxu0  ;;  %2018 = vmatpush.msra.mxu0 %v1854_v50 }
 0x17f   :  { %v1266_v54 = vpop.f32.mrf.mxu2  ;;  %v489_v56 = vadd.f32 %v8286_v30, %v488_v53 }
 0x180   :  { %v1628_v57 = vpop.f32.mrf.mxu3  ;;  %v955_v60 = vpop.f32.mrf.mxu1 }
 0x181   :  { %v8533_v58 = vadd.f32 %v1628_v57, %v1264_v52  ;;  %v583_v61 = vmax.f32 %v489_v56, 0.0  ;;  %7242 = vmatmul.msk.f32.gmra.mxu0 %vm241_vm1, %v228_v55  ;;  %v1267_v1 = vadd.f32 %v1266_v54, %v955_v60  ;;  %v1853_v55 = vld [vmem:[#allocation8 + $0x60] sm:$0xff] }
 0x182   :  { %v737_v62 = vld [vmem:[#allocation2 + $0xc1] sm:$0xff]  ;;  %2019 = vmatpush.msra.mxu0 %v1853_v55 }
 0x183   :  { %v685_v63 = vld [vmem:[#allocation2 + $0xc8] sm:$0xff]  ;;  %633 = vst.msk [vmem:[#allocation2 + $0xd0] sm:$0xff] %vm606_vm2, %v583_v61  ;;  %7273 = vmatmul.msk.f32.gmra.mxu1 %vm606_vm2, %v737_v62 }
 0x184   :  { %v1413_v0 = vld [vmem:[#allocation2 + $0xc2] sm:$0xff]  ;;  %7323 = vmatmul.msk.f32.gmra.mxu2 %vm606_vm2, %v685_v63 }
 0x185   :  { %7371 = vmatmul.msk.f32.gmra.mxu3 %vm606_vm2, %v1413_v0 }
 0x186   :  { %v491_v2 = vpop.f32.mrf.mxu0 }
 0x187   :  { %v1269_v3 = vpop.f32.mrf.mxu2  ;;  %v492_v5 = vadd.f32 %v8286_v30, %v491_v2 }
 0x188   :  { %v1631_v6 = vpop.f32.mrf.mxu3  ;;  %v958_v9 = vpop.f32.mrf.mxu1 }
 0x189   :  { %v8544_v8 = vadd.f32 %v1631_v6, %v1267_v1  ;;  %v584_v10 = vmax.f32 %v492_v5, 0.0  ;;  %7243 = vmatmul.msk.f32.gmra.mxu0 %vm241_vm1, %v229_v4  ;;  %v1270_v14 = vadd.f32 %v1269_v3, %v958_v9  ;;  %v233_v1 = vld [vmem:[%s10647_s0 + $0x178] sm:$0xff] }
 0x18a   :  { %v738_v11 = vld [vmem:[#allocation2 + $0xc9] sm:$0xff] }
 0x18b   :  { %v686_v12 = vld [vmem:[#allocation2 + $0xd0] sm:$0xff]  ;;  %634 = vst.msk [vmem:[#allocation2 + $0xd8] sm:$0xff] %vm606_vm2, %v584_v10  ;;  %7274 = vmatmul.msk.f32.gmra.mxu1 %vm606_vm2, %v738_v11 }
 0x18c   :  { %v1414_v13 = vld [vmem:[#allocation2 + $0xca] sm:$0xff]  ;;  %7324 = vmatmul.msk.f32.gmra.mxu2 %vm606_vm2, %v686_v12 }
 0x18d   :  { %7372 = vmatmul.msk.f32.gmra.mxu3 %vm606_vm2, %v1414_v13 }
 0x18e   :  { %v494_v15 = vpop.f32.mrf.mxu0 }
 0x18f   :  { %v1272_v16 = vpop.f32.mrf.mxu2  ;;  %v495_v18 = vadd.f32 %v8286_v30, %v494_v15  ;;  %v234_v15 = vld [vmem:[%s10647_s0 + $0x180] sm:$0xff] }
 0x190   :  { %v1634_v20 = vpop.f32.mrf.mxu3  ;;  %v961_v22 = vpop.f32.mrf.mxu1 }
 0x191   :  { %v8555_v21 = vadd.f32 %v1634_v20, %v1270_v14  ;;  %v585_v23 = vmax.f32 %v495_v18, 0.0  ;;  %7244 = vmatmul.msk.f32.gmra.mxu0 %vm241_vm1, %v230_v17  ;;  %v1273_v28 = vadd.f32 %v1272_v16, %v961_v22 }
 0x192   :  { %v739_v24 = vld [vmem:[#allocation2 + $0xd1] sm:$0xff] }
 0x193   :  { %v687_v25 = vld [vmem:[#allocation2 + $0xd8] sm:$0xff]  ;;  %635 = vst.msk [vmem:[#allocation2 + $0xe0] sm:$0xff] %vm606_vm2, %v585_v23  ;;  %7275 = vmatmul.msk.f32.gmra.mxu1 %vm606_vm2, %v739_v24 }
 0x194   :  { %v1415_v27 = vld [vmem:[#allocation2 + $0xd2] sm:$0xff]  ;;  %7325 = vmatmul.msk.f32.gmra.mxu2 %vm606_vm2, %v687_v25 }
 0x195   :  { %7373 = vmatmul.msk.f32.gmra.mxu3 %vm606_vm2, %v1415_v27 }
 0x196   :  { %v497_v29 = vpop.f32.mrf.mxu0 }
 0x197   :  { %v1275_v31 = vpop.f32.mrf.mxu2  ;;  %v498_v34 = vadd.f32 %v8286_v30, %v497_v29 }
 0x198   :  { %v1637_v35 = vpop.f32.mrf.mxu3  ;;  %v964_v37 = vpop.f32.mrf.mxu1 }
 0x199   :  { %v8566_v36 = vadd.f32 %v1637_v35, %v1273_v28  ;;  %v586_v38 = vmax.f32 %v498_v34, 0.0  ;;  %7245 = vmatmul.msk.f32.gmra.mxu0 %vm241_vm1, %v231_v32  ;;  %v1276_v44 = vadd.f32 %v1275_v31, %v964_v37  ;;  %v660_v37 = vld [vmem:[#allocation2] sm:$0xff] }
 0x19a   :  { %v740_v39 = vld [vmem:[#allocation2 + $0xd9] sm:$0xff] }
 0x19b   :  { %v688_v40 = vld [vmem:[#allocation2 + $0xe0] sm:$0xff]  ;;  %636 = vst.msk [vmem:[#allocation2 + $0xe8] sm:$0xff] %vm606_vm2, %v586_v38  ;;  %7276 = vmatmul.msk.f32.gmra.mxu1 %vm606_vm2, %v740_v39 }
 0x19c   :  { %v1416_v41 = vld [vmem:[#allocation2 + $0xda] sm:$0xff]  ;;  %7326 = vmatmul.msk.f32.gmra.mxu2 %vm606_vm2, %v688_v40 }
 0x19d   :  { %7374 = vmatmul.msk.f32.gmra.mxu3 %vm606_vm2, %v1416_v41 }
 0x19e   :  { %v500_v46 = vpop.f32.mrf.mxu0 }
 0x19f   :  { %v1278_v48 = vpop.f32.mrf.mxu2  ;;  %v501_v51 = vadd.f32 %v8286_v30, %v500_v46 }
 0x1a0   :  { %v1640_v52 = vpop.f32.mrf.mxu3  ;;  %v967_v54 = vpop.f32.mrf.mxu1 }
 0x1a1   :  { %v8577_v53 = vadd.f32 %v1640_v52, %v1276_v44  ;;  %v587_v56 = vmax.f32 %v501_v51, 0.0  ;;  %7246 = vmatmul.msk.f32.gmra.mxu0 %vm241_vm1, %v232_v49  ;;  %v1279_v62 = vadd.f32 %v1278_v48, %v967_v54  ;;  %v1803_v51 = vld [vmem:[#allocation2 + $0xe] sm:$0xff] }
 0x1a2   :  { %v741_v57 = vld [vmem:[#allocation2 + $0xe1] sm:$0xff] }
 0x1a3   :  { %v689_v60 = vld [vmem:[#allocation2 + $0xe8] sm:$0xff]  ;;  %637 = vst.msk [vmem:[#allocation2 + $0xf0] sm:$0xff] %vm606_vm2, %v587_v56  ;;  %7277 = vmatmul.msk.f32.gmra.mxu1 %vm606_vm2, %v741_v57 }
 0x1a4   :  { %v1417_v61 = vld [vmem:[#allocation2 + $0xe2] sm:$0xff]  ;;  %7327 = vmatmul.msk.f32.gmra.mxu2 %vm606_vm2, %v689_v60 }
 0x1a5   :  { %7375 = vmatmul.msk.f32.gmra.mxu3 %vm606_vm2, %v1417_v61 }
 0x1a6   :  { %v503_v63 = vpop.f32.mrf.mxu0 }
 0x1a7   :  { %v1281_v0 = vpop.f32.mrf.mxu2  ;;  %v504_v2 = vadd.f32 %v8286_v30, %v503_v63 }
 0x1a8   :  { %v1643_v3 = vpop.f32.mrf.mxu3  ;;  %v970_v5 = vpop.f32.mrf.mxu1 }
 0x1a9   :  { %v8588_v4 = vadd.f32 %v1643_v3, %v1279_v62  ;;  %v588_v6 = vmax.f32 %v504_v2, 0.0  ;;  %7247 = vmatmul.msk.f32.gmra.mxu0 %vm241_vm1, %v233_v1  ;;  %v1282_v12 = vadd.f32 %v1281_v0, %v970_v5  ;;  %v1804_v2 = vld [vmem:[#allocation2 + $0x16] sm:$0xff] }
 0x1aa   :  { %v742_v9 = vld [vmem:[#allocation2 + $0xe9] sm:$0xff] }
 0x1ab   :  { %v690_v10 = vld [vmem:[#allocation2 + $0xf0] sm:$0xff]  ;;  %638 = vst.msk [vmem:[#allocation2 + $0xf8] sm:$0xff] %vm606_vm2, %v588_v6  ;;  %7278 = vmatmul.msk.f32.gmra.mxu1 %vm606_vm2, %v742_v9 }
 0x1ac   :  { %v1418_v11 = vld [vmem:[#allocation2 + $0xea] sm:$0xff]  ;;  %7328 = vmatmul.msk.f32.gmra.mxu2 %vm606_vm2, %v690_v10 }
 0x1ad   :  { %7376 = vmatmul.msk.f32.gmra.mxu3 %vm606_vm2, %v1418_v11 }
 0x1ae   :  { %v506_v13 = vpop.f32.mrf.mxu0 }
 0x1af   :  { %v1284_v14 = vpop.f32.mrf.mxu2  ;;  %v507_v16 = vadd.f32 %v8286_v30, %v506_v13 }
 0x1b0   :  { %v1646_v17 = vpop.f32.mrf.mxu3  ;;  %v973_v20 = vpop.f32.mrf.mxu1 }
 0x1b1   :  { %v8599_v18 = vadd.f32 %v1646_v17, %v1282_v12  ;;  %v589_v22 = vmax.f32 %v507_v16, 0.0  ;;  %7248 = vmatmul.msk.f32.gmra.mxu0 %vm241_vm1, %v234_v15  ;;  %v1285_v27 = vadd.f32 %v1284_v14, %v973_v20  ;;  %v8630_v12 = vld [vmem:[#allocation6] ss:$0 sm:$0xff]  ;;  %v1805_v17 = vld [vmem:[#allocation2 + $0x1e] sm:$0xff] }
 0x1b2   :  { %v743_v23 = vld [vmem:[#allocation2 + $0xf1] sm:$0xff] }
 0x1b3   :  { %v691_v24 = vld [vmem:[#allocation2 + $0xf8] sm:$0xff]  ;;  %639 = vst.msk [vmem:[#allocation2 + $0x100] sm:$0xff] %vm606_vm2, %v589_v22  ;;  %7279 = vmatmul.msk.f32.gmra.mxu1 %vm606_vm2, %v743_v23 }
 0x1b4   :  { %v1419_v25 = vld [vmem:[#allocation2 + $0xf2] sm:$0xff]  ;;  %7329 = vmatmul.msk.f32.gmra.mxu2 %vm606_vm2, %v691_v24 }
 0x1b5   :  { %7377 = vmatmul.msk.f32.gmra.mxu3 %vm606_vm2, %v1419_v25 }
 0x1b6   :  { %v509_v28 = vpop.f32.mrf.mxu0 }
 0x1b7   :  { %v1287_v29 = vpop.f32.mrf.mxu2  ;;  %v510_v31 = vadd.f32 %v8286_v30, %v509_v28 }
 0x1b8   :  { %v1649_v32 = vpop.f32.mrf.mxu3  ;;  %v976_v35 = vpop.f32.mrf.mxu1 }
 0x1b9   :  { %v8607_v34 = vadd.f32 %v1649_v32, %v1285_v27  ;;  %v590_v38 = vmax.f32 %v510_v31, 0.0  ;;  %7298 = vmatmul.msk.f32.vlgmr.msrb.gmra.mxu0 %vm606_vm2, %v660_v37  ;;  %v1288_v42 = vadd.f32 %v1287_v29, %v976_v35  ;;  %v1806_v37 = vld [vmem:[#allocation2 + $0x26] sm:$0xff] }
 0x1ba   :  { %v744_v39 = vld [vmem:[#allocation2 + $0xf9] sm:$0xff] }
 0x1bb   :  { %v692_v40 = vld [vmem:[#allocation2 + $0x100] sm:$0xff]  ;;  %640 = vst.msk [vmem:[#allocation2 + $0x108] sm:$0xff] %vm606_vm2, %v590_v38  ;;  %7280 = vmatmul.msk.f32.gmra.mxu1 %vm606_vm2, %v744_v39 }
 0x1bc   :  { %v1420_v41 = vld [vmem:[#allocation2 + $0xfa] sm:$0xff]  ;;  %7330 = vmatmul.msk.f32.gmra.mxu2 %vm606_vm2, %v692_v40 }
 0x1bd   :  { %7378 = vmatmul.msk.f32.gmra.mxu3 %vm606_vm2, %v1420_v41 }
 0x1be   :  { %v512_v43 = vpop.f32.mrf.mxu0 }
 0x1bf   :  { %v1290_v44 = vpop.f32.mrf.mxu2  ;;  %v513_v46 = vadd.f32 %v8286_v30, %v512_v43 }
 0x1c0   :  { %v1652_v48 = vpop.f32.mrf.mxu3  ;;  %v979_v50 = vpop.f32.mrf.mxu1 }
 0x1c1   :  { %v8615_v49 = vadd.f32 %v1652_v48, %v1288_v42  ;;  %v591_v52 = vmax.f32 %v513_v46, 0.0  ;;  %7396 = vmatmul.msk.f32.vlgmr.msra.gmra.mxu0 %vm606_vm2, %v1803_v51  ;;  %v1291_v57 = vadd.f32 %v1290_v44, %v979_v50 }
 0x1c2   :  { %v745_v54 = vld [vmem:[#allocation2 + $0x101] sm:$0xff] }
 0x1c3   :  { %v693_v55 = vld [vmem:[#allocation2 + $0x108] sm:$0xff]  ;;  %641 = vst.msk [vmem:[#allocation2 + $0x110] sm:$0xff] %vm606_vm2, %v591_v52  ;;  %7281 = vmatmul.msk.f32.gmra.mxu1 %vm606_vm2, %v745_v54 }
 0x1c4   :  { %v1421_v56 = vld [vmem:[#allocation2 + $0x102] sm:$0xff]  ;;  %7331 = vmatmul.msk.f32.gmra.mxu2 %vm606_vm2, %v693_v55  ;;  %v1807_v52 = vld [vmem:[#allocation2 + $0x2e] sm:$0xff] }
 0x1c5   :  { %7379 = vmatmul.msk.f32.gmra.mxu3 %vm606_vm2, %v1421_v56 }
 0x1c6   :  { %v515_v60 = vpop.f32.mrf.mxu0 }
 0x1c7   :  { %v1293_v61 = vpop.f32.mrf.mxu2  ;;  %v516_v62 = vadd.f32 %v8286_v30, %v515_v60 }
 0x1c8   :  { %v1655_v63 = vpop.f32.mrf.mxu3  ;;  %v982_v1 = vpop.f32.mrf.mxu1 }
 0x1c9   :  { %v8623_v0 = vadd.f32 %v1655_v63, %v1291_v57  ;;  %v592_v3 = vmax.f32 %v516_v62, 0.0  ;;  %7397 = vmatmul.msk.f32.gmra.mxu0 %vm606_vm2, %v1804_v2  ;;  %v1294_v30 = vadd.f32 %v1293_v61, %v982_v1 }
 0x1ca   :  { %v746_v5 = vld [vmem:[#allocation2 + $0x109] sm:$0xff] }
 0x1cb   :  { %v694_v6 = vld [vmem:[#allocation2 + $0x110] sm:$0xff]  ;;  %642 = vst.msk [vmem:[#allocation2 + $0x118] sm:$0xff] %vm606_vm2, %v592_v3  ;;  %7282 = vmatmul.msk.f32.gmra.mxu1 %vm606_vm2, %v746_v5 }
 0x1cc   :  { %v1422_v9 = vld [vmem:[#allocation2 + $0x10a] sm:$0xff]  ;;  %7332 = vmatmul.msk.f32.gmra.mxu2 %vm606_vm2, %v694_v6  ;;  %v1808_v5 = vld [vmem:[#allocation2 + $0x36] sm:$0xff] }
 0x1cd   :  { %7380 = vmatmul.msk.f32.gmra.mxu3 %vm606_vm2, %v1422_v9 }
 0x1ce   :  { %v518_v10 = vpop.f32.mrf.mxu0 }
 0x1cf   :  { %v1296_v11 = vpop.f32.mrf.mxu2  ;;  %v519_v13 = vadd.f32 %v8630_v12, %v518_v10 }
 0x1d0   :  { %v1658_v14 = vpop.f32.mrf.mxu3  ;;  %v985_v16 = vpop.f32.mrf.mxu1 }
 0x1d1   :  { %v8633_v15 = vadd.f32 %v1658_v14, %v1294_v30  ;;  %v593_v20 = vmax.f32 %v519_v13, 0.0  ;;  %7398 = vmatmul.msk.f32.gmra.mxu0 %vm606_vm2, %v1805_v17  ;;  %v1297_v25 = vadd.f32 %v1296_v11, %v985_v16 }
 0x1d2   :  { %v747_v22 = vld [vmem:[#allocation2 + $0x111] sm:$0xff] }
 0x1d3   :  { %v695_v23 = vld [vmem:[#allocation2 + $0x118] sm:$0xff]  ;;  %643 = vst.msk [vmem:[#allocation2 + $0x120] sm:$0xff] %vm606_vm2, %v593_v20  ;;  %7283 = vmatmul.msk.f32.gmra.mxu1 %vm606_vm2, %v747_v22 }
 0x1d4   :  { %v1423_v24 = vld [vmem:[#allocation2 + $0x112] sm:$0xff]  ;;  %7333 = vmatmul.msk.f32.gmra.mxu2 %vm606_vm2, %v695_v23  ;;  %v1809_v23 = vld [vmem:[#allocation2 + $0x3e] sm:$0xff] }
 0x1d5   :  { %7381 = vmatmul.msk.f32.gmra.mxu3 %vm606_vm2, %v1423_v24 }
 0x1d6   :  { %v521_v27 = vpop.f32.mrf.mxu0 }
 0x1d7   :  { %v1299_v28 = vpop.f32.mrf.mxu2  ;;  %v522_v29 = vadd.f32 %v8630_v12, %v521_v27 }
 0x1d8   :  { %v1661_v31 = vpop.f32.mrf.mxu3  ;;  %v988_v35 = vpop.f32.mrf.mxu1 }
 0x1d9   :  { %v8641_v32 = vadd.f32 %v1661_v31, %v1297_v25  ;;  %v594_v38 = vmax.f32 %v522_v29, 0.0  ;;  %7399 = vmatmul.msk.f32.gmra.mxu0 %vm606_vm2, %v1806_v37  ;;  %v1300_v42 = vadd.f32 %v1299_v28, %v988_v35 }
 0x1da   :  { %v748_v39 = vld [vmem:[#allocation2 + $0x119] sm:$0xff] }
 0x1db   :  { %v696_v40 = vld [vmem:[#allocation2 + $0x120] sm:$0xff]  ;;  %644 = vst.msk [vmem:[#allocation2 + $0x128] sm:$0xff] %vm606_vm2, %v594_v38  ;;  %7284 = vmatmul.msk.f32.gmra.mxu1 %vm606_vm2, %v748_v39 }
 0x1dc   :  { %v1424_v41 = vld [vmem:[#allocation2 + $0x11a] sm:$0xff]  ;;  %7334 = vmatmul.msk.f32.gmra.mxu2 %vm606_vm2, %v696_v40 }
 0x1dd   :  { %7382 = vmatmul.msk.f32.gmra.mxu3 %vm606_vm2, %v1424_v41  ;;  %v1810_v41 = vld [vmem:[#allocation2 + $0x46] sm:$0xff] }
 0x1de   :  { %v524_v43 = vpop.f32.mrf.mxu0 }
 0x1df   :  { %v1302_v44 = vpop.f32.mrf.mxu2  ;;  %v525_v46 = vadd.f32 %v8630_v12, %v524_v43 }
 0x1e0   :  { %v1664_v48 = vpop.f32.mrf.mxu3  ;;  %v991_v51 = vpop.f32.mrf.mxu1 }
 0x1e1   :  { %v8649_v50 = vadd.f32 %v1664_v48, %v1300_v42  ;;  %v595_v54 = vmax.f32 %v525_v46, 0.0  ;;  %7400 = vmatmul.msk.f32.gmra.mxu0 %vm606_vm2, %v1807_v52  ;;  %v1303_v60 = vadd.f32 %v1302_v44, %v991_v51 }
 0x1e2   :  { %v749_v55 = vld [vmem:[#allocation2 + $0x121] sm:$0xff] }
 0x1e3   :  { %v697_v56 = vld [vmem:[#allocation2 + $0x128] sm:$0xff]  ;;  %645 = vst.msk [vmem:[#allocation2 + $0x130] sm:$0xff] %vm606_vm2, %v595_v54  ;;  %7285 = vmatmul.msk.f32.gmra.mxu1 %vm606_vm2, %v749_v55 }
 0x1e4   :  { %v1425_v57 = vld [vmem:[#allocation2 + $0x122] sm:$0xff]  ;;  %7335 = vmatmul.msk.f32.gmra.mxu2 %vm606_vm2, %v697_v56 }
 0x1e5   :  { %7383 = vmatmul.msk.f32.gmra.mxu3 %vm606_vm2, %v1425_v57 }
 0x1e6   :  { %v527_v61 = vpop.f32.mrf.mxu0 }
 0x1e7   :  { %v1305_v62 = vpop.f32.mrf.mxu2  ;;  %v528_v63 = vadd.f32 %v8630_v12, %v527_v61 }
 0x1e8   :  { %v1667_v1 = vpop.f32.mrf.mxu3  ;;  %v994_v3 = vpop.f32.mrf.mxu1 }
 0x1e9   :  { %v8657_v2 = vadd.f32 %v1667_v1, %v1303_v60  ;;  %v596_v6 = vmax.f32 %v528_v63, 0.0  ;;  %7401 = vmatmul.msk.f32.gmra.mxu0 %vm606_vm2, %v1808_v5  ;;  %v1306_v11 = vadd.f32 %v1305_v62, %v994_v3  ;;  %v1811_v60 = vld [vmem:[#allocation2 + $0x4e] sm:$0xff] }
 0x1ea   :  { %v750_v9 = vld [vmem:[#allocation2 + $0x129] sm:$0xff] }
 0x1eb   :  { %v698_v30 = vld [vmem:[#allocation2 + $0x130] sm:$0xff]  ;;  %646 = vst.msk [vmem:[#allocation2 + $0x138] sm:$0xff] %vm606_vm2, %v596_v6  ;;  %7286 = vmatmul.msk.f32.gmra.mxu1 %vm606_vm2, %v750_v9 }
 0x1ec   :  { %v1426_v10 = vld [vmem:[#allocation2 + $0x12a] sm:$0xff]  ;;  %7336 = vmatmul.msk.f32.gmra.mxu2 %vm606_vm2, %v698_v30 }
 0x1ed   :  { %7384 = vmatmul.msk.f32.gmra.mxu3 %vm606_vm2, %v1426_v10 }
 0x1ee   :  { %v530_v13 = vpop.f32.mrf.mxu0 }
 0x1ef   :  { %v1308_v14 = vpop.f32.mrf.mxu2  ;;  %v531_v16 = vadd.f32 %v8630_v12, %v530_v13  ;;  %v1812_v13 = vld [vmem:[#allocation2 + $0x56] sm:$0xff] }
 0x1f0   :  { %v1670_v17 = vpop.f32.mrf.mxu3  ;;  %v997_v22 = vpop.f32.mrf.mxu1 }
 0x1f1   :  { %v8665_v20 = vadd.f32 %v1670_v17, %v1306_v11  ;;  %v597_v24 = vmax.f32 %v531_v16, 0.0  ;;  %7402 = vmatmul.msk.f32.gmra.mxu0 %vm606_vm2, %v1809_v23  ;;  %v1309_v29 = vadd.f32 %v1308_v14, %v997_v22 }
 0x1f2   :  { %v751_v25 = vld [vmem:[#allocation2 + $0x131] sm:$0xff] }
 0x1f3   :  { %v699_v27 = vld [vmem:[#allocation2 + $0x138] sm:$0xff]  ;;  %647 = vst.msk [vmem:[#allocation2 + $0x140] sm:$0xff] %vm606_vm2, %v597_v24  ;;  %7287 = vmatmul.msk.f32.gmra.mxu1 %vm606_vm2, %v751_v25 }
 0x1f4   :  { %v1427_v28 = vld [vmem:[#allocation2 + $0x132] sm:$0xff]  ;;  %7337 = vmatmul.msk.f32.gmra.mxu2 %vm606_vm2, %v699_v27 }
 0x1f5   :  { %7385 = vmatmul.msk.f32.gmra.mxu3 %vm606_vm2, %v1427_v28 }
 0x1f6   :  { %v533_v31 = vpop.f32.mrf.mxu0 }
 0x1f7   :  { %v1311_v35 = vpop.f32.mrf.mxu2  ;;  %v534_v37 = vadd.f32 %v8630_v12, %v533_v31 }
 0x1f8   :  { %v1673_v38 = vpop.f32.mrf.mxu3  ;;  %v1000_v40 = vpop.f32.mrf.mxu1 }
 0x1f9   :  { %v8673_v39 = vadd.f32 %v1673_v38, %v1309_v29  ;;  %v598_v42 = vmax.f32 %v534_v37, 0.0  ;;  %7403 = vmatmul.msk.f32.gmra.mxu0 %vm606_vm2, %v1810_v41  ;;  %v1312_v48 = vadd.f32 %v1311_v35, %v1000_v40  ;;  %v1813_v35 = vld [vmem:[#allocation2 + $0x5e] sm:$0xff] }
 0x1fa   :  { %v752_v43 = vld [vmem:[#allocation2 + $0x139] sm:$0xff] }
 0x1fb   :  { %v700_v44 = vld [vmem:[#allocation2 + $0x140] sm:$0xff]  ;;  %648 = vst.msk [vmem:[#allocation2 + $0x148] sm:$0xff] %vm606_vm2, %v598_v42  ;;  %7288 = vmatmul.msk.f32.gmra.mxu1 %vm606_vm2, %v752_v43  ;;  %v8125_v42 = vmov 0.0  }
 0x1fc   :  { %v1428_v46 = vld [vmem:[#allocation2 + $0x13a] sm:$0xff]  ;;  %7338 = vmatmul.msk.f32.gmra.mxu2 %vm606_vm2, %v700_v44  ;;  %656 = vst.msk [vmem:[#allocation2 + $0x188] sm:$0xff] %vm606_vm2, %v8125_v42 }
 0x1fd   :  { %7386 = vmatmul.msk.f32.gmra.mxu3 %vm606_vm2, %v1428_v46  ;;  %657 = vst.msk [vmem:[#allocation2 + $0x190] sm:$0xff] %vm606_vm2, %v8125_v42 }
 0x1fe   :  { %v536_v51 = vpop.f32.mrf.mxu0  ;;  %658 = vst.msk [vmem:[#allocation2 + $0x198] sm:$0xff] %vm606_vm2, %v8125_v42 }
 0x1ff   :  { %v1314_v52 = vpop.f32.mrf.mxu2  ;;  %v537_v54 = vadd.f32 %v8630_v12, %v536_v51  ;;  %659 = vst.msk [vmem:[#allocation2 + $0x1a0] sm:$0xff] %vm606_vm2, %v8125_v42 }
 0x200   :  { %v1676_v55 = vpop.f32.mrf.mxu3  ;;  %v1003_v57 = vpop.f32.mrf.mxu1 }
 0x201   :  { %v8681_v56 = vadd.f32 %v1676_v55, %v1312_v48  ;;  %v599_v61 = vmax.f32 %v537_v54, 0.0  ;;  %7404 = vmatmul.msk.f32.gmra.mxu0 %vm606_vm2, %v1811_v60  ;;  %v1315_v3 = vadd.f32 %v1314_v52, %v1003_v57  ;;  %v1814_v55 = vld [vmem:[#allocation2 + $0x66] sm:$0xff] }
 0x202   :  { %v753_v62 = vld [vmem:[#allocation2 + $0x141] sm:$0xff] }
 0x203   :  { %v701_v63 = vld [vmem:[#allocation2 + $0x148] sm:$0xff]  ;;  %649 = vst.msk [vmem:[#allocation2 + $0x150] sm:$0xff] %vm606_vm2, %v599_v61  ;;  %7289 = vmatmul.msk.f32.gmra.mxu1 %vm606_vm2, %v753_v62 }
 0x204   :  { %v1429_v1 = vld [vmem:[#allocation2 + $0x142] sm:$0xff]  ;;  %7339 = vmatmul.msk.f32.gmra.mxu2 %vm606_vm2, %v701_v63  ;;  %v2684_v63 = vld [vmem:[#allocation8 + $0xb8] sm:$0xff] }
 0x205   :  { %7387 = vmatmul.msk.f32.gmra.mxu3 %vm606_vm2, %v1429_v1  ;;  %2844 = vmatpush.msrb.mxu2 %v2684_v63  ;;  %v2269_v63 = vld [vmem:[#allocation8 + $0x90] sm:$0xff] }
 0x206   :  { %v539_v5 = vpop.f32.mrf.mxu0 }
 0x207   :  { %v1317_v6 = vpop.f32.mrf.mxu2  ;;  %v540_v9 = vadd.f32 %v8630_v12, %v539_v5 }
 0x208   :  { %v1679_v30 = vpop.f32.mrf.mxu3  ;;  %v1006_v11 = vpop.f32.mrf.mxu1 }
 0x209   :  { %v8689_v10 = vadd.f32 %v1679_v30, %v1315_v3  ;;  %v600_v14 = vmax.f32 %v540_v9, 0.0  ;;  %7405 = vmatmul.msk.f32.gmra.mxu0 %vm606_vm2, %v1812_v13  ;;  %v1318_v23 = vadd.f32 %v1317_v6, %v1006_v11  ;;  %v2683_v6 = vld [vmem:[#allocation8 + $0xb0] sm:$0xff] }
 0x20a   :  { %v754_v16 = vld [vmem:[#allocation2 + $0x149] sm:$0xff]  ;;  %2845 = vmatpush.msrb.mxu2 %v2683_v6 }
 0x20b   :  { %v702_v17 = vld [vmem:[#allocation2 + $0x150] sm:$0xff]  ;;  %650 = vst.msk [vmem:[#allocation2 + $0x158] sm:$0xff] %vm606_vm2, %v600_v14  ;;  %7290 = vmatmul.msk.f32.gmra.mxu1 %vm606_vm2, %v754_v16  ;;  %v2682_v16 = vld [vmem:[#allocation8 + $0xa8] sm:$0xff] }
 0x20c   :  { %v1430_v22 = vld [vmem:[#allocation2 + $0x14a] sm:$0xff]  ;;  %7340 = vmatmul.msk.f32.gmra.mxu2 %vm606_vm2, %v702_v17 }
 0x20d   :  { %7388 = vmatmul.msk.f32.gmra.mxu3 %vm606_vm2, %v1430_v22  ;;  %v1815_v14 = vld [vmem:[#allocation2 + $0x6e] sm:$0xff]  ;;  %2846 = vmatpush.msrb.mxu2 %v2682_v16  ;;  %v2681_v22 = vld [vmem:[#allocation8 + $0xa0] sm:$0xff] }
 0x20e   :  { %v542_v24 = vpop.f32.mrf.mxu0 }
 0x20f   :  { %v1320_v25 = vpop.f32.mrf.mxu2  ;;  %v543_v27 = vadd.f32 %v8630_v12, %v542_v24  ;;  %2847 = vmatpush.msrb.mxu2 %v2681_v22 }
 0x210   :  { %v1682_v28 = vpop.f32.mrf.mxu3  ;;  %v1009_v31 = vpop.f32.mrf.mxu1 }
 0x211   :  { %v8697_v29 = vadd.f32 %v1682_v28, %v1318_v23  ;;  %v601_v37 = vmax.f32 %v543_v27, 0.0  ;;  %7406 = vmatmul.msk.f32.gmra.mxu0 %vm606_vm2, %v1813_v35  ;;  %v1321_v43 = vadd.f32 %v1320_v25, %v1009_v31  ;;  %v3098_v27 = vld [vmem:[#allocation8 + $0xd8] sm:$0xff] }
 0x212   :  { %v755_v38 = vld [vmem:[#allocation2 + $0x151] sm:$0xff]  ;;  %3258 = vmatpush.msrb.mxu3 %v3098_v27 }
 0x213   :  { %10660 = vst [vmem:[#allocation28_spill] sm:$0xff] %v8697_v29  ;;  %v703_v40 = vld [vmem:[#allocation2 + $0x158] sm:$0xff]  ;;  %7291 = vmatmul.msk.f32.gmra.mxu1 %vm606_vm2, %v755_v38 }
 0x214   :  { %v1431_v41 = vld [vmem:[#allocation2 + $0x152] sm:$0xff]  ;;  %651 = vst.msk [vmem:[#allocation2 + $0x160] sm:$0xff] %vm606_vm2, %v601_v37  ;;  %7341 = vmatmul.msk.f32.gmra.mxu2 %vm606_vm2, %v703_v40  ;;  %v3097_v37 = vld [vmem:[#allocation8 + $0xd0] sm:$0xff] }
 0x215   :  { %7389 = vmatmul.msk.f32.gmra.mxu3 %vm606_vm2, %v1431_v41 }
 0x216   :  { %v545_v44 = vpop.f32.mrf.mxu0  ;;  %3259 = vmatpush.msrb.mxu3 %v3097_v37 }
 0x217   :  { %v1323_v46 = vpop.f32.mrf.mxu2  ;;  %v546_v48 = vadd.f32 %v8630_v12, %v545_v44  ;;  %v3096_v44 = vld [vmem:[#allocation8 + $0xc8] sm:$0xff] }
 0x218   :  { %v1685_v51 = vpop.f32.mrf.mxu3  ;;  %v1012_v54 = vpop.f32.mrf.mxu1  ;;  %3260 = vmatpush.msrb.mxu3 %v3096_v44 }
 0x219   :  { %v8709_v52 = vadd.f32 %v1685_v51, %v1321_v43  ;;  %v602_v57 = vmax.f32 %v546_v48, 0.0  ;;  %7407 = vmatmul.msk.f32.gmra.mxu0 %vm606_vm2, %v1814_v55  ;;  %v1324_v1 = vadd.f32 %v1323_v46, %v1012_v54  ;;  %v1816_v43 = vld [vmem:[#allocation2 + $0x76] sm:$0xff] }
 0x21a   :  { %v3095_v48 = vld [vmem:[#allocation8 + $0xc0] sm:$0xff] }
 0x21b   :  { %10661 = vst [vmem:[#allocation29_spill] sm:$0xff] %v8709_v52  ;;  %v756_v60 = vld [vmem:[#allocation2 + $0x159] sm:$0xff]  ;;  %3261 = vmatpush.msrb.mxu3 %v3095_v48 }
 0x21c   :  { %v704_v61 = vld [vmem:[#allocation2 + $0x160] sm:$0xff]  ;;  %652 = vst.msk [vmem:[#allocation2 + $0x168] sm:$0xff] %vm606_vm2, %v602_v57  ;;  %7292 = vmatmul.msk.f32.gmra.mxu1 %vm606_vm2, %v756_v60  ;;  %v2270_v57 = vld [vmem:[#allocation8 + $0x98] sm:$0xff] }
 0x21d   :  { %v1432_v62 = vld [vmem:[#allocation2 + $0x15a] sm:$0xff]  ;;  %7342 = vmatmul.msk.f32.gmra.mxu2 %vm606_vm2, %v704_v61  ;;  %2430 = vmatpush.msra.mxu1 %v2270_v57 }
 0x21e   :  { %7390 = vmatmul.msk.f32.gmra.mxu3 %vm606_vm2, %v1432_v62  ;;  %v548_v3 = vpop.f32.mrf.mxu0 }
 0x21f   :  { %v1326_v5 = vpop.f32.mrf.mxu2  ;;  %v549_v9 = vadd.f32 %v8630_v12, %v548_v3  ;;  %2431 = vmatpush.msra.mxu1 %v2269_v63 }
 0x220   :  { %v1688_v30 = vpop.f32.mrf.mxu3  ;;  %v1015_v13 = vpop.f32.mrf.mxu1 }
 0x221   :  { %v8717_v11 = vadd.f32 %v1688_v30, %v1324_v1  ;;  %v603_v17 = vmax.f32 %v549_v9, 0.0  ;;  %7408 = vmatmul.msk.f32.gmra.mxu0 %vm606_vm2, %v1815_v14  ;;  %v1327_v28 = vadd.f32 %v1326_v5, %v1015_v13  ;;  %v1817_v9 = vld [vmem:[#allocation2 + $0x7e] sm:$0xff] }
 0x222   :  { %v2268_v30 = vld [vmem:[#allocation8 + $0x88] sm:$0xff]  ;;  %v2267_v14 = vld [vmem:[#allocation8 + $0x80] sm:$0xff] }
 0x223   :  { %10662 = vst [vmem:[#allocation30_spill] sm:$0xff] %v8717_v11  ;;  %v757_v23 = vld [vmem:[#allocation2 + $0x161] sm:$0xff]  ;;  %2432 = vmatpush.msra.mxu1 %v2268_v30  ;;  %v2632_v30 = vld [vmem:[#allocation2 + $0x18] sm:$0xff] }
 0x224   :  { %v705_v24 = vld [vmem:[#allocation2 + $0x168] sm:$0xff]  ;;  %653 = vst.msk [vmem:[#allocation2 + $0x170] sm:$0xff] %vm606_vm2, %v603_v17  ;;  %7293 = vmatmul.msk.f32.gmra.mxu1 %vm606_vm2, %v757_v23 }
 0x225   :  { %v1433_v25 = vld [vmem:[#allocation2 + $0x162] sm:$0xff]  ;;  %7343 = vmatmul.msk.f32.gmra.mxu2 %vm606_vm2, %v705_v24  ;;  %2433 = vmatpush.msra.mxu1 %v2267_v14 }
 0x226   :  { %7391 = vmatmul.msk.f32.gmra.mxu3 %vm606_vm2, %v1433_v25  ;;  %v551_v31 = vpop.f32.mrf.mxu0 }
 0x227   :  { %v1329_v35 = vpop.f32.mrf.mxu2  ;;  %v552_v38 = vadd.f32 %v8630_v12, %v551_v31  ;;  %v1818_v31 = vld [vmem:[#allocation2 + $0x86] sm:$0xff] }
 0x228   :  { %v1691_v40 = vpop.f32.mrf.mxu3  ;;  %v1018_v42 = vpop.f32.mrf.mxu1 }
 0x229   :  { %v8725_v41 = vadd.f32 %v1691_v40, %v1327_v28  ;;  %v604_v46 = vmax.f32 %v552_v38, 0.0  ;;  %7409 = vmatmul.msk.f32.gmra.mxu0 %vm606_vm2, %v1816_v43  ;;  %v1330_v60 = vadd.f32 %v1329_v35, %v1018_v42 }
 0x22b   :  { %10663 = vst [vmem:[#allocation31_spill] sm:$0xff] %v8725_v41  ;;  %v758_v51 = vld [vmem:[#allocation2 + $0x169] sm:$0xff] }
 0x22c   :  { %v706_v54 = vld [vmem:[#allocation2 + $0x170] sm:$0xff]  ;;  %654 = vst.msk [vmem:[#allocation2 + $0x178] sm:$0xff] %vm606_vm2, %v604_v46  ;;  %7294 = vmatmul.msk.f32.gmra.mxu1 %vm606_vm2, %v758_v51 }
 0x22d   :  { %v1434_v55 = vld [vmem:[#allocation2 + $0x16a] sm:$0xff]  ;;  %7344 = vmatmul.msk.f32.gmra.mxu2 %vm606_vm2, %v706_v54 }
 0x22e   :  { %7392 = vmatmul.msk.f32.gmra.mxu3 %vm606_vm2, %v1434_v55  ;;  %v554_v61 = vpop.f32.mrf.mxu0  ;;  %v1819_v51 = vld [vmem:[#allocation2 + $0x8e] sm:$0xff] }
 0x22f   :  { %v1332_v62 = vpop.f32.mrf.mxu2  ;;  %v555_v1 = vadd.f32 %v8630_v12, %v554_v61  ;;  %v2631_v55 = vld [vmem:[#allocation2 + $0x10] sm:$0xff] }
 0x230   :  { %v1694_v3 = vpop.f32.mrf.mxu3  ;;  %v1021_v6 = vpop.f32.mrf.mxu1  ;;  %v3501_v52 = vld [vmem:[#allocation2 + $0x16d] sm:$0xff] }
 0x231   :  { %v8733_v5 = vadd.f32 %v1694_v3, %v1330_v60  ;;  %v605_v13 = vmax.f32 %v555_v1, 0.0  ;;  %7410 = vmatmul.msk.f32.gmra.mxu0 %vm606_vm2, %v1817_v9  ;;  %v1333_v12 = vadd.f32 %v1332_v62, %v1021_v6  ;;  %v1820_v6 = vld [vmem:[#allocation2 + $0x96] sm:$0xff]  ;;  %v1389_v9 = vld [vmem:[#allocation2 + $0x2] sm:$0xff] }
 0x233   :  { %v759_v16 = vld [vmem:[#allocation2 + $0x171] sm:$0xff]  ;;  %655 = vst.msk [vmem:[#allocation2 + $0x180] sm:$0xff] %vm606_vm2, %v605_v13  ;;  %v3045_v13 = vld [vmem:[#allocation2 + $0x1c] sm:$0xff] }
 0x234   :  { %v707_v17 = vld [vmem:[#allocation2 + $0x178] sm:$0xff]  ;;  %7295 = vmatmul.msk.f32.gmra.mxu1 %vm606_vm2, %v759_v16 }
 0x235   :  { %v1435_v22 = vld [vmem:[#allocation2 + $0x172] sm:$0xff]  ;;  %7345 = vmatmul.msk.f32.gmra.mxu2 %vm606_vm2, %v707_v17 }
 0x236   :  { %7393 = vmatmul.msk.f32.gmra.mxu3 %vm606_vm2, %v1435_v22  ;;  %v8740_v23 = vpop.f32.mrf.mxu0 }
 0x237   :  { %v1335_v24 = vpop.f32.mrf.mxu2 }
 0x238   :  { %v1697_v25 = vpop.f32.mrf.mxu3  ;;  %v1024_v28 = vpop.f32.mrf.mxu1 }
 0x239   :  { %v8742_v27 = vadd.f32 %v1697_v25, %v1333_v12  ;;  %7411 = vmatmul.msk.f32.gmra.mxu0 %vm606_vm2, %v1818_v31  ;;  %v1336_v40 = vadd.f32 %v1335_v24, %v1024_v28  ;;  %v1821_v25 = vld [vmem:[#allocation2 + $0x9e] sm:$0xff]  ;;  %v2217_v28 = vld [vmem:[#allocation2 + $0xf] sm:$0xff] }
 0x23a   :  { %v760_v35 = vld [vmem:[#allocation2 + $0x179] sm:$0xff]  ;;  %v761_v54 = vld [vmem:[#allocation2 + $0x181] sm:$0xff] }
 0x23b   :  { %v708_v37 = vld [vmem:[#allocation2 + $0x180] sm:$0xff] }
 0x23c   :  { %v1436_v38 = vld [vmem:[#allocation2 + $0x17a] sm:$0xff]  ;;  %7296 = vmatmul.msk.f32.gmra.mxu1 %vm606_vm2, %v760_v35  ;;  %v1437_v57 = vld [vmem:[#allocation2 + $0x182] sm:$0xff] }
 0x23d   :  { %7346 = vmatmul.msk.f32.gmra.mxu2 %vm606_vm2, %v708_v37  ;;  %v2633_v31 = vld [vmem:[#allocation2 + $0x20] sm:$0xff] }
 0x23e   :  { %7394 = vmatmul.msk.f32.gmra.mxu3 %vm606_vm2, %v1436_v38  ;;  %v8748_v43 = vpop.f32.mrf.mxu0  ;;  %v3046_v35 = vld [vmem:[#allocation2 + $0x24] sm:$0xff] }
 0x23f   :  { %v1338_v42 = vpop.f32.mrf.mxu2 }
 0x240   :  { %v1700_v44 = vpop.f32.mrf.mxu3  ;;  %v1027_v48 = vpop.f32.mrf.mxu1 }
 0x241   :  { %v8750_v46 = vadd.f32 %v1700_v44, %v1336_v40  ;;  %7412 = vmatmul.msk.f32.gmra.mxu0 %vm606_vm2, %v1819_v51  ;;  %v1339_v60 = vadd.f32 %v1338_v42, %v1027_v48  ;;  %v1822_v51 = vld [vmem:[#allocation2 + $0xa6] sm:$0xff] }
 0x244   :  { %7297 = vmatmul.msk.f32.gmra.mxu1 %vm606_vm2, %v761_v54  ;;  %v2218_v54 = vld [vmem:[#allocation2 + $0x17] sm:$0xff] }
 0x245   :  { %7494 = vmatmul.msk.f32.vlgmr.msrb.gmra.mxu2 %vm606_vm2, %v2631_v55  ;;  %v2634_v55 = vld [vmem:[#allocation2 + $0x28] sm:$0xff] }
 0x246   :  { %7395 = vmatmul.msk.f32.gmra.mxu3 %vm606_vm2, %v1437_v57  ;;  %v8756_v62 = vpop.f32.mrf.mxu0  ;;  %v3047_v57 = vld [vmem:[#allocation2 + $0x2c] sm:$0xff] }
 0x247   :  { %v1341_v61 = vpop.f32.mrf.mxu2 }
 0x248   :  { %v1703_v63 = vpop.f32.mrf.mxu3  ;;  %v1030_v3 = vpop.f32.mrf.mxu1 }
 0x249   :  { %v8758_v1 = vadd.f32 %v1703_v63, %v1339_v60  ;;  %7413 = vmatmul.msk.f32.gmra.mxu0 %vm606_vm2, %v1820_v6  ;;  %v1342_v14 = vadd.f32 %v1341_v61, %v1030_v3 }
 0x24b   :  { %10664 = vst [vmem:[#allocation32_spill] sm:$0xff] %v8758_v1  ;;  %v1829_v1 = vld [vmem:[#allocation2 + $0xde] sm:$0xff] }
 0x24c   :  { %7347 = vmatmul.msk.f32.vlgmr.msrb.gmra.mxu1 %vm606_vm2, %v1389_v9 }
 0x24d   :  { %7495 = vmatmul.msk.f32.gmra.mxu2 %vm606_vm2, %v2632_v30  ;;  %v1823_v30 = vld [vmem:[#allocation2 + $0xae] sm:$0xff] }
 0x24e   :  { %7543 = vmatmul.msk.f32.vlgmr.msrb.gmra.mxu3 %vm606_vm2, %v3045_v13  ;;  %v8764_v17 = vpop.f32.mrf.mxu0  ;;  %v2219_v13 = vld [vmem:[#allocation2 + $0x1f] sm:$0xff] }
 0x24f   :  { %v1344_v16 = vpop.f32.mrf.mxu2 }
 0x250   :  { %v1706_v22 = vpop.f32.mrf.mxu3  ;;  %v1033_v24 = vpop.f32.mrf.mxu1 }
 0x251   :  { %v8766_v12 = vadd.f32 %v1706_v22, %v1342_v14  ;;  %7414 = vmatmul.msk.f32.gmra.mxu0 %vm606_vm2, %v1821_v25  ;;  %v1345_v37 = vadd.f32 %v1344_v16, %v1033_v24  ;;  %v2635_v14 = vld [vmem:[#allocation2 + $0x30] sm:$0xff] }
 0x252   :  { %v3048_v16 = vld [vmem:[#allocation2 + $0x34] sm:$0xff] }
 0x253   :  { %10665 = vst [vmem:[#allocation33_spill] sm:$0xff] %v8766_v12  ;;  %v2641_v12 = vld [vmem:[#allocation2 + $0x60] sm:$0xff] }
 0x254   :  { %7445 = vmatmul.msk.f32.vlgmr.msra.gmra.mxu1 %vm606_vm2, %v2217_v28 }
 0x255   :  { %7496 = vmatmul.msk.f32.gmra.mxu2 %vm606_vm2, %v2633_v31 }
 0x256   :  { %7544 = vmatmul.msk.f32.gmra.mxu3 %vm606_vm2, %v3046_v35  ;;  %v8772_v40 = vpop.f32.mrf.mxu0 }
 0x257   :  { %v1347_v38 = vpop.f32.mrf.mxu2 }
 0x258   :  { %v1709_v42 = vpop.f32.mrf.mxu3  ;;  %v1036_v48 = vpop.f32.mrf.mxu1 }
 0x259   :  { %v8774_v44 = vadd.f32 %v1709_v42, %v1345_v37  ;;  %7415 = vmatmul.msk.f32.gmra.mxu0 %vm606_vm2, %v1822_v51  ;;  %v1348_v60 = vadd.f32 %v1347_v38, %v1036_v48  ;;  %v1824_v37 = vld [vmem:[#allocation2 + $0xb6] sm:$0xff]  ;;  %v2220_v38 = vld [vmem:[#allocation2 + $0x27] sm:$0xff] }
 0x25a   :  { %v2636_v42 = vld [vmem:[#allocation2 + $0x38] sm:$0xff] }
 0x25b   :  { %10666 = vst [vmem:[#allocation34_spill] sm:$0xff] %v8774_v44  ;;  %v3049_v48 = vld [vmem:[#allocation2 + $0x3c] sm:$0xff]  ;;  %v1830_v44 = vld [vmem:[#allocation2 + $0xe6] sm:$0xff] }
 0x25c   :  { %7446 = vmatmul.msk.f32.gmra.mxu1 %vm606_vm2, %v2218_v54 }
 0x25d   :  { %7497 = vmatmul.msk.f32.gmra.mxu2 %vm606_vm2, %v2634_v55 }
 0x25e   :  { %7545 = vmatmul.msk.f32.gmra.mxu3 %vm606_vm2, %v3047_v57  ;;  %v8780_v63 = vpop.f32.mrf.mxu0 }
 0x25f   :  { %v1350_v61 = vpop.f32.mrf.mxu2 }
 0x260   :  { %v1712_v3 = vpop.f32.mrf.mxu3  ;;  %v1039_v9 = vpop.f32.mrf.mxu1 }
 0x261   :  { %v8782_v6 = vadd.f32 %v1712_v3, %v1348_v60  ;;  %7416 = vmatmul.msk.f32.gmra.mxu0 %vm606_vm2, %v1823_v30  ;;  %v1351_v22 = vadd.f32 %v1350_v61, %v1039_v9  ;;  %v1825_v3 = vld [vmem:[#allocation2 + $0xbe] sm:$0xff]  ;;  %v2221_v9 = vld [vmem:[#allocation2 + $0x2f] sm:$0xff] }
 0x262   :  { %v2637_v30 = vld [vmem:[#allocation2 + $0x40] sm:$0xff] }
 0x263   :  { %10667 = vst [vmem:[#allocation35_spill] sm:$0xff] %v8782_v6  ;;  %v2642_v6 = vld [vmem:[#allocation2 + $0x68] sm:$0xff] }
 0x264   :  { %7447 = vmatmul.msk.f32.gmra.mxu1 %vm606_vm2, %v2219_v13  ;;  %v3050_v13 = vld [vmem:[#allocation2 + $0x44] sm:$0xff] }
 0x265   :  { %7498 = vmatmul.msk.f32.gmra.mxu2 %vm606_vm2, %v2635_v14 }
 0x266   :  { %7546 = vmatmul.msk.f32.gmra.mxu3 %vm606_vm2, %v3048_v16  ;;  %v8788_v25 = vpop.f32.mrf.mxu0 }
 0x267   :  { %v1353_v24 = vpop.f32.mrf.mxu2 }
 0x268   :  { %v1715_v28 = vpop.f32.mrf.mxu3  ;;  %v1042_v35 = vpop.f32.mrf.mxu1 }
 0x269   :  { %v8790_v31 = vadd.f32 %v1715_v28, %v1351_v22  ;;  %7417 = vmatmul.msk.f32.gmra.mxu0 %vm606_vm2, %v1824_v37  ;;  %v1354_v51 = vadd.f32 %v1353_v24, %v1042_v35  ;;  %v1826_v37 = vld [vmem:[#allocation2 + $0xc6] sm:$0xff] }
 0x26b   :  { %10668 = vst [vmem:[#allocation36_spill] sm:$0xff] %v8790_v31  ;;  %v1831_v31 = vld [vmem:[#allocation2 + $0xee] sm:$0xff] }
 0x26c   :  { %7448 = vmatmul.msk.f32.gmra.mxu1 %vm606_vm2, %v2220_v38  ;;  %v2222_v38 = vld [vmem:[#allocation2 + $0x37] sm:$0xff] }
 0x26d   :  { %7499 = vmatmul.msk.f32.gmra.mxu2 %vm606_vm2, %v2636_v42  ;;  %v2638_v42 = vld [vmem:[#allocation2 + $0x48] sm:$0xff] }
 0x26e   :  { %7547 = vmatmul.msk.f32.gmra.mxu3 %vm606_vm2, %v3049_v48  ;;  %v8796_v55 = vpop.f32.mrf.mxu0  ;;  %v3051_v48 = vld [vmem:[#allocation2 + $0x4c] sm:$0xff] }
 0x26f   :  { %v1356_v54 = vpop.f32.mrf.mxu2 }
 0x270   :  { %v1718_v57 = vpop.f32.mrf.mxu3  ;;  %v1045_v61 = vpop.f32.mrf.mxu1 }
 0x271   :  { %v8798_v60 = vadd.f32 %v1718_v57, %v1354_v51  ;;  %7418 = vmatmul.msk.f32.gmra.mxu0 %vm606_vm2, %v1825_v3  ;;  %v1357_v14 = vadd.f32 %v1356_v54, %v1045_v61 }
 0x273   :  { %10669 = vst [vmem:[#allocation37_spill] sm:$0xff] %v8798_v60  ;;  %v2643_v60 = vld [vmem:[#allocation2 + $0x70] sm:$0xff] }
 0x274   :  { %7449 = vmatmul.msk.f32.gmra.mxu1 %vm606_vm2, %v2221_v9 }
 0x275   :  { %7500 = vmatmul.msk.f32.gmra.mxu2 %vm606_vm2, %v2637_v30  ;;  %v1827_v30 = vld [vmem:[#allocation2 + $0xce] sm:$0xff] }
 0x276   :  { %7548 = vmatmul.msk.f32.gmra.mxu3 %vm606_vm2, %v3050_v13  ;;  %v8804_v22 = vpop.f32.mrf.mxu0  ;;  %v2223_v13 = vld [vmem:[#allocation2 + $0x3f] sm:$0xff] }
 0x277   :  { %v1359_v16 = vpop.f32.mrf.mxu2 }
 0x278   :  { %v1721_v24 = vpop.f32.mrf.mxu3  ;;  %v1048_v35 = vpop.f32.mrf.mxu1 }
 0x279   :  { %v8806_v28 = vadd.f32 %v1721_v24, %v1357_v14  ;;  %7419 = vmatmul.msk.f32.gmra.mxu0 %vm606_vm2, %v1826_v37  ;;  %v1360_v51 = vadd.f32 %v1359_v16, %v1048_v35  ;;  %v2639_v14 = vld [vmem:[#allocation2 + $0x50] sm:$0xff] }
 0x27a   :  { %v3052_v24 = vld [vmem:[#allocation2 + $0x54] sm:$0xff] }
 0x27b   :  { %10670 = vst [vmem:[#allocation38_spill] sm:$0xff] %v8806_v28  ;;  %v1832_v28 = vld [vmem:[#allocation2 + $0xf6] sm:$0xff] }
 0x27c   :  { %7450 = vmatmul.msk.f32.gmra.mxu1 %vm606_vm2, %v2222_v38 }
 0x27d   :  { %7501 = vmatmul.msk.f32.gmra.mxu2 %vm606_vm2, %v2638_v42 }
 0x27e   :  { %7549 = vmatmul.msk.f32.gmra.mxu3 %vm606_vm2, %v3051_v48  ;;  %v8812_v57 = vpop.f32.mrf.mxu0 }
 0x27f   :  { %v1362_v54 = vpop.f32.mrf.mxu2 }
 0x280   :  { %v1724_v61 = vpop.f32.mrf.mxu3  ;;  %v1051_v9 = vpop.f32.mrf.mxu1 }
 0x281   :  { %v8814_v3 = vadd.f32 %v1724_v61, %v1360_v51  ;;  %7420 = vmatmul.msk.f32.gmra.mxu0 %vm606_vm2, %v1827_v30  ;;  %v1363_v16 = vadd.f32 %v1362_v54, %v1051_v9  ;;  %v1828_v51 = vld [vmem:[#allocation2 + $0xd6] sm:$0xff]  ;;  %v2224_v61 = vld [vmem:[#allocation2 + $0x47] sm:$0xff] }
 0x282   :  { %v2640_v30 = vld [vmem:[#allocation2 + $0x58] sm:$0xff] }
 0x283   :  { %10671 = vst [vmem:[#allocation39_spill] sm:$0xff] %v8814_v3  ;;  %v2644_v3 = vld [vmem:[#allocation2 + $0x78] sm:$0xff] }
 0x284   :  { %7451 = vmatmul.msk.f32.gmra.mxu1 %vm606_vm2, %v2223_v13  ;;  %v3053_v13 = vld [vmem:[#allocation2 + $0x5c] sm:$0xff] }
 0x285   :  { %7502 = vmatmul.msk.f32.gmra.mxu2 %vm606_vm2, %v2639_v14 }
 0x286   :  { %7550 = vmatmul.msk.f32.gmra.mxu3 %vm606_vm2, %v3052_v24  ;;  %v8820_v37 = vpop.f32.mrf.mxu0 }
 0x287   :  { %v1365_v35 = vpop.f32.mrf.mxu2 }
 0x288   :  { %v1727_v38 = vpop.f32.mrf.mxu3  ;;  %v1054_v48 = vpop.f32.mrf.mxu1 }
 0x289   :  { %v8822_v42 = vadd.f32 %v1727_v38, %v1363_v16  ;;  %7421 = vmatmul.msk.f32.gmra.mxu0 %vm606_vm2, %v1828_v51  ;;  %v1366_v54 = vadd.f32 %v1365_v35, %v1054_v48  ;;  %v2225_v51 = vld [vmem:[#allocation2 + $0x4f] sm:$0xff] }
 0x28b   :  { %10672 = vst [vmem:[#allocation40_spill] sm:$0xff] %v8822_v42  ;;  %v1833_v42 = vld [vmem:[#allocation2 + $0xfe] sm:$0xff] }
 0x28c   :  { %7452 = vmatmul.msk.f32.gmra.mxu1 %vm606_vm2, %v2224_v61  ;;  %v3054_v61 = vld [vmem:[#allocation2 + $0x64] sm:$0xff] }
 0x28d   :  { %7503 = vmatmul.msk.f32.gmra.mxu2 %vm606_vm2, %v2640_v30 }
 0x28e   :  { %7551 = vmatmul.msk.f32.gmra.mxu3 %vm606_vm2, %v3053_v13  ;;  %v8828_v14 = vpop.f32.mrf.mxu0 }
 0x28f   :  { %v1368_v9 = vpop.f32.mrf.mxu2 }
 0x290   :  { %v1730_v24 = vpop.f32.mrf.mxu3  ;;  %v1057_v38 = vpop.f32.mrf.mxu1 }
 0x291   :  { %v8830_v16 = vadd.f32 %v1730_v24, %v1366_v54  ;;  %7422 = vmatmul.msk.f32.gmra.mxu0 %vm606_vm2, %v1829_v1  ;;  %v1369_v35 = vadd.f32 %v1368_v9, %v1057_v38  ;;  %v2226_v1 = vld [vmem:[#allocation2 + $0x57] sm:$0xff] }
 0x293   :  { %10673 = vst [vmem:[#allocation41_spill] sm:$0xff] %v8830_v16  ;;  %v2645_v16 = vld [vmem:[#allocation2 + $0x80] sm:$0xff] }
 0x294   :  { %7453 = vmatmul.msk.f32.gmra.mxu1 %vm606_vm2, %v2225_v51 }
 0x295   :  { %7504 = vmatmul.msk.f32.gmra.mxu2 %vm606_vm2, %v2641_v12  ;;  %v3055_v12 = vld [vmem:[#allocation2 + $0x6c] sm:$0xff] }
 0x296   :  { %7552 = vmatmul.msk.f32.gmra.mxu3 %vm606_vm2, %v3054_v61  ;;  %v8836_v30 = vpop.f32.mrf.mxu0 }
 0x297   :  { %v1371_v48 = vpop.f32.mrf.mxu2 }
 0x298   :  { %v1733_v13 = vpop.f32.mrf.mxu3 }
 0x299   :  { %v8838_v54 = vadd.f32 %v1733_v13, %v1369_v35  ;;  %v1060_v24 = vpop.f32.mrf.mxu1  ;;  %7423 = vmatmul.msk.f32.gmra.mxu0 %vm606_vm2, %v1830_v44  ;;  %v2227_v44 = vld [vmem:[#allocation2 + $0x5f] sm:$0xff] }
 0x29a   :  { %v1372_v9 = vadd.f32 %v1371_v48, %v1060_v24 }
 0x29b   :  { %10674 = vst [vmem:[#allocation42_spill] sm:$0xff] %v8838_v54  ;;  %v1834_v54 = vld [vmem:[#allocation2 + $0x106] sm:$0xff] }
 0x29c   :  { %7454 = vmatmul.msk.f32.gmra.mxu1 %vm606_vm2, %v2226_v1 }
 0x29d   :  { %7505 = vmatmul.msk.f32.gmra.mxu2 %vm606_vm2, %v2642_v6  ;;  %v3056_v6 = vld [vmem:[#allocation2 + $0x74] sm:$0xff] }
 0x29e   :  { %7553 = vmatmul.msk.f32.gmra.mxu3 %vm606_vm2, %v3055_v12  ;;  %v8844_v51 = vpop.f32.mrf.mxu0 }
 0x2a0   :  { %v1374_v38 = vpop.f32.mrf.mxu2 }
 0x2a1   :  { %v1736_v61 = vpop.f32.mrf.mxu3  ;;  %v1063_v13 = vpop.f32.mrf.mxu1  ;;  %7424 = vmatmul.msk.f32.gmra.mxu0 %vm606_vm2, %v1831_v31  ;;  %v2228_v31 = vld [vmem:[#allocation2 + $0x67] sm:$0xff] }
 0x2a2   :  { %v8846_v35 = vadd.f32 %v1736_v61, %v1372_v9  ;;  %v1375_v48 = vadd.f32 %v1374_v38, %v1063_v13 }
 0x2a4   :  { %10675 = vst [vmem:[#allocation43_spill] sm:$0xff] %v8846_v35  ;;  %7455 = vmatmul.msk.f32.gmra.mxu1 %vm606_vm2, %v2227_v44  ;;  %v2646_v35 = vld [vmem:[#allocation2 + $0x88] sm:$0xff] }
 0x2a5   :  { %7506 = vmatmul.msk.f32.gmra.mxu2 %vm606_vm2, %v2643_v60  ;;  %v3057_v60 = vld [vmem:[#allocation2 + $0x7c] sm:$0xff] }
 0x2a6   :  { %7554 = vmatmul.msk.f32.gmra.mxu3 %vm606_vm2, %v3056_v6  ;;  %v8852_v1 = vpop.f32.mrf.mxu0 }
 0x2a8   :  { %v1377_v24 = vpop.f32.mrf.mxu2 }
 0x2a9   :  { %v1739_v12 = vpop.f32.mrf.mxu3  ;;  %v1066_v61 = vpop.f32.mrf.mxu1  ;;  %7425 = vmatmul.msk.f32.gmra.mxu0 %vm606_vm2, %v1832_v28  ;;  %v2229_v28 = vld [vmem:[#allocation2 + $0x6f] sm:$0xff] }
 0x2aa   :  { %v8854_v9 = vadd.f32 %v1739_v12, %v1375_v48  ;;  %v1378_v38 = vadd.f32 %v1377_v24, %v1066_v61 }
 0x2ac   :  { %10676 = vst [vmem:[#allocation44_spill] sm:$0xff] %v8854_v9  ;;  %7456 = vmatmul.msk.f32.gmra.mxu1 %vm606_vm2, %v2228_v31  ;;  %v1835_v9 = vld [vmem:[#allocation2 + $0x10e] sm:$0xff] }
 0x2ad   :  { %7507 = vmatmul.msk.f32.gmra.mxu2 %vm606_vm2, %v2644_v3  ;;  %v3058_v3 = vld [vmem:[#allocation2 + $0x84] sm:$0xff] }
 0x2ae   :  { %7555 = vmatmul.msk.f32.gmra.mxu3 %vm606_vm2, %v3057_v60  ;;  %v8860_v44 = vpop.f32.mrf.mxu0 }
 0x2b0   :  { %v1380_v13 = vpop.f32.mrf.mxu2 }
 0x2b1   :  { %v1742_v6 = vpop.f32.mrf.mxu3  ;;  %v1069_v12 = vpop.f32.mrf.mxu1  ;;  %7426 = vmatmul.msk.f32.gmra.mxu0 %vm606_vm2, %v1833_v42  ;;  %v2230_v42 = vld [vmem:[#allocation2 + $0x77] sm:$0xff] }
 0x2b2   :  { %v8862_v48 = vadd.f32 %v1742_v6, %v1378_v38  ;;  %v1381_v24 = vadd.f32 %v1380_v13, %v1069_v12 }
 0x2b4   :  { %10677 = vst [vmem:[#allocation45_spill] sm:$0xff] %v8862_v48  ;;  %7457 = vmatmul.msk.f32.gmra.mxu1 %vm606_vm2, %v2229_v28  ;;  %v2647_v48 = vld [vmem:[#allocation2 + $0x90] sm:$0xff] }
 0x2b5   :  { %7508 = vmatmul.msk.f32.gmra.mxu2 %vm606_vm2, %v2645_v16  ;;  %v3059_v16 = vld [vmem:[#allocation2 + $0x8c] sm:$0xff] }
 0x2b6   :  { %7556 = vmatmul.msk.f32.gmra.mxu3 %vm606_vm2, %v3058_v3  ;;  %v8868_v31 = vpop.f32.mrf.mxu0 }
 0x2b8   :  { %v1383_v61 = vpop.f32.mrf.mxu2 }
 0x2b9   :  { %v1745_v60 = vpop.f32.mrf.mxu3  ;;  %v1072_v6 = vpop.f32.mrf.mxu1  ;;  %7427 = vmatmul.msk.f32.gmra.mxu0 %vm606_vm2, %v1834_v54  ;;  %v2231_v54 = vld [vmem:[#allocation2 + $0x7f] sm:$0xff] }
 0x2ba   :  { %v8870_v38 = vadd.f32 %v1745_v60, %v1381_v24  ;;  %v1384_v13 = vadd.f32 %v1383_v61, %v1072_v6 }
 0x2bc   :  { %10678 = vst [vmem:[#allocation46_spill] sm:$0xff] %v8870_v38  ;;  %7458 = vmatmul.msk.f32.gmra.mxu1 %vm606_vm2, %v2230_v42  ;;  %v1836_v38 = vld [vmem:[#allocation2 + $0x116] sm:$0xff] }
 0x2bd   :  { %7509 = vmatmul.msk.f32.gmra.mxu2 %vm606_vm2, %v2646_v35  ;;  %v3060_v35 = vld [vmem:[#allocation2 + $0x94] sm:$0xff] }
 0x2be   :  { %7557 = vmatmul.msk.f32.gmra.mxu3 %vm606_vm2, %v3059_v16  ;;  %v8876_v28 = vpop.f32.mrf.mxu0 }
 0x2c0   :  { %v1386_v12 = vpop.f32.mrf.mxu2 }
 0x2c1   :  { %v1748_v3 = vpop.f32.mrf.mxu3  ;;  %v1075_v60 = vpop.f32.mrf.mxu1  ;;  %7428 = vmatmul.msk.f32.gmra.mxu0 %vm606_vm2, %v1835_v9  ;;  %v1243_v9 = vadd.f32 %v8740_v23, %v8447_v26  ;;  %v1837_v26 = vld [vmem:[#allocation2 + $0x11e] sm:$0xff] }
 0x2c2   :  { %v8878_v24 = vadd.f32 %v1748_v3, %v1384_v13  ;;  %v1387_v61 = vadd.f32 %v1386_v12, %v1075_v60  ;;  %v3061_v12 = vld [vmem:[#allocation2 + $0x9c] sm:$0xff] }
 0x2c4   :  { %10679 = vst [vmem:[#allocation47_spill] sm:$0xff] %v8878_v24  ;;  %7459 = vmatmul.msk.f32.gmra.mxu1 %vm606_vm2, %v2231_v54  ;;  %v2232_v54 = vld [vmem:[#allocation2 + $0x87] sm:$0xff]  ;;  %v2648_v24 = vld [vmem:[#allocation2 + $0x98] sm:$0xff] }
 0x2c5   :  { %7510 = vmatmul.msk.f32.gmra.mxu2 %vm606_vm2, %v2647_v48 }
 0x2c6   :  { %7558 = vmatmul.msk.f32.gmra.mxu3 %vm606_vm2, %v3060_v35  ;;  %v8884_v6 = vpop.f32.mrf.mxu0 }
 0x2c8   :  { %v2849_v42 = vpop.f32.mrf.mxu2 }
 0x2c9   :  { %v1751_v16 = vpop.f32.mrf.mxu3  ;;  %v1607_v3 = vpop.f32.mrf.mxu1  ;;  %7429 = vmatmul.msk.f32.gmra.mxu0 %vm606_vm2, %v1836_v38  ;;  %v2233_v38 = vld [vmem:[#allocation2 + $0x8f] sm:$0xff] }
 0x2ca   :  { %v8886_v13 = vadd.f32 %v1751_v16, %v1387_v61  ;;  %v1754_v48 = vadd.f32 %v1607_v3, %v1243_v9  ;;  %v2649_v3 = vld [vmem:[#allocation2 + $0xa0] sm:$0xff] }
 0x2cc   :  { %10680 = vst [vmem:[#allocation48_spill] sm:$0xff] %v8886_v13  ;;  %7460 = vmatmul.msk.f32.gmra.mxu1 %vm606_vm2, %v2232_v54  ;;  %v2168_v16 = vadd.f32 %v8748_v43, %v1754_v48 }
 0x2cd   :  { %7511 = vmatmul.msk.f32.gmra.mxu2 %vm606_vm2, %v2648_v24  ;;  %v3062_v24 = vld [vmem:[#allocation2 + $0xa4] sm:$0xff] }
 0x2ce   :  { %7559 = vmatmul.msk.f32.gmra.mxu3 %vm606_vm2, %v3061_v12  ;;  %v8894_v60 = vpop.f32.mrf.mxu0 }
 0x2d0   :  { %v2852_v35 = vpop.f32.mrf.mxu2 }
 0x2d1   :  { %v3263_v61 = vpop.f32.mrf.mxu3  ;;  %v2435_v13 = vpop.f32.mrf.mxu1  ;;  %7430 = vmatmul.msk.f32.gmra.mxu0 %vm606_vm2, %v1837_v26  ;;  %v1838_v26 = vld [vmem:[#allocation2 + $0x126] sm:$0xff] }
 0x2d2   :  { %v2582_v23 = vadd.f32 %v2435_v13, %v2168_v16  ;;  %v2169_v13 = vadd.f32 %v8756_v62, %v8467_v47  ;;  %v2170_v62 = vadd.f32 %v8764_v17, %v8478_v59  ;;  %v2171_v17 = vadd.f32 %v8772_v40, %v8489_v7 }
 0x2d3   :  { %v2172_v40 = vadd.f32 %v8780_v63, %v8500_v19  ;;  %v2173_v63 = vadd.f32 %v8788_v25, %v8511_v33  ;;  %v2174_v25 = vadd.f32 %v8796_v55, %v8522_v45  ;;  %v2175_v55 = vadd.f32 %v8804_v22, %v8533_v58 }
 0x2d4   :  { %v2996_v9 = vadd.f32 %v2849_v42, %v2582_v23  ;;  %7461 = vmatmul.msk.f32.gmra.mxu1 %vm606_vm2, %v2233_v38  ;;  %v2234_v42 = vld [vmem:[#allocation2 + $0x97] sm:$0xff]  ;;  %v2650_v23 = vld [vmem:[#allocation2 + $0xa8] sm:$0xff]  ;;  %v2176_v22 = vadd.f32 %v8812_v57, %v8544_v8  ;;  %v2177_v57 = vadd.f32 %v8820_v37, %v8555_v21  ;;  %v2178_v37 = vadd.f32 %v8828_v14, %v8566_v36 }
 0x2d5   :  { %7512 = vmatmul.msk.f32.gmra.mxu2 %vm606_vm2, %v2649_v3 }
 0x2d6   :  { %7560 = vmatmul.msk.f32.gmra.mxu3 %vm606_vm2, %v3062_v24  ;;  %v8901_v54 = vadd.f32 %v3263_v61, %v2996_v9  ;;  %v8903_v12 = vpop.f32.mrf.mxu0  ;;  %v3063_v61 = vld [vmem:[#allocation2 + $0xac] sm:$0xff] }
 0x2d8   :  { %v2855_v43 = vpop.f32.mrf.mxu2 }
 0x2d9   :  { %v3266_v48 = vpop.f32.mrf.mxu3  ;;  %v2438_v16 = vpop.f32.mrf.mxu1  ;;  %7431 = vmatmul.msk.f32.gmra.mxu0 %vm606_vm2, %v1838_v26 }
 0x2da   :  { %v2583_v29 = vadd.f32 %v2438_v16, %v2169_v13  ;;  %v1839_v16 = vld [vmem:[#allocation2 + $0x12e] sm:$0xff] }
 0x2dc   :  { %v2997_v38 = vadd.f32 %v2852_v35, %v2583_v29  ;;  %7462 = vmatmul.msk.f32.gmra.mxu1 %vm606_vm2, %v2234_v42  ;;  %v2235_v29 = vld [vmem:[#allocation2 + $0x9f] sm:$0xff]  ;;  %v2651_v35 = vld [vmem:[#allocation2 + $0xb0] sm:$0xff] }
 0x2dd   :  { %7513 = vmatmul.msk.f32.gmra.mxu2 %vm606_vm2, %v2650_v23 }
 0x2de   :  { %7561 = vmatmul.msk.f32.gmra.mxu3 %vm606_vm2, %v3063_v61  ;;  %v8911_v3 = vadd.f32 %v3266_v48, %v2997_v38  ;;  %v8913_v9 = vpop.f32.mrf.mxu0  ;;  %v3064_v48 = vld [vmem:[#allocation2 + $0xb4] sm:$0xff] }
 0x2e0   :  { %v2858_v47 = vpop.f32.mrf.mxu2 }
 0x2e1   :  { %v3269_v24 = vpop.f32.mrf.mxu3  ;;  %v2441_v13 = vpop.f32.mrf.mxu1  ;;  %7432 = vmatmul.msk.f32.gmra.mxu0 %vm606_vm2, %v1839_v16 }
 0x2e2   :  { %v2584_v26 = vadd.f32 %v2441_v13, %v2170_v62  ;;  %v1840_v13 = vld [vmem:[#allocation2 + $0x136] sm:$0xff] }
 0x2e4   :  { %v2998_v42 = vadd.f32 %v2855_v43, %v2584_v26  ;;  %7463 = vmatmul.msk.f32.gmra.mxu1 %vm606_vm2, %v2235_v29  ;;  %v2236_v43 = vld [vmem:[#allocation2 + $0xa7] sm:$0xff]  ;;  %v2652_v26 = vld [vmem:[#allocation2 + $0xb8] sm:$0xff] }
 0x2e5   :  { %7514 = vmatmul.msk.f32.gmra.mxu2 %vm606_vm2, %v2651_v35 }
 0x2e6   :  { %7562 = vmatmul.msk.f32.gmra.mxu3 %vm606_vm2, %v3064_v48  ;;  %v8921_v23 = vadd.f32 %v3269_v24, %v2998_v42  ;;  %v8923_v38 = vpop.f32.mrf.mxu0  ;;  %v3065_v24 = vld [vmem:[#allocation2 + $0xbc] sm:$0xff] }
 0x2e8   :  { %v2861_v59 = vpop.f32.mrf.mxu2 }
 0x2e9   :  { %v3272_v61 = vpop.f32.mrf.mxu3  ;;  %v2444_v62 = vpop.f32.mrf.mxu1  ;;  %7433 = vmatmul.msk.f32.gmra.mxu0 %vm606_vm2, %v1840_v13 }
 0x2ea   :  { %v2585_v16 = vadd.f32 %v2444_v62, %v2171_v17  ;;  %v1841_v62 = vld [vmem:[#allocation2 + $0x13e] sm:$0xff] }
 0x2ec   :  { %v2999_v29 = vadd.f32 %v2858_v47, %v2585_v16  ;;  %7464 = vmatmul.msk.f32.gmra.mxu1 %vm606_vm2, %v2236_v43  ;;  %v2237_v47 = vld [vmem:[#allocation2 + $0xaf] sm:$0xff]  ;;  %v2653_v16 = vld [vmem:[#allocation2 + $0xc0] sm:$0xff] }
 0x2ed   :  { %7515 = vmatmul.msk.f32.gmra.mxu2 %vm606_vm2, %v2652_v26 }
 0x2ee   :  { %7563 = vmatmul.msk.f32.gmra.mxu3 %vm606_vm2, %v3065_v24  ;;  %v8931_v35 = vadd.f32 %v3272_v61, %v2999_v29  ;;  %v8933_v42 = vpop.f32.mrf.mxu0  ;;  %v3066_v61 = vld [vmem:[#allocation2 + $0xc4] sm:$0xff] }
 0x2f0   :  { %v2864_v7 = vpop.f32.mrf.mxu2 }
 0x2f1   :  { %v3275_v48 = vpop.f32.mrf.mxu3  ;;  %v2447_v17 = vpop.f32.mrf.mxu1  ;;  %7434 = vmatmul.msk.f32.gmra.mxu0 %vm606_vm2, %v1841_v62 }
 0x2f2   :  { %v2586_v13 = vadd.f32 %v2447_v17, %v2172_v40  ;;  %v1842_v17 = vld [vmem:[#allocation2 + $0x146] sm:$0xff] }
 0x2f4   :  { %v3000_v43 = vadd.f32 %v2861_v59, %v2586_v13  ;;  %7465 = vmatmul.msk.f32.gmra.mxu1 %vm606_vm2, %v2237_v47  ;;  %v2238_v59 = vld [vmem:[#allocation2 + $0xb7] sm:$0xff]  ;;  %v2654_v13 = vld [vmem:[#allocation2 + $0xc8] sm:$0xff] }
 0x2f5   :  { %7516 = vmatmul.msk.f32.gmra.mxu2 %vm606_vm2, %v2653_v16 }
 0x2f6   :  { %7564 = vmatmul.msk.f32.gmra.mxu3 %vm606_vm2, %v3066_v61  ;;  %v8941_v26 = vadd.f32 %v3275_v48, %v3000_v43  ;;  %v8943_v29 = vpop.f32.mrf.mxu0  ;;  %v3067_v48 = vld [vmem:[#allocation2 + $0xcc] sm:$0xff] }
 0x2f8   :  { %v2867_v19 = vpop.f32.mrf.mxu2 }
 0x2f9   :  { %v3278_v24 = vpop.f32.mrf.mxu3  ;;  %v2450_v40 = vpop.f32.mrf.mxu1  ;;  %7435 = vmatmul.msk.f32.gmra.mxu0 %vm606_vm2, %v1842_v17 }
 0x2fa   :  { %v2587_v62 = vadd.f32 %v2450_v40, %v2173_v63  ;;  %v1843_v40 = vld [vmem:[#allocation2 + $0x14e] sm:$0xff] }
 0x2fc   :  { %v3001_v47 = vadd.f32 %v2864_v7, %v2587_v62  ;;  %7466 = vmatmul.msk.f32.gmra.mxu1 %vm606_vm2, %v2238_v59  ;;  %v2239_v7 = vld [vmem:[#allocation2 + $0xbf] sm:$0xff]  ;;  %v2655_v62 = vld [vmem:[#allocation2 + $0xd0] sm:$0xff] }
 0x2fd   :  { %7517 = vmatmul.msk.f32.gmra.mxu2 %vm606_vm2, %v2654_v13 }
 0x2fe   :  { %7565 = vmatmul.msk.f32.gmra.mxu3 %vm606_vm2, %v3067_v48  ;;  %v8951_v16 = vadd.f32 %v3278_v24, %v3001_v47  ;;  %v8953_v43 = vpop.f32.mrf.mxu0  ;;  %v3068_v24 = vld [vmem:[#allocation2 + $0xd4] sm:$0xff] }
 0x300   :  { %v2870_v33 = vpop.f32.mrf.mxu2 }
 0x301   :  { %v3281_v61 = vpop.f32.mrf.mxu3  ;;  %v2453_v63 = vpop.f32.mrf.mxu1  ;;  %7436 = vmatmul.msk.f32.gmra.mxu0 %vm606_vm2, %v1843_v40 }
 0x302   :  { %v2588_v17 = vadd.f32 %v2453_v63, %v2174_v25  ;;  %v1844_v63 = vld [vmem:[#allocation2 + $0x156] sm:$0xff] }
 0x304   :  { %v3002_v59 = vadd.f32 %v2867_v19, %v2588_v17  ;;  %7467 = vmatmul.msk.f32.gmra.mxu1 %vm606_vm2, %v2239_v7  ;;  %v2240_v19 = vld [vmem:[#allocation2 + $0xc7] sm:$0xff]  ;;  %v2656_v17 = vld [vmem:[#allocation2 + $0xd8] sm:$0xff] }
 0x305   :  { %7518 = vmatmul.msk.f32.gmra.mxu2 %vm606_vm2, %v2655_v62 }
 0x306   :  { %7566 = vmatmul.msk.f32.gmra.mxu3 %vm606_vm2, %v3068_v24  ;;  %v8961_v13 = vadd.f32 %v3281_v61, %v3002_v59  ;;  %v8963_v47 = vpop.f32.mrf.mxu0  ;;  %v3069_v61 = vld [vmem:[#allocation2 + $0xdc] sm:$0xff] }
 0x307   :  { %10681 = vst [vmem:[#allocation49_spill] sm:$0xff] %v8963_v47  ;;  %v3499_v47 = vld [vmem:[#allocation2 + $0x15d] sm:$0xff] }
 0x308   :  { %v2873_v45 = vpop.f32.mrf.mxu2 }
 0x309   :  { %v3284_v48 = vpop.f32.mrf.mxu3  ;;  %v2456_v25 = vpop.f32.mrf.mxu1  ;;  %7437 = vmatmul.msk.f32.gmra.mxu0 %vm606_vm2, %v1844_v63 }
 0x30a   :  { %v2589_v40 = vadd.f32 %v2456_v25, %v2175_v55  ;;  %v1845_v25 = vld [vmem:[#allocation2 + $0x15e] sm:$0xff] }
 0x30c   :  { %v3003_v7 = vadd.f32 %v2870_v33, %v2589_v40  ;;  %7468 = vmatmul.msk.f32.gmra.mxu1 %vm606_vm2, %v2240_v19  ;;  %v2241_v33 = vld [vmem:[#allocation2 + $0xcf] sm:$0xff]  ;;  %v2657_v40 = vld [vmem:[#allocation2 + $0xe0] sm:$0xff] }
 0x30d   :  { %7519 = vmatmul.msk.f32.gmra.mxu2 %vm606_vm2, %v2656_v17 }
 0x30e   :  { %7567 = vmatmul.msk.f32.gmra.mxu3 %vm606_vm2, %v3069_v61  ;;  %v8971_v62 = vadd.f32 %v3284_v48, %v3003_v7  ;;  %v8973_v59 = vpop.f32.mrf.mxu0  ;;  %v3070_v48 = vld [vmem:[#allocation2 + $0xe4] sm:$0xff] }
 0x30f   :  { %10682 = vst [vmem:[#allocation50_spill] sm:$0xff] %v8973_v59 }
 0x310   :  { %v2876_v58 = vpop.f32.mrf.mxu2 }
 0x311   :  { %v3287_v24 = vpop.f32.mrf.mxu3  ;;  %v2459_v55 = vpop.f32.mrf.mxu1  ;;  %7438 = vmatmul.msk.f32.gmra.mxu0 %vm606_vm2, %v1845_v25 }
 0x312   :  { %v2590_v63 = vadd.f32 %v2459_v55, %v2176_v22  ;;  %v1846_v55 = vld [vmem:[#allocation2 + $0x166] sm:$0xff] }
 0x314   :  { %v3004_v19 = vadd.f32 %v2873_v45, %v2590_v63  ;;  %7469 = vmatmul.msk.f32.gmra.mxu1 %vm606_vm2, %v2241_v33  ;;  %v2242_v45 = vld [vmem:[#allocation2 + $0xd7] sm:$0xff]  ;;  %v2658_v63 = vld [vmem:[#allocation2 + $0xe8] sm:$0xff] }
 0x315   :  { %7520 = vmatmul.msk.f32.gmra.mxu2 %vm606_vm2, %v2657_v40 }
 0x316   :  { %7568 = vmatmul.msk.f32.gmra.mxu3 %vm606_vm2, %v3070_v48  ;;  %v8981_v17 = vadd.f32 %v3287_v24, %v3004_v19  ;;  %v8983_v7 = vpop.f32.mrf.mxu0  ;;  %v3071_v24 = vld [vmem:[#allocation2 + $0xec] sm:$0xff] }
 0x317   :  { %10683 = vst [vmem:[#allocation51_spill] sm:$0xff] %v8983_v7 }
 0x318   :  { %v2879_v8 = vpop.f32.mrf.mxu2 }
 0x319   :  { %v3290_v61 = vpop.f32.mrf.mxu3  ;;  %v2462_v22 = vpop.f32.mrf.mxu1  ;;  %7439 = vmatmul.msk.f32.gmra.mxu0 %vm606_vm2, %v1846_v55 }
 0x31a   :  { %v2591_v25 = vadd.f32 %v2462_v22, %v2177_v57  ;;  %v1847_v22 = vld [vmem:[#allocation2 + $0x16e] sm:$0xff] }
 0x31c   :  { %v3005_v33 = vadd.f32 %v2876_v58, %v2591_v25  ;;  %7470 = vmatmul.msk.f32.gmra.mxu1 %vm606_vm2, %v2242_v45  ;;  %v2243_v58 = vld [vmem:[#allocation2 + $0xdf] sm:$0xff]  ;;  %v2659_v25 = vld [vmem:[#allocation2 + $0xf0] sm:$0xff] }
 0x31d   :  { %7521 = vmatmul.msk.f32.gmra.mxu2 %vm606_vm2, %v2658_v63  ;;  %v3512_v63 = vld [vmem:[#allocation8 + $0xf8] sm:$0xff] }
 0x31e   :  { %7569 = vmatmul.msk.f32.gmra.mxu3 %vm606_vm2, %v3071_v24  ;;  %v8991_v40 = vadd.f32 %v3290_v61, %v3005_v33  ;;  %v8993_v19 = vpop.f32.mrf.mxu0  ;;  %v3072_v61 = vld [vmem:[#allocation2 + $0xf4] sm:$0xff]  ;;  %3672 = vmatpush.msrb.mxu0 %v3512_v63  ;;  %v3511_v33 = vld [vmem:[#allocation8 + $0xf0] sm:$0xff] }
 0x31f   :  { %10684 = vst [vmem:[#allocation52_spill] sm:$0xff] %v8993_v19  ;;  %v2660_v63 = vld [vmem:[#allocation2 + $0xf8] sm:$0xff] }
 0x320   :  { %v2882_v21 = vpop.f32.mrf.mxu2  ;;  %3673 = vmatpush.msrb.mxu0 %v3511_v33 }
 0x321   :  { %v3293_v48 = vpop.f32.mrf.mxu3  ;;  %v2465_v57 = vpop.f32.mrf.mxu1  ;;  %7440 = vmatmul.msk.f32.gmra.mxu0 %vm606_vm2, %v1847_v22 }
 0x322   :  { %v2592_v55 = vadd.f32 %v2465_v57, %v2178_v37  ;;  %v2179_v37 = vadd.f32 %v8836_v30, %v8577_v53  ;;  %v3510_v57 = vld [vmem:[#allocation8 + $0xe8] sm:$0xff] }
 0x323   :  { %3674 = vmatpush.msrb.mxu0 %v3510_v57 }
 0x324   :  { %v3006_v45 = vadd.f32 %v2879_v8, %v2592_v55  ;;  %7471 = vmatmul.msk.f32.gmra.mxu1 %vm606_vm2, %v2243_v58  ;;  %v1848_v55 = vld [vmem:[#allocation2 + $0x176] sm:$0xff] }
 0x325   :  { %7522 = vmatmul.msk.f32.gmra.mxu2 %vm606_vm2, %v2659_v25  ;;  %v3509_v25 = vld [vmem:[#allocation8 + $0xe0] sm:$0xff] }
 0x326   :  { %7570 = vmatmul.msk.f32.gmra.mxu3 %vm606_vm2, %v3072_v61  ;;  %v9001_v36 = vadd.f32 %v3293_v48, %v3006_v45  ;;  %v9003_v14 = vpop.f32.mrf.mxu0  ;;  %v2244_v61 = vld [vmem:[#allocation2 + $0xe7] sm:$0xff]  ;;  %3675 = vmatpush.msrb.mxu0 %v3509_v25  ;;  %v3073_v45 = vld [vmem:[#allocation2 + $0xfc] sm:$0xff] }
 0x328   :  { %v2885_v24 = vpop.f32.mrf.mxu2 }
 0x329   :  { %v3296_v8 = vpop.f32.mrf.mxu3  ;;  %v2468_v22 = vpop.f32.mrf.mxu1  ;;  %7441 = vmatmul.msk.f32.gmra.mxu0 %vm606_vm2, %v1848_v55  ;;  %v1849_v55 = vld [vmem:[#allocation2 + $0x17e] sm:$0xff] }
 0x32a   :  { %v2593_v58 = vadd.f32 %v2468_v22, %v2179_v37  ;;  %v2180_v37 = vadd.f32 %v8844_v51, %v8588_v4  ;;  %v2181_v51 = vadd.f32 %v8852_v1, %v8599_v18  ;;  %v1851_v1 = vld [vmem:[#allocation2 + $0x18e] sm:$0xff] }
 0x32c   :  { %v3007_v48 = vadd.f32 %v2882_v21, %v2593_v58  ;;  %7472 = vmatmul.msk.f32.gmra.mxu1 %vm606_vm2, %v2244_v61  ;;  %v2245_v21 = vld [vmem:[#allocation2 + $0xef] sm:$0xff]  ;;  %v2661_v58 = vld [vmem:[#allocation2 + $0x100] sm:$0xff] }
 0x32d   :  { %7523 = vmatmul.msk.f32.gmra.mxu2 %vm606_vm2, %v2660_v63 }
 0x32e   :  { %7571 = vmatmul.msk.f32.gmra.mxu3 %vm606_vm2, %v3073_v45  ;;  %v9011_v53 = vadd.f32 %v3296_v8, %v3007_v48  ;;  %v9013_v30 = vpop.f32.mrf.mxu0  ;;  %v3074_v8 = vld [vmem:[#allocation2 + $0x104] sm:$0xff] }
 0x330   :  { %v2888_v33 = vpop.f32.mrf.mxu2 }
 0x331   :  { %v3299_v57 = vpop.f32.mrf.mxu3  ;;  %v2471_v22 = vpop.f32.mrf.mxu1  ;;  %7442 = vmatmul.msk.f32.gmra.mxu0 %vm606_vm2, %v1849_v55 }
 0x332   :  { %v2594_v25 = vadd.f32 %v2471_v22, %v2180_v37  ;;  %v1850_v22 = vld [vmem:[#allocation2 + $0x186] sm:$0xff] }
 0x334   :  { %v3008_v61 = vadd.f32 %v2885_v24, %v2594_v25  ;;  %7473 = vmatmul.msk.f32.gmra.mxu1 %vm606_vm2, %v2245_v21  ;;  %v2246_v24 = vld [vmem:[#allocation2 + $0xf7] sm:$0xff]  ;;  %v2662_v25 = vld [vmem:[#allocation2 + $0x108] sm:$0xff] }
 0x335   :  { %7524 = vmatmul.msk.f32.gmra.mxu2 %vm606_vm2, %v2661_v58 }
 0x336   :  { %7572 = vmatmul.msk.f32.gmra.mxu3 %vm606_vm2, %v3074_v8  ;;  %v9021_v63 = vadd.f32 %v3299_v57, %v3008_v61  ;;  %v9023_v48 = vpop.f32.mrf.mxu0  ;;  %v3075_v57 = vld [vmem:[#allocation2 + $0x10c] sm:$0xff]  ;;  %v2182_v8 = vadd.f32 %v8860_v44, %v8607_v34  ;;  %v2183_v44 = vadd.f32 %v8868_v31, %v8615_v49  ;;  %v2184_v31 = vadd.f32 %v8876_v28, %v8623_v0 }
 0x337   :  { %v2185_v28 = vadd.f32 %v8884_v6, %v8633_v15  ;;  %v2186_v15 = vadd.f32 %v8894_v60, %v8641_v32  ;;  %v2187_v60 = vadd.f32 %v8903_v12, %v8649_v50  ;;  %v2188_v12 = vadd.f32 %v8913_v9, %v8657_v2 }
 0x338   :  { %v2891_v4 = vpop.f32.mrf.mxu2  ;;  %v2189_v9 = vadd.f32 %v8923_v38, %v8665_v20  ;;  %v2190_v20 = vadd.f32 %v8933_v42, %v8673_v39  ;;  %v2191_v39 = vadd.f32 %v8943_v29, %v8681_v56  ;;  %v2192_v29 = vadd.f32 %v8953_v43, %v8689_v10 }
 0x339   :  { %v3302_v45 = vpop.f32.mrf.mxu3  ;;  %v2474_v37 = vpop.f32.mrf.mxu1  ;;  %7443 = vmatmul.msk.f32.gmra.mxu0 %vm606_vm2, %v1850_v22 }
 0x33a   :  { %v2595_v55 = vadd.f32 %v2474_v37, %v2181_v51 }
 0x33c   :  { %v3009_v21 = vadd.f32 %v2888_v33, %v2595_v55  ;;  %7474 = vmatmul.msk.f32.gmra.mxu1 %vm606_vm2, %v2246_v24  ;;  %v2247_v33 = vld [vmem:[#allocation2 + $0xff] sm:$0xff]  ;;  %v2663_v55 = vld [vmem:[#allocation2 + $0x110] sm:$0xff] }
 0x33d   :  { %7525 = vmatmul.msk.f32.gmra.mxu2 %vm606_vm2, %v2662_v25 }
 0x33e   :  { %7573 = vmatmul.msk.f32.gmra.mxu3 %vm606_vm2, %v3075_v57  ;;  %v9031_v58 = vadd.f32 %v3302_v45, %v3009_v21  ;;  %v9033_v61 = vpop.f32.mrf.mxu0  ;;  %v3076_v45 = vld [vmem:[#allocation2 + $0x114] sm:$0xff] }
 0x33f   :  { %10685 = vst [vmem:[#allocation53_spill] sm:$0xff] %v9033_v61  ;;  %v3091_v61 = vld [vmem:[#allocation2 + $0x18c] sm:$0xff] }
 0x340   :  { %v2894_v18 = vpop.f32.mrf.mxu2 }
 0x341   :  { %v3305_v51 = vpop.f32.mrf.mxu3  ;;  %v2477_v37 = vpop.f32.mrf.mxu1  ;;  %7444 = vmatmul.msk.f32.gmra.mxu0 %vm606_vm2, %v1851_v1 }
 0x342   :  { %v2596_v22 = vadd.f32 %v2477_v37, %v2182_v8  ;;  %v3459_v8 = vld [vmem:[#allocation2 + $0x1d] sm:$0xff] }
 0x344   :  { %v3010_v24 = vadd.f32 %v2891_v4, %v2596_v22  ;;  %7475 = vmatmul.msk.f32.gmra.mxu1 %vm606_vm2, %v2247_v33  ;;  %v2248_v4 = vld [vmem:[#allocation2 + $0x107] sm:$0xff]  ;;  %v2664_v22 = vld [vmem:[#allocation2 + $0x118] sm:$0xff] }
 0x345   :  { %7526 = vmatmul.msk.f32.gmra.mxu2 %vm606_vm2, %v2663_v55 }
 0x346   :  { %7574 = vmatmul.msk.f32.gmra.mxu3 %vm606_vm2, %v3076_v45  ;;  %v9041_v25 = vadd.f32 %v3305_v51, %v3010_v24  ;;  %v9043_v21 = vpop.f32.mrf.mxu0  ;;  %v3077_v51 = vld [vmem:[#allocation2 + $0x11c] sm:$0xff] }
 0x347   :  { %10686 = vst [vmem:[#allocation54_spill] sm:$0xff] %v9043_v21  ;;  %v2262_v21 = vld [vmem:[#allocation2 + $0x177] sm:$0xff] }
 0x348   :  { %v2897_v34 = vpop.f32.mrf.mxu2 }
 0x349   :  { %v3308_v57 = vpop.f32.mrf.mxu3  ;;  %v2480_v1 = vpop.f32.mrf.mxu1  ;;  %7592 = vmatmul.msk.f32.vlgmr.msrb.gmra.mxu0 %vm606_vm2, %v3459_v8 }
 0x34a   :  { %v2597_v37 = vadd.f32 %v2480_v1, %v2183_v44  ;;  %v3460_v1 = vld [vmem:[#allocation2 + $0x25] sm:$0xff] }
 0x34c   :  { %v3011_v33 = vadd.f32 %v2894_v18, %v2597_v37  ;;  %7476 = vmatmul.msk.f32.gmra.mxu1 %vm606_vm2, %v2248_v4  ;;  %v2249_v18 = vld [vmem:[#allocation2 + $0x10f] sm:$0xff]  ;;  %v2665_v37 = vld [vmem:[#allocation2 + $0x120] sm:$0xff] }
 0x34d   :  { %7527 = vmatmul.msk.f32.gmra.mxu2 %vm606_vm2, %v2664_v22 }
 0x34e   :  { %7575 = vmatmul.msk.f32.gmra.mxu3 %vm606_vm2, %v3077_v51  ;;  %v9051_v55 = vadd.f32 %v3308_v57, %v3011_v33  ;;  %v9053_v24 = vpop.f32.mrf.mxu0  ;;  %v3078_v57 = vld [vmem:[#allocation2 + $0x124] sm:$0xff] }
 0x34f   :  { %10687 = vst [vmem:[#allocation55_spill] sm:$0xff] %v9053_v24 }
 0x350   :  { %v2900_v49 = vpop.f32.mrf.mxu2 }
 0x351   :  { %v3311_v45 = vpop.f32.mrf.mxu3  ;;  %v2483_v44 = vpop.f32.mrf.mxu1  ;;  %7593 = vmatmul.msk.f32.gmra.mxu0 %vm606_vm2, %v3460_v1 }
 0x352   :  { %v2598_v8 = vadd.f32 %v2483_v44, %v2184_v31  ;;  %v3461_v44 = vld [vmem:[#allocation2 + $0x2d] sm:$0xff] }
 0x354   :  { %v3012_v4 = vadd.f32 %v2897_v34, %v2598_v8  ;;  %7477 = vmatmul.msk.f32.gmra.mxu1 %vm606_vm2, %v2249_v18  ;;  %v2250_v34 = vld [vmem:[#allocation2 + $0x117] sm:$0xff]  ;;  %v2666_v8 = vld [vmem:[#allocation2 + $0x128] sm:$0xff] }
 0x355   :  { %7528 = vmatmul.msk.f32.gmra.mxu2 %vm606_vm2, %v2665_v37 }
 0x356   :  { %7576 = vmatmul.msk.f32.gmra.mxu3 %vm606_vm2, %v3078_v57  ;;  %v9061_v22 = vadd.f32 %v3311_v45, %v3012_v4  ;;  %v9063_v33 = vpop.f32.mrf.mxu0  ;;  %v3079_v45 = vld [vmem:[#allocation2 + $0x12c] sm:$0xff] }
 0x357   :  { %10689 = vst [vmem:[#allocation57_spill] sm:$0xff] %v9063_v33  ;;  %v2263_v33 = vld [vmem:[#allocation2 + $0x17f] sm:$0xff] }
 0x358   :  { %10688 = vst [vmem:[#allocation56_spill] sm:$0xff] %v9061_v22  ;;  %v2903_v0 = vpop.f32.mrf.mxu2  ;;  %v3492_v22 = vld [vmem:[#allocation2 + $0x125] sm:$0xff] }
 0x359   :  { %v3314_v51 = vpop.f32.mrf.mxu3  ;;  %v2486_v31 = vpop.f32.mrf.mxu1  ;;  %7594 = vmatmul.msk.f32.gmra.mxu0 %vm606_vm2, %v3461_v44 }
 0x35a   :  { %v2599_v1 = vadd.f32 %v2486_v31, %v2185_v28  ;;  %v3462_v31 = vld [vmem:[#allocation2 + $0x35] sm:$0xff] }
 0x35c   :  { %v3013_v18 = vadd.f32 %v2900_v49, %v2599_v1  ;;  %7478 = vmatmul.msk.f32.gmra.mxu1 %vm606_vm2, %v2250_v34  ;;  %v2251_v49 = vld [vmem:[#allocation2 + $0x11f] sm:$0xff]  ;;  %v2667_v1 = vld [vmem:[#allocation2 + $0x130] sm:$0xff] }
 0x35d   :  { %7529 = vmatmul.msk.f32.gmra.mxu2 %vm606_vm2, %v2666_v8 }
 0x35e   :  { %7577 = vmatmul.msk.f32.gmra.mxu3 %vm606_vm2, %v3079_v45  ;;  %v9071_v37 = vadd.f32 %v3314_v51, %v3013_v18  ;;  %v9073_v4 = vpop.f32.mrf.mxu0  ;;  %v3080_v51 = vld [vmem:[#allocation2 + $0x134] sm:$0xff] }
 0x35f   :  { %10691 = vst [vmem:[#allocation59_spill] sm:$0xff] %v9073_v4  ;;  %v2265_v4 = vld [vmem:[#allocation2 + $0x18f] sm:$0xff] }
 0x360   :  { %10690 = vst [vmem:[#allocation58_spill] sm:$0xff] %v9071_v37  ;;  %v2906_v57 = vpop.f32.mrf.mxu2  ;;  %v3493_v37 = vld [vmem:[#allocation2 + $0x12d] sm:$0xff] }
 0x361   :  { %v3317_v6 = vpop.f32.mrf.mxu3  ;;  %v2489_v28 = vpop.f32.mrf.mxu1  ;;  %7595 = vmatmul.msk.f32.gmra.mxu0 %vm606_vm2, %v3462_v31  ;;  %v2252_v31 = vld [vmem:[#allocation2 + $0x127] sm:$0xff] }
 0x362   :  { %v2600_v44 = vadd.f32 %v2489_v28, %v2186_v15  ;;  %v3463_v15 = vld [vmem:[#allocation2 + $0x3d] sm:$0xff] }
 0x364   :  { %v3014_v34 = vadd.f32 %v2903_v0, %v2600_v44  ;;  %7479 = vmatmul.msk.f32.gmra.mxu1 %vm606_vm2, %v2251_v49  ;;  %v2668_v44 = vld [vmem:[#allocation2 + $0x138] sm:$0xff] }
 0x365   :  { %7530 = vmatmul.msk.f32.gmra.mxu2 %vm606_vm2, %v2667_v1 }
 0x366   :  { %7578 = vmatmul.msk.f32.gmra.mxu3 %vm606_vm2, %v3080_v51  ;;  %v9081_v8 = vadd.f32 %v3317_v6, %v3014_v34  ;;  %v9083_v32 = vpop.f32.mrf.mxu0  ;;  %v3081_v6 = vld [vmem:[#allocation2 + $0x13c] sm:$0xff] }
 0x367   :  { %10693 = vst [vmem:[#allocation61_spill] sm:$0xff] %v9083_v32  ;;  %v3477_v32 = vld [vmem:[#allocation2 + $0xad] sm:$0xff] }
 0x368   :  { %10692 = vst [vmem:[#allocation60_spill] sm:$0xff] %v9081_v8  ;;  %v2909_v0 = vpop.f32.mrf.mxu2  ;;  %v3890_v8 = vld [vmem:[#allocation2 + $0xa6] sm:$0xff] }
 0x369   :  { %v3320_v18 = vpop.f32.mrf.mxu3  ;;  %v2492_v45 = vpop.f32.mrf.mxu1  ;;  %7596 = vmatmul.msk.f32.gmra.mxu0 %vm606_vm2, %v3463_v15  ;;  %v2669_v15 = vld [vmem:[#allocation2 + $0x140] sm:$0xff] }
 0x36a   :  { %v2601_v28 = vadd.f32 %v2492_v45, %v2187_v60  ;;  %v3464_v60 = vld [vmem:[#allocation2 + $0x45] sm:$0xff] }
 0x36c   :  { %v3015_v49 = vadd.f32 %v2906_v57, %v2601_v28  ;;  %7480 = vmatmul.msk.f32.gmra.mxu1 %vm606_vm2, %v2252_v31  ;;  %v2253_v57 = vld [vmem:[#allocation2 + $0x12f] sm:$0xff] }
 0x36d   :  { %7531 = vmatmul.msk.f32.gmra.mxu2 %vm606_vm2, %v2668_v44 }
 0x36e   :  { %7579 = vmatmul.msk.f32.gmra.mxu3 %vm606_vm2, %v3081_v6  ;;  %v9091_v1 = vadd.f32 %v3320_v18, %v3015_v49  ;;  %v9093_v50 = vpop.f32.mrf.mxu0  ;;  %v3082_v18 = vld [vmem:[#allocation2 + $0x144] sm:$0xff] }
 0x36f   :  { %10695 = vst [vmem:[#allocation63_spill] sm:$0xff] %v9093_v50  ;;  %v3478_v50 = vld [vmem:[#allocation2 + $0xb5] sm:$0xff] }
 0x370   :  { %10694 = vst [vmem:[#allocation62_spill] sm:$0xff] %v9091_v1  ;;  %v2912_v31 = vpop.f32.mrf.mxu2  ;;  %v3495_v1 = vld [vmem:[#allocation2 + $0x13d] sm:$0xff] }
 0x371   :  { %v3323_v34 = vpop.f32.mrf.mxu3  ;;  %v2495_v51 = vpop.f32.mrf.mxu1  ;;  %7597 = vmatmul.msk.f32.gmra.mxu0 %vm606_vm2, %v3464_v60  ;;  %v2670_v60 = vld [vmem:[#allocation2 + $0x148] sm:$0xff] }
 0x372   :  { %v2602_v45 = vadd.f32 %v2495_v51, %v2188_v12  ;;  %v3465_v12 = vld [vmem:[#allocation2 + $0x4d] sm:$0xff] }
 0x374   :  { %v3016_v28 = vadd.f32 %v2909_v0, %v2602_v45  ;;  %7481 = vmatmul.msk.f32.gmra.mxu1 %vm606_vm2, %v2253_v57  ;;  %v2254_v0 = vld [vmem:[#allocation2 + $0x137] sm:$0xff] }
 0x375   :  { %7532 = vmatmul.msk.f32.gmra.mxu2 %vm606_vm2, %v2669_v15 }
 0x376   :  { %7580 = vmatmul.msk.f32.gmra.mxu3 %vm606_vm2, %v3082_v18  ;;  %v9101_v44 = vadd.f32 %v3323_v34, %v3016_v28  ;;  %v9103_v2 = vpop.f32.mrf.mxu0  ;;  %v3083_v34 = vld [vmem:[#allocation2 + $0x14c] sm:$0xff] }
 0x377   :  { %10697 = vst [vmem:[#allocation65_spill] sm:$0xff] %v9103_v2 }
 0x378   :  { %10696 = vst [vmem:[#allocation64_spill] sm:$0xff] %v9101_v44  ;;  %v2915_v15 = vpop.f32.mrf.mxu2 }
 0x379   :  { %v3326_v49 = vpop.f32.mrf.mxu3  ;;  %v2498_v6 = vpop.f32.mrf.mxu1  ;;  %7598 = vmatmul.msk.f32.gmra.mxu0 %vm606_vm2, %v3465_v12  ;;  %v2671_v12 = vld [vmem:[#allocation2 + $0x150] sm:$0xff] }
 0x37a   :  { %v2603_v51 = vadd.f32 %v2498_v6, %v2189_v9  ;;  %v3466_v9 = vld [vmem:[#allocation2 + $0x55] sm:$0xff] }
 0x37c   :  { %v3017_v45 = vadd.f32 %v2912_v31, %v2603_v51  ;;  %7482 = vmatmul.msk.f32.gmra.mxu1 %vm606_vm2, %v2254_v0  ;;  %v2255_v31 = vld [vmem:[#allocation2 + $0x13f] sm:$0xff] }
 0x37d   :  { %7533 = vmatmul.msk.f32.gmra.mxu2 %vm606_vm2, %v2670_v60 }
 0x37e   :  { %7581 = vmatmul.msk.f32.gmra.mxu3 %vm606_vm2, %v3083_v34  ;;  %v9111_v57 = vadd.f32 %v3326_v49, %v3017_v45  ;;  %v9115_v38 = vpop.f32.mrf.mxu0  ;;  %v3084_v49 = vld [vmem:[#allocation2 + $0x154] sm:$0xff]  ;;  %v3467_v45 = vld [vmem:[#allocation2 + $0x5d] sm:$0xff] }
 0x37f   :  { %10699 = vst [vmem:[#allocation67_spill] sm:$0xff] %v9115_v38 }
 0x380   :  { %10698 = vst [vmem:[#allocation66_spill] sm:$0xff] %v9111_v57  ;;  %v2918_v42 = vpop.f32.mrf.mxu2  ;;  %v3496_v57 = vld [vmem:[#allocation2 + $0x145] sm:$0xff] }
 0x381   :  { %v3329_v28 = vpop.f32.mrf.mxu3  ;;  %v2501_v18 = vpop.f32.mrf.mxu1  ;;  %7599 = vmatmul.msk.f32.gmra.mxu0 %vm606_vm2, %v3466_v9  ;;  %v2672_v9 = vld [vmem:[#allocation2 + $0x158] sm:$0xff] }
 0x382   :  { %v2604_v6 = vadd.f32 %v2501_v18, %v2190_v20  ;;  %v2256_v18 = vld [vmem:[#allocation2 + $0x147] sm:$0xff] }
 0x384   :  { %v3018_v51 = vadd.f32 %v2915_v15, %v2604_v6  ;;  %7483 = vmatmul.msk.f32.gmra.mxu1 %vm606_vm2, %v2255_v31 }
 0x385   :  { %7534 = vmatmul.msk.f32.gmra.mxu2 %vm606_vm2, %v2671_v12  ;;  %v3468_v12 = vld [vmem:[#allocation2 + $0x65] sm:$0xff] }
 0x386   :  { %7582 = vmatmul.msk.f32.gmra.mxu3 %vm606_vm2, %v3084_v49  ;;  %v9121_v0 = vadd.f32 %v3329_v28, %v3018_v51  ;;  %v9125_v34 = vpop.f32.mrf.mxu0  ;;  %v3085_v28 = vld [vmem:[#allocation2 + $0x15c] sm:$0xff] }
 0x387   :  { %10701 = vst [vmem:[#allocation69_spill] sm:$0xff] %v9125_v34  ;;  %v3482_v34 = vld [vmem:[#allocation2 + $0xd5] sm:$0xff] }
 0x388   :  { %10700 = vst [vmem:[#allocation68_spill] sm:$0xff] %v9121_v0  ;;  %v2921_v49 = vpop.f32.mrf.mxu2  ;;  %v3497_v0 = vld [vmem:[#allocation2 + $0x14d] sm:$0xff] }
 0x389   :  { %v2504_v60 = vpop.f32.mrf.mxu1  ;;  %7600 = vmatmul.msk.f32.gmra.mxu0 %vm606_vm2, %v3467_v45  ;;  %v3332_v15 = vpop.f32.mrf.mxu3 }
 0x38a   :  { %v2605_v20 = vadd.f32 %v2504_v60, %v2191_v39  ;;  %v2257_v39 = vld [vmem:[#allocation2 + $0x14f] sm:$0xff] }
 0x38c   :  { %v3019_v6 = vadd.f32 %v2918_v42, %v2605_v20  ;;  %7484 = vmatmul.msk.f32.gmra.mxu1 %vm606_vm2, %v2256_v18  ;;  %v2673_v42 = vld [vmem:[#allocation2 + $0x160] sm:$0xff]  ;;  %v3469_v18 = vld [vmem:[#allocation2 + $0x6d] sm:$0xff] }
 0x38d   :  { %7535 = vmatmul.msk.f32.gmra.mxu2 %vm606_vm2, %v2672_v9  ;;  %v3086_v20 = vld [vmem:[#allocation2 + $0x164] sm:$0xff]  ;;  %v2258_v9 = vld [vmem:[#allocation2 + $0x157] sm:$0xff] }
 0x38e   :  { %7583 = vmatmul.msk.f32.gmra.mxu3 %vm606_vm2, %v3085_v28  ;;  %v9131_v56 = vadd.f32 %v3332_v15, %v3019_v6  ;;  %v9136_v60 = vpop.f32.mrf.mxu0  ;;  %v2674_v6 = vld [vmem:[#allocation2 + $0x168] sm:$0xff] }
 0x38f   :  { %10703 = vst [vmem:[#allocation71_spill] sm:$0xff] %v9136_v60  ;;  %v3087_v28 = vld [vmem:[#allocation2 + $0x16c] sm:$0xff]  ;;  %v3483_v60 = vld [vmem:[#allocation2 + $0xdd] sm:$0xff] }
 0x390   :  { %10702 = vst [vmem:[#allocation70_spill] sm:$0xff] %v9131_v56 }
 0x391   :  { %v2507_v31 = vpop.f32.mrf.mxu1  ;;  %7601 = vmatmul.msk.f32.gmra.mxu0 %vm606_vm2, %v3468_v12  ;;  %v3335_v15 = vpop.f32.mrf.mxu3 }
 0x392   :  { %v2606_v51 = vadd.f32 %v2507_v31, %v2192_v29  ;;  %v3926_v29 = vld [vmem:[#allocation8 + $0x118] sm:$0xff] }
 0x393   :  { %4086 = vmatpush.msrb.mxu1 %v3926_v29  ;;  %v3472_v29 = vld [vmem:[#allocation2 + $0x85] sm:$0xff] }
 0x394   :  { %v3020_v45 = vadd.f32 %v2921_v49, %v2606_v51  ;;  %7485 = vmatmul.msk.f32.gmra.mxu1 %vm606_vm2, %v2257_v39  ;;  %v3470_v51 = vld [vmem:[#allocation2 + $0x75] sm:$0xff]  ;;  %v2259_v49 = vld [vmem:[#allocation2 + $0x15f] sm:$0xff] }
 0x395   :  { %7536 = vmatmul.msk.f32.gmra.mxu2 %vm606_vm2, %v2673_v42  ;;  %v2675_v39 = vld [vmem:[#allocation2 + $0x170] sm:$0xff] }
 0x396   :  { %7584 = vmatmul.msk.f32.gmra.mxu3 %vm606_vm2, %v3086_v20  ;;  %v9141_v10 = vadd.f32 %v3335_v15, %v3020_v45  ;;  %v9149_v31 = vpop.f32.mrf.mxu0  ;;  %v3088_v42 = vld [vmem:[#allocation2 + $0x174] sm:$0xff]  ;;  %v3471_v15 = vld [vmem:[#allocation2 + $0x7d] sm:$0xff] }
 0x397   :  { %10705 = vst [vmem:[#allocation73_spill] sm:$0xff] %v9149_v31 }
 0x399   :  { %v9143_v43 = vpop.f32.mrf.mxu1  ;;  %7602 = vmatmul.msk.f32.gmra.mxu0 %vm606_vm2, %v3469_v18  ;;  %v2260_v18 = vld [vmem:[#allocation2 + $0x167] sm:$0xff] }
 0x39a   :  { %10704 = vst [vmem:[#allocation72_spill] sm:$0xff] %v9143_v43  ;;  %v3498_v43 = vld [vmem:[#allocation2 + $0x155] sm:$0xff] }
 0x39c   :  { %7486 = vmatmul.msk.f32.gmra.mxu1 %vm606_vm2, %v2258_v9  ;;  %v2676_v9 = vld [vmem:[#allocation2 + $0x178] sm:$0xff] }
 0x39d   :  { %7537 = vmatmul.msk.f32.gmra.mxu2 %vm606_vm2, %v2674_v6  ;;  %v3089_v6 = vld [vmem:[#allocation2 + $0x17c] sm:$0xff] }
 0x39e   :  { %7585 = vmatmul.msk.f32.gmra.mxu3 %vm606_vm2, %v3087_v28  ;;  %v9157_v45 = vpop.f32.mrf.mxu0 }
 0x39f   :  { %10707 = vst [vmem:[#allocation75_spill] sm:$0xff] %v9157_v45  ;;  %v3487_v45 = vld [vmem:[#allocation2 + $0xfd] sm:$0xff] }
 0x3a1   :  { %v9151_v12 = vpop.f32.mrf.mxu1  ;;  %7603 = vmatmul.msk.f32.gmra.mxu0 %vm606_vm2, %v3470_v51 }
 0x3a2   :  { %10706 = vst [vmem:[#allocation74_spill] sm:$0xff] %v9151_v12  ;;  %v3894_v12 = vld [vmem:[#allocation2 + $0xc6] sm:$0xff] }
 0x3a4   :  { %7487 = vmatmul.msk.f32.gmra.mxu1 %vm606_vm2, %v2259_v49  ;;  %v2261_v49 = vld [vmem:[#allocation2 + $0x16f] sm:$0xff] }
 0x3a5   :  { %7538 = vmatmul.msk.f32.gmra.mxu2 %vm606_vm2, %v2675_v39  ;;  %v2677_v39 = vld [vmem:[#allocation2 + $0x180] sm:$0xff] }
 0x3a6   :  { %7586 = vmatmul.msk.f32.gmra.mxu3 %vm606_vm2, %v3088_v42  ;;  %v9167_v51 = vpop.f32.mrf.mxu0  ;;  %v3090_v42 = vld [vmem:[#allocation2 + $0x184] sm:$0xff] }
 0x3a7   :  { %10710 = vst [vmem:[#allocation78_spill] sm:$0xff] %v9167_v51  ;;  %v3488_v51 = vld [vmem:[#allocation2 + $0x105] sm:$0xff] }
 0x3a9   :  { %v9159_v20 = vpop.f32.mrf.mxu1  ;;  %7604 = vmatmul.msk.f32.gmra.mxu0 %vm606_vm2, %v3471_v15  ;;  %v3925_v15 = vld [vmem:[#allocation8 + $0x110] sm:$0xff] }
 0x3aa   :  { %10708 = vst [vmem:[#allocation76_spill] sm:$0xff] %v9159_v20  ;;  %4087 = vmatpush.msrb.mxu1 %v3925_v15  ;;  %v2679_v15 = vld [vmem:[#allocation2 + $0x190] sm:$0xff]  ;;  %v9326_v20 = vpop.f32.mrf.mxu2 }
 0x3ab   :  { %10735 = vst [vmem:[#allocation103_spill] sm:$0xff] %v9326_v20 }
 0x3ac   :  { %7488 = vmatmul.msk.f32.gmra.mxu1 %vm606_vm2, %v2260_v18 }
 0x3ad   :  { %7539 = vmatmul.msk.f32.gmra.mxu2 %vm606_vm2, %v2676_v9  ;;  %v3473_v9 = vld [vmem:[#allocation2 + $0x8d] sm:$0xff] }
 0x3ae   :  { %7587 = vmatmul.msk.f32.gmra.mxu3 %vm606_vm2, %v3089_v6  ;;  %v2678_v6 = vld [vmem:[#allocation2 + $0x188] sm:$0xff]  ;;  %v9176_v24 = vpop.f32.mrf.mxu0 }
 0x3af   :  { %10712 = vst [vmem:[#allocation80_spill] sm:$0xff] %v9176_v24  ;;  %v3885_v24 = vld [vmem:[#allocation2 + $0x7e] sm:$0xff] }
 0x3b1   :  { %v9165_v28 = vpop.f32.mrf.mxu1  ;;  %7605 = vmatmul.msk.f32.gmra.mxu0 %vm606_vm2, %v3472_v29  ;;  %v3924_v29 = vld [vmem:[#allocation8 + $0x108] sm:$0xff] }
 0x3b2   :  { %10709 = vst [vmem:[#allocation77_spill] sm:$0xff] %v9165_v28  ;;  %4088 = vmatpush.msrb.mxu1 %v3924_v29  ;;  %v3093_v29 = vld [vmem:[#allocation2 + $0x19c] sm:$0xff]  ;;  %v9335_v59 = vpop.f32.mrf.mxu2 }
 0x3b3   :  { %10737 = vst [vmem:[#allocation105_spill] sm:$0xff] %v9335_v59  ;;  %v3502_v59 = vld [vmem:[#allocation2 + $0x175] sm:$0xff] }
 0x3b4   :  { %7489 = vmatmul.msk.f32.gmra.mxu1 %vm606_vm2, %v2261_v49  ;;  %v3923_v49 = vld [vmem:[#allocation8 + $0x100] sm:$0xff] }
 0x3b5   :  { %7540 = vmatmul.msk.f32.gmra.mxu2 %vm606_vm2, %v2677_v39  ;;  %4089 = vmatpush.msrb.mxu1 %v3923_v49  ;;  %v2264_v49 = vld [vmem:[#allocation2 + $0x187] sm:$0xff] }
 0x3b6   :  { %7588 = vmatmul.msk.f32.gmra.mxu3 %vm606_vm2, %v3090_v42  ;;  %v3474_v42 = vld [vmem:[#allocation2 + $0x95] sm:$0xff] }
 0x3b9   :  { %v9173_v18 = vpop.f32.mrf.mxu1  ;;  %7606 = vmatmul.msk.f32.gmra.mxu0 %vm606_vm2, %v3473_v9  ;;  %v3092_v9 = vld [vmem:[#allocation2 + $0x194] sm:$0xff] }
 0x3ba   :  { %10711 = vst [vmem:[#allocation79_spill] sm:$0xff] %v9173_v18 }
 0x3bc   :  { %7490 = vmatmul.msk.f32.gmra.mxu1 %vm606_vm2, %v2262_v21  ;;  %v9187_v21 = vpop.f32.mrf.mxu0 }
 0x3bd   :  { %7541 = vmatmul.msk.f32.gmra.mxu2 %vm606_vm2, %v2678_v6  ;;  %10714 = vst [vmem:[#allocation82_spill] sm:$0xff] %v9187_v21 }
 0x3be   :  { %7589 = vmatmul.msk.f32.gmra.mxu3 %vm606_vm2, %v3091_v61  ;;  %v3475_v61 = vld [vmem:[#allocation2 + $0x9d] sm:$0xff] }
 0x3c1   :  { %v9181_v39 = vpop.f32.mrf.mxu1  ;;  %7607 = vmatmul.msk.f32.gmra.mxu0 %vm606_vm2, %v3474_v42 }
 0x3c2   :  { %10713 = vst [vmem:[#allocation81_spill] sm:$0xff] %v9181_v39 }
 0x3c4   :  { %7491 = vmatmul.msk.f32.gmra.mxu1 %vm606_vm2, %v2263_v33  ;;  %v9194_v42 = vpop.f32.mrf.mxu0 }
 0x3c5   :  { %7542 = vmatmul.msk.f32.gmra.mxu2 %vm606_vm2, %v2679_v15  ;;  %10715 = vst [vmem:[#allocation83_spill] sm:$0xff] %v9194_v42  ;;  %v3476_v15 = vld [vmem:[#allocation2 + $0xa5] sm:$0xff]  ;;  %v3880_v42 = vld [vmem:[#allocation2 + $0x56] sm:$0xff] }
 0x3c6   :  { %7590 = vmatmul.msk.f32.gmra.mxu3 %vm606_vm2, %v3092_v9 }
 0x3c9   :  { %v9189_v6 = vpop.f32.mrf.mxu1  ;;  %7608 = vmatmul.msk.f32.gmra.mxu0 %vm606_vm2, %v3475_v61 }
 0x3cc   :  { %7492 = vmatmul.msk.f32.gmra.mxu1 %vm606_vm2, %v2264_v49  ;;  %v9202_v61 = vpop.f32.mrf.mxu0  ;;  %v3873_v49 = vld [vmem:[#allocation2 + $0x1e] sm:$0xff] }
 0x3ce   :  { %7591 = vmatmul.msk.f32.gmra.mxu3 %vm606_vm2, %v3093_v29 }
 0x3d1   :  { %v9196_v33 = vpop.f32.mrf.mxu1  ;;  %7609 = vmatmul.msk.f32.gmra.mxu0 %vm606_vm2, %v3476_v15  ;;  %v3479_v15 = vld [vmem:[#allocation2 + $0xbd] sm:$0xff] }
 0x3d2   :  { %10716 = vst [vmem:[#allocation84_spill] sm:$0xff] %v9196_v33  ;;  %v3874_v33 = vld [vmem:[#allocation2 + $0x26] sm:$0xff] }
 0x3d4   :  { %7493 = vmatmul.msk.f32.gmra.mxu1 %vm606_vm2, %v2265_v4  ;;  %v9209_v2 = vpop.f32.mrf.mxu0 }
 0x3d9   :  { %v9200_v9 = vpop.f32.mrf.mxu1  ;;  %7610 = vmatmul.msk.f32.gmra.mxu0 %vm606_vm2, %v3477_v32 }
 0x3da   :  { %10717 = vst [vmem:[#allocation85_spill] sm:$0xff] %v9200_v9  ;;  %v3875_v9 = vld [vmem:[#allocation2 + $0x2e] sm:$0xff] }
 0x3dc   :  { %7641 = vmatmul.msk.f32.vlgmr.msrb.gmra.mxu1 %vm606_vm2, %v3873_v49  ;;  %v9216_v32 = vpop.f32.mrf.mxu0 }
 0x3e1   :  { %v9206_v29 = vpop.f32.mrf.mxu1  ;;  %7611 = vmatmul.msk.f32.gmra.mxu0 %vm606_vm2, %v3478_v50  ;;  %v3876_v50 = vld [vmem:[#allocation2 + $0x36] sm:$0xff] }
 0x3e2   :  { %10718 = vst [vmem:[#allocation86_spill] sm:$0xff] %v9206_v29  ;;  %v3480_v29 = vld [vmem:[#allocation2 + $0xc5] sm:$0xff] }
 0x3e4   :  { %7642 = vmatmul.msk.f32.gmra.mxu1 %vm606_vm2, %v3874_v33  ;;  %v9222_v38 = vpop.f32.mrf.mxu0 }
 0x3e9   :  { %v9212_v4 = vpop.f32.mrf.mxu1  ;;  %7612 = vmatmul.msk.f32.gmra.mxu0 %vm606_vm2, %v3479_v15  ;;  %v3877_v15 = vld [vmem:[#allocation2 + $0x3e] sm:$0xff] }
 0x3ea   :  { %10719 = vst [vmem:[#allocation87_spill] sm:$0xff] %v9212_v4  ;;  %v3481_v4 = vld [vmem:[#allocation2 + $0xcd] sm:$0xff] }
 0x3ec   :  { %7643 = vmatmul.msk.f32.gmra.mxu1 %vm606_vm2, %v3875_v9 }
 0x3f1   :  { %v9218_v49 = vpop.f32.mrf.mxu1  ;;  %7613 = vmatmul.msk.f32.gmra.mxu0 %vm606_vm2, %v3480_v29  ;;  %v3878_v29 = vld [vmem:[#allocation2 + $0x46] sm:$0xff] }
 0x3f2   :  { %10720 = vst [vmem:[#allocation88_spill] sm:$0xff] %v9218_v49  ;;  %v9230_v49 = vpop.f32.mrf.mxu0 }
 0x3f4   :  { %7644 = vmatmul.msk.f32.gmra.mxu1 %vm606_vm2, %v3876_v50 }
 0x3f9   :  { %v9224_v33 = vpop.f32.mrf.mxu1  ;;  %7614 = vmatmul.msk.f32.gmra.mxu0 %vm606_vm2, %v3481_v4 }
 0x3fa   :  { %10721 = vst [vmem:[#allocation89_spill] sm:$0xff] %v9224_v33  ;;  %v3879_v33 = vld [vmem:[#allocation2 + $0x4e] sm:$0xff]  ;;  %v9237_v4 = vpop.f32.mrf.mxu0 }
 0x3fc   :  { %7645 = vmatmul.msk.f32.gmra.mxu1 %vm606_vm2, %v3877_v15 }
 0x401   :  { %v9228_v9 = vpop.f32.mrf.mxu1  ;;  %7615 = vmatmul.msk.f32.gmra.mxu0 %vm606_vm2, %v3482_v34 }
 0x402   :  { %10722 = vst [vmem:[#allocation90_spill] sm:$0xff] %v9228_v9  ;;  %v3484_v9 = vld [vmem:[#allocation2 + $0xe5] sm:$0xff]  ;;  %v9244_v34 = vpop.f32.mrf.mxu0 }
 0x404   :  { %7646 = vmatmul.msk.f32.gmra.mxu1 %vm606_vm2, %v3878_v29 }
 0x409   :  { %v9234_v50 = vpop.f32.mrf.mxu1  ;;  %7616 = vmatmul.msk.f32.gmra.mxu0 %vm606_vm2, %v3483_v60  ;;  %v3881_v60 = vld [vmem:[#allocation2 + $0x5e] sm:$0xff] }
 0x40a   :  { %10723 = vst [vmem:[#allocation91_spill] sm:$0xff] %v9234_v50  ;;  %v3485_v50 = vld [vmem:[#allocation2 + $0xed] sm:$0xff]  ;;  %v9250_v31 = vpop.f32.mrf.mxu0 }
 0x40c   :  { %7647 = vmatmul.msk.f32.gmra.mxu1 %vm606_vm2, %v3879_v33 }
 0x411   :  { %v9240_v15 = vpop.f32.mrf.mxu1  ;;  %7617 = vmatmul.msk.f32.gmra.mxu0 %vm606_vm2, %v3484_v9  ;;  %v3882_v9 = vld [vmem:[#allocation2 + $0x66] sm:$0xff] }
 0x412   :  { %10724 = vst [vmem:[#allocation92_spill] sm:$0xff] %v9240_v15  ;;  %v3486_v15 = vld [vmem:[#allocation2 + $0xf5] sm:$0xff] }
 0x414   :  { %7648 = vmatmul.msk.f32.gmra.mxu1 %vm606_vm2, %v3880_v42 }
 0x419   :  { %v9246_v29 = vpop.f32.mrf.mxu1  ;;  %7618 = vmatmul.msk.f32.gmra.mxu0 %vm606_vm2, %v3485_v50  ;;  %v3883_v50 = vld [vmem:[#allocation2 + $0x6e] sm:$0xff] }
 0x41a   :  { %10725 = vst [vmem:[#allocation93_spill] sm:$0xff] %v9246_v29  ;;  %v9258_v29 = vpop.f32.mrf.mxu0 }
 0x41c   :  { %7649 = vmatmul.msk.f32.gmra.mxu1 %vm606_vm2, %v3881_v60 }
 0x421   :  { %v9252_v33 = vpop.f32.mrf.mxu1  ;;  %7619 = vmatmul.msk.f32.gmra.mxu0 %vm606_vm2, %v3486_v15 }
 0x422   :  { %10726 = vst [vmem:[#allocation94_spill] sm:$0xff] %v9252_v33  ;;  %v3884_v33 = vld [vmem:[#allocation2 + $0x76] sm:$0xff]  ;;  %v9265_v15 = vpop.f32.mrf.mxu0 }
 0x424   :  { %7650 = vmatmul.msk.f32.gmra.mxu1 %vm606_vm2, %v3882_v9 }
 0x429   :  { %v9256_v42 = vpop.f32.mrf.mxu1  ;;  %7620 = vmatmul.msk.f32.gmra.mxu0 %vm606_vm2, %v3487_v45 }
 0x42a   :  { %10727 = vst [vmem:[#allocation95_spill] sm:$0xff] %v9256_v42  ;;  %v3489_v42 = vld [vmem:[#allocation2 + $0x10d] sm:$0xff]  ;;  %v9272_v45 = vpop.f32.mrf.mxu0 }
 0x42c   :  { %7651 = vmatmul.msk.f32.gmra.mxu1 %vm606_vm2, %v3883_v50 }
 0x431   :  { %v9262_v60 = vpop.f32.mrf.mxu1  ;;  %7621 = vmatmul.msk.f32.gmra.mxu0 %vm606_vm2, %v3488_v51  ;;  %v3886_v51 = vld [vmem:[#allocation2 + $0x86] sm:$0xff] }
 0x432   :  { %10728 = vst [vmem:[#allocation96_spill] sm:$0xff] %v9262_v60  ;;  %v3490_v60 = vld [vmem:[#allocation2 + $0x115] sm:$0xff]  ;;  %v9278_v21 = vpop.f32.mrf.mxu0 }
 0x434   :  { %7652 = vmatmul.msk.f32.gmra.mxu1 %vm606_vm2, %v3884_v33 }
 0x439   :  { %v9268_v9 = vpop.f32.mrf.mxu1  ;;  %7622 = vmatmul.msk.f32.gmra.mxu0 %vm606_vm2, %v3489_v42  ;;  %v3887_v42 = vld [vmem:[#allocation2 + $0x8e] sm:$0xff] }
 0x43a   :  { %10729 = vst [vmem:[#allocation97_spill] sm:$0xff] %v9268_v9  ;;  %v3491_v9 = vld [vmem:[#allocation2 + $0x11d] sm:$0xff] }
 0x43c   :  { %7653 = vmatmul.msk.f32.gmra.mxu1 %vm606_vm2, %v3885_v24 }
 0x441   :  { %v9274_v50 = vpop.f32.mrf.mxu1  ;;  %7623 = vmatmul.msk.f32.gmra.mxu0 %vm606_vm2, %v3490_v60  ;;  %v3888_v60 = vld [vmem:[#allocation2 + $0x96] sm:$0xff] }
 0x442   :  { %10730 = vst [vmem:[#allocation98_spill] sm:$0xff] %v9274_v50  ;;  %v9286_v50 = vpop.f32.mrf.mxu0 }
 0x444   :  { %7654 = vmatmul.msk.f32.gmra.mxu1 %vm606_vm2, %v3886_v51 }
 0x449   :  { %v9280_v33 = vpop.f32.mrf.mxu1  ;;  %7624 = vmatmul.msk.f32.gmra.mxu0 %vm606_vm2, %v3491_v9 }
 0x44a   :  { %10731 = vst [vmem:[#allocation99_spill] sm:$0xff] %v9280_v33  ;;  %v3889_v33 = vld [vmem:[#allocation2 + $0x9e] sm:$0xff]  ;;  %v9293_v9 = vpop.f32.mrf.mxu0 }
 0x44b   :  { %v3837_v41 = vadd.f32 %v9293_v9, %v9031_v58  ;;  %v3834_v58 = vadd.f32 %v9272_v45, %v9001_v36  ;;  %v3830_v36 = vadd.f32 %v9244_v34, %v8961_v13  ;;  %v3907_v45 = vld [vmem:[#allocation2 + $0x12e] sm:$0xff] }
 0x44c   :  { %7655 = vmatmul.msk.f32.gmra.mxu1 %vm606_vm2, %v3887_v42 }
 0x451   :  { %v9284_v24 = vpop.f32.mrf.mxu1  ;;  %7625 = vmatmul.msk.f32.gmra.mxu0 %vm606_vm2, %v3492_v22 }
 0x452   :  { %10732 = vst [vmem:[#allocation100_spill] sm:$0xff] %v9284_v24  ;;  %v3494_v24 = vld [vmem:[#allocation2 + $0x135] sm:$0xff]  ;;  %v9300_v22 = vpop.f32.mrf.mxu0 }
 0x454   :  { %7656 = vmatmul.msk.f32.gmra.mxu1 %vm606_vm2, %v3888_v60 }
 0x459   :  { %v9290_v51 = vpop.f32.mrf.mxu1  ;;  %7626 = vmatmul.msk.f32.gmra.mxu0 %vm606_vm2, %v3493_v37  ;;  %v3891_v37 = vld [vmem:[#allocation2 + $0xae] sm:$0xff] }
 0x45a   :  { %v9306_v44 = vpop.f32.mrf.mxu0 }
 0x45c   :  { %7657 = vmatmul.msk.f32.gmra.mxu1 %vm606_vm2, %v3889_v33 }
 0x461   :  { %v9296_v42 = vpop.f32.mrf.mxu1  ;;  %7627 = vmatmul.msk.f32.gmra.mxu0 %vm606_vm2, %v3494_v24  ;;  %v3892_v24 = vld [vmem:[#allocation2 + $0xb6] sm:$0xff] }
 0x462   :  { %v9314_v56 = vpop.f32.mrf.mxu0 }
 0x463   :  { %10733 = vst [vmem:[#allocation101_spill] sm:$0xff] %v9314_v56 }
 0x464   :  { %7658 = vmatmul.msk.f32.gmra.mxu1 %vm606_vm2, %v3890_v8 }
 0x469   :  { %v9302_v60 = vpop.f32.mrf.mxu1  ;;  %7628 = vmatmul.msk.f32.gmra.mxu0 %vm606_vm2, %v3495_v1  ;;  %v3893_v1 = vld [vmem:[#allocation2 + $0xbe] sm:$0xff] }
 0x46c   :  { %7659 = vmatmul.msk.f32.gmra.mxu1 %vm606_vm2, %v3891_v37 }
 0x471   :  { %v9308_v33 = vpop.f32.mrf.mxu1  ;;  %7629 = vmatmul.msk.f32.gmra.mxu0 %vm606_vm2, %v3496_v57  ;;  %v9321_v57 = vpop.f32.mrf.mxu0 }
 0x472   :  { %10734 = vst [vmem:[#allocation102_spill] sm:$0xff] %v9321_v57  ;;  %v3896_v57 = vld [vmem:[#allocation2 + $0xd6] sm:$0xff] }
 0x474   :  { %7660 = vmatmul.msk.f32.gmra.mxu1 %vm606_vm2, %v3892_v24 }
 0x479   :  { %v9312_v8 = vpop.f32.mrf.mxu1  ;;  %7630 = vmatmul.msk.f32.gmra.mxu0 %vm606_vm2, %v3497_v0  ;;  %v3895_v0 = vld [vmem:[#allocation2 + $0xce] sm:$0xff] }
 0x47c   :  { %7661 = vmatmul.msk.f32.gmra.mxu1 %vm606_vm2, %v3893_v1  ;;  %v9330_v1 = vpop.f32.mrf.mxu0 }
 0x47d   :  { %10736 = vst [vmem:[#allocation104_spill] sm:$0xff] %v9330_v1  ;;  %v3897_v1 = vld [vmem:[#allocation2 + $0xde] sm:$0xff] }
 0x481   :  { %v9318_v37 = vpop.f32.mrf.mxu1  ;;  %7631 = vmatmul.msk.f32.gmra.mxu0 %vm606_vm2, %v3498_v43  ;;  %v3500_v43 = vld [vmem:[#allocation2 + $0x165] sm:$0xff] }
 0x484   :  { %7662 = vmatmul.msk.f32.gmra.mxu1 %vm606_vm2, %v3894_v12  ;;  %v3832_v12 = vadd.f32 %v9258_v29, %v8981_v17  ;;  %v9340_v20 = vpop.f32.mrf.mxu0  ;;  %v3898_v17 = vld [vmem:[#allocation2 + $0xe6] sm:$0xff] }
 0x485   :  { %10738 = vst [vmem:[#allocation106_spill] sm:$0xff] %v9340_v20 }
 0x489   :  { %v9324_v24 = vpop.f32.mrf.mxu1  ;;  %7632 = vmatmul.msk.f32.gmra.mxu0 %vm606_vm2, %v3499_v47 }
 0x48c   :  { %7663 = vmatmul.msk.f32.gmra.mxu1 %vm606_vm2, %v3895_v0 }
 0x491   :  { %v9332_v56 = vpop.f32.mrf.mxu1  ;;  %7633 = vmatmul.msk.f32.gmra.mxu0 %vm606_vm2, %v3500_v43  ;;  %v9346_v43 = vpop.f32.mrf.mxu2 }
 0x492   :  { %10739 = vst [vmem:[#allocation107_spill] sm:$0xff] %v9346_v43  ;;  %v3504_v43 = vld [vmem:[#allocation2 + $0x185] sm:$0xff] }
 0x494   :  { %7664 = vmatmul.msk.f32.gmra.mxu1 %vm606_vm2, %v3896_v57  ;;  %v9350_v57 = vpop.f32.mrf.mxu0 }
 0x495   :  { %10740 = vst [vmem:[#allocation108_spill] sm:$0xff] %v9350_v57  ;;  %v3505_v57 = vld [vmem:[#allocation2 + $0x18d] sm:$0xff] }
 0x499   :  { %v4115_v47 = vpop.f32.mrf.mxu1  ;;  %7634 = vmatmul.msk.f32.gmra.mxu0 %vm606_vm2, %v3501_v52  ;;  %v9354_v29 = vpop.f32.mrf.mxu2  ;;  %v3899_v52 = vld [vmem:[#allocation2 + $0xee] sm:$0xff] }
 0x49a   :  { %v9342_v0 = vadd.f32 %v4115_v47, %v3832_v12  ;;  %10741 = vst [vmem:[#allocation109_spill] sm:$0xff] %v9354_v29  ;;  %v3503_v47 = vld [vmem:[#allocation2 + $0x17d] sm:$0xff] }
 0x49c   :  { %7665 = vmatmul.msk.f32.gmra.mxu1 %vm606_vm2, %v3897_v1  ;;  %v9357_v1 = vpop.f32.mrf.mxu0 }
 0x49d   :  { %10742 = vst [vmem:[#allocation110_spill] sm:$0xff] %v9357_v1 }
 0x4a1   :  { %v9348_v28 = vpop.f32.mrf.mxu1  ;;  %7635 = vmatmul.msk.f32.gmra.mxu0 %vm606_vm2, %v3502_v59  ;;  %v9360_v7 = vpop.f32.mrf.mxu2  ;;  %v3900_v59 = vld [vmem:[#allocation2 + $0xf6] sm:$0xff] }
 0x4a2   :  { %10743 = vst [vmem:[#allocation111_spill] sm:$0xff] %v9360_v7 }
 0x4a4   :  { %7666 = vmatmul.msk.f32.gmra.mxu1 %vm606_vm2, %v3898_v17  ;;  %v9364_v17 = vpop.f32.mrf.mxu0 }
 0x4a5   :  { %10744 = vst [vmem:[#allocation112_spill] sm:$0xff] %v9364_v17  ;;  %v3507_v17 = vld [vmem:[#allocation2 + $0x19d] sm:$0xff] }
 0x4a9   :  { %v4121_v12 = vpop.f32.mrf.mxu1  ;;  %7636 = vmatmul.msk.f32.gmra.mxu0 %vm606_vm2, %v3503_v47  ;;  %v3901_v47 = vld [vmem:[#allocation2 + $0xfe] sm:$0xff]  ;;  %v9367_v11 = vpop.f32.mrf.mxu2 }
 0x4aa   :  { %10745 = vst [vmem:[#allocation113_spill] sm:$0xff] %v9367_v11 }
 0x4ac   :  { %7667 = vmatmul.msk.f32.gmra.mxu1 %vm606_vm2, %v3899_v52  ;;  %v3506_v52 = vld [vmem:[#allocation2 + $0x195] sm:$0xff]  ;;  %v9370_v1 = vpop.f32.mrf.mxu0 }
 0x4ad   :  { %10746 = vst [vmem:[#allocation114_spill] sm:$0xff] %v9370_v1  ;;  %v3839_v1 = vadd.f32 %v9306_v44, %v9051_v55  ;;  %v3835_v55 = vadd.f32 %v9278_v21, %v9011_v53  ;;  %v3831_v53 = vadd.f32 %v9250_v31, %v8971_v62  ;;  %v3828_v62 = vadd.f32 %v9230_v49, %v8941_v26 }
 0x4ae   :  { %v3825_v26 = vadd.f32 %v9209_v2, %v8911_v3  ;;  %v4287_v3 = vld [vmem:[#allocation14] sm:$0xff] }
 0x4af   :  { %v4242_v31 = vadd.f32 %v9312_v8, %v3828_v62  ;;  %v4311_v62 = vld [vmem:[#allocation14 + $0xc0] sm:$0xff] }
 0x4b1   :  { %v4124_v20 = vpop.f32.mrf.mxu1  ;;  %7637 = vmatmul.msk.f32.gmra.mxu0 %vm606_vm2, %v3504_v43  ;;  %v3902_v43 = vld [vmem:[#allocation2 + $0x106] sm:$0xff] }
 0x4b4   :  { %7668 = vmatmul.msk.f32.gmra.mxu1 %vm606_vm2, %v3900_v59  ;;  %v9374_v59 = vpop.f32.mrf.mxu2  ;;  %v9376_v19 = vpop.f32.mrf.mxu0 }
 0x4b5   :  { %10747 = vst [vmem:[#allocation115_spill] sm:$0xff] %v9374_v59  ;;  %v3904_v59 = vld [vmem:[#allocation2 + $0x116] sm:$0xff] }
 0x4b9   :  { %v4127_v29 = vpop.f32.mrf.mxu1  ;;  %7638 = vmatmul.msk.f32.gmra.mxu0 %vm606_vm2, %v3505_v57  ;;  %v3903_v57 = vld [vmem:[#allocation2 + $0x10e] sm:$0xff] }
 0x4bc   :  { %7669 = vmatmul.msk.f32.gmra.mxu1 %vm606_vm2, %v3901_v47  ;;  %v9380_v47 = vpop.f32.mrf.mxu2 }
 0x4bd   :  { %10748 = vst [vmem:[#allocation116_spill] sm:$0xff] %v9380_v47  ;;  %v10769_v47 = vld [vmem:[#allocation76_spill] sm:$0xff] }
 0x4c1   :  { %v4130_v7 = vpop.f32.mrf.mxu1  ;;  %7639 = vmatmul.msk.f32.gmra.mxu0 %vm606_vm2, %v3506_v52 }
 0x4c4   :  { %7670 = vmatmul.msk.f32.gmra.mxu1 %vm606_vm2, %v3902_v43  ;;  %v3838_v43 = vadd.f32 %v9300_v22, %v9041_v25  ;;  %v9395_v22 = vpop.f32.mrf.mxu2 }
 0x4c5   :  { %10749 = vst [vmem:[#allocation117_spill] sm:$0xff] %v9395_v22 }
 0x4c9   :  { %v4133_v18 = vpop.f32.mrf.mxu1  ;;  %7640 = vmatmul.msk.f32.gmra.mxu0 %vm606_vm2, %v3507_v17  ;;  %v3836_v17 = vadd.f32 %v9286_v50, %v9021_v63  ;;  %v3833_v63 = vadd.f32 %v9265_v15, %v8991_v40  ;;  %v3906_v40 = vld [vmem:[#allocation2 + $0x126] sm:$0xff]  ;;  %v4244_v15 = vadd.f32 %v9324_v24, %v3830_v36 }
 0x4ca   :  { %v4252_v39 = vadd.f32 %v4133_v18, %v3838_v43  ;;  %v4249_v18 = vadd.f32 %v4124_v20, %v3835_v55  ;;  %v4245_v20 = vadd.f32 %v9332_v56, %v3831_v53  ;;  %v3827_v56 = vadd.f32 %v9222_v38, %v8931_v35  ;;  %v9432_v35 = vpop.f32.mrf.mxu3  ;;  %v3911_v43 = vld [vmem:[#allocation2 + $0x14e] sm:$0xff]  ;;  %v4307_v53 = vld [vmem:[#allocation14 + $0xa0] sm:$0xff] }
 0x4cb   :  { %v4250_v44 = vadd.f32 %v4127_v29, %v3836_v17  ;;  %v3824_v38 = vadd.f32 %v9202_v61, %v8901_v54  ;;  %v4291_v61 = vld [vmem:[#allocation14 + $0x20] sm:$0xff] }
 0x4cc   :  { %7671 = vmatmul.msk.f32.gmra.mxu1 %vm606_vm2, %v3903_v57  ;;  %v4251_v57 = vadd.f32 %v4130_v7, %v3837_v41  ;;  %v4248_v41 = vadd.f32 %v4121_v12, %v3834_v58  ;;  %v4247_v7 = vadd.f32 %v9348_v28, %v3833_v63  ;;  %v9411_v21 = vpop.f32.mrf.mxu2  ;;  %v3829_v28 = vadd.f32 %v9237_v4, %v8951_v16 }
 0x4cd   :  { %10750 = vst [vmem:[#allocation118_spill] sm:$0xff] %v9411_v21  ;;  %v3826_v16 = vadd.f32 %v9216_v32, %v8921_v23  ;;  %v4241_v4 = vadd.f32 %v9308_v33, %v3827_v56  ;;  %v4239_v23 = vadd.f32 %v9296_v42, %v3825_v26  ;;  %v9439_v32 = vpop.f32.mrf.mxu0  ;;  %v4238_v9 = vadd.f32 %v9290_v51, %v3824_v38  ;;  %v4295_v51 = vld [vmem:[#allocation14 + $0x40] sm:$0xff]  ;;  %v3915_v26 = vld [vmem:[#allocation2 + $0x16e] sm:$0xff] }
 0x4ce   :  { %v4243_v13 = vadd.f32 %v9318_v37, %v3829_v28  ;;  %v3909_v37 = vld [vmem:[#allocation2 + $0x13e] sm:$0xff] }
 0x4cf   :  { %v4240_v49 = vadd.f32 %v9302_v60, %v3826_v16  ;;  %v3908_v60 = vld [vmem:[#allocation2 + $0x136] sm:$0xff] }
 0x4d1   :  { %v4136_v52 = vpop.f32.mrf.mxu1 }
 0x4d2   :  { %v4253_v11 = vadd.f32 %v4136_v52, %v3839_v1  ;;  %v9445_v33 = vpop.f32.mrf.mxu3  ;;  %v3910_v1 = vld [vmem:[#allocation2 + $0x146] sm:$0xff] }
 0x4d4   :  { %7672 = vmatmul.msk.f32.gmra.mxu1 %vm606_vm2, %v3904_v59  ;;  %4544 = vmatpush.msra.mxu2 %v4253_v11  ;;  %v3905_v11 = vld [vmem:[#allocation2 + $0x11e] sm:$0xff]  ;;  %v9436_v50 = vpop.f32.mrf.mxu2 }
 0x4d5   :  { %10751 = vst [vmem:[#allocation119_spill] sm:$0xff] %v9436_v50  ;;  %v9449_v42 = vpop.f32.mrf.mxu0  ;;  %v4299_v59 = vld [vmem:[#allocation14 + $0x60] sm:$0xff] }
 0x4d6   :  { %4545 = vmatpush.msra.mxu2 %v4252_v39 }
 0x4d8   :  { %4546 = vmatpush.msra.mxu2 %v4251_v57 }
 0x4d9   :  { %v9393_v25 = vpop.f32.mrf.mxu1 }
 0x4da   :  { %4547 = vmatpush.msra.mxu2 %v4250_v44  ;;  %v4303_v44 = vld [vmem:[#allocation14 + $0x80] sm:$0xff] }
 0x4dc   :  { %7673 = vmatmul.msk.f32.gmra.mxu1 %vm606_vm2, %v3905_v11  ;;  %4548 = vmatpush.msra.mxu2 %v4249_v18  ;;  %v9447_v54 = vpop.f32.mrf.mxu2  ;;  %v3912_v18 = vld [vmem:[#allocation2 + $0x156] sm:$0xff] }
 0x4dd   :  { %v9460_v12 = vpop.f32.mrf.mxu0 }
 0x4de   :  { %4549 = vmatpush.msra.mxu2 %v4248_v41 }
 0x4e0   :  { %4550 = vmatpush.msra.mxu2 %v4247_v7  ;;  %v3848_v7 = vadd.f32 %v9376_v19, %v9141_v10  ;;  %v4315_v19 = vld [vmem:[#allocation14 + $0xe0] sm:$0xff] }
 0x4e1   :  { %v9405_v39 = vpop.f32.mrf.mxu1 }
 0x4e2   :  { %4551 = vmatpush.msra.mxu2 %v9342_v0  ;;  %v9456_v0 = vpop.f32.mrf.mxu3 }
 0x4e4   :  { %7674 = vmatmul.msk.f32.gmra.mxu1 %vm606_vm2, %v3906_v40  ;;  %4552 = vmatpush.msra.mxu2 %v4245_v20  ;;  %v9458_v29 = vpop.f32.mrf.mxu2  ;;  %v3913_v40 = vld [vmem:[#allocation2 + $0x15e] sm:$0xff] }
 0x4e5   :  { %v9470_v55 = vpop.f32.mrf.mxu0 }
 0x4e6   :  { %4553 = vmatpush.msra.mxu2 %v4244_v15 }
 0x4e8   :  { %4554 = vmatpush.msra.mxu2 %v4243_v13 }
 0x4e9   :  { %v9423_v34 = vpop.f32.mrf.mxu1 }
 0x4ea   :  { %4555 = vmatpush.msra.mxu2 %v4242_v31  ;;  %v9465_v17 = vpop.f32.mrf.mxu3  ;;  %v3914_v31 = vld [vmem:[#allocation2 + $0x166] sm:$0xff] }
 0x4ec   :  { %7675 = vmatmul.msk.f32.gmra.mxu1 %vm606_vm2, %v3907_v45  ;;  %4556 = vmatpush.msra.mxu2 %v4241_v4  ;;  %v9467_v57 = vpop.f32.mrf.mxu2 }
 0x4ed   :  { %v9479_v41 = vpop.f32.mrf.mxu0 }
 0x4ee   :  { %4557 = vmatpush.msra.mxu2 %v4240_v49  ;;  %v4319_v49 = vld [vmem:[#allocation14 + $0x100] sm:$0xff] }
 0x4f0   :  { %4558 = vmatpush.msra.mxu2 %v4239_v23  ;;  %v3916_v23 = vld [vmem:[#allocation2 + $0x176] sm:$0xff] }
 0x4f1   :  { %v9442_v2 = vpop.f32.mrf.mxu1 }
 0x4f2   :  { %4559 = vmatpush.msra.mxu2 %v4238_v9  ;;  %v9475_v11 = vpop.f32.mrf.mxu3 }
 0x4f3   :  { %4560 = vmatmul.f32.vlgmr.msra.gmra.mxu2 %v4287_v3 }
 0x4f4   :  { %7676 = vmatmul.msk.f32.gmra.mxu1 %vm606_vm2, %v3908_v60  ;;  %v9477_v63 = vpop.f32.mrf.mxu2 }
 0x4f5   :  { %v9490_v13 = vpop.f32.mrf.mxu0 }
 0x4f9   :  { %v9451_v8 = vpop.f32.mrf.mxu1 }
 0x4fa   :  { %v9486_v28 = vpop.f32.mrf.mxu3 }
 0x4fb   :  { %4563 = vmatmul.f32.gmra.mxu2 %v4291_v61  ;;  %v4323_v61 = vld [vmem:[#allocation14 + $0x120] sm:$0xff] }
 0x4fc   :  { %7677 = vmatmul.msk.f32.gmra.mxu1 %vm606_vm2, %v3909_v37  ;;  %v9488_v15 = vpop.f32.mrf.mxu2 }
 0x4fd   :  { %v3770_v45 = vpop.f32.mrf.mxu0 }
 0x501   :  { %v9454_v24 = vpop.f32.mrf.mxu1 }
 0x502   :  { %v3356_v16 = vpop.f32.mrf.mxu3 }
 0x503   :  { %4566 = vmatmul.f32.gmra.mxu2 %v4295_v51  ;;  %v3917_v51 = vld [vmem:[#allocation2 + $0x17e] sm:$0xff] }
 0x504   :  { %7678 = vmatmul.msk.f32.gmra.mxu1 %vm606_vm2, %v3910_v1  ;;  %v9497_v4 = vpop.f32.mrf.mxu2 }
 0x505   :  { %v9507_v60 = vpop.f32.mrf.mxu0 }
 0x506   :  { %10753 = vst [vmem:[#allocation121_spill] sm:$0xff] %v9507_v60 }
 0x509   :  { %v9463_v52 = vpop.f32.mrf.mxu1 }
 0x50a   :  { %v9502_v9 = vpop.f32.mrf.mxu3 }
 0x50b   :  { %4569 = vmatmul.f32.gmra.mxu2 %v4299_v59  ;;  %10752 = vst [vmem:[#allocation120_spill] sm:$0xff] %v9502_v9 }
 0x50c   :  { %7679 = vmatmul.msk.f32.gmra.mxu1 %vm606_vm2, %v3911_v43  ;;  %v9504_v3 = vpop.f32.mrf.mxu2 }
 0x50d   :  { %v9516_v43 = vpop.f32.mrf.mxu0 }
 0x50e   :  { %10755 = vst [vmem:[#allocation123_spill] sm:$0xff] %v9516_v43  ;;  %v10766_v43 = vld [vmem:[#allocation113_spill] sm:$0xff] }
 0x511   :  { %v9472_v58 = vpop.f32.mrf.mxu1 }
 0x512   :  { %v9512_v1 = vpop.f32.mrf.mxu3 }
 0x513   :  { %4572 = vmatmul.f32.gmra.mxu2 %v4303_v44  ;;  %10754 = vst [vmem:[#allocation122_spill] sm:$0xff] %v9512_v1  ;;  %v4327_v44 = vld [vmem:[#allocation14 + $0x140] sm:$0xff]  ;;  %v10768_v1 = vld [vmem:[#allocation50_spill] sm:$0xff] }
 0x514   :  { %7680 = vmatmul.msk.f32.gmra.mxu1 %vm606_vm2, %v3912_v18  ;;  %v9514_v59 = vpop.f32.mrf.mxu2 }
 0x519   :  { %v4163_v36 = vpop.f32.mrf.mxu1 }
 0x51a   :  { %v9483_v20 = vadd.f32 %v4163_v36, %v3848_v7  ;;  %v3918_v7 = vld [vmem:[#allocation2 + $0x186] sm:$0xff]  ;;  %v2198_v36 = vadd.f32 %v9013_v30, %v8742_v27  ;;  %v10761_v27 = vld [vmem:[#allocation79_spill] sm:$0xff] }
 0x51b   :  { %4575 = vmatmul.f32.gmra.mxu2 %v4307_v53  ;;  %v2199_v53 = vadd.f32 %v9023_v48, %v8750_v46  ;;  %v3919_v48 = vld [vmem:[#allocation2 + $0x18e] sm:$0xff] }
 0x51c   :  { %7681 = vmatmul.msk.f32.gmra.mxu1 %vm606_vm2, %v3913_v40 }
 0x51d   :  { %v2613_v40 = vadd.f32 %v9189_v6, %v2199_v53  ;;  %v10762_v6 = vld [vmem:[#allocation115_spill] sm:$0xff] }
 0x51f   :  { %v3027_v53 = vadd.f32 %v10762_v6, %v2613_v40  ;;  %v10772_v40 = vld [vmem:[#allocation49_spill] sm:$0xff]  ;;  %v10773_v6 = vld [vmem:[#allocation74_spill] sm:$0xff] }
 0x521   :  { %v9492_v56 = vpop.f32.mrf.mxu1 }
 0x523   :  { %4578 = vmatmul.f32.gmra.mxu2 %v4311_v62  ;;  %v2197_v62 = vadd.f32 %v9003_v14, %v8733_v5  ;;  %v10763_v5 = vld [vmem:[#allocation30_spill] sm:$0xff]  ;;  %v10764_v14 = vld [vmem:[#allocation51_spill] sm:$0xff] }
 0x524   :  { %7682 = vmatmul.msk.f32.gmra.mxu1 %vm606_vm2, %v3914_v31  ;;  %v10756_v31 = vld [vmem:[#allocation81_spill] sm:$0xff] }
 0x525   :  { %v2611_v30 = vadd.f32 %v10761_v27, %v2197_v62  ;;  %v3441_v62 = vadd.f32 %v3356_v16, %v3027_v53  ;;  %v10771_v27 = vld [vmem:[#allocation28_spill] sm:$0xff] }
 0x529   :  { %v9495_v10 = vpop.f32.mrf.mxu1 }
 0x52b   :  { %4581 = vmatmul.f32.gmra.mxu2 %v4315_v19  ;;  %v2612_v19 = vadd.f32 %v10756_v31, %v2198_v36  ;;  %v2195_v36 = vadd.f32 %v10764_v14, %v10763_v5  ;;  %v10765_v31 = vld [vmem:[#allocation77_spill] sm:$0xff] }
 0x52c   :  { %7683 = vmatmul.msk.f32.gmra.mxu1 %vm606_vm2, %v3915_v26  ;;  %v9527_v26 = vpop.f32.mrf.mxu3  ;;  %v10774_v5 = vld [vmem:[#allocation109_spill] sm:$0xff] }
 0x52d   :  { %10757 = vst [vmem:[#allocation81_spill] sm:$0xff] %v9527_v26  ;;  %v3026_v9 = vadd.f32 %v10766_v43, %v2612_v19  ;;  %v2609_v22 = vadd.f32 %v10769_v47, %v2195_v36  ;;  %v3855_v43 = vadd.f32 %v3770_v45, %v3441_v62  ;;  %v4335_v19 = vld [vmem:[#allocation14 + $0x180] sm:$0xff] }
 0x531   :  { %v9500_v38 = vpop.f32.mrf.mxu1 }
 0x533   :  { %4584 = vmatmul.f32.gmra.mxu2 %v4319_v49  ;;  %v9529_v49 = vpop.f32.mrf.mxu2 }
 0x534   :  { %7684 = vmatmul.msk.f32.gmra.mxu1 %vm606_vm2, %v3916_v23  ;;  %v4331_v23 = vld [vmem:[#allocation14 + $0x160] sm:$0xff]  ;;  %v9553_v36 = vpop.f32.mrf.mxu3 }
 0x539   :  { %v9509_v37 = vpop.f32.mrf.mxu1 }
 0x53b   :  { %4587 = vmatmul.f32.gmra.mxu2 %v4323_v61  ;;  %v9531_v61 = vpop.f32.mrf.mxu0  ;;  %v9555_v16 = vpop.f32.mrf.mxu2 }
 0x53c   :  { %7685 = vmatmul.msk.f32.gmra.mxu1 %vm606_vm2, %v3917_v51  ;;  %10758 = vst [vmem:[#allocation124_spill] sm:$0xff] %v9531_v61  ;;  %v10759_v51 = vld [vmem:[#allocation31_spill] sm:$0xff]  ;;  %v10767_v61 = vld [vmem:[#allocation29_spill] sm:$0xff] }
 0x53d   :  { %v2194_v26 = vadd.f32 %v10768_v1, %v10767_v61  ;;  %v3920_v1 = vld [vmem:[#allocation2 + $0x196] sm:$0xff]  ;;  %v10776_v61 = vld [vmem:[#allocation107_spill] sm:$0xff]  ;;  %10777 = vst [vmem:[#allocation31_spill] sm:$0xff] %v9553_v36 }
 0x53e   :  { %v3023_v47 = vadd.f32 %v10776_v61, %v2609_v22  ;;  %v10780_v22 = vld [vmem:[#allocation103_spill] sm:$0xff] }
 0x53f   :  { %v2608_v21 = vadd.f32 %v10773_v6, %v2194_v26 }
 0x541   :  { %v4178_v18 = vpop.f32.mrf.mxu1 }
 0x543   :  { %4590 = vmatmul.f32.gmra.mxu2 %v4327_v44  ;;  %v10760_v44 = vld [vmem:[#allocation52_spill] sm:$0xff] }
 0x544   :  { %7686 = vmatmul.msk.f32.gmra.mxu1 %vm606_vm2, %v3918_v7  ;;  %v2196_v7 = vadd.f32 %v10760_v44, %v10759_v51  ;;  %v10770_v51 = vld [vmem:[#allocation111_spill] sm:$0xff] }
 0x545   :  { %v3025_v44 = vadd.f32 %v10770_v51, %v2611_v30 }
 0x546   :  { %v2610_v60 = vadd.f32 %v10765_v31, %v2196_v7  ;;  %v3440_v7 = vadd.f32 %v9486_v28, %v3026_v9  ;;  %v9560_v28 = vpop.f32.mrf.mxu0 }
 0x547   :  { %v3439_v30 = vadd.f32 %v9475_v11, %v3025_v44  ;;  %10779 = vst [vmem:[#allocation52_spill] sm:$0xff] %v9560_v28  ;;  %v3437_v11 = vadd.f32 %v9456_v0, %v3023_v47 }
 0x548   :  { %v3024_v14 = vadd.f32 %v10774_v5, %v2610_v60  ;;  %v3854_v26 = vadd.f32 %v9490_v13, %v3440_v7  ;;  %v10778_v60 = vld [vmem:[#allocation105_spill] sm:$0xff] }
 0x549   :  { %v4181_v46 = vpop.f32.mrf.mxu1  ;;  %v3022_v51 = vadd.f32 %v10778_v60, %v2608_v21  ;;  %v3853_v9 = vadd.f32 %v9479_v41, %v3439_v30  ;;  %v3851_v44 = vadd.f32 %v9460_v12, %v3437_v11  ;;  %v4339_v41 = vld [vmem:[#allocation14 + $0x1a0] sm:$0xff] }
 0x54a   :  { %v3438_v45 = vadd.f32 %v9465_v17, %v3024_v14  ;;  %v4268_v62 = vadd.f32 %v4181_v46, %v3854_v26  ;;  %v4343_v14 = vld [vmem:[#allocation14 + $0x1c0] sm:$0xff] }
 0x54b   :  { %4593 = vmatmul.f32.gmra.mxu2 %v4331_v23  ;;  %v2193_v23 = vadd.f32 %v10772_v40, %v10771_v27  ;;  %v3436_v21 = vadd.f32 %v9445_v33, %v3022_v51  ;;  %v3921_v40 = vld [vmem:[#allocation2 + $0x19e] sm:$0xff]  ;;  %v4265_v0 = vadd.f32 %v9500_v38, %v3851_v44  ;;  %v9578_v33 = vpop.f32.mrf.mxu2  ;;  %v10785_v38 = vld [vmem:[#allocation114_spill] sm:$0xff]  ;;  %v10791_v30 = vld [vmem:[#allocation64_spill] sm:$0xff] }
 0x54c   :  { %7687 = vmatmul.msk.f32.gmra.mxu1 %vm606_vm2, %v3919_v48  ;;  %v10775_v48 = vld [vmem:[#allocation72_spill] sm:$0xff]  ;;  %v3852_v13 = vadd.f32 %v9470_v55, %v3438_v45  ;;  %v9576_v55 = vpop.f32.mrf.mxu3  ;;  %v10795_v51 = vld [vmem:[#allocation106_spill] sm:$0xff] }
 0x54d   :  { %v2607_v31 = vadd.f32 %v10775_v48, %v2193_v23  ;;  %v3850_v6 = vadd.f32 %v9449_v42, %v3436_v21  ;;  %10782 = vst [vmem:[#allocation115_spill] sm:$0xff] %v9576_v55  ;;  %v10784_v42 = vld [vmem:[#allocation70_spill] sm:$0xff]  ;;  %v10792_v26 = vld [vmem:[#allocation108_spill] sm:$0xff] }
 0x54e   :  { %v4266_v17 = vadd.f32 %v9509_v37, %v3852_v13  ;;  %v3847_v5 = vadd.f32 %v10785_v38, %v10784_v42  ;;  %v4292_v42 = vld [vmem:[#allocation14 + $0x28] sm:$0xff]  ;;  %v4355_v38 = vld [vmem:[#allocation14 + $0x220] sm:$0xff] }
 0x54f   :  { %v3021_v27 = vadd.f32 %v10780_v22, %v2607_v31  ;;  %v4264_v37 = vadd.f32 %v9495_v10, %v3850_v6  ;;  %v10789_v31 = vld [vmem:[#allocation66_spill] sm:$0xff] }
 0x550   :  { %v4261_v10 = vadd.f32 %v9472_v58, %v3847_v5 }
 0x551   :  { %v4184_v50 = vpop.f32.mrf.mxu1  ;;  %v3435_v23 = vadd.f32 %v9432_v35, %v3021_v27  ;;  %v10798_v27 = vld [vmem:[#allocation104_spill] sm:$0xff] }
 0x552   :  { %v4269_v53 = vadd.f32 %v4184_v50, %v3855_v43  ;;  %v4267_v50 = vadd.f32 %v4178_v18, %v3853_v9  ;;  %v9583_v18 = vpop.f32.mrf.mxu0  ;;  %v10787_v43 = vld [vmem:[#allocation68_spill] sm:$0xff] }
 0x553   :  { %4596 = vmatmul.f32.gmra.mxu2 %v4335_v19  ;;  %v3849_v12 = vadd.f32 %v9439_v32, %v3435_v23  ;;  %10783 = vst [vmem:[#allocation30_spill] sm:$0xff] %v9583_v18  ;;  %v10788_v19 = vld [vmem:[#allocation112_spill] sm:$0xff]  ;;  %v9594_v48 = vpop.f32.mrf.mxu2 }
 0x554   :  { %7688 = vmatmul.msk.f32.gmra.mxu1 %vm606_vm2, %v3920_v1  ;;  %4669 = vmatpush.msra.mxu3 %v4269_v53  ;;  %v3846_v32 = vadd.f32 %v10788_v19, %v10787_v43  ;;  %v9599_v47 = vpop.f32.mrf.mxu3  ;;  %v3844_v53 = vadd.f32 %v10792_v26, %v10791_v30  ;;  %v4296_v43 = vld [vmem:[#allocation14 + $0x48] sm:$0xff]  ;;  %v4359_v19 = vld [vmem:[#allocation14 + $0x240] sm:$0xff] }
 0x555   :  { %v4263_v35 = vadd.f32 %v9492_v56, %v3849_v12  ;;  %v10790_v56 = vld [vmem:[#allocation110_spill] sm:$0xff]  ;;  %v4351_v12 = vld [vmem:[#allocation14 + $0x200] sm:$0xff] }
 0x556   :  { %4670 = vmatpush.msra.mxu3 %v4268_v62  ;;  %v3845_v1 = vadd.f32 %v10790_v56, %v10789_v31  ;;  %v4260_v61 = vadd.f32 %v9463_v52, %v3846_v32  ;;  %v4258_v9 = vadd.f32 %v9451_v8, %v3844_v53  ;;  %v4347_v62 = vld [vmem:[#allocation14 + $0x1e0] sm:$0xff] }
 0x557   :  { %v10797_v52 = vld [vmem:[#allocation60_spill] sm:$0xff] }
 0x558   :  { %4671 = vmatpush.msra.mxu3 %v4267_v50  ;;  %v4259_v60 = vadd.f32 %v9454_v24, %v3845_v1  ;;  %v3842_v11 = vadd.f32 %v10798_v27, %v10797_v52  ;;  %v10799_v24 = vld [vmem:[#allocation58_spill] sm:$0xff]  ;;  %v4300_v1 = vld [vmem:[#allocation14 + $0x68] sm:$0xff]  ;;  %v4371_v27 = vld [vmem:[#allocation14 + $0x2a0] sm:$0xff] }
 0x559   :  { %v9571_v46 = vpop.f32.mrf.mxu1  ;;  %v10800_v50 = vld [vmem:[#allocation102_spill] sm:$0xff]  ;;  %v4308_v52 = vld [vmem:[#allocation14 + $0xa8] sm:$0xff] }
 0x55a   :  { %10781 = vst [vmem:[#allocation79_spill] sm:$0xff] %v9571_v46  ;;  %4672 = vmatpush.msra.mxu3 %v4266_v17  ;;  %v9604_v58 = vpop.f32.mrf.mxu0  ;;  %v3841_v21 = vadd.f32 %v10800_v50, %v10799_v24  ;;  %v4256_v44 = vadd.f32 %v9423_v34, %v3842_v11  ;;  %v10801_v17 = vld [vmem:[#allocation56_spill] sm:$0xff] }
 0x55b   :  { %4599 = vmatmul.f32.gmra.mxu2 %v4339_v41  ;;  %10793 = vst [vmem:[#allocation77_spill] sm:$0xff] %v9604_v58  ;;  %v10802_v41 = vld [vmem:[#allocation101_spill] sm:$0xff]  ;;  %v10835_v58 = vld [vmem:[#allocation95_spill] sm:$0xff] }
 0x55c   :  { %7689 = vmatmul.msk.f32.gmra.mxu1 %vm606_vm2, %v3921_v40  ;;  %4673 = vmatpush.msra.mxu3 %v4265_v0  ;;  %v3840_v8 = vadd.f32 %v10802_v41, %v10801_v17  ;;  %v9619_v40 = vpop.f32.mrf.mxu2  ;;  %v4255_v23 = vadd.f32 %v9405_v39, %v3841_v21  ;;  %v9622_v6 = vpop.f32.mrf.mxu3  ;;  %v4288_v0 = vld [vmem:[#allocation14 + $0x8] sm:$0xff]  ;;  %v4375_v21 = vld [vmem:[#allocation14 + $0x2c0] sm:$0xff] }
 0x55d   :  { %v4312_v50 = vld [vmem:[#allocation14 + $0xc8] sm:$0xff] }
 0x55e   :  { %4674 = vmatpush.msra.mxu3 %v4264_v37 }
 0x560   :  { %4675 = vmatpush.msra.mxu3 %v4263_v35 }
 0x561   :  { %v9588_v7 = vpop.f32.mrf.mxu1 }
 0x562   :  { %10786 = vst [vmem:[#allocation51_spill] sm:$0xff] %v9588_v7  ;;  %4676 = vmatpush.msra.mxu3 %v9483_v20  ;;  %v10794_v20 = vld [vmem:[#allocation62_spill] sm:$0xff]  ;;  %v9625_v37 = vpop.f32.mrf.mxu0 }
 0x563   :  { %4602 = vmatmul.f32.gmra.mxu2 %v4343_v14  ;;  %v3843_v45 = vadd.f32 %v10795_v51, %v10794_v20  ;;  %v4304_v20 = vld [vmem:[#allocation14 + $0x88] sm:$0xff]  ;;  %v4367_v51 = vld [vmem:[#allocation14 + $0x280] sm:$0xff]  ;;  %v10826_v7 = vld [vmem:[#allocation98_spill] sm:$0xff] }
 0x564   :  { %4677 = vmatpush.msra.mxu3 %v4261_v10  ;;  %v9633_v5 = vpop.f32.mrf.mxu3 }
 0x565   :  { %v4257_v13 = vadd.f32 %v9442_v2, %v3843_v45  ;;  %v4254_v2 = vadd.f32 %v9393_v25, %v3840_v8 }
 0x566   :  { %4678 = vmatpush.msra.mxu3 %v4260_v61  ;;  %v4363_v61 = vld [vmem:[#allocation14 + $0x260] sm:$0xff] }
 0x568   :  { %4679 = vmatpush.msra.mxu3 %v4259_v60 }
 0x569   :  { %v9609_v22 = vpop.f32.mrf.mxu1 }
 0x56a   :  { %10796 = vst [vmem:[#allocation113_spill] sm:$0xff] %v9609_v22  ;;  %4680 = vmatpush.msra.mxu3 %v4258_v9  ;;  %v9635_v14 = vpop.f32.mrf.mxu0 }
 0x56b   :  { %4605 = vmatmul.f32.gmra.mxu2 %v4347_v62 }
 0x56c   :  { %4681 = vmatpush.msra.mxu3 %v4257_v13  ;;  %v9641_v10 = vpop.f32.mrf.mxu3 }
 0x56e   :  { %4682 = vmatpush.msra.mxu3 %v4256_v44 }
 0x570   :  { %4683 = vmatpush.msra.mxu3 %v4255_v23  ;;  %v4316_v23 = vld [vmem:[#allocation14 + $0xe8] sm:$0xff] }
 0x571   :  { %v9627_v35 = vpop.f32.mrf.mxu1 }
 0x572   :  { %10803 = vst [vmem:[#allocation29_spill] sm:$0xff] %v9627_v35  ;;  %4684 = vmatpush.msra.mxu3 %v4254_v2  ;;  %v9643_v31 = vpop.f32.mrf.mxu0  ;;  %v4379_v2 = vld [vmem:[#allocation14 + $0x2e0] sm:$0xff]  ;;  %v4332_v35 = vld [vmem:[#allocation14 + $0x168] sm:$0xff] }
 0x573   :  { %4685 = vmatmul.f32.vlgmr.msra.gmra.mxu3 %v4288_v0  ;;  %4608 = vmatmul.f32.gmra.mxu2 %v4351_v12 }
 0x574   :  { %v9649_v26 = vpop.f32.mrf.mxu3 }
 0x576   :  { %v9629_v34 = vpop.f32.mrf.mxu2 }
 0x577   :  { %10804 = vst [vmem:[#allocation50_spill] sm:$0xff] %v9629_v34 }
 0x579   :  { %v9631_v39 = vpop.f32.mrf.mxu1 }
 0x57a   :  { %10805 = vst [vmem:[#allocation76_spill] sm:$0xff] %v9631_v39  ;;  %v9653_v60 = vpop.f32.mrf.mxu0  ;;  %v4395_v39 = vld [vmem:[#allocation14 + $0x360] sm:$0xff] }
 0x57b   :  { %4688 = vmatmul.f32.gmra.mxu3 %v4292_v42  ;;  %4611 = vmatmul.f32.gmra.mxu2 %v4355_v38 }
 0x57c   :  { %v9659_v62 = vpop.f32.mrf.mxu3 }
 0x57e   :  { %v9637_v25 = vpop.f32.mrf.mxu2 }
 0x57f   :  { %10806 = vst [vmem:[#allocation111_spill] sm:$0xff] %v9637_v25  ;;  %v10822_v25 = vld [vmem:[#allocation99_spill] sm:$0xff] }
 0x581   :  { %v9639_v32 = vpop.f32.mrf.mxu1 }
 0x582   :  { %10807 = vst [vmem:[#allocation28_spill] sm:$0xff] %v9639_v32  ;;  %v9661_v11 = vpop.f32.mrf.mxu0  ;;  %v10828_v32 = vld [vmem:[#allocation75_spill] sm:$0xff] }
 0x583   :  { %4691 = vmatmul.f32.gmra.mxu3 %v4296_v43  ;;  %4614 = vmatmul.f32.gmra.mxu2 %v4359_v19  ;;  %v4320_v43 = vld [vmem:[#allocation14 + $0x108] sm:$0xff]  ;;  %v4383_v19 = vld [vmem:[#allocation14 + $0x300] sm:$0xff] }
 0x584   :  { %v9669_v17 = vpop.f32.mrf.mxu3 }
 0x586   :  { %v9645_v56 = vpop.f32.mrf.mxu2 }
 0x587   :  { %10808 = vst [vmem:[#allocation49_spill] sm:$0xff] %v9645_v56 }
 0x589   :  { %v9647_v30 = vpop.f32.mrf.mxu1 }
 0x58a   :  { %10809 = vst [vmem:[#allocation74_spill] sm:$0xff] %v9647_v30  ;;  %v9671_v41 = vpop.f32.mrf.mxu0 }
 0x58b   :  { %4694 = vmatmul.f32.gmra.mxu3 %v4300_v1  ;;  %4617 = vmatmul.f32.gmra.mxu2 %v4363_v61 }
 0x58c   :  { %v9677_v12 = vpop.f32.mrf.mxu3 }
 0x58e   :  { %v9651_v53 = vpop.f32.mrf.mxu2 }
 0x58f   :  { %10810 = vst [vmem:[#allocation109_spill] sm:$0xff] %v9651_v53  ;;  %v10821_v53 = vld [vmem:[#allocation80_spill] sm:$0xff] }
 0x591   :  { %v9655_v45 = vpop.f32.mrf.mxu1 }
 0x592   :  { %10811 = vst [vmem:[#allocation72_spill] sm:$0xff] %v9655_v45  ;;  %v9679_v42 = vpop.f32.mrf.mxu0 }
 0x593   :  { %4697 = vmatmul.f32.gmra.mxu3 %v4304_v20  ;;  %4620 = vmatmul.f32.gmra.mxu2 %v4367_v51 }
 0x594   :  { %v3398_v20 = vpop.f32.mrf.mxu3 }
 0x596   :  { %v9657_v9 = vpop.f32.mrf.mxu2 }
 0x597   :  { %10812 = vst [vmem:[#allocation107_spill] sm:$0xff] %v9657_v9  ;;  %v10820_v9 = vld [vmem:[#allocation46_spill] sm:$0xff] }
 0x598   :  { %v2214_v56 = vadd.f32 %v10821_v53, %v10820_v9  ;;  %v10830_v9 = vld [vmem:[#allocation43_spill] sm:$0xff] }
 0x599   :  { %v9663_v13 = vpop.f32.mrf.mxu1 }
 0x59a   :  { %v3812_v51 = vpop.f32.mrf.mxu0  ;;  %v2628_v22 = vadd.f32 %v10826_v7, %v2214_v56  ;;  %v10834_v56 = vld [vmem:[#allocation96_spill] sm:$0xff] }
 0x59b   :  { %4700 = vmatmul.f32.gmra.mxu3 %v4308_v52  ;;  %4623 = vmatmul.f32.gmra.mxu2 %v4371_v27  ;;  %v4324_v52 = vld [vmem:[#allocation14 + $0x128] sm:$0xff]  ;;  %v4387_v27 = vld [vmem:[#allocation14 + $0x320] sm:$0xff] }
 0x59c   :  { %v3042_v30 = vadd.f32 %v9578_v33, %v2628_v22 }
 0x59e   :  { %v9665_v24 = vpop.f32.mrf.mxu2 }
 0x59f   :  { %10813 = vst [vmem:[#allocation105_spill] sm:$0xff] %v9665_v24 }
 0x5a1   :  { %v9667_v44 = vpop.f32.mrf.mxu1 }
 0x5a3   :  { %4703 = vmatmul.f32.gmra.mxu3 %v4312_v50  ;;  %4626 = vmatmul.f32.gmra.mxu2 %v4375_v21 }
 0x5a6   :  { %v9673_v8 = vpop.f32.mrf.mxu2 }
 0x5a7   :  { %10814 = vst [vmem:[#allocation103_spill] sm:$0xff] %v9673_v8  ;;  %v3815_v8 = vpop.f32.mrf.mxu0 }
 0x5a9   :  { %v9675_v0 = vpop.f32.mrf.mxu1 }
 0x5ab   :  { %4706 = vmatmul.f32.gmra.mxu3 %v4316_v23  ;;  %4629 = vmatmul.f32.gmra.mxu2 %v4379_v2  ;;  %v3401_v23 = vpop.f32.mrf.mxu3  ;;  %v4328_v2 = vld [vmem:[#allocation14 + $0x148] sm:$0xff] }
 0x5ac   :  { %v3456_v33 = vadd.f32 %v3401_v23, %v3042_v30 }
 0x5ae   :  { %v9681_v38 = vpop.f32.mrf.mxu2 }
 0x5af   :  { %10815 = vst [vmem:[#allocation70_spill] sm:$0xff] %v9681_v38  ;;  %v4391_v38 = vld [vmem:[#allocation14 + $0x340] sm:$0xff] }
 0x5b1   :  { %v9683_v1 = vpop.f32.mrf.mxu1 }
 0x5b3   :  { %4709 = vmatmul.f32.gmra.mxu3 %v4320_v43  ;;  %4632 = vmatmul.f32.gmra.mxu2 %v4383_v19  ;;  %v10818_v43 = vld [vmem:[#allocation47_spill] sm:$0xff]  ;;  %v10819_v19 = vld [vmem:[#allocation82_spill] sm:$0xff]  ;;  %v3404_v28 = vpop.f32.mrf.mxu3 }
 0x5b6   :  { %v9685_v61 = vpop.f32.mrf.mxu2 }
 0x5b7   :  { %10816 = vst [vmem:[#allocation114_spill] sm:$0xff] %v9685_v61  ;;  %v2215_v61 = vadd.f32 %v10819_v19, %v10818_v43  ;;  %v10829_v43 = vld [vmem:[#allocation97_spill] sm:$0xff] }
 0x5b9   :  { %v9687_v50 = vpop.f32.mrf.mxu1  ;;  %v2629_v34 = vadd.f32 %v10822_v25, %v2215_v61  ;;  %v10831_v25 = vld [vmem:[#allocation73_spill] sm:$0xff] }
 0x5ba   :  { %v2211_v61 = vadd.f32 %v10831_v25, %v10830_v9 }
 0x5bb   :  { %4712 = vmatmul.f32.gmra.mxu3 %v4324_v52  ;;  %4635 = vmatmul.f32.gmra.mxu2 %v4387_v27  ;;  %v10824_v52 = vld [vmem:[#allocation45_spill] sm:$0xff]  ;;  %v10825_v27 = vld [vmem:[#allocation78_spill] sm:$0xff]  ;;  %v3043_v53 = vadd.f32 %v9594_v48, %v2629_v34  ;;  %v3407_v30 = vpop.f32.mrf.mxu3 }
 0x5bc   :  { %v2625_v55 = vadd.f32 %v10835_v58, %v2211_v61  ;;  %v4336_v58 = vld [vmem:[#allocation14 + $0x188] sm:$0xff]  ;;  %v4399_v61 = vld [vmem:[#allocation14 + $0x380] sm:$0xff] }
 0x5bd   :  { %v3457_v34 = vadd.f32 %v3404_v28, %v3043_v53 }
 0x5be   :  { %v9689_v21 = vpop.f32.mrf.mxu2 }
 0x5bf   :  { %10817 = vst [vmem:[#allocation68_spill] sm:$0xff] %v9689_v21  ;;  %v2213_v21 = vadd.f32 %v10825_v27, %v10824_v52  ;;  %v10832_v52 = vld [vmem:[#allocation48_spill] sm:$0xff]  ;;  %v10833_v27 = vld [vmem:[#allocation83_spill] sm:$0xff] }
 0x5c0   :  { %v2216_v7 = vadd.f32 %v10833_v27, %v10832_v52  ;;  %v10841_v52 = vld [vmem:[#allocation94_spill] sm:$0xff] }
 0x5c1   :  { %v4226_v24 = vpop.f32.mrf.mxu1  ;;  %v2627_v19 = vadd.f32 %v10829_v43, %v2213_v21  ;;  %v10838_v43 = vld [vmem:[#allocation100_spill] sm:$0xff] }
 0x5c2   :  { %v2630_v9 = vadd.f32 %v10838_v43, %v2216_v7 }
 0x5c3   :  { %4715 = vmatmul.f32.gmra.mxu3 %v4328_v2  ;;  %4638 = vmatmul.f32.gmra.mxu2 %v4391_v38  ;;  %v10827_v38 = vld [vmem:[#allocation44_spill] sm:$0xff]  ;;  %v3041_v48 = vadd.f32 %v9555_v16, %v2627_v19  ;;  %v10844_v16 = vld [vmem:[#allocation93_spill] sm:$0xff]  ;;  %v3039_v19 = vadd.f32 %v9514_v59, %v2625_v55  ;;  %v10848_v55 = vld [vmem:[#allocation38_spill] sm:$0xff] }
 0x5c4   :  { %v2212_v18 = vadd.f32 %v10828_v32, %v10827_v38  ;;  %v10836_v32 = vld [vmem:[#allocation42_spill] sm:$0xff]  ;;  %v10837_v38 = vld [vmem:[#allocation71_spill] sm:$0xff]  ;;  %v3044_v7 = vadd.f32 %v9619_v40, %v2630_v9 }
 0x5c5   :  { %v2210_v21 = vadd.f32 %v10837_v38, %v10836_v32  ;;  %v10843_v32 = vld [vmem:[#allocation67_spill] sm:$0xff]  ;;  %v3455_v43 = vadd.f32 %v3398_v20, %v3041_v48 }
 0x5c6   :  { %v9696_v46 = vpop.f32.mrf.mxu2  ;;  %v2626_v36 = vadd.f32 %v10834_v56, %v2212_v18  ;;  %v10842_v56 = vld [vmem:[#allocation40_spill] sm:$0xff]  ;;  %v10849_v40 = vld [vmem:[#allocation63_spill] sm:$0xff] }
 0x5c7   :  { %10823 = vst [vmem:[#allocation112_spill] sm:$0xff] %v9696_v46  ;;  %v3818_v46 = vpop.f32.mrf.mxu0  ;;  %v2624_v27 = vadd.f32 %v10841_v52, %v2210_v21  ;;  %v2208_v38 = vadd.f32 %v10843_v32, %v10842_v56  ;;  %v10845_v21 = vld [vmem:[#allocation39_spill] sm:$0xff]  ;;  %v10846_v52 = vld [vmem:[#allocation65_spill] sm:$0xff]  ;;  %v2206_v20 = vadd.f32 %v10849_v40, %v10848_v55  ;;  %v3453_v56 = vadd.f32 %v9669_v17, %v3039_v19 }
 0x5c8   :  { %v3040_v18 = vadd.f32 %v9529_v49, %v2626_v36  ;;  %v3871_v22 = vadd.f32 %v3818_v46, %v3457_v34  ;;  %v2207_v49 = vadd.f32 %v10846_v52, %v10845_v21  ;;  %v10847_v36 = vld [vmem:[#allocation92_spill] sm:$0xff]  ;;  %v3869_v34 = vadd.f32 %v3812_v51, %v3455_v43  ;;  %v10852_v51 = vld [vmem:[#allocation61_spill] sm:$0xff]  ;;  %v10855_v19 = vld [vmem:[#allocation59_spill] sm:$0xff] }
 0x5c9   :  { %v4229_v2 = vpop.f32.mrf.mxu1  ;;  %v2622_v46 = vadd.f32 %v10847_v36, %v2208_v38  ;;  %v3038_v23 = vadd.f32 %v9504_v3, %v2624_v27  ;;  %v10853_v27 = vld [vmem:[#allocation90_spill] sm:$0xff]  ;;  %v10858_v52 = vld [vmem:[#allocation57_spill] sm:$0xff]  ;;  %v10859_v36 = vld [vmem:[#allocation88_spill] sm:$0xff] }
 0x5cb   :  { %4718 = vmatmul.f32.gmra.mxu3 %v4332_v35  ;;  %4641 = vmatmul.f32.gmra.mxu2 %v4395_v39  ;;  %v10839_v35 = vld [vmem:[#allocation41_spill] sm:$0xff]  ;;  %v3036_v32 = vadd.f32 %v9488_v15, %v2622_v46  ;;  %v3452_v38 = vadd.f32 %v9659_v62, %v3038_v23 }
 0x5cc   :  { %v10840_v39 = vld [vmem:[#allocation69_spill] sm:$0xff] }
 0x5cd   :  { %v2209_v45 = vadd.f32 %v10840_v39, %v10839_v35  ;;  %v3870_v35 = vadd.f32 %v3815_v8, %v3456_v33  ;;  %v10850_v8 = vld [vmem:[#allocation91_spill] sm:$0xff]  ;;  %v3866_v62 = vadd.f32 %v9661_v11, %v3452_v38  ;;  %v10860_v11 = vld [vmem:[#allocation34_spill] sm:$0xff] }
 0x5ce   :  { %v9716_v25 = vpop.f32.mrf.mxu2  ;;  %v2621_v48 = vadd.f32 %v10850_v8, %v2207_v49 }
 0x5cf   :  { %v2623_v28 = vadd.f32 %v10844_v16, %v2209_v45  ;;  %v3454_v45 = vadd.f32 %v9677_v12, %v3040_v18  ;;  %v4284_v59 = vadd.f32 %v4229_v2, %v3870_v35  ;;  %v3821_v33 = vpop.f32.mrf.mxu0  ;;  %v10851_v12 = vld [vmem:[#allocation37_spill] sm:$0xff]  ;;  %v2620_v18 = vadd.f32 %v10853_v27, %v2206_v20 }
 0x5d0   :  { %v2205_v2 = vadd.f32 %v10852_v51, %v10851_v12  ;;  %v3035_v35 = vadd.f32 %v9477_v63, %v2621_v48  ;;  %v3450_v63 = vadd.f32 %v9641_v10, %v3036_v32  ;;  %v10865_v48 = vld [vmem:[#allocation86_spill] sm:$0xff]  ;;  %v10868_v12 = vld [vmem:[#allocation85_spill] sm:$0xff]  ;;  %v10870_v32 = vld [vmem:[#allocation72_spill] sm:$0xff] }
 0x5d1   :  { %v4232_v53 = vpop.f32.mrf.mxu1  ;;  %v3037_v9 = vadd.f32 %v9497_v4, %v2623_v28  ;;  %v3867_v4 = vadd.f32 %v9671_v41, %v3453_v56  ;;  %v10854_v28 = vld [vmem:[#allocation36_spill] sm:$0xff] }
 0x5d2   :  { %v4285_v39 = vadd.f32 %v4232_v53, %v3871_v22  ;;  %v3458_v22 = vadd.f32 %v3407_v30, %v3044_v7  ;;  %v2204_v53 = vadd.f32 %v10855_v19, %v10854_v28  ;;  %v10856_v7 = vld [vmem:[#allocation89_spill] sm:$0xff]  ;;  %v3034_v30 = vadd.f32 %v9467_v57, %v2620_v18  ;;  %v4407_v56 = vld [vmem:[#allocation14 + $0x3c0] sm:$0xff]  ;;  %v10875_v28 = vld [vmem:[#allocation74_spill] sm:$0xff] }
 0x5d3   :  { %4721 = vmatmul.f32.gmra.mxu3 %v4336_v58  ;;  %4644 = vmatmul.f32.gmra.mxu2 %v4399_v61  ;;  %v3868_v58 = vadd.f32 %v9679_v42, %v3454_v45  ;;  %v4283_v61 = vadd.f32 %v4226_v24, %v3869_v34  ;;  %v4340_v42 = vld [vmem:[#allocation14 + $0x1a8] sm:$0xff]  ;;  %v4403_v24 = vld [vmem:[#allocation14 + $0x3a0] sm:$0xff]  ;;  %v2619_v43 = vadd.f32 %v10856_v7, %v2205_v2 }
 0x5d4   :  { %4794 = vmatpush.msrb.mxu2 %v4285_v39  ;;  %v3872_v16 = vadd.f32 %v3821_v33, %v3458_v22  ;;  %v3451_v15 = vadd.f32 %v9649_v26, %v3037_v9  ;;  %v4281_v41 = vadd.f32 %v9683_v1, %v3867_v4  ;;  %v2618_v46 = vadd.f32 %v10859_v36, %v2204_v53  ;;  %v10861_v1 = vld [vmem:[#allocation55_spill] sm:$0xff]  ;;  %v10876_v53 = vld [vmem:[#allocation117_spill] sm:$0xff] }
 0x5d5   :  { %v4282_v17 = vadd.f32 %v9687_v50, %v3868_v58  ;;  %v10857_v50 = vld [vmem:[#allocation35_spill] sm:$0xff]  ;;  %v4280_v26 = vadd.f32 %v9675_v0, %v3866_v62  ;;  %v2202_v45 = vadd.f32 %v10861_v1, %v10860_v11  ;;  %v3033_v55 = vadd.f32 %v9458_v29, %v2619_v43  ;;  %v10864_v0 = vld [vmem:[#allocation54_spill] sm:$0xff]  ;;  %v10867_v58 = vld [vmem:[#allocation53_spill] sm:$0xff] }
 0x5d6   :  { %4795 = vmatpush.msrb.mxu2 %v4284_v59  ;;  %v9738_v3 = vpop.f32.mrf.mxu2  ;;  %v2203_v49 = vadd.f32 %v10858_v52, %v10857_v50  ;;  %v3865_v23 = vadd.f32 %v9653_v60, %v3451_v15  ;;  %v10862_v34 = vld [vmem:[#allocation87_spill] sm:$0xff]  ;;  %v3449_v40 = vadd.f32 %v9633_v5, %v3035_v35  ;;  %v3864_v57 = vadd.f32 %v9643_v31, %v3450_v63  ;;  %v10863_v60 = vld [vmem:[#allocation33_spill] sm:$0xff]  ;;  %v10878_v43 = vld [vmem:[#allocation30_spill] sm:$0xff] }
 0x5d7   :  { %v2201_v8 = vadd.f32 %v10864_v0, %v10863_v60  ;;  %v2616_v9 = vadd.f32 %v10865_v48, %v2202_v45  ;;  %v3032_v33 = vadd.f32 %v9447_v54, %v2618_v46  ;;  %v3448_v22 = vadd.f32 %v9622_v6, %v3034_v30  ;;  %v4344_v31 = vld [vmem:[#allocation14 + $0x1c8] sm:$0xff]  ;;  %v10869_v2 = vld [vmem:[#allocation119_spill] sm:$0xff] }
 0x5d8   :  { %4796 = vmatpush.msrb.mxu2 %v4283_v61  ;;  %v2617_v59 = vadd.f32 %v10862_v34, %v2203_v49  ;;  %v4279_v20 = vadd.f32 %v9667_v44, %v3865_v23  ;;  %v3863_v29 = vadd.f32 %v9635_v14, %v3449_v40  ;;  %v4278_v5 = vadd.f32 %v9663_v13, %v3864_v57  ;;  %v10866_v44 = vld [vmem:[#allocation32_spill] sm:$0xff]  ;;  %v10872_v13 = vld [vmem:[#allocation118_spill] sm:$0xff]  ;;  %v10877_v7 = vld [vmem:[#allocation31_spill] sm:$0xff] }
 0x5d9   :  { %v4235_v39 = vpop.f32.mrf.mxu1  ;;  %v2200_v61 = vadd.f32 %v10867_v58, %v10866_v44  ;;  %v2615_v51 = vadd.f32 %v10868_v12, %v2201_v8  ;;  %v3447_v18 = vadd.f32 %v9599_v47, %v3033_v55  ;;  %v3862_v54 = vadd.f32 %v9625_v37, %v3448_v22  ;;  %v10871_v14 = vld [vmem:[#allocation84_spill] sm:$0xff]  ;;  %v10881_v50 = vld [vmem:[#allocation81_spill] sm:$0xff]  ;;  %v10888_v57 = vld [vmem:[#allocation123_spill] sm:$0xff] }
 0x5da   :  { %v4286_v21 = vadd.f32 %v4235_v39, %v3872_v16  ;;  %4797 = vmatpush.msrb.mxu2 %v4282_v17  ;;  %v3031_v27 = vadd.f32 %v10869_v2, %v2617_v59  ;;  %v4277_v6 = vadd.f32 %v10870_v32, %v3863_v29  ;;  %v3030_v4 = vadd.f32 %v10872_v13, %v2616_v9  ;;  %v10873_v16 = vld [vmem:[#allocation115_spill] sm:$0xff]  ;;  %v10879_v39 = vld [vmem:[#allocation28_spill] sm:$0xff]  ;;  %v10886_v34 = vld [vmem:[#allocation29_spill] sm:$0xff] }
 0x5db   :  { %4724 = vmatmul.f32.gmra.mxu3 %v4340_v42  ;;  %4647 = vmatmul.f32.gmra.mxu2 %v4403_v24  ;;  %v2614_v38 = vadd.f32 %v10871_v14, %v2200_v61  ;;  %v3446_v17 = vadd.f32 %v10873_v16, %v3032_v33  ;;  %v10874_v42 = vld [vmem:[#allocation77_spill] sm:$0xff]  ;;  %v4276_v19 = vadd.f32 %v10875_v28, %v3862_v54  ;;  %v10882_v49 = vld [vmem:[#allocation52_spill] sm:$0xff]  ;;  %v10891_v9 = vld [vmem:[#allocation51_spill] sm:$0xff] }
 0x5dc   :  { %4798 = vmatpush.msrb.mxu2 %v4281_v41  ;;  %4934 = vmatpush.msrb.mxu3 %v4286_v21  ;;  %v3861_v24 = vadd.f32 %v10874_v42, %v3447_v18  ;;  %v3029_v47 = vadd.f32 %v10876_v53, %v2615_v51  ;;  %v3445_v37 = vadd.f32 %v10877_v7, %v3031_v27  ;;  %v10880_v41 = vld [vmem:[#allocation116_spill] sm:$0xff]  ;;  %v10889_v60 = vld [vmem:[#allocation113_spill] sm:$0xff]  ;;  %v10892_v29 = vld [vmem:[#allocation79_spill] sm:$0xff] }
 0x5dd   :  { %v3860_v35 = vadd.f32 %v10878_v43, %v3446_v17  ;;  %v3028_v21 = vadd.f32 %v10880_v41, %v2614_v38  ;;  %v3444_v52 = vadd.f32 %v10881_v50, %v3030_v4  ;;  %v10883_v46 = vld [vmem:[#allocation76_spill] sm:$0xff]  ;;  %v10890_v8 = vld [vmem:[#allocation121_spill] sm:$0xff] }
 0x5de   :  { %4799 = vmatpush.msrb.mxu2 %v4280_v26  ;;  %v9768_v10 = vpop.f32.mrf.mxu2  ;;  %v4275_v15 = vadd.f32 %v10879_v39, %v3861_v24  ;;  %v3859_v36 = vadd.f32 %v10882_v49, %v3445_v37  ;;  %v4348_v63 = vld [vmem:[#allocation14 + $0x1e8] sm:$0xff]  ;;  %v4411_v23 = vld [vmem:[#allocation14 + $0x3e0] sm:$0xff]  ;;  %v10884_v26 = vld [vmem:[#allocation122_spill] sm:$0xff] }
 0x5df   :  { %v4274_v30 = vadd.f32 %v10883_v46, %v3860_v35  ;;  %v3443_v11 = vadd.f32 %v10884_v26, %v3029_v47  ;;  %v10885_v1 = vld [vmem:[#allocation124_spill] sm:$0xff]  ;;  %v4289_v16 = vld [vmem:[#allocation14 + $0x10] sm:$0xff] }
 0x5e0   :  { %4800 = vmatpush.msrb.mxu2 %v4279_v20  ;;  %v3858_v45 = vadd.f32 %v10885_v1, %v3444_v52  ;;  %v4273_v59 = vadd.f32 %v10886_v34, %v3859_v36  ;;  %v10887_v55 = vld [vmem:[#allocation120_spill] sm:$0xff]  ;;  %v4293_v28 = vld [vmem:[#allocation14 + $0x30] sm:$0xff] }
 0x5e1   :  { %v3442_v40 = vadd.f32 %v10887_v55, %v3028_v21  ;;  %v3857_v20 = vadd.f32 %v10888_v57, %v3443_v11  ;;  %v4356_v61 = vld [vmem:[#allocation14 + $0x228] sm:$0xff]  ;;  %v4419_v12 = vld [vmem:[#allocation14 + $0x420] sm:$0xff]  ;;  %v4297_v7 = vld [vmem:[#allocation14 + $0x50] sm:$0xff] }
 0x5e2   :  { %4801 = vmatpush.msrb.mxu2 %v4278_v5  ;;  %v4272_v0 = vadd.f32 %v10889_v60, %v3858_v45  ;;  %v4360_v27 = vld [vmem:[#allocation14 + $0x248] sm:$0xff]  ;;  %v4423_v18 = vld [vmem:[#allocation14 + $0x440] sm:$0xff]  ;;  %v4301_v39 = vld [vmem:[#allocation14 + $0x70] sm:$0xff] }
 0x5e3   :  { %4727 = vmatmul.f32.gmra.mxu3 %v4344_v31  ;;  %4650 = vmatmul.f32.gmra.mxu2 %v4407_v56  ;;  %v3856_v48 = vadd.f32 %v10890_v8, %v3442_v40  ;;  %v4271_v33 = vadd.f32 %v10891_v9, %v3857_v20  ;;  %v4352_v31 = vld [vmem:[#allocation14 + $0x208] sm:$0xff]  ;;  %v4415_v56 = vld [vmem:[#allocation14 + $0x400] sm:$0xff]  ;;  %v4305_v50 = vld [vmem:[#allocation14 + $0x90] sm:$0xff] }
 0x5e4   :  { %4802 = vmatpush.msrb.mxu2 %v4277_v6  ;;  %v4364_v6 = vld [vmem:[#allocation14 + $0x268] sm:$0xff]  ;;  %v4427_v14 = vld [vmem:[#allocation14 + $0x460] sm:$0xff]  ;;  %v4309_v46 = vld [vmem:[#allocation14 + $0xb0] sm:$0xff] }
 0x5e5   :  { %v4270_v5 = vadd.f32 %v10892_v29, %v3856_v48  ;;  %v4368_v4 = vld [vmem:[#allocation14 + $0x288] sm:$0xff]  ;;  %v4313_v26 = vld [vmem:[#allocation14 + $0xd0] sm:$0xff] }
 0x5e6   :  { %4803 = vmatpush.msrb.mxu2 %v4276_v19  ;;  %v9793_v62 = vpop.f32.mrf.mxu2  ;;  %v4372_v24 = vld [vmem:[#allocation14 + $0x2a8] sm:$0xff]  ;;  %v4317_v34 = vld [vmem:[#allocation14 + $0xf0] sm:$0xff] }
 0x5e7   :  { %v4376_v47 = vld [vmem:[#allocation14 + $0x2c8] sm:$0xff]  ;;  %v4321_v57 = vld [vmem:[#allocation14 + $0x110] sm:$0xff] }
 0x5e8   :  { %4804 = vmatpush.msrb.mxu2 %v4275_v15  ;;  %v4380_v35 = vld [vmem:[#allocation14 + $0x2e8] sm:$0xff]  ;;  %v4325_v8 = vld [vmem:[#allocation14 + $0x130] sm:$0xff] }
 0x5e9   :  { %v4384_v21 = vld [vmem:[#allocation14 + $0x308] sm:$0xff]  ;;  %v4329_v29 = vld [vmem:[#allocation14 + $0x150] sm:$0xff] }
 0x5ea   :  { %4805 = vmatpush.msrb.mxu2 %v4274_v30  ;;  %v4388_v36 = vld [vmem:[#allocation14 + $0x328] sm:$0xff] }
 0x5eb   :  { %4730 = vmatmul.f32.gmra.mxu3 %v4348_v63  ;;  %4653 = vmatmul.f32.gmra.mxu2 %v4411_v23  ;;  %v4392_v23 = vld [vmem:[#allocation14 + $0x348] sm:$0xff] }
 0x5ec   :  { %4806 = vmatpush.msrb.mxu2 %v4273_v59  ;;  %v4396_v45 = vld [vmem:[#allocation14 + $0x368] sm:$0xff] }
 0x5ed   :  { %v4400_v40 = vld [vmem:[#allocation14 + $0x388] sm:$0xff] }
 0x5ee   :  { %4807 = vmatpush.msrb.mxu2 %v4272_v0  ;;  %v9807_v22 = vpop.f32.mrf.mxu2  ;;  %v4404_v0 = vld [vmem:[#allocation14 + $0x3a8] sm:$0xff] }
 0x5f0   :  { %4808 = vmatpush.msrb.mxu2 %v4271_v33  ;;  %v4408_v33 = vld [vmem:[#allocation14 + $0x3c8] sm:$0xff] }
 0x5f2   :  { %4809 = vmatpush.msrb.mxu2 %v4270_v5 }
 0x5f3   :  { %4733 = vmatmul.f32.gmra.mxu3 %v4352_v31  ;;  %4656 = vmatmul.f32.gmra.mxu2 %v4415_v56  ;;  %v4412_v56 = vld [vmem:[#allocation14 + $0x3e8] sm:$0xff] }
 0x5f6   :  { %v9810_v44 = vpop.f32.mrf.mxu3  ;;  %v9812_v58 = vpop.f32.mrf.mxu2 }
 0x5fb   :  { %4736 = vmatmul.f32.gmra.mxu3 %v4356_v61  ;;  %4659 = vmatmul.f32.gmra.mxu2 %v4419_v12  ;;  %v4333_v61 = vld [vmem:[#allocation14 + $0x170] sm:$0xff] }
 0x5fe   :  { %v9814_v51 = vpop.f32.mrf.mxu3  ;;  %v9816_v2 = vpop.f32.mrf.mxu2 }
 0x603   :  { %4739 = vmatmul.f32.gmra.mxu3 %v4360_v27  ;;  %4662 = vmatmul.f32.gmra.mxu2 %v4423_v18  ;;  %v4416_v18 = vld [vmem:[#allocation14 + $0x408] sm:$0xff] }
 0x606   :  { %v9818_v54 = vpop.f32.mrf.mxu3  ;;  %v9820_v32 = vpop.f32.mrf.mxu2 }
 0x60b   :  { %4742 = vmatmul.f32.gmra.mxu3 %v4364_v6  ;;  %4665 = vmatmul.f32.gmra.mxu2 %v4427_v14  ;;  %v4337_v6 = vld [vmem:[#allocation14 + $0x190] sm:$0xff] }
 0x60e   :  { %v9822_v38 = vpop.f32.mrf.mxu3  ;;  %v9824_v13 = vpop.f32.mrf.mxu2 }
 0x613   :  { %4745 = vmatmul.f32.gmra.mxu3 %v4368_v4  ;;  %4810 = vmatmul.f32.vlgmr.msrb.gmra.mxu2 %v4289_v16  ;;  %v4420_v16 = vld [vmem:[#allocation14 + $0x428] sm:$0xff] }
 0x616   :  { %v9826_v17 = vpop.f32.mrf.mxu3  ;;  %v9828_v42 = vpop.f32.mrf.mxu2 }
 0x61b   :  { %4748 = vmatmul.f32.gmra.mxu3 %v4372_v24  ;;  %4813 = vmatmul.f32.gmra.mxu2 %v4293_v28  ;;  %v4341_v24 = vld [vmem:[#allocation14 + $0x1b0] sm:$0xff] }
 0x61e   :  { %v9830_v19 = vpop.f32.mrf.mxu3  ;;  %v9832_v53 = vpop.f32.mrf.mxu2 }
 0x623   :  { %4751 = vmatmul.f32.gmra.mxu3 %v4376_v47  ;;  %4816 = vmatmul.f32.gmra.mxu2 %v4297_v7  ;;  %v4424_v7 = vld [vmem:[#allocation14 + $0x448] sm:$0xff] }
 0x626   :  { %v9834_v37 = vpop.f32.mrf.mxu3  ;;  %v9836_v43 = vpop.f32.mrf.mxu2 }
 0x62b   :  { %4754 = vmatmul.f32.gmra.mxu3 %v4380_v35  ;;  %4819 = vmatmul.f32.gmra.mxu2 %v4301_v39  ;;  %v4345_v35 = vld [vmem:[#allocation14 + $0x1d0] sm:$0xff] }
 0x62e   :  { %v9838_v15 = vpop.f32.mrf.mxu3  ;;  %v9840_v41 = vpop.f32.mrf.mxu2 }
 0x633   :  { %4757 = vmatmul.f32.gmra.mxu3 %v4384_v21  ;;  %4822 = vmatmul.f32.gmra.mxu2 %v4305_v50  ;;  %v4428_v50 = vld [vmem:[#allocation14 + $0x468] sm:$0xff] }
 0x636   :  { %v9842_v52 = vpop.f32.mrf.mxu3  ;;  %v9844_v49 = vpop.f32.mrf.mxu2 }
 0x63b   :  { %4760 = vmatmul.f32.gmra.mxu3 %v4388_v36  ;;  %4825 = vmatmul.f32.gmra.mxu2 %v4309_v46  ;;  %v4349_v36 = vld [vmem:[#allocation14 + $0x1f0] sm:$0xff]  ;;  %v9886_v46 = vld [vmem:[#allocation9] ss:$0 sm:$0xff] }
 0x63e   :  { %v9846_v30 = vpop.f32.mrf.mxu3  ;;  %v9848_v63 = vpop.f32.mrf.mxu2 }
 0x643   :  { %4763 = vmatmul.f32.gmra.mxu3 %v4392_v23  ;;  %4828 = vmatmul.f32.gmra.mxu2 %v4313_v26 }
 0x646   :  { %v9850_v11 = vpop.f32.mrf.mxu3  ;;  %v9852_v1 = vpop.f32.mrf.mxu2 }
 0x64b   :  { %4766 = vmatmul.f32.gmra.mxu3 %v4396_v45  ;;  %4831 = vmatmul.f32.gmra.mxu2 %v4317_v34  ;;  %v4290_v45 = vld [vmem:[#allocation14 + $0x18] sm:$0xff]  ;;  %v4353_v34 = vld [vmem:[#allocation14 + $0x210] sm:$0xff] }
 0x64e   :  { %v9854_v59 = vpop.f32.mrf.mxu3  ;;  %v9856_v55 = vpop.f32.mrf.mxu2 }
 0x64f   :  { %10893 = vst [vmem:[#allocation66_spill] sm:$0xff] %v9856_v55  ;;  %v4362_v55 = vld [vmem:[#allocation14 + $0x258] sm:$0xff] }
 0x653   :  { %4769 = vmatmul.f32.gmra.mxu3 %v4400_v40  ;;  %4834 = vmatmul.f32.gmra.mxu2 %v4321_v57  ;;  %v10900_v40 = vld [vmem:[#allocation50_spill] sm:$0xff] }
 0x654   :  { %v4562_v57 = vadd.f32 %v9886_v46, %v10900_v40 }
 0x656   :  { %v9858_v20 = vpop.f32.mrf.mxu3  ;;  %v9860_v60 = vpop.f32.mrf.mxu2 }
 0x657   :  { %10894 = vst [vmem:[#allocation110_spill] sm:$0xff] %v9860_v60  ;;  %v4358_v60 = vld [vmem:[#allocation14 + $0x238] sm:$0xff] }
 0x65b   :  { %4772 = vmatmul.f32.gmra.mxu3 %v4404_v0  ;;  %4837 = vmatmul.f32.gmra.mxu2 %v4325_v8  ;;  %v4687_v0 = vadd.f32 %v9810_v44, %v4562_v57  ;;  %v4298_v44 = vld [vmem:[#allocation14 + $0x58] sm:$0xff] }
 0x65e   :  { %v9862_v48 = vpop.f32.mrf.mxu3  ;;  %v9864_v9 = vpop.f32.mrf.mxu2 }
 0x65f   :  { %10895 = vst [vmem:[#allocation64_spill] sm:$0xff] %v9864_v9  ;;  %v10913_v9 = vld [vmem:[#allocation112_spill] sm:$0xff] }
 0x663   :  { %4775 = vmatmul.f32.gmra.mxu3 %v4408_v33  ;;  %4840 = vmatmul.f32.gmra.mxu2 %v4329_v29 }
 0x666   :  { %v9866_v5 = vpop.f32.mrf.mxu3  ;;  %v9868_v31 = vpop.f32.mrf.mxu2 }
 0x66b   :  { %4778 = vmatmul.f32.gmra.mxu3 %v4412_v56  ;;  %4843 = vmatmul.f32.gmra.mxu2 %v4333_v61  ;;  %v4294_v56 = vld [vmem:[#allocation14 + $0x38] sm:$0xff]  ;;  %v4357_v61 = vld [vmem:[#allocation14 + $0x230] sm:$0xff] }
 0x66e   :  { %v9870_v12 = vpop.f32.mrf.mxu3  ;;  %v9872_v27 = vpop.f32.mrf.mxu2 }
 0x673   :  { %4781 = vmatmul.f32.gmra.mxu3 %v4416_v18  ;;  %4846 = vmatmul.f32.gmra.mxu2 %v4337_v6  ;;  %v10901_v18 = vld [vmem:[#allocation111_spill] sm:$0xff] }
 0x674   :  { %v4565_v6 = vadd.f32 %v9886_v46, %v10901_v18 }
 0x676   :  { %v9874_v14 = vpop.f32.mrf.mxu3  ;;  %v9876_v4 = vpop.f32.mrf.mxu2 }
 0x67b   :  { %4784 = vmatmul.f32.gmra.mxu3 %v4420_v16  ;;  %4849 = vmatmul.f32.gmra.mxu2 %v4341_v24  ;;  %v4690_v16 = vadd.f32 %v9814_v51, %v4565_v6  ;;  %v4302_v51 = vld [vmem:[#allocation14 + $0x78] sm:$0xff] }
 0x67e   :  { %v9878_v28 = vpop.f32.mrf.mxu3  ;;  %v9880_v47 = vpop.f32.mrf.mxu2 }
 0x67f   :  { %10896 = vst [vmem:[#allocation108_spill] sm:$0xff] %v9878_v28 }
 0x680   :  { %10897 = vst [vmem:[#allocation62_spill] sm:$0xff] %v9880_v47  ;;  %v10911_v47 = vld [vmem:[#allocation68_spill] sm:$0xff] }
 0x683   :  { %4787 = vmatmul.f32.gmra.mxu3 %v4424_v7  ;;  %4852 = vmatmul.f32.gmra.mxu2 %v4345_v35 }
 0x686   :  { %v9882_v39 = vpop.f32.mrf.mxu3  ;;  %v9884_v21 = vpop.f32.mrf.mxu2 }
 0x687   :  { %10898 = vst [vmem:[#allocation106_spill] sm:$0xff] %v9884_v21  ;;  %v10909_v21 = vld [vmem:[#allocation114_spill] sm:$0xff] }
 0x68b   :  { %4790 = vmatmul.f32.gmra.mxu3 %v4428_v50  ;;  %4855 = vmatmul.f32.gmra.mxu2 %v4349_v36  ;;  %v4361_v50 = vld [vmem:[#allocation14 + $0x250] sm:$0xff] }
 0x68c   :  { %v10902_v36 = vld [vmem:[#allocation49_spill] sm:$0xff] }
 0x68e   :  { %v9888_v23 = vpop.f32.mrf.mxu3  ;;  %v9890_v26 = vpop.f32.mrf.mxu2 }
 0x68f   :  { %10899 = vst [vmem:[#allocation60_spill] sm:$0xff] %v9890_v26  ;;  %v10907_v26 = vld [vmem:[#allocation70_spill] sm:$0xff] }
 0x693   :  { %7690 = vmatmul.msk.f32.vlgmr.msrb.gmra.mxu3 %vm4435_vm3, %v4290_v45  ;;  %4858 = vmatmul.f32.gmra.mxu2 %v4353_v34  ;;  %v4568_v45 = vadd.f32 %v9886_v46, %v10902_v36 }
 0x695   :  { %v4693_v34 = vadd.f32 %v9818_v54, %v4568_v45  ;;  %v4306_v54 = vld [vmem:[#allocation14 + $0x98] sm:$0xff] }
 0x696   :  { %v9896_v8 = vpop.f32.mrf.mxu3  ;;  %v4811_v33 = vpop.f32.mrf.mxu2 }
 0x697   :  { %v9898_v29 = vadd.f32 %v4811_v33, %v4687_v0  ;;  %v4365_v33 = vld [vmem:[#allocation14 + $0x270] sm:$0xff] }
 0x69b   :  { %7691 = vmatmul.msk.f32.gmra.mxu3 %vm4435_vm3, %v4294_v56  ;;  %4861 = vmatmul.f32.gmra.mxu2 %v4357_v61  ;;  %v10903_v56 = vld [vmem:[#allocation109_spill] sm:$0xff] }
 0x69c   :  { %v4571_v61 = vadd.f32 %v9886_v46, %v10903_v56  ;;  %v10905_v56 = vld [vmem:[#allocation105_spill] sm:$0xff] }
 0x69e   :  { %v9904_v24 = vpop.f32.mrf.mxu3  ;;  %v4814_v7 = vpop.f32.mrf.mxu2  ;;  %v4696_v18 = vadd.f32 %v9822_v38, %v4571_v61  ;;  %v4310_v38 = vld [vmem:[#allocation14 + $0xb8] sm:$0xff]  ;;  %v4577_v61 = vadd.f32 %v9886_v46, %v10905_v56 }
 0x69f   :  { %v9906_v35 = vadd.f32 %v4814_v7, %v4690_v16 }
 0x6a3   :  { %7692 = vmatmul.msk.f32.gmra.mxu3 %vm4435_vm3, %v4298_v44  ;;  %4864 = vmatmul.f32.gmra.mxu2 %v4361_v50  ;;  %v4369_v44 = vld [vmem:[#allocation14 + $0x290] sm:$0xff]  ;;  %v10904_v50 = vld [vmem:[#allocation107_spill] sm:$0xff] }
 0x6a4   :  { %v4574_v36 = vadd.f32 %v9886_v46, %v10904_v50  ;;  %v4377_v50 = vld [vmem:[#allocation14 + $0x2d0] sm:$0xff] }
 0x6a6   :  { %v9912_v40 = vpop.f32.mrf.mxu3  ;;  %v4817_v57 = vpop.f32.mrf.mxu2  ;;  %v4699_v45 = vadd.f32 %v9826_v17, %v4574_v36  ;;  %v4314_v17 = vld [vmem:[#allocation14 + $0xd8] sm:$0xff] }
 0x6a7   :  { %v9914_v0 = vadd.f32 %v4817_v57, %v4693_v34  ;;  %v10906_v36 = vld [vmem:[#allocation103_spill] sm:$0xff] }
 0x6ab   :  { %7693 = vmatmul.msk.f32.gmra.mxu3 %vm4435_vm3, %v4302_v51  ;;  %4867 = vmatmul.f32.gmra.mxu2 %v4365_v33  ;;  %v4373_v33 = vld [vmem:[#allocation14 + $0x2b0] sm:$0xff] }
 0x6ae   :  { %v9920_v6 = vpop.f32.mrf.mxu3  ;;  %v4820_v16 = vpop.f32.mrf.mxu2 }
 0x6af   :  { %v9922_v7 = vadd.f32 %v4820_v16, %v4696_v18  ;;  %v4702_v18 = vadd.f32 %v9830_v19, %v4577_v61  ;;  %v4318_v19 = vld [vmem:[#allocation14 + $0xf8] sm:$0xff]  ;;  %v4381_v61 = vld [vmem:[#allocation14 + $0x2f0] sm:$0xff] }
 0x6b3   :  { %7694 = vmatmul.msk.f32.gmra.mxu3 %vm4435_vm3, %v4306_v54  ;;  %4870 = vmatmul.f32.gmra.mxu2 %v4369_v44 }
 0x6b6   :  { %v9928_v34 = vpop.f32.mrf.mxu3  ;;  %v4823_v57 = vpop.f32.mrf.mxu2 }
 0x6b7   :  { %v9930_v51 = vadd.f32 %v4823_v57, %v4699_v45  ;;  %v4580_v45 = vadd.f32 %v9886_v46, %v10906_v36 }
 0x6b9   :  { %v4705_v57 = vadd.f32 %v9834_v37, %v4580_v45  ;;  %v4322_v37 = vld [vmem:[#allocation14 + $0x118] sm:$0xff]  ;;  %v4385_v45 = vld [vmem:[#allocation14 + $0x310] sm:$0xff] }
 0x6bb   :  { %7695 = vmatmul.msk.f32.gmra.mxu3 %vm4435_vm3, %v4310_v38  ;;  %4873 = vmatmul.f32.gmra.mxu2 %v4373_v33 }
 0x6be   :  { %v9936_v16 = vpop.f32.mrf.mxu3  ;;  %v4826_v54 = vpop.f32.mrf.mxu2 }
 0x6bf   :  { %v9938_v44 = vadd.f32 %v4826_v54, %v4702_v18  ;;  %v4583_v18 = vadd.f32 %v9886_v46, %v10907_v26 }
 0x6c1   :  { %v4708_v54 = vadd.f32 %v9838_v15, %v4583_v18  ;;  %v4326_v15 = vld [vmem:[#allocation14 + $0x138] sm:$0xff]  ;;  %v4389_v18 = vld [vmem:[#allocation14 + $0x330] sm:$0xff] }
 0x6c3   :  { %7696 = vmatmul.msk.f32.gmra.mxu3 %vm4435_vm3, %v4314_v17  ;;  %4876 = vmatmul.f32.gmra.mxu2 %v4377_v50 }
 0x6c6   :  { %v9944_v56 = vpop.f32.mrf.mxu3  ;;  %v4829_v38 = vpop.f32.mrf.mxu2 }
 0x6c7   :  { %v9946_v33 = vadd.f32 %v4829_v38, %v4705_v57  ;;  %v4586_v57 = vadd.f32 %v9886_v46, %v10909_v21 }
 0x6c9   :  { %v4711_v26 = vadd.f32 %v9842_v52, %v4586_v57  ;;  %v4330_v52 = vld [vmem:[#allocation14 + $0x158] sm:$0xff]  ;;  %v4393_v57 = vld [vmem:[#allocation14 + $0x350] sm:$0xff] }
 0x6cb   :  { %7697 = vmatmul.msk.f32.gmra.mxu3 %vm4435_vm3, %v4318_v19  ;;  %4879 = vmatmul.f32.gmra.mxu2 %v4381_v61 }
 0x6ce   :  { %v9952_v36 = vpop.f32.mrf.mxu3  ;;  %v4832_v17 = vpop.f32.mrf.mxu2 }
 0x6cf   :  { %10908 = vst [vmem:[#allocation104_spill] sm:$0xff] %v9952_v36  ;;  %v9954_v50 = vadd.f32 %v4832_v17, %v4708_v54  ;;  %v4589_v54 = vadd.f32 %v9886_v46, %v10911_v47  ;;  %v4421_v36 = vld [vmem:[#allocation14 + $0x430] sm:$0xff] }
 0x6d1   :  { %v4714_v21 = vadd.f32 %v9846_v30, %v4589_v54  ;;  %v4334_v30 = vld [vmem:[#allocation14 + $0x178] sm:$0xff]  ;;  %v4397_v54 = vld [vmem:[#allocation14 + $0x370] sm:$0xff] }
 0x6d3   :  { %7698 = vmatmul.msk.f32.gmra.mxu3 %vm4435_vm3, %v4322_v37  ;;  %4882 = vmatmul.f32.gmra.mxu2 %v4385_v45 }
 0x6d6   :  { %v9960_v38 = vpop.f32.mrf.mxu3  ;;  %v4835_v19 = vpop.f32.mrf.mxu2 }
 0x6d7   :  { %10910 = vst [vmem:[#allocation58_spill] sm:$0xff] %v9960_v38  ;;  %v9962_v61 = vadd.f32 %v4835_v19, %v4711_v26  ;;  %v4592_v26 = vadd.f32 %v9886_v46, %v10913_v9  ;;  %v4417_v38 = vld [vmem:[#allocation14 + $0x410] sm:$0xff] }
 0x6d9   :  { %v4717_v47 = vadd.f32 %v9850_v11, %v4592_v26  ;;  %v4338_v11 = vld [vmem:[#allocation14 + $0x198] sm:$0xff]  ;;  %v4401_v26 = vld [vmem:[#allocation14 + $0x390] sm:$0xff] }
 0x6db   :  { %7699 = vmatmul.msk.f32.gmra.mxu3 %vm4435_vm3, %v4326_v15  ;;  %4885 = vmatmul.f32.gmra.mxu2 %v4389_v18 }
 0x6de   :  { %v9968_v17 = vpop.f32.mrf.mxu3  ;;  %v4838_v37 = vpop.f32.mrf.mxu2 }
 0x6df   :  { %10912 = vst [vmem:[#allocation102_spill] sm:$0xff] %v9968_v17  ;;  %v9970_v45 = vadd.f32 %v4838_v37, %v4714_v21  ;;  %v4595_v21 = vadd.f32 %v9886_v46, %v9716_v25  ;;  %v4342_v25 = vld [vmem:[#allocation14 + $0x1b8] sm:$0xff]  ;;  %v4405_v17 = vld [vmem:[#allocation14 + $0x3b0] sm:$0xff] }
 0x6e1   :  { %v4720_v9 = vadd.f32 %v9854_v59, %v4595_v21  ;;  %v4409_v21 = vld [vmem:[#allocation14 + $0x3d0] sm:$0xff] }
 0x6e3   :  { %7700 = vmatmul.msk.f32.gmra.mxu3 %vm4435_vm3, %v4330_v52  ;;  %4888 = vmatmul.f32.gmra.mxu2 %v4393_v57 }
 0x6e6   :  { %v9976_v19 = vpop.f32.mrf.mxu3  ;;  %v4841_v15 = vpop.f32.mrf.mxu2 }
 0x6e7   :  { %v9978_v18 = vadd.f32 %v4841_v15, %v4717_v47 }
 0x6eb   :  { %7701 = vmatmul.msk.f32.gmra.mxu3 %vm4435_vm3, %v4334_v30  ;;  %4891 = vmatmul.f32.gmra.mxu2 %v4397_v54  ;;  %v4346_v54 = vld [vmem:[#allocation14 + $0x1d8] sm:$0xff] }
 0x6ee   :  { %v9984_v37 = vpop.f32.mrf.mxu3  ;;  %v4844_v52 = vpop.f32.mrf.mxu2 }
 0x6ef   :  { %v9986_v57 = vadd.f32 %v4844_v52, %v4720_v9 }
 0x6f3   :  { %7702 = vmatmul.msk.f32.gmra.mxu3 %vm4435_vm3, %v4338_v11  ;;  %4894 = vmatmul.f32.gmra.mxu2 %v4401_v26  ;;  %v4350_v11 = vld [vmem:[#allocation14 + $0x1f8] sm:$0xff]  ;;  %v4413_v26 = vld [vmem:[#allocation14 + $0x3f0] sm:$0xff] }
 0x6f6   :  { %v9989_v47 = vpop.f32.mrf.mxu3  ;;  %v9991_v15 = vpop.f32.mrf.mxu2 }
 0x6fb   :  { %7703 = vmatmul.msk.f32.gmra.mxu3 %vm4435_vm3, %v4342_v25  ;;  %4897 = vmatmul.f32.gmra.mxu2 %v4405_v17 }
 0x6fe   :  { %v9994_v59 = vpop.f32.mrf.mxu3  ;;  %v9996_v30 = vpop.f32.mrf.mxu2 }
 0x6ff   :  { %10914 = vst [vmem:[#allocation56_spill] sm:$0xff] %v9994_v59  ;;  %v4354_v59 = vld [vmem:[#allocation14 + $0x218] sm:$0xff] }
 0x703   :  { %7704 = vmatmul.msk.f32.gmra.mxu3 %vm4435_vm3, %v4346_v54  ;;  %4900 = vmatmul.f32.gmra.mxu2 %v4409_v21 }
 0x706   :  { %v9999_v9 = vpop.f32.mrf.mxu3  ;;  %v10001_v52 = vpop.f32.mrf.mxu2 }
 0x707   :  { %10915 = vst [vmem:[#allocation101_spill] sm:$0xff] %v9999_v9 }
 0x70b   :  { %7705 = vmatmul.msk.f32.gmra.mxu3 %vm4435_vm3, %v4350_v11  ;;  %4903 = vmatmul.f32.gmra.mxu2 %v4413_v26 }
 0x70e   :  { %v10004_v25 = vpop.f32.mrf.mxu3  ;;  %v10006_v17 = vpop.f32.mrf.mxu2 }
 0x70f   :  { %10916 = vst [vmem:[#allocation47_spill] sm:$0xff] %v10004_v25 }
 0x713   :  { %7706 = vmatmul.msk.f32.gmra.mxu3 %vm4435_vm3, %v4354_v59  ;;  %4906 = vmatmul.f32.gmra.mxu2 %v4417_v38  ;;  %v4425_v59 = vld [vmem:[#allocation14 + $0x450] sm:$0xff]  ;;  %v4616_v38 = vadd.f32 %v9886_v46, %v9820_v32 }
 0x716   :  { %v4936_v54 = vpop.f32.mrf.mxu3  ;;  %v10009_v21 = vpop.f32.mrf.mxu2 }
 0x717   :  { %v10012_v9 = vadd.f32 %v4936_v54, %v9898_v29  ;;  %v4741_v29 = vadd.f32 %v9882_v39, %v4616_v38 }
 0x71b   :  { %7707 = vmatmul.msk.f32.gmra.mxu3 %vm4435_vm3, %v4358_v60  ;;  %4909 = vmatmul.f32.gmra.mxu2 %v4421_v36 }
 0x71e   :  { %v4939_v11 = vpop.f32.mrf.mxu3  ;;  %v10015_v26 = vpop.f32.mrf.mxu2 }
 0x71f   :  { %10917 = vst [vmem:[#allocation82_spill] sm:$0xff] %v10015_v26  ;;  %v10018_v25 = vadd.f32 %v4939_v11, %v9906_v35  ;;  %v4366_v26 = vld [vmem:[#allocation14 + $0x278] sm:$0xff]  ;;  %v4429_v35 = vld [vmem:[#allocation14 + $0x470] sm:$0xff]  ;;  %v4619_v11 = vadd.f32 %v9886_v46, %v9824_v13 }
 0x721   :  { %v4744_v32 = vadd.f32 %v9888_v23, %v4619_v11 }
 0x723   :  { %7708 = vmatmul.msk.f32.gmra.mxu3 %vm4435_vm3, %v4362_v55  ;;  %4912 = vmatmul.f32.gmra.mxu2 %v4425_v59 }
 0x726   :  { %v4942_v54 = vpop.f32.mrf.mxu3  ;;  %v4865_v28 = vpop.f32.mrf.mxu2 }
 0x727   :  { %v10025_v60 = vadd.f32 %v4942_v54, %v9914_v0  ;;  %v10027_v36 = vadd.f32 %v4865_v28, %v4741_v29  ;;  %v4370_v0 = vld [vmem:[#allocation14 + $0x298] sm:$0xff]  ;;  %v4622_v28 = vadd.f32 %v9886_v46, %v9828_v42 }
 0x729   :  { %v4747_v13 = vadd.f32 %v9896_v8, %v4622_v28 }
 0x72b   :  { %7709 = vmatmul.msk.f32.gmra.mxu3 %vm4435_vm3, %v4366_v26  ;;  %4915 = vmatmul.f32.gmra.mxu2 %v4429_v35  ;;  %v4374_v35 = vld [vmem:[#allocation14 + $0x2b8] sm:$0xff] }
 0x72e   :  { %v4945_v55 = vpop.f32.mrf.mxu3  ;;  %v4868_v59 = vpop.f32.mrf.mxu2 }
 0x72f   :  { %v10034_v39 = vadd.f32 %v4945_v55, %v9922_v7  ;;  %v10036_v38 = vadd.f32 %v4868_v59, %v4744_v32  ;;  %v4625_v7 = vadd.f32 %v9886_v46, %v9832_v53  ;;  %v4378_v59 = vld [vmem:[#allocation14 + $0x2d8] sm:$0xff] }
 0x731   :  { %v4750_v11 = vadd.f32 %v9904_v24, %v4625_v7 }
 0x733   :  { %7710 = vmatmul.msk.f32.gmra.mxu3 %vm4435_vm3, %v4370_v0 }
 0x736   :  { %v4948_v29 = vpop.f32.mrf.mxu3  ;;  %v4871_v26 = vpop.f32.mrf.mxu2 }
 0x737   :  { %v10043_v54 = vadd.f32 %v4948_v29, %v9930_v51  ;;  %v10045_v23 = vadd.f32 %v4871_v26, %v4747_v13  ;;  %v4628_v51 = vadd.f32 %v9886_v46, %v9836_v43  ;;  %v4382_v29 = vld [vmem:[#allocation14 + $0x2f8] sm:$0xff] }
 0x739   :  { %v4753_v0 = vadd.f32 %v9912_v40, %v4628_v51  ;;  %v4390_v51 = vld [vmem:[#allocation14 + $0x338] sm:$0xff] }
 0x73b   :  { %7711 = vmatmul.msk.f32.gmra.mxu3 %vm4435_vm3, %v4374_v35 }
 0x73e   :  { %v4951_v42 = vpop.f32.mrf.mxu3  ;;  %v4874_v32 = vpop.f32.mrf.mxu2 }
 0x73f   :  { %v10052_v55 = vadd.f32 %v4951_v42, %v9938_v44  ;;  %v10054_v8 = vadd.f32 %v4874_v32, %v4750_v11  ;;  %v4631_v44 = vadd.f32 %v9886_v46, %v9840_v41  ;;  %v4386_v11 = vld [vmem:[#allocation14 + $0x318] sm:$0xff] }
 0x741   :  { %v4756_v26 = vadd.f32 %v9920_v6, %v4631_v44  ;;  %v4394_v44 = vld [vmem:[#allocation14 + $0x358] sm:$0xff] }
 0x743   :  { %7712 = vmatmul.msk.f32.gmra.mxu3 %vm4435_vm3, %v4378_v59 }
 0x746   :  { %v4954_v53 = vpop.f32.mrf.mxu3  ;;  %v4877_v28 = vpop.f32.mrf.mxu2 }
 0x747   :  { %v10061_v13 = vadd.f32 %v4954_v53, %v9946_v33  ;;  %v10063_v24 = vadd.f32 %v4877_v28, %v4753_v0  ;;  %v4634_v33 = vadd.f32 %v9886_v46, %v9844_v49  ;;  %v5044_v49 = vmax.f32 %v10012_v9, 0.0  ;;  %v10088_v53 = vld [vmem:[#allocation11] ss:$0 sm:$0xff] }
 0x749   :  { %v4759_v42 = vadd.f32 %v9928_v34, %v4634_v33 }
 0x74b   :  { %7713 = vmatmul.msk.f32.gmra.mxu3 %vm4435_vm3, %v4382_v29 }
 0x74e   :  { %v4957_v43 = vpop.f32.mrf.mxu3  ;;  %v4880_v35 = vpop.f32.mrf.mxu2 }
 0x74f   :  { %v10070_v7 = vadd.f32 %v4957_v43, %v9954_v50  ;;  %v10072_v40 = vadd.f32 %v4880_v35, %v4756_v26  ;;  %v4637_v50 = vadd.f32 %v9886_v46, %v9848_v63  ;;  %v4640_v26 = vadd.f32 %v9886_v46, %v9852_v1  ;;  %v10096_v43 = vld [vmem:[#allocation12] ss:$0 sm:$0xff] }
 0x750   :  { %v5084_v63 = vmul.f32 %v10088_v53, %v5044_v49 }
 0x751   :  { %v4762_v0 = vadd.f32 %v9936_v16, %v4637_v50  ;;  %v4765_v9 = vadd.f32 %v9944_v56, %v4640_v26  ;;  %v4398_v50 = vld [vmem:[#allocation14 + $0x378] sm:$0xff] }
 0x753   :  { %7714 = vmatmul.msk.f32.gmra.mxu3 %vm4435_vm3, %v4386_v11  ;;  %v10102_v11 = vadd.f32 %v10096_v43, %v5084_v63 }
 0x756   :  { %v4960_v41 = vpop.f32.mrf.mxu3  ;;  %v4883_v32 = vpop.f32.mrf.mxu2 }
 0x757   :  { %v10079_v59 = vadd.f32 %v4960_v41, %v9962_v61  ;;  %v10081_v6 = vadd.f32 %v4883_v32, %v4759_v42 }
 0x75b   :  { %7715 = vmatmul.msk.f32.gmra.mxu3 %vm4435_vm3, %v4390_v51 }
 0x75e   :  { %v4963_v34 = vpop.f32.mrf.mxu3  ;;  %v4886_v28 = vpop.f32.mrf.mxu2 }
 0x75f   :  { %v4964_v29 = vadd.f32 %v4963_v34, %v9970_v45  ;;  %v10091_v61 = vadd.f32 %v4886_v28, %v4762_v0  ;;  %v5045_v45 = vmax.f32 %v10018_v25, 0.0  ;;  %v5046_v34 = vmax.f32 %v10025_v60, 0.0 }
 0x761   :  { %v5053_v35 = vmax.f32 %v4964_v29, 0.0  ;;  %v5085_v56 = vmul.f32 %v10088_v53, %v5045_v45 }
 0x763   :  { %v5093_v16 = vmul.f32 %v10088_v53, %v5053_v35  ;;  %7716 = vmatmul.msk.f32.gmra.mxu3 %vm4435_vm3, %v4394_v44  ;;  %v10117_v25 = vadd.f32 %v10096_v43, %v5085_v56  ;;  %v4598_v44 = vadd.f32 %v9886_v46, %v9738_v3  ;;  %v4402_v35 = vld [vmem:[#allocation14 + $0x398] sm:$0xff]  ;;  %v5047_v3 = vmax.f32 %v10034_v39, 0.0 }
 0x765   :  { %v10106_v33 = vadd.f32 %v10096_v43, %v5093_v16  ;;  %v5086_v16 = vmul.f32 %v10088_v53, %v5046_v34  ;;  %v4723_v60 = vadd.f32 %v9858_v20, %v4598_v44  ;;  %v4601_v20 = vadd.f32 %v9886_v46, %v9768_v10 }
 0x766   :  { %v4966_v1 = vpop.f32.mrf.mxu3  ;;  %v4889_v42 = vpop.f32.mrf.mxu2  ;;  %v5087_v34 = vmul.f32 %v10088_v53, %v5047_v3  ;;  %v4652_v3 = vadd.f32 %v9886_v46, %v9868_v31 }
 0x767   :  { %v5160_v41 = vmax.f32 %v10102_v11, %v10106_v33  ;;  %v4967_v32 = vadd.f32 %v4966_v1, %v9978_v18  ;;  %v10111_v51 = vadd.f32 %v4889_v42, %v4765_v9  ;;  %v10135_v1 = vadd.f32 %v10096_v43, %v5086_v16  ;;  %v5293_v11 = vld [vmem:[#allocation15 + $0xa0] sm:$0xff]  ;;  %v5294_v33 = vld [vmem:[#allocation15 + $0xa8] sm:$0xff] }
 0x768   :  { %v4726_v39 = vadd.f32 %v9862_v48, %v4601_v20  ;;  %v4604_v48 = vadd.f32 %v9886_v46, %v9793_v62 }
 0x769   :  { %v5054_v0 = vmax.f32 %v4967_v32, 0.0 }
 0x76a   :  { %v4729_v20 = vadd.f32 %v9866_v5, %v4604_v48  ;;  %v4607_v5 = vadd.f32 %v9886_v46, %v9807_v22 }
 0x76b   :  { %v5094_v49 = vmul.f32 %v10088_v53, %v5054_v0  ;;  %7717 = vmatmul.msk.f32.gmra.mxu3 %vm4435_vm3, %v4398_v50 }
 0x76c   :  { %v4854_v31 = vadd.f32 %v10001_v52, %v4729_v20  ;;  %v4732_v52 = vadd.f32 %v9870_v12, %v4607_v5  ;;  %v4610_v12 = vadd.f32 %v9886_v46, %v9812_v58 }
 0x76d   :  { %v10121_v28 = vadd.f32 %v10096_v43, %v5094_v49  ;;  %v4406_v49 = vld [vmem:[#allocation14 + $0x3b8] sm:$0xff] }
 0x76e   :  { %v4969_v29 = vpop.f32.mrf.mxu3  ;;  %v10123_v18 = vpop.f32.mrf.mxu2 }
 0x76f   :  { %v5161_v26 = vmax.f32 %v10117_v25, %v10121_v28  ;;  %v4970_v63 = vadd.f32 %v4969_v29, %v9986_v57  ;;  %v4848_v57 = vadd.f32 %v9991_v15, %v4723_v60  ;;  %v10153_v15 = vadd.f32 %v10096_v43, %v5087_v34  ;;  %v5346_v25 = vld [vmem:[#allocation15 + $0xe0] sm:$0xff]  ;;  %v5347_v28 = vld [vmem:[#allocation15 + $0xe8] sm:$0xff] }
 0x771   :  { %v5055_v9 = vmax.f32 %v4970_v63, 0.0  ;;  %v5048_v63 = vmax.f32 %v10043_v54, 0.0 }
 0x773   :  { %v5095_v45 = vmul.f32 %v10088_v53, %v5055_v9  ;;  %7718 = vmatmul.msk.f32.gmra.mxu3 %vm4435_vm3, %v4402_v35  ;;  %v4851_v35 = vadd.f32 %v9996_v30, %v4726_v39  ;;  %v5088_v54 = vmul.f32 %v10088_v53, %v5048_v63 }
 0x775   :  { %v10139_v42 = vadd.f32 %v10096_v43, %v5095_v45  ;;  %v10174_v62 = vadd.f32 %v10096_v43, %v5088_v54 }
 0x776   :  { %v4972_v32 = vpop.f32.mrf.mxu3  ;;  %v10142_v50 = vpop.f32.mrf.mxu2 }
 0x777   :  { %v5162_v56 = vmax.f32 %v10135_v1, %v10139_v42  ;;  %v4973_v0 = vadd.f32 %v4972_v32, %v4848_v57  ;;  %v4410_v57 = vld [vmem:[#allocation14 + $0x3d8] sm:$0xff] }
 0x778   :  { %v6458_v1 = vld [vmem:[#allocation15 + $0x618] sm:$0xff] }
 0x779   :  { %v5056_v29 = vmax.f32 %v4973_v0, 0.0  ;;  %v4777_v0 = vadd.f32 %v9976_v19, %v4652_v3 }
 0x77b   :  { %v5096_v44 = vmul.f32 %v10088_v53, %v5056_v29  ;;  %7719 = vmatmul.msk.f32.gmra.mxu3 %vm4435_vm3, %v4406_v49  ;;  %v5049_v49 = vmax.f32 %v10052_v55, 0.0  ;;  %v4414_v55 = vld [vmem:[#allocation14 + $0x3f8] sm:$0xff] }
 0x77d   :  { %v10157_v10 = vadd.f32 %v10096_v43, %v5096_v44 }
 0x77e   :  { %v4975_v16 = vpop.f32.mrf.mxu3  ;;  %v10160_v9 = vpop.f32.mrf.mxu2 }
 0x77f   :  { %v5163_v60 = vmax.f32 %v10153_v15, %v10157_v10  ;;  %v4976_v45 = vadd.f32 %v4975_v16, %v4851_v35  ;;  %v4655_v35 = vadd.f32 %v9886_v46, %v9872_v27  ;;  %v5089_v16 = vmul.f32 %v10088_v53, %v5049_v49  ;;  %v6561_v15 = vld [vmem:[#allocation15 + $0x680] sm:$0xff]  ;;  %v6566_v10 = vld [vmem:[#allocation15 + $0x6a8] sm:$0xff] }
 0x780   :  { %v4857_v27 = vadd.f32 %v10006_v17, %v4732_v52  ;;  %v4658_v49 = vadd.f32 %v9886_v46, %v9876_v4  ;;  %v4735_v17 = vadd.f32 %v9874_v14, %v4610_v12  ;;  %v4613_v14 = vadd.f32 %v9886_v46, %v9816_v2  ;;  %v10919_v12 = vld [vmem:[#allocation82_spill] sm:$0xff] }
 0x781   :  { %v5057_v32 = vmax.f32 %v4976_v45, 0.0  ;;  %v4780_v22 = vadd.f32 %v9984_v37, %v4655_v35  ;;  %v10195_v3 = vadd.f32 %v10096_v43, %v5089_v16  ;;  %v5052_v2 = vmax.f32 %v10079_v59, 0.0 }
 0x782   :  { %v4783_v58 = vadd.f32 %v9989_v47, %v4658_v49  ;;  %v4860_v4 = vadd.f32 %v10009_v21, %v4735_v17 }
 0x783   :  { %v5097_v30 = vmul.f32 %v10088_v53, %v5057_v32  ;;  %7720 = vmatmul.msk.f32.gmra.mxu3 %vm4435_vm3, %v4410_v57  ;;  %v5050_v57 = vmax.f32 %v10061_v13, 0.0  ;;  %v4418_v13 = vld [vmem:[#allocation14 + $0x418] sm:$0xff]  ;;  %v5092_v17 = vmul.f32 %v10088_v53, %v5052_v2 }
 0x785   :  { %v10178_v34 = vadd.f32 %v10096_v43, %v5097_v30  ;;  %v10247_v59 = vadd.f32 %v10096_v43, %v5092_v17  ;;  %v5197_v17 = vld [vmem:[#allocation15 + $0x50] sm:$0xff] }
 0x786   :  { %v4978_v29 = vpop.f32.mrf.mxu3  ;;  %v4901_v39 = vpop.f32.mrf.mxu2 }
 0x787   :  { %v5164_v44 = vmax.f32 %v10174_v62, %v10178_v34  ;;  %v4979_v63 = vadd.f32 %v4978_v29, %v4854_v31  ;;  %v10185_v19 = vadd.f32 %v4901_v39, %v4777_v0  ;;  %v5090_v31 = vmul.f32 %v10088_v53, %v5050_v57  ;;  %v10918_v57 = vld [vmem:[#allocation108_spill] sm:$0xff]  ;;  %v6669_v62 = vld [vmem:[#allocation15 + $0x710] sm:$0xff] }
 0x789   :  { %v5058_v48 = vmax.f32 %v4979_v63, 0.0  ;;  %v10216_v5 = vadd.f32 %v10096_v43, %v5090_v31  ;;  %v5051_v63 = vmax.f32 %v10070_v7, 0.0 }
 0x78b   :  { %v5098_v45 = vmul.f32 %v10088_v53, %v5058_v48  ;;  %7721 = vmatmul.msk.f32.gmra.mxu3 %vm4435_vm3, %v4414_v55 }
 0x78d   :  { %v10199_v54 = vadd.f32 %v10096_v43, %v5098_v45  ;;  %v4422_v45 = vld [vmem:[#allocation14 + $0x438] sm:$0xff] }
 0x78e   :  { %v4981_v32 = vpop.f32.mrf.mxu3  ;;  %v4904_v20 = vpop.f32.mrf.mxu2 }
 0x78f   :  { %v5165_v30 = vmax.f32 %v10195_v3, %v10199_v54  ;;  %v4982_v0 = vadd.f32 %v4981_v32, %v4857_v27  ;;  %v10206_v37 = vadd.f32 %v4904_v20, %v4780_v22  ;;  %v5091_v22 = vmul.f32 %v10088_v53, %v5051_v63 }
 0x790   :  { %v4738_v27 = vadd.f32 %v10918_v57, %v4613_v14 }
 0x791   :  { %v5059_v29 = vmax.f32 %v4982_v0, 0.0  ;;  %v10234_v21 = vadd.f32 %v10096_v43, %v5091_v22 }
 0x792   :  { %v4863_v0 = vadd.f32 %v10919_v12, %v4738_v27  ;;  %v5201_v27 = vld [vmem:[#allocation15 + $0x70] sm:$0xff]  ;;  %v5202_v12 = vld [vmem:[#allocation15 + $0x78] sm:$0xff] }
 0x793   :  { %v5099_v39 = vmul.f32 %v10088_v53, %v5059_v29  ;;  %7722 = vmatmul.msk.f32.gmra.mxu3 %vm4435_vm3, %v4418_v13  ;;  %v4426_v29 = vld [vmem:[#allocation14 + $0x458] sm:$0xff]  ;;  %5219 = vmatpush.msra.mxu0 %v5201_v27  ;;  %v5189_v27 = vld [vmem:[#allocation15 + $0x10] sm:$0xff] }
 0x794   :  { %5239 = vmatpush.msra.mxu1 %v5202_v12  ;;  %v10920_v12 = vld [vmem:[#allocation66_spill] sm:$0xff] }
 0x795   :  { %v10220_v35 = vadd.f32 %v10096_v43, %v5099_v39 }
 0x796   :  { %v4984_v55 = vpop.f32.mrf.mxu3  ;;  %v4907_v16 = vpop.f32.mrf.mxu2 }
 0x797   :  { %v5166_v48 = vmax.f32 %v10216_v5, %v10220_v35  ;;  %v4985_v52 = vadd.f32 %v4984_v55, %v4860_v4  ;;  %v10227_v47 = vadd.f32 %v4907_v16, %v4783_v58  ;;  %v4430_v16 = vld [vmem:[#allocation14 + $0x478] sm:$0xff]  ;;  %v5613_v35 = vld [vmem:[#allocation15 + $0x230] sm:$0xff] }
 0x798   :  { %v6674_v5 = vld [vmem:[#allocation15 + $0x738] sm:$0xff] }
 0x799   :  { %v5060_v7 = vmax.f32 %v4985_v52, 0.0 }
 0x79b   :  { %v5100_v32 = vmul.f32 %v10088_v53, %v5060_v7  ;;  %7723 = vmatmul.msk.f32.gmra.mxu3 %vm4435_vm3, %v4422_v45 }
 0x79d   :  { %v10238_v20 = vadd.f32 %v10096_v43, %v5100_v32 }
 0x79e   :  { %v4987_v49 = vpop.f32.mrf.mxu3 }
 0x79f   :  { %v5167_v13 = vmax.f32 %v10234_v21, %v10238_v20  ;;  %v4988_v31 = vadd.f32 %v4987_v49, %v4863_v0  ;;  %v6775_v21 = vld [vmem:[#allocation15 + $0x790] sm:$0xff]  ;;  %v5608_v20 = vld [vmem:[#allocation15 + $0x208] sm:$0xff] }
 0x7a1   :  { %v5061_v39 = vmax.f32 %v4988_v31, 0.0  ;;  %v5199_v31 = vld [vmem:[#allocation15 + $0x60] sm:$0xff] }
 0x7a2   :  { %5220 = vmatpush.msra.mxu0 %v5199_v31  ;;  %v5188_v31 = vld [vmem:[#allocation15 + $0x8] sm:$0xff] }
 0x7a3   :  { %v5101_v58 = vmul.f32 %v10088_v53, %v5061_v39  ;;  %7724 = vmatmul.msk.f32.gmra.mxu3 %vm4435_vm3, %v4426_v29  ;;  %v5200_v29 = vld [vmem:[#allocation15 + $0x68] sm:$0xff]  ;;  %v5198_v39 = vld [vmem:[#allocation15 + $0x58] sm:$0xff] }
 0x7a4   :  { %5240 = vmatpush.msra.mxu1 %v5200_v29  ;;  %5221 = vmatpush.msra.mxu0 %v5197_v17 }
 0x7a5   :  { %v10250_v63 = vadd.f32 %v10096_v43, %v5101_v58  ;;  %v5195_v58 = vld [vmem:[#allocation15 + $0x40] sm:$0xff] }
 0x7a6   :  { %v4990_v4 = vpop.f32.mrf.mxu3  ;;  %5241 = vmatpush.msra.mxu1 %v5198_v39  ;;  %5222 = vmatpush.msra.mxu0 %v5195_v58 }
 0x7a7   :  { %v5168_v55 = vmax.f32 %v10247_v59, %v10250_v63  ;;  %v4991_v29 = vadd.f32 %v4990_v4, %v10027_v36  ;;  %v6774_v59 = vld [vmem:[#allocation15 + $0x788] sm:$0xff]  ;;  %v5660_v63 = vld [vmem:[#allocation15 + $0x240] sm:$0xff] }
 0x7a9   :  { %v5062_v39 = vmax.f32 %v4991_v29, 0.0 }
 0x7ab   :  { %7725 = vmatmul.msk.f32.gmra.mxu3 %vm4435_vm3, %v4430_v16  ;;  %v5196_v16 = vld [vmem:[#allocation15 + $0x48] sm:$0xff] }
 0x7ac   :  { %5242 = vmatpush.msra.mxu1 %v5196_v16 }
 0x7ae   :  { %v4993_v14 = vpop.f32.mrf.mxu3 }
 0x7af   :  { %v10256_v52 = vadd.f32 %v4993_v14, %v10036_v38  ;;  %v5194_v14 = vld [vmem:[#allocation15 + $0x38] sm:$0xff] }
 0x7b0   :  { %5281 = vmatpush.msrb.mxu1 %v5194_v14 }
 0x7b1   :  { %v5063_v4 = vmax.f32 %v10256_v52, 0.0 }
 0x7b6   :  { %v4996_v45 = vpop.f32.mrf.mxu3 }
 0x7b7   :  { %v10259_v22 = vadd.f32 %v4996_v45, %v10045_v23  ;;  %v5192_v45 = vld [vmem:[#allocation15 + $0x28] sm:$0xff] }
 0x7b8   :  { %5282 = vmatpush.msrb.mxu1 %v5192_v45 }
 0x7be   :  { %v4999_v7 = vpop.f32.mrf.mxu3 }
 0x7bf   :  { %v10262_v57 = vadd.f32 %v4999_v7, %v10054_v8 }
 0x7c6   :  { %v5002_v32 = vpop.f32.mrf.mxu3 }
 0x7c7   :  { %v10265_v2 = vadd.f32 %v5002_v32, %v10063_v24  ;;  %v5190_v32 = vld [vmem:[#allocation15 + $0x18] sm:$0xff] }
 0x7c8   :  { %5283 = vmatpush.msrb.mxu1 %v5190_v32 }
 0x7ca   :  { %5284 = vmatpush.msrb.mxu1 %v5188_v31 }
 0x7ce   :  { %v5005_v0 = vpop.f32.mrf.mxu3 }
 0x7cf   :  { %v10268_v38 = vadd.f32 %v5005_v0, %v10072_v40  ;;  %v5193_v40 = vld [vmem:[#allocation15 + $0x30] sm:$0xff] }
 0x7d0   :  { %5261 = vmatpush.msrb.mxu0 %v5193_v40  ;;  %v10922_v40 = vld [vmem:[#allocation110_spill] sm:$0xff] }
 0x7d1   :  { %v4646_v14 = vadd.f32 %v9886_v46, %v10922_v40 }
 0x7d6   :  { %v5008_v49 = vpop.f32.mrf.mxu3 }
 0x7d7   :  { %v10271_v23 = vadd.f32 %v5008_v49, %v10081_v6  ;;  %v5191_v6 = vld [vmem:[#allocation15 + $0x20] sm:$0xff] }
 0x7d8   :  { %5262 = vmatpush.msrb.mxu0 %v5191_v6  ;;  %v5187_v49 = vld [vmem:[#allocation15] sm:$0xff] }
 0x7da   :  { %5263 = vmatpush.msrb.mxu0 %v5189_v27 }
 0x7dc   :  { %5264 = vmatpush.msrb.mxu0 %v5187_v49  ;;  %v10924_v49 = vld [vmem:[#allocation64_spill] sm:$0xff] }
 0x7dd   :  { %v4649_v31 = vadd.f32 %v9886_v46, %v10924_v49 }
 0x7de   :  { %v5011_v8 = vpop.f32.mrf.mxu3 }
 0x7df   :  { %v10274_v24 = vadd.f32 %v5011_v8, %v10091_v61  ;;  %v4643_v61 = vadd.f32 %v9886_v46, %v10920_v12  ;;  %v10921_v8 = vld [vmem:[#allocation104_spill] sm:$0xff] }
 0x7e1   :  { %v4768_v17 = vadd.f32 %v10921_v8, %v4643_v61  ;;  %v5069_v54 = vmax.f32 %v10274_v24, 0.0 }
 0x7e3   :  { %v4893_v58 = vadd.f32 %v10123_v18, %v4768_v17  ;;  %v5103_v17 = vmul.f32 %v10088_v53, %v5063_v4  ;;  %v5292_v4 = vld [vmem:[#allocation15 + $0x98] sm:$0xff]  ;;  %v5109_v24 = vmul.f32 %v10088_v53, %v5069_v54 }
 0x7e5   :  { %v5143_v46 = vadd.f32 %v10096_v43, %v5103_v17  ;;  %v5065_v17 = vmax.f32 %v10262_v57, 0.0  ;;  %v6462_v57 = vld [vmem:[#allocation15 + $0x638] sm:$0xff] }
 0x7e6   :  { %v5014_v7 = vpop.f32.mrf.mxu3  ;;  %6498 = vmatpush.msra.mxu3 %v6462_v57 }
 0x7e7   :  { %v10279_v0 = vadd.f32 %v5014_v7, %v10111_v51  ;;  %v5102_v51 = vmul.f32 %v10088_v53, %v5062_v39  ;;  %v10923_v7 = vld [vmem:[#allocation58_spill] sm:$0xff] }
 0x7e8   :  { %v4771_v27 = vadd.f32 %v10923_v7, %v4646_v14  ;;  %v5295_v14 = vld [vmem:[#allocation15 + $0xb0] sm:$0xff] }
 0x7e9   :  { %v5142_v36 = vadd.f32 %v10096_v43, %v5102_v51  ;;  %v5064_v51 = vmax.f32 %v10259_v22, 0.0 }
 0x7ea   :  { %v4896_v18 = vadd.f32 %v10142_v50, %v4771_v27 }
 0x7eb   :  { %v5104_v22 = vmul.f32 %v10088_v53, %v5064_v51  ;;  %v5342_v51 = vld [vmem:[#allocation15 + $0xc0] sm:$0xff] }
 0x7ee   :  { %v5017_v16 = vpop.f32.mrf.mxu3 }
 0x7ef   :  { %v5018_v6 = vadd.f32 %v5017_v16, %v4893_v58  ;;  %v10925_v16 = vld [vmem:[#allocation102_spill] sm:$0xff] }
 0x7f0   :  { %v4774_v52 = vadd.f32 %v10925_v16, %v4649_v31  ;;  %v5348_v31 = vld [vmem:[#allocation15 + $0xf0] sm:$0xff] }
 0x7f1   :  { %v5071_v45 = vmax.f32 %v5018_v6, 0.0  ;;  %v5296_v6 = vld [vmem:[#allocation15 + $0xb8] sm:$0xff] }
 0x7f2   :  { %v4899_v7 = vadd.f32 %v10160_v9, %v4774_v52 }
 0x7f3   :  { %v5111_v32 = vmul.f32 %v10088_v53, %v5071_v45 }
 0x7f5   :  { %v5151_v12 = vadd.f32 %v10096_v43, %v5111_v32 }
 0x7f6   :  { %v5020_v61 = vpop.f32.mrf.mxu3 }
 0x7f7   :  { %v5169_v29 = vmax.f32 %v5142_v36, %v5151_v12  ;;  %v5021_v8 = vadd.f32 %v5020_v61, %v4896_v18  ;;  %v5291_v36 = vld [vmem:[#allocation15 + $0x90] sm:$0xff]  ;;  %v5289_v18 = vld [vmem:[#allocation15 + $0x80] sm:$0xff]  ;;  %v5290_v61 = vld [vmem:[#allocation15 + $0x88] sm:$0xff] }
 0x7f9   :  { %v10299_v39 = vmax.f32 %v5160_v41, %v5169_v29  ;;  %v5072_v58 = vmax.f32 %v5021_v8, 0.0  ;;  %v5349_v29 = vld [vmem:[#allocation15 + $0xf8] sm:$0xff]  ;;  %v5144_v8 = vadd.f32 %v10096_v43, %v5104_v22 }
 0x7fb   :  { %v5112_v40 = vmul.f32 %v10088_v53, %v5072_v58  ;;  %v5204_v50 = vrot.slane %v10299_v39, 2 }
 0x7fd   :  { %v5152_v45 = vadd.f32 %v10096_v43, %v5112_v40  ;;  %7726 = vmatmul.msk.f32.vlgmr.msra.gmra.mxu0 %vm606_vm2, %v5204_v50  ;;  %7727 = vmatmul.msk.f32.vlgmr.msra.gmra.mxu1 %vm606_vm2, %v5204_v50  ;;  %v5344_v40 = vld [vmem:[#allocation15 + $0xd0] sm:$0xff]  ;;  %v5345_v50 = vld [vmem:[#allocation15 + $0xd8] sm:$0xff] }
 0x7fe   :  { %v5023_v41 = vpop.f32.mrf.mxu3  ;;  %5312 = vmatpush.msra.mxu0 %v5295_v14  ;;  %5332 = vmatpush.msra.mxu1 %v5296_v6  ;;  %v5105_v14 = vmul.f32 %v10088_v53, %v5065_v17 }
 0x7ff   :  { %v5170_v27 = vmax.f32 %v5143_v46, %v5152_v45  ;;  %v5024_v32 = vadd.f32 %v5023_v41, %v4899_v7  ;;  %v5343_v45 = vld [vmem:[#allocation15 + $0xc8] sm:$0xff]  ;;  %v5402_v41 = vld [vmem:[#allocation15 + $0x138] sm:$0xff] }
 0x800   :  { %5313 = vmatpush.msra.mxu0 %v5293_v11  ;;  %5333 = vmatpush.msra.mxu1 %v5294_v33  ;;  %v6460_v7 = vld [vmem:[#allocation15 + $0x628] sm:$0xff]  ;;  %v5297_v11 = vrot.slane %v10299_v39, 4  ;;  %v5401_v33 = vld [vmem:[#allocation15 + $0x130] sm:$0xff]  ;;  %v5145_v42 = vadd.f32 %v10096_v43, %v5105_v14  ;;  %v5452_v14 = vld [vmem:[#allocation15 + $0x160] sm:$0xff] }
 0x801   :  { %v10314_v9 = vmax.f32 %v5161_v26, %v5170_v27  ;;  %v5073_v12 = vmax.f32 %v5024_v32, 0.0  ;;  %6499 = vmatpush.msra.mxu3 %v6460_v7  ;;  %v6567_v27 = vld [vmem:[#allocation15 + $0x6b0] sm:$0xff]  ;;  %v6564_v7 = vld [vmem:[#allocation15 + $0x698] sm:$0xff] }
 0x802   :  { %5314 = vmatpush.msra.mxu0 %v5291_v36  ;;  %5334 = vmatpush.msra.mxu1 %v5292_v4  ;;  %v5399_v36 = vld [vmem:[#allocation15 + $0x120] sm:$0xff]  ;;  %v5400_v4 = vld [vmem:[#allocation15 + $0x128] sm:$0xff] }
 0x803   :  { %v5113_v49 = vmul.f32 %v10088_v53, %v5073_v12  ;;  %v6565_v12 = vld [vmem:[#allocation15 + $0x6a0] sm:$0xff]  ;;  %6584 = vmatpush.msra.mxu2 %v6567_v27  ;;  %6500 = vmatpush.msra.mxu3 %v6458_v1  ;;  %v5450_v27 = vld [vmem:[#allocation15 + $0x150] sm:$0xff]  ;;  %v5451_v1 = vld [vmem:[#allocation15 + $0x158] sm:$0xff] }
 0x804   :  { %5315 = vmatpush.msra.mxu0 %v5289_v18  ;;  %5335 = vmatpush.msra.mxu1 %v5290_v61  ;;  %v6456_v18 = vld [vmem:[#allocation15 + $0x608] sm:$0xff] }
 0x805   :  { %v5153_v58 = vadd.f32 %v10096_v43, %v5113_v49  ;;  %7728 = vmatmul.msk.f32.vlgmr.msrb.gmra.mxu0 %vm606_vm2, %v10299_v39  ;;  %7729 = vmatmul.msk.f32.vlgmr.msrb.gmra.mxu1 %vm606_vm2, %v10299_v39 }
 0x806   :  { %v5026_v26 = vpop.f32.mrf.mxu3  ;;  %5365 = vmatpush.msrb.mxu0 %v5348_v31  ;;  %5385 = vmatpush.msrb.mxu1 %v5349_v29  ;;  %v5397_v31 = vld [vmem:[#allocation15 + $0x110] sm:$0xff]  ;;  %v5398_v29 = vld [vmem:[#allocation15 + $0x118] sm:$0xff] }
 0x807   :  { %v5171_v16 = vmax.f32 %v5144_v8, %v5153_v58  ;;  %v5027_v52 = vadd.f32 %v5026_v26, %v10185_v19  ;;  %6585 = vmatpush.msra.mxu2 %v6565_v12  ;;  %6501 = vmatpush.msra.mxu3 %v6456_v18  ;;  %v5449_v12 = vld [vmem:[#allocation15 + $0x148] sm:$0xff] }
 0x808   :  { %5366 = vmatpush.msrb.mxu0 %v5346_v25  ;;  %5386 = vmatpush.msrb.mxu1 %v5347_v28  ;;  %v5395_v25 = vld [vmem:[#allocation15 + $0x100] sm:$0xff]  ;;  %v5396_v28 = vld [vmem:[#allocation15 + $0x108] sm:$0xff] }
 0x809   :  { %v10329_v6 = vmax.f32 %v5162_v56, %v5171_v16  ;;  %v5074_v46 = vmax.f32 %v5027_v52, 0.0  ;;  %v5066_v56 = vmax.f32 %v10265_v2, 0.0  ;;  %v6563_v2 = vld [vmem:[#allocation15 + $0x690] sm:$0xff]  ;;  %v5350_v16 = vrot.slane %v10299_v39, 6  ;;  %v5453_v39 = vld [vmem:[#allocation15 + $0x168] sm:$0xff] }
 0x80a   :  { %5367 = vmatpush.msrb.mxu0 %v5344_v40  ;;  %5387 = vmatpush.msrb.mxu1 %v5345_v50  ;;  %v5454_v52 = vld [vmem:[#allocation15 + $0x170] sm:$0xff]  ;;  %v5455_v40 = vld [vmem:[#allocation15 + $0x178] sm:$0xff]  ;;  %v5067_v50 = vmax.f32 %v10268_v38, 0.0 }
 0x80b   :  { %v5114_v19 = vmul.f32 %v10088_v53, %v5074_v46  ;;  %v5106_v8 = vmul.f32 %v10088_v53, %v5066_v56  ;;  %6586 = vmatpush.msra.mxu2 %v6563_v2  ;;  %v6562_v56 = vld [vmem:[#allocation15 + $0x688] sm:$0xff] }
 0x80c   :  { %5368 = vmatpush.msrb.mxu0 %v5342_v51  ;;  %5388 = vmatpush.msrb.mxu1 %v5343_v45  ;;  %v4910_v51 = vpop.f32.mrf.mxu2  ;;  %v6673_v45 = vld [vmem:[#allocation15 + $0x730] sm:$0xff] }
 0x80d   :  { %v5154_v32 = vadd.f32 %v10096_v43, %v5114_v19  ;;  %7730 = vmatmul.msk.f32.vlgmr.msra.gmra.mxu0 %vm606_vm2, %v5297_v11  ;;  %7731 = vmatmul.msk.f32.vlgmr.msra.gmra.mxu1 %vm606_vm2, %v5297_v11  ;;  %v10352_v19 = vld [vmem:[#allocation9] ss:$0 sm:$0xff] }
 0x80e   :  { %v5029_v22 = vpop.f32.mrf.mxu3  ;;  %5418 = vmatpush.msra.mxu0 %v5401_v33  ;;  %5438 = vmatpush.msra.mxu1 %v5402_v41  ;;  %v10926_v11 = vld [vmem:[#allocation62_spill] sm:$0xff] }
 0x80f   :  { %v5172_v61 = vmax.f32 %v5145_v42, %v5154_v32  ;;  %v5030_v49 = vadd.f32 %v5029_v22, %v10206_v37  ;;  %v6568_v37 = vld [vmem:[#allocation15 + $0x6b8] sm:$0xff]  ;;  %v4661_v33 = vadd.f32 %v10352_v19, %v10926_v11  ;;  %6587 = vmatpush.msra.mxu2 %v6561_v15  ;;  %v6671_v42 = vld [vmem:[#allocation15 + $0x720] sm:$0xff]  ;;  %v5107_v32 = vmul.f32 %v10088_v53, %v5067_v50 }
 0x810   :  { %5419 = vmatpush.msra.mxu0 %v5399_v36  ;;  %5439 = vmatpush.msra.mxu1 %v5400_v4  ;;  %v5448_v22 = vld [vmem:[#allocation15 + $0x140] sm:$0xff]  ;;  %v5561_v11 = vld [vmem:[#allocation15 + $0x1f8] sm:$0xff] }
 0x811   :  { %v10343_v17 = vmax.f32 %v5163_v60, %v5172_v61  ;;  %v5075_v58 = vmax.f32 %v5030_v49, 0.0  ;;  %6604 = vmatpush.msrb.mxu3 %v6568_v37  ;;  %v5146_v60 = vadd.f32 %v10096_v43, %v5106_v8  ;;  %6690 = vmatpush.msrb.mxu2 %v6673_v45  ;;  %v5507_v49 = vld [vmem:[#allocation15 + $0x1b0] sm:$0xff]  ;;  %v5147_v34 = vadd.f32 %v10096_v43, %v5107_v32  ;;  %v5505_v8 = vld [vmem:[#allocation15 + $0x1a0] sm:$0xff] }
 0x812   :  { %5420 = vmatpush.msra.mxu0 %v5397_v31  ;;  %5440 = vmatpush.msra.mxu1 %v5398_v29  ;;  %v5508_v31 = vld [vmem:[#allocation15 + $0x1b8] sm:$0xff]  ;;  %v5456_v45 = vrot.slane %v10314_v9, 2 }
 0x813   :  { %v5115_v26 = vmul.f32 %v10088_v53, %v5075_v58  ;;  %6605 = vmatpush.msrb.mxu3 %v6566_v10  ;;  %6691 = vmatpush.msrb.mxu2 %v6671_v42  ;;  %v5506_v58 = vld [vmem:[#allocation15 + $0x1a8] sm:$0xff]  ;;  %v10928_v37 = vld [vmem:[#allocation106_spill] sm:$0xff] }
 0x814   :  { %5421 = vmatpush.msra.mxu0 %v5395_v25  ;;  %5441 = vmatpush.msra.mxu1 %v5396_v28  ;;  %v6667_v28 = vld [vmem:[#allocation15 + $0x700] sm:$0xff]  ;;  %v4913_v15 = vpop.f32.mrf.mxu2 }
 0x815   :  { %v5155_v57 = vadd.f32 %v10096_v43, %v5115_v26  ;;  %7732 = vmatmul.msk.f32.vlgmr.msrb.gmra.mxu0 %vm606_vm2, %v5350_v16  ;;  %7733 = vmatmul.msk.f32.vlgmr.msrb.gmra.mxu1 %vm606_vm2, %v5350_v16  ;;  %v4664_v26 = vadd.f32 %v10352_v19, %v10928_v37 }
 0x816   :  { %v5032_v46 = vpop.f32.mrf.mxu3  ;;  %5471 = vmatpush.msrb.mxu0 %v5454_v52  ;;  %5491 = vmatpush.msrb.mxu1 %v5455_v40  ;;  %v5503_v52 = vld [vmem:[#allocation15 + $0x190] sm:$0xff]  ;;  %v5504_v40 = vld [vmem:[#allocation15 + $0x198] sm:$0xff] }
 0x817   :  { %v5173_v38 = vmax.f32 %v5146_v60, %v5155_v57  ;;  %v5033_v41 = vadd.f32 %v5032_v46, %v10227_v47  ;;  %6606 = vmatpush.msrb.mxu3 %v6564_v7  ;;  %v10927_v47 = vld [vmem:[#allocation56_spill] sm:$0xff]  ;;  %6692 = vmatpush.msrb.mxu2 %v6669_v62  ;;  %v5560_v7 = vld [vmem:[#allocation15 + $0x1f0] sm:$0xff] }
 0x818   :  { %5472 = vmatpush.msrb.mxu0 %v5452_v14  ;;  %5492 = vmatpush.msrb.mxu1 %v5453_v39  ;;  %v4786_v18 = vadd.f32 %v10927_v47, %v4661_v33  ;;  %v5501_v57 = vld [vmem:[#allocation15 + $0x180] sm:$0xff]  ;;  %v5502_v14 = vld [vmem:[#allocation15 + $0x188] sm:$0xff] }
 0x819   :  { %v10361_v36 = vmax.f32 %v5164_v44, %v5173_v38  ;;  %v5076_v4 = vmax.f32 %v5033_v41, 0.0  ;;  %6607 = vmatpush.msrb.mxu3 %v6562_v56  ;;  %v5068_v44 = vmax.f32 %v10271_v23, 0.0  ;;  %6693 = vmatpush.msrb.mxu2 %v6667_v28  ;;  %v10929_v39 = vld [vmem:[#allocation101_spill] sm:$0xff]  ;;  %v5558_v38 = vld [vmem:[#allocation15 + $0x1e0] sm:$0xff] }
 0x81a   :  { %5473 = vmatpush.msrb.mxu0 %v5450_v27  ;;  %5493 = vmatpush.msrb.mxu1 %v5451_v1  ;;  %v4911_v2 = vadd.f32 %v4910_v51, %v4786_v18  ;;  %v4789_v46 = vadd.f32 %v10929_v39, %v4664_v26  ;;  %v5559_v41 = vld [vmem:[#allocation15 + $0x1e8] sm:$0xff]  ;;  %v5554_v18 = vld [vmem:[#allocation15 + $0x1c0] sm:$0xff]  ;;  %v6779_v28 = vld [vmem:[#allocation15 + $0x7b0] sm:$0xff] }
 0x81b   :  { %v5116_v61 = vmul.f32 %v10088_v53, %v5076_v4  ;;  %v5108_v10 = vmul.f32 %v10088_v53, %v5068_v44  ;;  %v10930_v1 = vld [vmem:[#allocation60_spill] sm:$0xff]  ;;  %v5556_v4 = vld [vmem:[#allocation15 + $0x1d0] sm:$0xff] }
 0x81c   :  { %5474 = vmatpush.msrb.mxu0 %v5448_v22  ;;  %5494 = vmatpush.msrb.mxu1 %v5449_v12  ;;  %v4914_v33 = vadd.f32 %v4913_v15, %v4789_v46  ;;  %v4667_v42 = vadd.f32 %v10352_v19, %v10930_v1  ;;  %v5557_v22 = vld [vmem:[#allocation15 + $0x1d8] sm:$0xff]  ;;  %v5611_v26 = vld [vmem:[#allocation15 + $0x220] sm:$0xff]  ;;  %v5609_v15 = vld [vmem:[#allocation15 + $0x210] sm:$0xff] }
 0x81d   :  { %v5156_v29 = vadd.f32 %v10096_v43, %v5116_v61  ;;  %7734 = vmatmul.msk.f32.vlgmr.msra.gmra.mxu0 %vm606_vm2, %v10314_v9  ;;  %7735 = vmatmul.msk.f32.vlgmr.msra.gmra.mxu1 %vm606_vm2, %v10314_v9  ;;  %v5148_v3 = vadd.f32 %v10096_v43, %v5108_v10  ;;  %v5555_v61 = vld [vmem:[#allocation15 + $0x1c8] sm:$0xff]  ;;  %v10931_v19 = vld [vmem:[#allocation47_spill] sm:$0xff]  ;;  %v5662_v1 = vld [vmem:[#allocation15 + $0x250] sm:$0xff] }
 0x81e   :  { %v5035_v25 = vpop.f32.mrf.mxu3  ;;  %5524 = vmatpush.msra.mxu0 %v5507_v49  ;;  %5544 = vmatpush.msra.mxu1 %v5508_v31  ;;  %v4916_v49 = vpop.f32.mrf.mxu2  ;;  %v4792_v31 = vadd.f32 %v10931_v19, %v4667_v42  ;;  %v6668_v39 = vld [vmem:[#allocation15 + $0x708] sm:$0xff]  ;;  %v5717_v19 = vld [vmem:[#allocation15 + $0x2a0] sm:$0xff] }
 0x81f   :  { %v5174_v16 = vmax.f32 %v5147_v34, %v5156_v29  ;;  %v5036_v23 = vadd.f32 %v5035_v25, %v4911_v2  ;;  %v5509_v34 = vrot.slane %v10314_v9, 4  ;;  %v5149_v29 = vadd.f32 %v10096_v43, %v5109_v24  ;;  %v6672_v25 = vld [vmem:[#allocation15 + $0x728] sm:$0xff]  ;;  %v5719_v24 = vld [vmem:[#allocation15 + $0x2b0] sm:$0xff] }
 0x820   :  { %5525 = vmatpush.msra.mxu0 %v5505_v8  ;;  %5545 = vmatpush.msra.mxu1 %v5506_v58  ;;  %v5070_v2 = vmax.f32 %v10279_v0, 0.0  ;;  %v4917_v58 = vadd.f32 %v4916_v49, %v4792_v31  ;;  %v6670_v0 = vld [vmem:[#allocation15 + $0x718] sm:$0xff]  ;;  %v5668_v49 = vrot.slane %v10329_v6, 2  ;;  %v6991_v31 = vld [vmem:[#allocation15 + $0x8b0] sm:$0xff] }
 0x821   :  { %v10378_v60 = vmax.f32 %v5165_v30, %v5174_v16  ;;  %v5077_v50 = vmax.f32 %v5036_v23, 0.0  ;;  %v5612_v16 = vld [vmem:[#allocation15 + $0x228] sm:$0xff] }
 0x822   :  { %5526 = vmatpush.msra.mxu0 %v5503_v52  ;;  %5546 = vmatpush.msra.mxu1 %v5504_v40  ;;  %v6777_v40 = vld [vmem:[#allocation15 + $0x7a0] sm:$0xff]  ;;  %v5110_v10 = vmul.f32 %v10088_v53, %v5070_v2  ;;  %v6987_v2 = vld [vmem:[#allocation15 + $0x890] sm:$0xff] }
 0x823   :  { %v5117_v51 = vmul.f32 %v10088_v53, %v5077_v50 }
 0x824   :  { %5527 = vmatpush.msra.mxu0 %v5501_v57  ;;  %5547 = vmatpush.msra.mxu1 %v5502_v14  ;;  %v5610_v14 = vld [vmem:[#allocation15 + $0x218] sm:$0xff] }
 0x825   :  { %v5157_v30 = vadd.f32 %v10096_v43, %v5117_v51  ;;  %7736 = vmatmul.msk.f32.vlgmr.msrb.gmra.mxu0 %vm606_vm2, %v5456_v45  ;;  %7737 = vmatmul.msk.f32.vlgmr.msrb.gmra.mxu1 %vm606_vm2, %v5456_v45  ;;  %v5562_v51 = vrot.slane %v10314_v9, 6  ;;  %v5607_v45 = vld [vmem:[#allocation15 + $0x200] sm:$0xff] }
 0x826   :  { %v5038_v27 = vpop.f32.mrf.mxu3  ;;  %5577 = vmatpush.msrb.mxu0 %v5560_v7  ;;  %5597 = vmatpush.msrb.mxu1 %v5561_v11  ;;  %v6780_v11 = vld [vmem:[#allocation15 + $0x7b8] sm:$0xff]  ;;  %v6773_v9 = vld [vmem:[#allocation15 + $0x780] sm:$0xff] }
 0x827   :  { %v5175_v56 = vmax.f32 %v5148_v3, %v5157_v30  ;;  %v5039_v32 = vadd.f32 %v5038_v27, %v4914_v33  ;;  %v5667_v3 = vld [vmem:[#allocation15 + $0x278] sm:$0xff]  ;;  %v6778_v30 = vld [vmem:[#allocation15 + $0x7a8] sm:$0xff]  ;;  %v6885_v33 = vld [vmem:[#allocation15 + $0x830] sm:$0xff] }
 0x828   :  { %5578 = vmatpush.msrb.mxu0 %v5558_v38  ;;  %5598 = vmatpush.msrb.mxu1 %v5559_v41  ;;  %v5665_v41 = vld [vmem:[#allocation15 + $0x268] sm:$0xff]  ;;  %v6776_v27 = vld [vmem:[#allocation15 + $0x798] sm:$0xff] }
 0x829   :  { %v10394_v12 = vmax.f32 %v5166_v48, %v5175_v56  ;;  %v5078_v47 = vmax.f32 %v5039_v32, 0.0  ;;  %v5614_v48 = vld [vmem:[#allocation15 + $0x238] sm:$0xff]  ;;  %v6883_v56 = vld [vmem:[#allocation15 + $0x820] sm:$0xff] }
 0x82a   :  { %5579 = vmatpush.msrb.mxu0 %v5556_v4  ;;  %5599 = vmatpush.msrb.mxu1 %v5557_v22  ;;  %v5663_v32 = vld [vmem:[#allocation15 + $0x258] sm:$0xff]  ;;  %v5661_v4 = vld [vmem:[#allocation15 + $0x248] sm:$0xff] }
 0x82b   :  { %v5118_v62 = vmul.f32 %v10088_v53, %v5078_v47  ;;  %7775 = vmatmul.msk.f32.vlgmr.msra.gmra.mxu3 %vm606_vm2, %v10394_v12  ;;  %v6569_v44 = vrot.slane %v10394_v12, 4  ;;  %v6886_v22 = vld [vmem:[#allocation15 + $0x838] sm:$0xff]  ;;  %v6879_v47 = vld [vmem:[#allocation15 + $0x800] sm:$0xff] }
 0x82c   :  { %5580 = vmatpush.msrb.mxu0 %v5554_v18  ;;  %5600 = vmatpush.msrb.mxu1 %v5555_v61  ;;  %v5720_v18 = vld [vmem:[#allocation15 + $0x2b8] sm:$0xff]  ;;  %v6884_v61 = vld [vmem:[#allocation15 + $0x828] sm:$0xff] }
 0x82d   :  { %v5158_v8 = vadd.f32 %v10096_v43, %v5118_v62  ;;  %7738 = vmatmul.msk.f32.vlgmr.msra.gmra.mxu0 %vm606_vm2, %v5509_v34  ;;  %7739 = vmatmul.msk.f32.vlgmr.msra.gmra.mxu1 %vm606_vm2, %v5509_v34  ;;  %v5718_v62 = vld [vmem:[#allocation15 + $0x2a8] sm:$0xff]  ;;  %v6882_v34 = vld [vmem:[#allocation15 + $0x818] sm:$0xff] }
 0x82e   :  { %7778 = vmatmul.msk.f32.vlgmr.msra.gmra.mxu2 %vm606_vm2, %v6569_v44  ;;  %v5041_v37 = vpop.f32.mrf.mxu3  ;;  %6710 = vmatpush.msra.mxu3 %v6674_v5  ;;  %v6989_v5 = vld [vmem:[#allocation15 + $0x8a0] sm:$0xff] }
 0x82f   :  { %v5176_v23 = vmax.f32 %v5149_v29, %v5158_v8  ;;  %v5042_v52 = vadd.f32 %v5041_v37, %v4917_v58  ;;  %5630 = vmatpush.msra.mxu0 %v5613_v35  ;;  %5650 = vmatpush.msra.mxu1 %v5614_v48  ;;  %v5716_v35 = vld [vmem:[#allocation15 + $0x298] sm:$0xff]  ;;  %v6880_v48 = vld [vmem:[#allocation15 + $0x808] sm:$0xff]  ;;  %v5713_v29 = vld [vmem:[#allocation15 + $0x280] sm:$0xff] }
 0x830   :  { %6711 = vmatpush.msra.mxu3 %v6672_v25  ;;  %6796 = vmatpush.msra.mxu2 %v6779_v28  ;;  %v5714_v8 = vld [vmem:[#allocation15 + $0x288] sm:$0xff]  ;;  %v6992_v58 = vld [vmem:[#allocation15 + $0x8b8] sm:$0xff]  ;;  %v6985_v25 = vld [vmem:[#allocation15 + $0x880] sm:$0xff]  ;;  %v5721_v28 = vrot.slane %v10329_v6, 4 }
 0x831   :  { %v10412_v50 = vmax.f32 %v5167_v13, %v5176_v23  ;;  %v5079_v57 = vmax.f32 %v5042_v52, 0.0  ;;  %5631 = vmatpush.msra.mxu0 %v5611_v26  ;;  %5651 = vmatpush.msra.mxu1 %v5612_v16  ;;  %v5150_v13 = vadd.f32 %v10096_v43, %v5110_v10  ;;  %v5772_v26 = vld [vmem:[#allocation15 + $0x2f0] sm:$0xff]  ;;  %v5773_v16 = vld [vmem:[#allocation15 + $0x2f8] sm:$0xff]  ;;  %v6990_v23 = vld [vmem:[#allocation15 + $0x8a8] sm:$0xff] }
 0x832   :  { %6712 = vmatpush.msra.mxu3 %v6670_v0  ;;  %6797 = vmatpush.msra.mxu2 %v6777_v40  ;;  %v5770_v52 = vld [vmem:[#allocation15 + $0x2e0] sm:$0xff]  ;;  %v5771_v0 = vld [vmem:[#allocation15 + $0x2e8] sm:$0xff]  ;;  %v6988_v40 = vld [vmem:[#allocation15 + $0x898] sm:$0xff] }
 0x833   :  { %v5119_v46 = vmul.f32 %v10088_v53, %v5079_v57  ;;  %7779 = vmatmul.msk.f32.vlgmr.msrb.gmra.mxu3 %vm606_vm2, %v6569_v44  ;;  %5632 = vmatpush.msra.mxu0 %v5609_v15  ;;  %v5666_v53 = vld [vmem:[#allocation15 + $0x270] sm:$0xff]  ;;  %v6781_v42 = vrot.slane %v10412_v50, 4  ;;  %v5769_v10 = vld [vmem:[#allocation15 + $0x2d8] sm:$0xff]  ;;  %v6986_v57 = vld [vmem:[#allocation15 + $0x888] sm:$0xff] }
 0x834   :  { %5652 = vmatpush.msra.mxu1 %v5610_v14  ;;  %6713 = vmatpush.msra.mxu3 %v6668_v39  ;;  %v5715_v44 = vld [vmem:[#allocation15 + $0x290] sm:$0xff]  ;;  %v5766_v14 = vld [vmem:[#allocation15 + $0x2c0] sm:$0xff]  ;;  %v5767_v39 = vld [vmem:[#allocation15 + $0x2c8] sm:$0xff] }
 0x835   :  { %v5159_v7 = vadd.f32 %v10096_v43, %v5119_v46  ;;  %7740 = vmatmul.msk.f32.vlgmr.msrb.gmra.mxu0 %vm606_vm2, %v5562_v51  ;;  %7741 = vmatmul.msk.f32.vlgmr.msrb.gmra.mxu1 %vm606_vm2, %v5562_v51  ;;  %v5664_v43 = vld [vmem:[#allocation15 + $0x260] sm:$0xff]  ;;  %v5768_v15 = vld [vmem:[#allocation15 + $0x2d0] sm:$0xff]  ;;  %v5774_v46 = vrot.slane %v10329_v6, 6 }
 0x836   :  { %7782 = vmatmul.msk.f32.vlgmr.msrb.gmra.mxu2 %vm606_vm2, %v10412_v50  ;;  %5633 = vmatpush.msra.mxu0 %v5607_v45  ;;  %v5825_v51 = vld [vmem:[#allocation15 + $0x330] sm:$0xff]  ;;  %v5826_v45 = vld [vmem:[#allocation15 + $0x338] sm:$0xff] }
 0x837   :  { %v5177_v54 = vmax.f32 %v5150_v13, %v5159_v7  ;;  %6798 = vmatpush.msra.mxu2 %v6775_v21  ;;  %5653 = vmatpush.msra.mxu1 %v5608_v20  ;;  %v5823_v21 = vld [vmem:[#allocation15 + $0x320] sm:$0xff]  ;;  %v5824_v20 = vld [vmem:[#allocation15 + $0x328] sm:$0xff]  ;;  %v5821_v13 = vld [vmem:[#allocation15 + $0x310] sm:$0xff] }
 0x838   :  { %6816 = vmatpush.msrb.mxu3 %v6780_v11  ;;  %5683 = vmatpush.msrb.mxu0 %v5666_v53  ;;  %v5822_v7 = vld [vmem:[#allocation15 + $0x318] sm:$0xff]  ;;  %v5819_v11 = vld [vmem:[#allocation15 + $0x300] sm:$0xff]  ;;  %v5878_v53 = vld [vmem:[#allocation15 + $0x370] sm:$0xff] }
 0x839   :  { %v10426_v38 = vmax.f32 %v5168_v55, %v5177_v54  ;;  %6799 = vmatpush.msra.mxu2 %v6773_v9  ;;  %5703 = vmatpush.msrb.mxu1 %v5667_v3  ;;  %v6881_v55 = vld [vmem:[#allocation15 + $0x810] sm:$0xff]  ;;  %v5879_v9 = vld [vmem:[#allocation15 + $0x378] sm:$0xff]  ;;  %v5876_v3 = vld [vmem:[#allocation15 + $0x360] sm:$0xff] }
 0x83a   :  { %6817 = vmatpush.msrb.mxu3 %v6778_v30  ;;  %5684 = vmatpush.msrb.mxu0 %v5664_v43  ;;  %v5877_v54 = vld [vmem:[#allocation15 + $0x368] sm:$0xff]  ;;  %v5874_v30 = vld [vmem:[#allocation15 + $0x350] sm:$0xff]  ;;  %v5872_v43 = vld [vmem:[#allocation15 + $0x340] sm:$0xff] }
 0x83b   :  { %6902 = vmatpush.msrb.mxu2 %v6885_v33  ;;  %7783 = vmatmul.msk.f32.vlgmr.msra.gmra.mxu3 %vm606_vm2, %v10412_v50  ;;  %v6993_v37 = vrot.slane %v10426_v38, 4  ;;  %v5875_v33 = vld [vmem:[#allocation15 + $0x358] sm:$0xff] }
 0x83c   :  { %5704 = vmatpush.msrb.mxu1 %v5665_v41  ;;  %6818 = vmatpush.msrb.mxu3 %v6776_v27  ;;  %v5873_v41 = vld [vmem:[#allocation15 + $0x348] sm:$0xff]  ;;  %v5880_v27 = vrot.slane %v10343_v17, 2 }
 0x83d   :  { %7742 = vmatmul.msk.f32.vlgmr.msra.gmra.mxu0 %vm606_vm2, %v10329_v6  ;;  %7743 = vmatmul.msk.f32.vlgmr.msra.gmra.mxu1 %vm606_vm2, %v10329_v6  ;;  %v5820_v6 = vld [vmem:[#allocation15 + $0x308] sm:$0xff] }
 0x83e   :  { %7786 = vmatmul.msk.f32.vlgmr.msra.gmra.mxu2 %vm606_vm2, %v6781_v42  ;;  %5685 = vmatpush.msrb.mxu0 %v5662_v1  ;;  %v5931_v1 = vld [vmem:[#allocation15 + $0x3b0] sm:$0xff] }
 0x83f   :  { %6903 = vmatpush.msrb.mxu2 %v6883_v56  ;;  %5705 = vmatpush.msrb.mxu1 %v5663_v32  ;;  %v5929_v56 = vld [vmem:[#allocation15 + $0x3a0] sm:$0xff]  ;;  %v5930_v32 = vld [vmem:[#allocation15 + $0x3a8] sm:$0xff] }
 0x840   :  { %6819 = vmatpush.msrb.mxu3 %v6774_v59  ;;  %5686 = vmatpush.msrb.mxu0 %v5660_v63  ;;  %v5927_v59 = vld [vmem:[#allocation15 + $0x390] sm:$0xff]  ;;  %v5928_v63 = vld [vmem:[#allocation15 + $0x398] sm:$0xff] }
 0x841   :  { %6904 = vmatpush.msrb.mxu2 %v6881_v55  ;;  %5706 = vmatpush.msrb.mxu1 %v5661_v4  ;;  %v5925_v55 = vld [vmem:[#allocation15 + $0x380] sm:$0xff]  ;;  %v5926_v4 = vld [vmem:[#allocation15 + $0x388] sm:$0xff] }
 0x842   :  { %6922 = vmatpush.msra.mxu3 %v6886_v22  ;;  %5736 = vmatpush.msra.mxu0 %v5719_v24  ;;  %v5933_v22 = vrot.slane %v10343_v17, 4  ;;  %v5984_v24 = vld [vmem:[#allocation15 + $0x3f0] sm:$0xff] }
 0x843   :  { %7787 = vmatmul.msk.f32.vlgmr.msrb.gmra.mxu3 %vm606_vm2, %v6781_v42  ;;  %6905 = vmatpush.msrb.mxu2 %v6879_v47  ;;  %v5932_v42 = vld [vmem:[#allocation15 + $0x3b8] sm:$0xff] }
 0x844   :  { %5756 = vmatpush.msra.mxu1 %v5720_v18  ;;  %6923 = vmatpush.msra.mxu3 %v6884_v61  ;;  %v5985_v47 = vld [vmem:[#allocation15 + $0x3f8] sm:$0xff]  ;;  %v5982_v18 = vld [vmem:[#allocation15 + $0x3e0] sm:$0xff]  ;;  %v5983_v61 = vld [vmem:[#allocation15 + $0x3e8] sm:$0xff] }
 0x845   :  { %7744 = vmatmul.msk.f32.vlgmr.msrb.gmra.mxu0 %vm606_vm2, %v5668_v49  ;;  %7745 = vmatmul.msk.f32.vlgmr.msrb.gmra.mxu1 %vm606_vm2, %v5668_v49  ;;  %v5980_v49 = vld [vmem:[#allocation15 + $0x3d0] sm:$0xff] }
 0x846   :  { %7790 = vmatmul.msk.f32.vlgmr.msrb.gmra.mxu2 %vm606_vm2, %v10426_v38  ;;  %5737 = vmatpush.msra.mxu0 %v5717_v19  ;;  %v5981_v19 = vld [vmem:[#allocation15 + $0x3d8] sm:$0xff] }
 0x847   :  { %7008 = vmatpush.msra.mxu2 %v6991_v31  ;;  %5757 = vmatpush.msra.mxu1 %v5718_v62  ;;  %v5978_v31 = vld [vmem:[#allocation15 + $0x3c0] sm:$0xff]  ;;  %v5979_v62 = vld [vmem:[#allocation15 + $0x3c8] sm:$0xff] }
 0x848   :  { %6924 = vmatpush.msra.mxu3 %v6882_v34  ;;  %5738 = vmatpush.msra.mxu0 %v5715_v44  ;;  %v5986_v34 = vrot.slane %v10343_v17, 6  ;;  %v6037_v44 = vld [vmem:[#allocation15 + $0x430] sm:$0xff] }
 0x849   :  { %7009 = vmatpush.msra.mxu2 %v6989_v5  ;;  %5758 = vmatpush.msra.mxu1 %v5716_v35  ;;  %v6038_v5 = vld [vmem:[#allocation15 + $0x438] sm:$0xff]  ;;  %v6035_v35 = vld [vmem:[#allocation15 + $0x420] sm:$0xff] }
 0x84a   :  { %6925 = vmatpush.msra.mxu3 %v6880_v48  ;;  %5739 = vmatpush.msra.mxu0 %v5713_v29  ;;  %v6036_v48 = vld [vmem:[#allocation15 + $0x428] sm:$0xff]  ;;  %v6033_v29 = vld [vmem:[#allocation15 + $0x410] sm:$0xff] }
 0x84b   :  { %7010 = vmatpush.msra.mxu2 %v6987_v2  ;;  %7791 = vmatmul.msk.f32.vlgmr.msra.gmra.mxu3 %vm606_vm2, %v10426_v38  ;;  %v6034_v2 = vld [vmem:[#allocation15 + $0x418] sm:$0xff] }
 0x84c   :  { %5759 = vmatpush.msra.mxu1 %v5714_v8  ;;  %7028 = vmatpush.msrb.mxu3 %v6992_v58 }
 0x84d   :  { %7011 = vmatpush.msra.mxu2 %v6985_v25  ;;  %7746 = vmatmul.msk.f32.vlgmr.msra.gmra.mxu0 %vm606_vm2, %v5721_v28  ;;  %v6032_v25 = vld [vmem:[#allocation15 + $0x408] sm:$0xff] }
 0x84e   :  { %7747 = vmatmul.msk.f32.vlgmr.msra.gmra.mxu1 %vm606_vm2, %v5721_v28  ;;  %7794 = vmatmul.msk.f32.vlgmr.msra.gmra.mxu2 %vm606_vm2, %v6993_v37  ;;  %v6090_v28 = vld [vmem:[#allocation15 + $0x470] sm:$0xff] }
 0x84f   :  { %5789 = vmatpush.msrb.mxu0 %v5772_v26  ;;  %5809 = vmatpush.msrb.mxu1 %v5773_v16  ;;  %v6088_v26 = vld [vmem:[#allocation15 + $0x460] sm:$0xff]  ;;  %v6089_v16 = vld [vmem:[#allocation15 + $0x468] sm:$0xff] }
 0x850   :  { %7029 = vmatpush.msrb.mxu3 %v6990_v23  ;;  %v6086_v23 = vld [vmem:[#allocation15 + $0x450] sm:$0xff] }
 0x851   :  { %5790 = vmatpush.msrb.mxu0 %v5770_v52  ;;  %5810 = vmatpush.msrb.mxu1 %v5771_v0  ;;  %v6087_v52 = vld [vmem:[#allocation15 + $0x458] sm:$0xff] }
 0x852   :  { %7030 = vmatpush.msrb.mxu3 %v6988_v40 }
 0x853   :  { %5791 = vmatpush.msrb.mxu0 %v5768_v15  ;;  %5811 = vmatpush.msrb.mxu1 %v5769_v10  ;;  %v6084_v15 = vld [vmem:[#allocation15 + $0x440] sm:$0xff]  ;;  %v6085_v10 = vld [vmem:[#allocation15 + $0x448] sm:$0xff] }
 0x854   :  { %7031 = vmatpush.msrb.mxu3 %v6986_v57  ;;  %v6092_v57 = vrot.slane %v10361_v36, 2 }
 0x855   :  { %7795 = vmatmul.msk.f32.vlgmr.msrb.gmra.mxu3 %vm606_vm2, %v6993_v37  ;;  %5792 = vmatpush.msrb.mxu0 %v5766_v14  ;;  %v6091_v37 = vld [vmem:[#allocation15 + $0x478] sm:$0xff]  ;;  %v6143_v14 = vld [vmem:[#allocation15 + $0x4b0] sm:$0xff] }
 0x856   :  { %5812 = vmatpush.msrb.mxu1 %v5767_v39  ;;  %7748 = vmatmul.msk.f32.vlgmr.msrb.gmra.mxu0 %vm606_vm2, %v5774_v46  ;;  %v6144_v39 = vld [vmem:[#allocation15 + $0x4b8] sm:$0xff] }
 0x857   :  { %7749 = vmatmul.msk.f32.vlgmr.msrb.gmra.mxu1 %vm606_vm2, %v5774_v46  ;;  %5842 = vmatpush.msra.mxu0 %v5825_v51  ;;  %v6141_v46 = vld [vmem:[#allocation15 + $0x4a0] sm:$0xff]  ;;  %v6142_v51 = vld [vmem:[#allocation15 + $0x4a8] sm:$0xff] }
 0x858   :  { %5862 = vmatpush.msra.mxu1 %v5826_v45  ;;  %v6139_v45 = vld [vmem:[#allocation15 + $0x490] sm:$0xff] }
 0x859   :  { %5843 = vmatpush.msra.mxu0 %v5823_v21  ;;  %v6140_v21 = vld [vmem:[#allocation15 + $0x498] sm:$0xff] }
 0x85a   :  { %5863 = vmatpush.msra.mxu1 %v5824_v20 }
 0x85b   :  { %5844 = vmatpush.msra.mxu0 %v5821_v13 }
 0x85c   :  { %5864 = vmatpush.msra.mxu1 %v5822_v7  ;;  %v6137_v7 = vld [vmem:[#allocation15 + $0x480] sm:$0xff] }
 0x85d   :  { %5845 = vmatpush.msra.mxu0 %v5819_v11  ;;  %v6138_v11 = vld [vmem:[#allocation15 + $0x488] sm:$0xff] }
 0x85e   :  { %5865 = vmatpush.msra.mxu1 %v5820_v6  ;;  %7750 = vmatmul.msk.f32.vlgmr.msra.gmra.mxu0 %vm606_vm2, %v10343_v17  ;;  %v6145_v6 = vrot.slane %v10361_v36, 4 }
 0x85f   :  { %7751 = vmatmul.msk.f32.vlgmr.msra.gmra.mxu1 %vm606_vm2, %v10343_v17  ;;  %5895 = vmatpush.msrb.mxu0 %v5878_v53  ;;  %v6031_v17 = vld [vmem:[#allocation15 + $0x400] sm:$0xff]  ;;  %v6196_v53 = vld [vmem:[#allocation15 + $0x4f0] sm:$0xff] }
 0x860   :  { %5915 = vmatpush.msrb.mxu1 %v5879_v9  ;;  %v6197_v9 = vld [vmem:[#allocation15 + $0x4f8] sm:$0xff] }
 0x861   :  { %5896 = vmatpush.msrb.mxu0 %v5876_v3  ;;  %v6194_v3 = vld [vmem:[#allocation15 + $0x4e0] sm:$0xff] }
 0x862   :  { %5916 = vmatpush.msrb.mxu1 %v5877_v54  ;;  %v6195_v54 = vld [vmem:[#allocation15 + $0x4e8] sm:$0xff] }
 0x863   :  { %5897 = vmatpush.msrb.mxu0 %v5874_v30  ;;  %v6192_v30 = vld [vmem:[#allocation15 + $0x4d0] sm:$0xff] }
 0x864   :  { %5917 = vmatpush.msrb.mxu1 %v5875_v33  ;;  %v6193_v33 = vld [vmem:[#allocation15 + $0x4d8] sm:$0xff] }
 0x865   :  { %5898 = vmatpush.msrb.mxu0 %v5872_v43 }
 0x866   :  { %5918 = vmatpush.msrb.mxu1 %v5873_v41  ;;  %7752 = vmatmul.msk.f32.vlgmr.msrb.gmra.mxu0 %vm606_vm2, %v5880_v27 }
 0x867   :  { %7753 = vmatmul.msk.f32.vlgmr.msrb.gmra.mxu1 %vm606_vm2, %v5880_v27  ;;  %5948 = vmatpush.msra.mxu0 %v5931_v1  ;;  %v6190_v27 = vld [vmem:[#allocation15 + $0x4c0] sm:$0xff]  ;;  %v6191_v1 = vld [vmem:[#allocation15 + $0x4c8] sm:$0xff] }
 0x868   :  { %5968 = vmatpush.msra.mxu1 %v5932_v42  ;;  %v6198_v42 = vrot.slane %v10361_v36, 6 }
 0x869   :  { %5949 = vmatpush.msra.mxu0 %v5929_v56  ;;  %v6249_v56 = vld [vmem:[#allocation15 + $0x530] sm:$0xff] }
 0x86a   :  { %5969 = vmatpush.msra.mxu1 %v5930_v32  ;;  %v6250_v32 = vld [vmem:[#allocation15 + $0x538] sm:$0xff] }
 0x86b   :  { %5950 = vmatpush.msra.mxu0 %v5927_v59  ;;  %v6247_v59 = vld [vmem:[#allocation15 + $0x520] sm:$0xff] }
 0x86c   :  { %5970 = vmatpush.msra.mxu1 %v5928_v63  ;;  %v6248_v63 = vld [vmem:[#allocation15 + $0x528] sm:$0xff] }
 0x86d   :  { %5951 = vmatpush.msra.mxu0 %v5925_v55  ;;  %v6245_v55 = vld [vmem:[#allocation15 + $0x510] sm:$0xff] }
 0x86e   :  { %5971 = vmatpush.msra.mxu1 %v5926_v4  ;;  %7754 = vmatmul.msk.f32.vlgmr.msra.gmra.mxu0 %vm606_vm2, %v5933_v22  ;;  %v6246_v4 = vld [vmem:[#allocation15 + $0x518] sm:$0xff] }
 0x86f   :  { %7755 = vmatmul.msk.f32.vlgmr.msra.gmra.mxu1 %vm606_vm2, %v5933_v22  ;;  %6001 = vmatpush.msrb.mxu0 %v5984_v24 }
 0x870   :  { %6021 = vmatpush.msrb.mxu1 %v5985_v47  ;;  %v6243_v47 = vld [vmem:[#allocation15 + $0x500] sm:$0xff] }
 0x871   :  { %6002 = vmatpush.msrb.mxu0 %v5982_v18  ;;  %v6302_v18 = vld [vmem:[#allocation15 + $0x570] sm:$0xff] }
 0x872   :  { %6022 = vmatpush.msrb.mxu1 %v5983_v61  ;;  %v6303_v61 = vld [vmem:[#allocation15 + $0x578] sm:$0xff] }
 0x873   :  { %6003 = vmatpush.msrb.mxu0 %v5980_v49  ;;  %v6300_v49 = vld [vmem:[#allocation15 + $0x560] sm:$0xff] }
 0x874   :  { %6023 = vmatpush.msrb.mxu1 %v5981_v19  ;;  %v6301_v19 = vld [vmem:[#allocation15 + $0x568] sm:$0xff] }
 0x875   :  { %6004 = vmatpush.msrb.mxu0 %v5978_v31  ;;  %v6298_v31 = vld [vmem:[#allocation15 + $0x550] sm:$0xff] }
 0x876   :  { %6024 = vmatpush.msrb.mxu1 %v5979_v62  ;;  %7756 = vmatmul.msk.f32.vlgmr.msrb.gmra.mxu0 %vm606_vm2, %v5986_v34 }
 0x877   :  { %7757 = vmatmul.msk.f32.vlgmr.msrb.gmra.mxu1 %vm606_vm2, %v5986_v34  ;;  %6054 = vmatpush.msra.mxu0 %v6037_v44  ;;  %v6299_v34 = vld [vmem:[#allocation15 + $0x558] sm:$0xff] }
 0x878   :  { %6074 = vmatpush.msra.mxu1 %v6038_v5 }
 0x879   :  { %6055 = vmatpush.msra.mxu0 %v6035_v35  ;;  %v6296_v35 = vld [vmem:[#allocation15 + $0x540] sm:$0xff] }
 0x87a   :  { %6075 = vmatpush.msra.mxu1 %v6036_v48  ;;  %v10466_v8 = vpop.f32.mrf.mxu0  ;;  %v10468_v58 = vpop.f32.mrf.mxu1 }
 0x87b   :  { %6056 = vmatpush.msra.mxu0 %v6033_v29  ;;  %v6297_v29 = vld [vmem:[#allocation15 + $0x548] sm:$0xff] }
 0x87c   :  { %6076 = vmatpush.msra.mxu1 %v6034_v2  ;;  %v6304_v2 = vrot.slane %v10378_v60, 2 }
 0x87d   :  { %6057 = vmatpush.msra.mxu0 %v6031_v17  ;;  %v6355_v17 = vld [vmem:[#allocation15 + $0x5b0] sm:$0xff] }
 0x87e   :  { %6077 = vmatpush.msra.mxu1 %v6032_v25  ;;  %7758 = vmatmul.msk.f32.vlgmr.msra.gmra.mxu0 %vm606_vm2, %v10361_v36 }
 0x87f   :  { %7759 = vmatmul.msk.f32.vlgmr.msra.gmra.mxu1 %vm606_vm2, %v10361_v36  ;;  %6107 = vmatpush.msrb.mxu0 %v6090_v28  ;;  %v6244_v36 = vld [vmem:[#allocation15 + $0x508] sm:$0xff]  ;;  %v6356_v28 = vld [vmem:[#allocation15 + $0x5b8] sm:$0xff] }
 0x880   :  { %6127 = vmatpush.msrb.mxu1 %v6091_v37 }
 0x881   :  { %6108 = vmatpush.msrb.mxu0 %v6088_v26 }
 0x882   :  { %6128 = vmatpush.msrb.mxu1 %v6089_v16  ;;  %v10474_v0 = vpop.f32.mrf.mxu0  ;;  %v10476_v40 = vpop.f32.mrf.mxu1  ;;  %v6354_v16 = vld [vmem:[#allocation15 + $0x5a8] sm:$0xff] }
 0x883   :  { %6109 = vmatpush.msrb.mxu0 %v6086_v23  ;;  %v5287_v62 = vadd.f32 %v10476_v40, %v10468_v58  ;;  %v6353_v58 = vld [vmem:[#allocation15 + $0x5a0] sm:$0xff]  ;;  %v5267_v37 = vadd.f32 %v10474_v0, %v10466_v8  ;;  %v6351_v23 = vld [vmem:[#allocation15 + $0x590] sm:$0xff]  ;;  %v6350_v8 = vld [vmem:[#allocation15 + $0x588] sm:$0xff]  ;;  %v6357_v0 = vrot.slane %v10378_v60, 4 }
 0x884   :  { %6129 = vmatpush.msrb.mxu1 %v6087_v52 }
 0x885   :  { %6110 = vmatpush.msrb.mxu0 %v6084_v15  ;;  %v6352_v15 = vld [vmem:[#allocation15 + $0x598] sm:$0xff] }
 0x886   :  { %6130 = vmatpush.msrb.mxu1 %v6085_v10  ;;  %7760 = vmatmul.msk.f32.vlgmr.msrb.gmra.mxu0 %vm606_vm2, %v6092_v57 }
 0x887   :  { %7761 = vmatmul.msk.f32.vlgmr.msrb.gmra.mxu1 %vm606_vm2, %v6092_v57  ;;  %6160 = vmatpush.msra.mxu0 %v6143_v14  ;;  %v6349_v14 = vld [vmem:[#allocation15 + $0x580] sm:$0xff] }
 0x888   :  { %6180 = vmatpush.msra.mxu1 %v6144_v39 }
 0x889   :  { %6161 = vmatpush.msra.mxu0 %v6141_v46 }
 0x88a   :  { %6181 = vmatpush.msra.mxu1 %v6142_v51  ;;  %v10481_v20 = vpop.f32.mrf.mxu0  ;;  %v10483_v13 = vpop.f32.mrf.mxu1  ;;  %v6408_v51 = vld [vmem:[#allocation15 + $0x5f0] sm:$0xff] }
 0x88b   :  { %6162 = vmatpush.msra.mxu0 %v6139_v45  ;;  %v5341_v48 = vadd.f32 %v10483_v13, %v5287_v62  ;;  %v5340_v52 = vadd.f32 %v10481_v20, %v5267_v37  ;;  %v6406_v20 = vld [vmem:[#allocation15 + $0x5e0] sm:$0xff]  ;;  %v6723_v37 = vld [vmem:[#allocation15 + $0x758] sm:$0xff] }
 0x88c   :  { %6182 = vmatpush.msra.mxu1 %v6140_v21  ;;  %v6409_v21 = vld [vmem:[#allocation15 + $0x5f8] sm:$0xff] }
 0x88d   :  { %6163 = vmatpush.msra.mxu0 %v6137_v7  ;;  %v6407_v7 = vld [vmem:[#allocation15 + $0x5e8] sm:$0xff] }
 0x88e   :  { %6183 = vmatpush.msra.mxu1 %v6138_v11  ;;  %7762 = vmatmul.msk.f32.vlgmr.msra.gmra.mxu0 %vm606_vm2, %v6145_v6  ;;  %v6404_v11 = vld [vmem:[#allocation15 + $0x5d0] sm:$0xff] }
 0x88f   :  { %7763 = vmatmul.msk.f32.vlgmr.msra.gmra.mxu1 %vm606_vm2, %v6145_v6  ;;  %6213 = vmatpush.msrb.mxu0 %v6196_v53  ;;  %v6405_v53 = vld [vmem:[#allocation15 + $0x5d8] sm:$0xff] }
 0x890   :  { %6233 = vmatpush.msrb.mxu1 %v6197_v9 }
 0x891   :  { %6214 = vmatpush.msrb.mxu0 %v6194_v3 }
 0x892   :  { %6234 = vmatpush.msrb.mxu1 %v6195_v54  ;;  %v10488_v43 = vpop.f32.mrf.mxu0  ;;  %v5390_v41 = vpop.f32.mrf.mxu1  ;;  %v6402_v54 = vld [vmem:[#allocation15 + $0x5c0] sm:$0xff] }
 0x893   :  { %6215 = vmatpush.msrb.mxu0 %v6192_v30  ;;  %v5394_v25 = vadd.f32 %v5390_v41, %v5341_v48  ;;  %v5393_v39 = vadd.f32 %v10488_v43, %v5340_v52  ;;  %v6403_v43 = vld [vmem:[#allocation15 + $0x5c8] sm:$0xff]  ;;  %v6410_v41 = vrot.slane %v10378_v60, 6 }
 0x894   :  { %6235 = vmatpush.msrb.mxu1 %v6193_v33  ;;  %v6615_v48 = vld [vmem:[#allocation15 + $0x6c8] sm:$0xff] }
 0x895   :  { %6216 = vmatpush.msrb.mxu0 %v6190_v27  ;;  %v6461_v27 = vld [vmem:[#allocation15 + $0x630] sm:$0xff] }
 0x896   :  { %6236 = vmatpush.msrb.mxu1 %v6191_v1  ;;  %7764 = vmatmul.msk.f32.vlgmr.msrb.gmra.mxu0 %vm606_vm2, %v6198_v42  ;;  %v6515_v1 = vld [vmem:[#allocation15 + $0x678] sm:$0xff] }
 0x897   :  { %7765 = vmatmul.msk.f32.vlgmr.msrb.gmra.mxu1 %vm606_vm2, %v6198_v42  ;;  %6266 = vmatpush.msra.mxu0 %v6249_v56  ;;  %v6459_v42 = vld [vmem:[#allocation15 + $0x620] sm:$0xff]  ;;  %v6513_v56 = vld [vmem:[#allocation15 + $0x668] sm:$0xff] }
 0x898   :  { %6286 = vmatpush.msra.mxu1 %v6250_v32  ;;  %v6457_v32 = vld [vmem:[#allocation15 + $0x610] sm:$0xff] }
 0x899   :  { %6267 = vmatpush.msra.mxu0 %v6247_v59  ;;  %v6511_v59 = vld [vmem:[#allocation15 + $0x658] sm:$0xff] }
 0x89a   :  { %6287 = vmatpush.msra.mxu1 %v6248_v63  ;;  %v5423_v22 = vpop.f32.mrf.mxu0  ;;  %v5443_v24 = vpop.f32.mrf.mxu1 }
 0x89b   :  { %6268 = vmatpush.msra.mxu0 %v6245_v55  ;;  %v5447_v26 = vadd.f32 %v5443_v24, %v5394_v25  ;;  %v5446_v45 = vadd.f32 %v5423_v22, %v5393_v39  ;;  %v6509_v24 = vld [vmem:[#allocation15 + $0x648] sm:$0xff]  ;;  %v6618_v25 = vld [vmem:[#allocation15 + $0x6e0] sm:$0xff] }
 0x89c   :  { %6288 = vmatpush.msra.mxu1 %v6246_v4  ;;  %v6455_v4 = vld [vmem:[#allocation15 + $0x600] sm:$0xff]  ;;  %v6831_v39 = vld [vmem:[#allocation15 + $0x7e8] sm:$0xff] }
 0x89d   :  { %6269 = vmatpush.msra.mxu0 %v6243_v47  ;;  %v6514_v47 = vld [vmem:[#allocation15 + $0x670] sm:$0xff] }
 0x89e   :  { %6289 = vmatpush.msra.mxu1 %v6244_v36  ;;  %7766 = vmatmul.msk.f32.vlgmr.msra.gmra.mxu0 %vm606_vm2, %v10378_v60  ;;  %v6516_v36 = vrot.slane %v10394_v12, 2 }
 0x89f   :  { %7767 = vmatmul.msk.f32.vlgmr.msra.gmra.mxu1 %vm606_vm2, %v10378_v60  ;;  %6319 = vmatpush.msrb.mxu0 %v6302_v18  ;;  %v6621_v18 = vld [vmem:[#allocation15 + $0x6f8] sm:$0xff] }
 0x8a0   :  { %6339 = vmatpush.msrb.mxu1 %v6303_v61  ;;  %v6512_v61 = vld [vmem:[#allocation15 + $0x660] sm:$0xff] }
 0x8a1   :  { %6320 = vmatpush.msrb.mxu0 %v6300_v49  ;;  %v6619_v49 = vld [vmem:[#allocation15 + $0x6e8] sm:$0xff] }
 0x8a2   :  { %6340 = vmatpush.msrb.mxu1 %v6301_v19  ;;  %v5476_v44 = vpop.f32.mrf.mxu0  ;;  %v5496_v5 = vpop.f32.mrf.mxu1  ;;  %v6510_v19 = vld [vmem:[#allocation15 + $0x650] sm:$0xff] }
 0x8a3   :  { %6321 = vmatpush.msrb.mxu0 %v6298_v31  ;;  %v5500_v40 = vadd.f32 %v5496_v5, %v5447_v26  ;;  %v5499_v13 = vadd.f32 %v5476_v44, %v5446_v45  ;;  %v6617_v31 = vld [vmem:[#allocation15 + $0x6d8] sm:$0xff]  ;;  %v6508_v44 = vld [vmem:[#allocation15 + $0x640] sm:$0xff]  ;;  %v6827_v45 = vld [vmem:[#allocation15 + $0x7c8] sm:$0xff] }
 0x8a4   :  { %6341 = vmatpush.msrb.mxu1 %v6299_v34 }
 0x8a5   :  { %6322 = vmatpush.msrb.mxu0 %v6296_v35 }
 0x8a6   :  { %6342 = vmatpush.msrb.mxu1 %v6297_v29  ;;  %7768 = vmatmul.msk.f32.vlgmr.msrb.gmra.mxu0 %vm606_vm2, %v6304_v2  ;;  %v6620_v29 = vld [vmem:[#allocation15 + $0x6f0] sm:$0xff] }
 0x8a7   :  { %7769 = vmatmul.msk.f32.vlgmr.msrb.gmra.mxu1 %vm606_vm2, %v6304_v2  ;;  %6372 = vmatpush.msra.mxu0 %v6355_v17  ;;  %v6622_v2 = vrot.slane %v10394_v12, 6  ;;  %v6727_v17 = vld [vmem:[#allocation15 + $0x778] sm:$0xff] }
 0x8a8   :  { %6392 = vmatpush.msra.mxu1 %v6356_v28  ;;  %v6725_v28 = vld [vmem:[#allocation15 + $0x768] sm:$0xff] }
 0x8a9   :  { %6373 = vmatpush.msra.mxu0 %v6353_v58  ;;  %v6616_v58 = vld [vmem:[#allocation15 + $0x6d0] sm:$0xff] }
 0x8aa   :  { %6393 = vmatpush.msra.mxu1 %v6354_v16  ;;  %v5529_v10 = vpop.f32.mrf.mxu0  ;;  %v5549_v57 = vpop.f32.mrf.mxu1  ;;  %v6614_v16 = vld [vmem:[#allocation15 + $0x6c0] sm:$0xff] }
 0x8ab   :  { %v5553_v46 = vadd.f32 %v5549_v57, %v5500_v40  ;;  %6374 = vmatpush.msra.mxu0 %v6351_v23  ;;  %v5552_v6 = vadd.f32 %v5529_v10, %v5499_v13  ;;  %v6728_v10 = vrot.slane %v10412_v50, 2  ;;  %v6833_v57 = vld [vmem:[#allocation15 + $0x7f8] sm:$0xff]  ;;  %v6832_v13 = vld [vmem:[#allocation15 + $0x7f0] sm:$0xff] }
 0x8ac   :  { %6394 = vmatpush.msra.mxu1 %v6352_v15  ;;  %v6726_v15 = vld [vmem:[#allocation15 + $0x770] sm:$0xff] }
 0x8ad   :  { %6375 = vmatpush.msra.mxu0 %v6349_v14  ;;  %v6724_v14 = vld [vmem:[#allocation15 + $0x760] sm:$0xff] }
 0x8ae   :  { %6395 = vmatpush.msra.mxu1 %v6350_v8  ;;  %7770 = vmatmul.msk.f32.vlgmr.msra.gmra.mxu0 %vm606_vm2, %v6357_v0  ;;  %v6829_v8 = vld [vmem:[#allocation15 + $0x7d8] sm:$0xff] }
 0x8af   :  { %7771 = vmatmul.msk.f32.vlgmr.msra.gmra.mxu1 %vm606_vm2, %v6357_v0  ;;  %6425 = vmatpush.msrb.mxu0 %v6408_v51  ;;  %v6720_v0 = vld [vmem:[#allocation15 + $0x740] sm:$0xff] }
 0x8b0   :  { %6445 = vmatpush.msrb.mxu1 %v6409_v21 }
 0x8b1   :  { %6426 = vmatpush.msrb.mxu0 %v6406_v20 }
 0x8b2   :  { %6446 = vmatpush.msrb.mxu1 %v6407_v7  ;;  %v5582_v9 = vpop.f32.mrf.mxu0  ;;  %v5602_v3 = vpop.f32.mrf.mxu1 }
 0x8b3   :  { %v5605_v30 = vadd.f32 %v5582_v9, %v5552_v6  ;;  %v5606_v33 = vadd.f32 %v5602_v3, %v5553_v46  ;;  %6427 = vmatpush.msrb.mxu0 %v6404_v11  ;;  %v6722_v46 = vld [vmem:[#allocation15 + $0x750] sm:$0xff]  ;;  %v6834_v11 = vrot.slane %v10412_v50, 6  ;;  %v6939_v6 = vld [vmem:[#allocation15 + $0x878] sm:$0xff]  ;;  %v6937_v9 = vld [vmem:[#allocation15 + $0x868] sm:$0xff] }
 0x8b4   :  { %6447 = vmatpush.msrb.mxu1 %v6405_v53  ;;  %v6830_v53 = vld [vmem:[#allocation15 + $0x7e0] sm:$0xff]  ;;  %v6828_v3 = vld [vmem:[#allocation15 + $0x7d0] sm:$0xff] }
 0x8b5   :  { %6428 = vmatpush.msrb.mxu0 %v6402_v54  ;;  %v6935_v54 = vld [vmem:[#allocation15 + $0x858] sm:$0xff] }
 0x8b6   :  { %6448 = vmatpush.msrb.mxu1 %v6403_v43  ;;  %7772 = vmatmul.msk.f32.vlgmr.msrb.gmra.mxu0 %vm606_vm2, %v6410_v41  ;;  %v6933_v43 = vld [vmem:[#allocation15 + $0x848] sm:$0xff] }
 0x8b7   :  { %7773 = vmatmul.msk.f32.vlgmr.msrb.gmra.mxu1 %vm606_vm2, %v6410_v41  ;;  %6478 = vmatpush.msra.mxu0 %v6461_v27  ;;  %v6938_v27 = vld [vmem:[#allocation15 + $0x870] sm:$0xff] }
 0x8b8   :  { %6551 = vmatpush.msra.mxu1 %v6515_v1 }
 0x8b9   :  { %6479 = vmatpush.msra.mxu0 %v6459_v42  ;;  %v6940_v42 = vrot.slane %v10426_v38, 2 }
 0x8ba   :  { %6552 = vmatpush.msra.mxu1 %v6513_v56  ;;  %v5635_v63 = vpop.f32.mrf.mxu0  ;;  %v5655_v55 = vpop.f32.mrf.mxu1  ;;  %v7045_v56 = vld [vmem:[#allocation15 + $0x8f8] sm:$0xff] }
 0x8bb   :  { %v5658_v60 = vadd.f32 %v5635_v63, %v5605_v30  ;;  %v5659_v22 = vadd.f32 %v5655_v55, %v5606_v33  ;;  %6480 = vmatpush.msra.mxu0 %v6457_v32  ;;  %v6826_v30 = vld [vmem:[#allocation15 + $0x7c0] sm:$0xff]  ;;  %v6934_v63 = vld [vmem:[#allocation15 + $0x850] sm:$0xff]  ;;  %v7041_v55 = vld [vmem:[#allocation15 + $0x8d8] sm:$0xff] }
 0x8bc   :  { %6553 = vmatpush.msra.mxu1 %v6511_v59  ;;  %v6936_v32 = vld [vmem:[#allocation15 + $0x860] sm:$0xff]  ;;  %v7043_v59 = vld [vmem:[#allocation15 + $0x8e8] sm:$0xff] }
 0x8bd   :  { %6481 = vmatpush.msra.mxu0 %v6455_v4  ;;  %v6932_v4 = vld [vmem:[#allocation15 + $0x840] sm:$0xff] }
 0x8be   :  { %6554 = vmatpush.msra.mxu1 %v6509_v24  ;;  %7774 = vmatmul.msk.f32.vlgmr.msra.gmra.mxu0 %vm606_vm2, %v10394_v12  ;;  %v6721_v12 = vld [vmem:[#allocation15 + $0x748] sm:$0xff] }
 0x8bf   :  { %7777 = vmatmul.msk.f32.vlgmr.msra.gmra.mxu1 %vm606_vm2, %v6516_v36  ;;  %6531 = vmatpush.msrb.mxu0 %v6514_v47 }
 0x8c0   :  { %6657 = vmatpush.msrb.mxu1 %v6621_v18 }
 0x8c1   :  { %6532 = vmatpush.msrb.mxu0 %v6512_v61  ;;  %v7046_v61 = vrot.slane %v10426_v38, 6 }
 0x8c2   :  { %6658 = vmatpush.msrb.mxu1 %v6619_v49  ;;  %v5688_v62 = vpop.f32.mrf.mxu0  ;;  %v5708_v34 = vpop.f32.mrf.mxu1  ;;  %v7042_v49 = vld [vmem:[#allocation15 + $0x8e0] sm:$0xff] }
 0x8c3   :  { %v5711_v5 = vadd.f32 %v5688_v62, %v5658_v60  ;;  %v5712_v35 = vadd.f32 %v5708_v34, %v5659_v22  ;;  %6533 = vmatpush.msrb.mxu0 %v6510_v19  ;;  %v7039_v22 = vld [vmem:[#allocation15 + $0x8c8] sm:$0xff]  ;;  %v7040_v19 = vld [vmem:[#allocation15 + $0x8d0] sm:$0xff] }
 0x8c4   :  { %6659 = vmatpush.msrb.mxu1 %v6617_v31  ;;  %v7038_v31 = vld [vmem:[#allocation15 + $0x8c0] sm:$0xff] }
 0x8c5   :  { %6534 = vmatpush.msrb.mxu0 %v6508_v44 }
 0x8c6   :  { %6660 = vmatpush.msrb.mxu1 %v6615_v48  ;;  %7776 = vmatmul.msk.f32.vlgmr.msrb.gmra.mxu0 %vm606_vm2, %v6516_v36  ;;  %v7044_v36 = vld [vmem:[#allocation15 + $0x8f0] sm:$0xff] }
 0x8c7   :  { %7781 = vmatmul.msk.f32.vlgmr.msrb.gmra.mxu1 %vm606_vm2, %v6622_v2  ;;  %6637 = vmatpush.msra.mxu0 %v6620_v29 }
 0x8c8   :  { %6763 = vmatpush.msra.mxu1 %v6727_v17 }
 0x8c9   :  { %6638 = vmatpush.msra.mxu0 %v6618_v25 }
 0x8ca   :  { %6764 = vmatpush.msra.mxu1 %v6725_v28  ;;  %v5741_v26 = vpop.f32.mrf.mxu0 }
 0x8cb   :  { %v5764_v23 = vadd.f32 %v5741_v26, %v5711_v5  ;;  %v5761_v52 = vpop.f32.mrf.mxu1  ;;  %6639 = vmatpush.msra.mxu0 %v6616_v58 }
 0x8cc   :  { %v5765_v40 = vadd.f32 %v5761_v52, %v5712_v35  ;;  %6765 = vmatpush.msra.mxu1 %v6723_v37 }
 0x8cd   :  { %6640 = vmatpush.msra.mxu0 %v6614_v16 }
 0x8ce   :  { %6766 = vmatpush.msra.mxu1 %v6721_v12  ;;  %7780 = vmatmul.msk.f32.vlgmr.msra.gmra.mxu0 %vm606_vm2, %v6622_v2 }
 0x8cf   :  { %7785 = vmatmul.msk.f32.vlgmr.msra.gmra.mxu1 %vm606_vm2, %v6728_v10  ;;  %6743 = vmatpush.msrb.mxu0 %v6726_v15 }
 0x8d0   :  { %6869 = vmatpush.msrb.mxu1 %v6833_v57 }
 0x8d1   :  { %6744 = vmatpush.msrb.mxu0 %v6724_v14  ;;  %v7130_v14 = vld [vmem:[%s10657_s10 + $0xf8] sm:$0xff] }
 0x8d2   :  { %6870 = vmatpush.msrb.mxu1 %v6831_v39  ;;  %7155 = vmatpush.msra.mxu3 %v7130_v14  ;;  %v7101_v14 = vld [vmem:[%s10657_s10 + $0x10] sm:$0xff] }
 0x8d3   :  { %v5794_v51 = vpop.f32.mrf.mxu0  ;;  %6745 = vmatpush.msrb.mxu0 %v6722_v46 }
 0x8d4   :  { %v5817_v21 = vadd.f32 %v5794_v51, %v5764_v23  ;;  %v5814_v20 = vpop.f32.mrf.mxu1  ;;  %6871 = vmatpush.msrb.mxu1 %v6829_v8  ;;  %v7129_v8 = vld [vmem:[%s10657_s10 + $0xf0] sm:$0xff]  ;;  %v7114_v51 = vld [vmem:[%s10657_s10 + $0x78] sm:$0xff] }
 0x8d5   :  { %v5818_v7 = vadd.f32 %v5814_v20, %v5765_v40  ;;  %6746 = vmatpush.msrb.mxu0 %v6720_v0  ;;  %v7128_v0 = vld [vmem:[%s10657_s10 + $0xe8] sm:$0xff]  ;;  %7156 = vmatpush.msra.mxu3 %v7129_v8  ;;  %v7126_v20 = vld [vmem:[%s10657_s10 + $0xd8] sm:$0xff] }
 0x8d6   :  { %6872 = vmatpush.msrb.mxu1 %v6827_v45  ;;  %7784 = vmatmul.msk.f32.vlgmr.msrb.gmra.mxu0 %vm606_vm2, %v6728_v10  ;;  %v7127_v45 = vld [vmem:[%s10657_s10 + $0xe0] sm:$0xff] }
 0x8d7   :  { %7789 = vmatmul.msk.f32.vlgmr.msrb.gmra.mxu1 %vm606_vm2, %v6834_v11  ;;  %6849 = vmatpush.msra.mxu0 %v6832_v13 }
 0x8d8   :  { %6975 = vmatpush.msra.mxu1 %v6939_v6  ;;  %7135 = vmatpush.msrb.mxu2 %v7114_v51  ;;  %v7113_v6 = vld [vmem:[%s10657_s10 + $0x70] sm:$0xff] }
 0x8d9   :  { %6850 = vmatpush.msra.mxu0 %v6830_v53  ;;  %7157 = vmatpush.msra.mxu3 %v7128_v0  ;;  %v7125_v53 = vld [vmem:[%s10657_s10 + $0xd0] sm:$0xff] }
 0x8da   :  { %6976 = vmatpush.msra.mxu1 %v6937_v9  ;;  %v7112_v9 = vld [vmem:[%s10657_s10 + $0x68] sm:$0xff]  ;;  %7136 = vmatpush.msrb.mxu2 %v7113_v6 }
 0x8db   :  { %v5847_v33 = vpop.f32.mrf.mxu0  ;;  %6851 = vmatpush.msra.mxu0 %v6828_v3  ;;  %7158 = vmatpush.msra.mxu3 %v7127_v45  ;;  %v7124_v3 = vld [vmem:[%s10657_s10 + $0xc8] sm:$0xff] }
 0x8dc   :  { %v5870_v41 = vadd.f32 %v5847_v33, %v5817_v21  ;;  %v5867_v50 = vpop.f32.mrf.mxu1  ;;  %6977 = vmatpush.msra.mxu1 %v6935_v54  ;;  %v6503_v21 = vpop.f32.mrf.mxu3  ;;  %v7123_v33 = vld [vmem:[%s10657_s10 + $0xc0] sm:$0xff]  ;;  %7137 = vmatpush.msrb.mxu2 %v7112_v9 }
 0x8dd   :  { %v5871_v1 = vadd.f32 %v5867_v50, %v5818_v7  ;;  %6852 = vmatpush.msra.mxu0 %v6826_v30  ;;  %7159 = vmatpush.msra.mxu3 %v7126_v20  ;;  %v7111_v30 = vld [vmem:[%s10657_s10 + $0x60] sm:$0xff]  ;;  %v7122_v50 = vld [vmem:[%s10657_s10 + $0xb8] sm:$0xff] }
 0x8de   :  { %6978 = vmatpush.msra.mxu1 %v6933_v43  ;;  %7788 = vmatmul.msk.f32.vlgmr.msra.gmra.mxu0 %vm606_vm2, %v6834_v11 }
 0x8df   :  { %7793 = vmatmul.msk.f32.vlgmr.msra.gmra.mxu1 %vm606_vm2, %v6940_v42  ;;  %6955 = vmatpush.msrb.mxu0 %v6938_v27 }
 0x8e0   :  { %7081 = vmatpush.msrb.mxu1 %v7045_v56  ;;  %7160 = vmatpush.msra.mxu3 %v7125_v53 }
 0x8e1   :  { %6956 = vmatpush.msrb.mxu0 %v6936_v32  ;;  %7138 = vmatpush.msrb.mxu2 %v7111_v30 }
 0x8e2   :  { %7082 = vmatpush.msrb.mxu1 %v7043_v59  ;;  %7161 = vmatpush.msra.mxu3 %v7124_v3  ;;  %v7109_v59 = vld [vmem:[%s10657_s10 + $0x50] sm:$0xff] }
 0x8e3   :  { %v5900_v60 = vpop.f32.mrf.mxu0  ;;  %6957 = vmatpush.msrb.mxu0 %v6934_v63  ;;  %v7121_v63 = vld [vmem:[%s10657_s10 + $0xb0] sm:$0xff] }
 0x8e4   :  { %v5923_v24 = vadd.f32 %v5900_v60, %v5870_v41  ;;  %v5920_v47 = vpop.f32.mrf.mxu1  ;;  %7083 = vmatpush.msrb.mxu1 %v7041_v55  ;;  %v7110_v41 = vld [vmem:[%s10657_s10 + $0x58] sm:$0xff]  ;;  %v6609_v27 = vpop.f32.mrf.mxu3  ;;  %7162 = vmatpush.msra.mxu3 %v7123_v33  ;;  %v7108_v55 = vld [vmem:[%s10657_s10 + $0x48] sm:$0xff] }
 0x8e5   :  { %v5924_v18 = vadd.f32 %v5920_v47, %v5871_v1  ;;  %6958 = vmatpush.msrb.mxu0 %v6932_v4  ;;  %7139 = vmatpush.msrb.mxu2 %v7110_v41  ;;  %v7120_v4 = vld [vmem:[%s10657_s10 + $0xa8] sm:$0xff] }
 0x8e6   :  { %7084 = vmatpush.msrb.mxu1 %v7039_v22  ;;  %7792 = vmatmul.msk.f32.vlgmr.msrb.gmra.mxu0 %vm606_vm2, %v6940_v42  ;;  %v7107_v22 = vld [vmem:[%s10657_s10 + $0x40] sm:$0xff] }
 0x8e7   :  { %7797 = vmatmul.msk.f32.vlgmr.msrb.gmra.mxu1 %vm606_vm2, %v7046_v61  ;;  %7061 = vmatpush.msra.mxu0 %v7044_v36  ;;  %v6589_v36 = vpop.f32.mrf.mxu2 }
 0x8e8   :  { %7163 = vmatpush.msra.mxu3 %v7122_v50  ;;  %7140 = vmatpush.msrb.mxu2 %v7109_v59 }
 0x8e9   :  { %7062 = vmatpush.msra.mxu0 %v7042_v49  ;;  %v7118_v49 = vld [vmem:[%s10657_s10 + $0x98] sm:$0xff] }
 0x8ea   :  { %7164 = vmatpush.msra.mxu3 %v7121_v63  ;;  %7141 = vmatpush.msrb.mxu2 %v7108_v55 }
 0x8eb   :  { %v5953_v62 = vpop.f32.mrf.mxu0  ;;  %7063 = vmatpush.msra.mxu0 %v7040_v19 }
 0x8ec   :  { %v5976_v34 = vadd.f32 %v5953_v62, %v5923_v24  ;;  %v5973_v44 = vpop.f32.mrf.mxu1  ;;  %v7119_v24 = vld [vmem:[%s10657_s10 + $0xa0] sm:$0xff]  ;;  %7165 = vmatpush.msra.mxu3 %v7120_v4  ;;  %7142 = vmatpush.msrb.mxu2 %v7107_v22  ;;  %v6715_v62 = vpop.f32.mrf.mxu3 }
 0x8ed   :  { %v5977_v5 = vadd.f32 %v5973_v44, %v5924_v18  ;;  %7064 = vmatpush.msra.mxu0 %v7038_v31 }
 0x8ee   :  { %7796 = vmatmul.msk.f32.vlgmr.msra.gmra.mxu0 %vm606_vm2, %v7046_v61  ;;  %v7106_v61 = vld [vmem:[%s10657_s10 + $0x38] sm:$0xff]  ;;  %7166 = vmatpush.msra.mxu3 %v7119_v24 }
 0x8ef   :  { %7143 = vmatpush.msrb.mxu2 %v7106_v61 }
 0x8f0   :  { %7167 = vmatpush.msra.mxu3 %v7118_v49  ;;  %v7828_v49 = vld [vmem:[#allocation18] ss:$0 sm:$0xff] }
 0x8f3   :  { %v6006_v35 = vpop.f32.mrf.mxu0 }
 0x8f4   :  { %v6029_v38 = vadd.f32 %v6006_v35, %v5976_v34  ;;  %v6026_v48 = vpop.f32.mrf.mxu1 }
 0x8f5   :  { %v6030_v29 = vadd.f32 %v6026_v48, %v5977_v5  ;;  %v7117_v48 = vld [vmem:[%s10657_s10 + $0x90] sm:$0xff] }
 0x8f6   :  { %7168 = vmatpush.msra.mxu3 %v7117_v48 }
 0x8fb   :  { %v6059_v2 = vpop.f32.mrf.mxu0 }
 0x8fc   :  { %v6082_v17 = vadd.f32 %v6059_v2, %v6029_v38  ;;  %v6079_v25 = vpop.f32.mrf.mxu1  ;;  %v7105_v38 = vld [vmem:[%s10657_s10 + $0x30] sm:$0xff]  ;;  %v7104_v2 = vld [vmem:[%s10657_s10 + $0x28] sm:$0xff] }
 0x8fd   :  { %v6083_v28 = vadd.f32 %v6079_v25, %v6030_v29  ;;  %7144 = vmatpush.msrb.mxu2 %v7105_v38 }
 0x8ff   :  { %7145 = vmatpush.msrb.mxu2 %v7104_v2 }
 0x903   :  { %v6112_v58 = vpop.f32.mrf.mxu0 }
 0x904   :  { %v6135_v37 = vadd.f32 %v6112_v58, %v6082_v17  ;;  %v6132_v26 = vpop.f32.mrf.mxu1  ;;  %v7116_v17 = vld [vmem:[%s10657_s10 + $0x88] sm:$0xff]  ;;  %v7115_v58 = vld [vmem:[%s10657_s10 + $0x80] sm:$0xff] }
 0x905   :  { %v6136_v11 = vadd.f32 %v6132_v26, %v6083_v28  ;;  %v7103_v28 = vld [vmem:[%s10657_s10 + $0x20] sm:$0xff]  ;;  %7169 = vmatpush.msra.mxu3 %v7116_v17  ;;  %v7102_v26 = vld [vmem:[%s10657_s10 + $0x18] sm:$0xff] }
 0x906   :  { %7146 = vmatpush.msrb.mxu2 %v7103_v28 }
 0x907   :  { %7170 = vmatpush.msra.mxu3 %v7115_v58 }
 0x908   :  { %7147 = vmatpush.msrb.mxu2 %v7102_v26 }
 0x90a   :  { %7148 = vmatpush.msrb.mxu2 %v7101_v14 }
 0x90b   :  { %v6165_v16 = vpop.f32.mrf.mxu0 }
 0x90c   :  { %v6185_v23 = vpop.f32.mrf.mxu1  ;;  %v6188_v47 = vadd.f32 %v6165_v16, %v6135_v37  ;;  %v6695_v16 = vpop.f32.mrf.mxu2 }
 0x90d   :  { %v6189_v54 = vadd.f32 %v6185_v23, %v6136_v11 }
 0x913   :  { %v10533_v52 = vpop.f32.mrf.mxu0 }
 0x914   :  { %v6238_v12 = vpop.f32.mrf.mxu1  ;;  %v6241_v19 = vadd.f32 %v10533_v52, %v6188_v47 }
 0x915   :  { %v6242_v43 = vadd.f32 %v6238_v12, %v6189_v54 }
 0x91b   :  { %v10535_v40 = vpop.f32.mrf.mxu0 }
 0x91c   :  { %v6291_v15 = vpop.f32.mrf.mxu1  ;;  %v6294_v34 = vadd.f32 %v10535_v40, %v6241_v19 }
 0x91d   :  { %v6295_v1 = vadd.f32 %v6291_v15, %v6242_v43 }
 0x923   :  { %v10537_v10 = vpop.f32.mrf.mxu0 }
 0x924   :  { %v6344_v57 = vpop.f32.mrf.mxu1  ;;  %v6347_v35 = vadd.f32 %v10537_v10, %v6294_v34  ;;  %v6821_v10 = vpop.f32.mrf.mxu3 }
 0x925   :  { %v6348_v32 = vadd.f32 %v6344_v57, %v6295_v1 }
 0x92b   :  { %v10542_v39 = vpop.f32.mrf.mxu0 }
 0x92c   :  { %v6397_v46 = vpop.f32.mrf.mxu1  ;;  %v6400_v25 = vadd.f32 %v10542_v39, %v6347_v35  ;;  %v7100_v39 = vld [vmem:[%s10657_s10 + $0x8] sm:$0xff]  ;;  %v6927_v11 = vpop.f32.mrf.mxu3 }
 0x92d   :  { %v6401_v60 = vadd.f32 %v6397_v46, %v6348_v32  ;;  %v7099_v46 = vld [vmem:[%s10657_s10] sm:$0xff]  ;;  %7149 = vmatpush.msrb.mxu2 %v7100_v39  ;;  %s8126_s10 = smov [#allocation20]  }
 0x92e   :  { %s7182_s5 = sshll.u32 %s8126_s10, 4  ;;  %s7183_s5 = int_to_ptr.vmem [resolvable:$true] %s7182_s5 }
 0x92f   :  { %7150 = vmatpush.msrb.mxu2 %v7099_v46 }
 0x933   :  { %v10559_v13 = vpop.f32.mrf.mxu0 }
 0x934   :  { %v6450_v7 = vpop.f32.mrf.mxu1  ;;  %v6453_v37 = vadd.f32 %v10559_v13, %v6400_v25  ;;  %v6801_v13 = vpop.f32.mrf.mxu2 }
 0x935   :  { %v6454_v18 = vadd.f32 %v6450_v7, %v6401_v60  ;;  %v7033_v1 = vpop.f32.mrf.mxu3 }
 0x937   :  { %v6507_v5 = vadd.f32 %v6503_v21, %v6454_v18 }
 0x93b   :  { %v6483_v42 = vpop.f32.mrf.mxu0 }
 0x93c   :  { %v6556_v56 = vpop.f32.mrf.mxu1  ;;  %v6506_v12 = vadd.f32 %v6483_v42, %v6453_v37  ;;  %v6907_v43 = vpop.f32.mrf.mxu2 }
 0x93d   :  { %v6560_v29 = vadd.f32 %v6556_v56, %v6507_v5 }
 0x93f   :  { %v6613_v23 = vadd.f32 %v6609_v27, %v6560_v29  ;;  %v7091_v27 = vld [vmem:[#allocation17] sm:$0x3] }
 0x940   :  { %v7094_v32 = vperm.slane %v7091_v27, 1  ;;  %v7093_v47 = vperm.slane %v7091_v27, 0 }
 0x943   :  { %v6536_v31 = vpop.f32.mrf.mxu0 }
 0x944   :  { %v6662_v44 = vpop.f32.mrf.mxu1  ;;  %v6559_v57 = vadd.f32 %v6536_v31, %v6506_v12  ;;  %v7013_v22 = vpop.f32.mrf.mxu2 }
 0x945   :  { %v6666_v15 = vadd.f32 %v6662_v44, %v6613_v23 }
 0x946   :  { %v6612_v0 = vadd.f32 %v6589_v36, %v6559_v57 }
 0x947   :  { %v6719_v8 = vadd.f32 %v6715_v62, %v6666_v15 }
 0x94b   :  { %v6642_v52 = vpop.f32.mrf.mxu0 }
 0x94c   :  { %v6768_v40 = vpop.f32.mrf.mxu1  ;;  %v6665_v21 = vadd.f32 %v6642_v52, %v6612_v0 }
 0x94d   :  { %v6772_v51 = vadd.f32 %v6768_v40, %v6719_v8 }
 0x94e   :  { %v6718_v6 = vadd.f32 %v6695_v16, %v6665_v21 }
 0x94f   :  { %v6825_v7 = vadd.f32 %v6821_v10, %v6772_v51 }
 0x953   :  { %v6748_v45 = vpop.f32.mrf.mxu0 }
 0x954   :  { %v6874_v20 = vpop.f32.mrf.mxu1  ;;  %v6771_v9 = vadd.f32 %v6748_v45, %v6718_v6 }
 0x955   :  { %v6878_v53 = vadd.f32 %v6874_v20, %v6825_v7 }
 0x956   :  { %v6824_v33 = vadd.f32 %v6801_v13, %v6771_v9 }
 0x957   :  { %v6931_v30 = vadd.f32 %v6927_v11, %v6878_v53 }
 0x95b   :  { %v6854_v3 = vpop.f32.mrf.mxu0 }
 0x95c   :  { %v6980_v54 = vpop.f32.mrf.mxu1  ;;  %v6877_v50 = vadd.f32 %v6854_v3, %v6824_v33 }
 0x95d   :  { %v6984_v41 = vadd.f32 %v6980_v54, %v6931_v30 }
 0x95e   :  { %v6930_v59 = vadd.f32 %v6907_v43, %v6877_v50 }
 0x95f   :  { %v7037_v56 = vadd.f32 %v7033_v1, %v6984_v41 }
 0x963   :  { %v6960_v42 = vpop.f32.mrf.mxu0 }
 0x964   :  { %v7086_v63 = vpop.f32.mrf.mxu1  ;;  %v6983_v4 = vadd.f32 %v6960_v42, %v6930_v59 }
 0x965   :  { %v7090_v55 = vadd.f32 %v7086_v63, %v7037_v56 }
 0x966   :  { %v7036_v24 = vadd.f32 %v7013_v22, %v6983_v4 }
 0x967   :  { %v7098_v60 = vadd.f32 %v7094_v32, %v7090_v55 }
 0x969   :  { %7171 = vmatmul.f32.vlgmr.msra.gmra.mxu3 %v7098_v60 }
 0x96b   :  { %v7066_v36 = vpop.f32.mrf.mxu0 }
 0x96c   :  { %v7089_v18 = vadd.f32 %v7066_v36, %v7036_v24 }
 0x96e   :  { %v7097_v61 = vadd.f32 %v7093_v47, %v7089_v18 }
 0x970   :  { %7151 = vmatmul.f32.vlgmr.msrb.gmra.mxu2 %v7097_v61 }
 0x9ec   :  { %v7172_v62 = vpop.f32.mrf.mxu3 }
 0x9f3   :  { %v7152_v19 = vpop.f32.mrf.mxu2 }
 0x9f4   :  { %v7153_v31 = vadd.f32 %v7828_v49, %v7152_v19 }
 0x9f6   :  { %v7173_v34 = vadd.f32 %v7172_v62, %v7153_v31 }
 0x9f8   :  { %7176 = vst.msk [vmem:[#allocation20] sm:$0x3] %vm7175_vm4, %v7173_v34 }
 0x9f9   :  { %7187 = dma.vmem_to_hbm [thread:$0]  %s7183_s5, 32, %s7185_s25, [#allocation5]  }
 0x9fa   :  { %8107 = dma.done.wait [#allocation5], 32  }
 0x9fb   :  { %8108 = vsyncadd [#allocation5], 4294967264 }
 0x9fc   :  { %7192 = vsyncpa [#allocation4], 1 }
 0x9fd   :  { %7193 = vsyncpa [#allocation7], 1 }
 0x9fe   :  { %7194 = vsyncpa [#allocation10], 1 }
 0x9ff   :  { %7195 = vsyncpa [#allocation13], 1 }
 0xa00   :  { %7196 = vsyncpa [#allocation16], 1 }
 0xa01   :  { %7197 = vsyncpa [#allocation19], 1 }
 0xa02   :  { %7198 = vsyncpa [#allocation5], 1 }

</bundles_post_ra>
